<compile_context>
chip_gen: v6e
topology: v6e:2x2x1
jax: 0.10.0
libtpu: 0.0.40
codegen_flags: <defaults>
</compile_context>

<pallas_src>
import numpy as np

import jax
import jax.numpy as jnp
from jax import lax
from jax.experimental import pallas as pl
from jax.experimental.pallas import tpu as pltpu

TN = 8            # images per grid step (batch tile)
R0 = TN * 32      # conv1-stage rows per tile: (n, h),  h  in [0, 32)
R1 = TN * 16      # pool1/conv2-stage rows:    (n, h1), h1 in [0, 16)
R2 = TN * 8       # pool2/fc-stage rows:       (n, h3), h3 in [0, 8)

_WEIGHT_ORDER = ("A1", "B1", "b1", "C1", "D1",
                 "A2", "B2", "b2", "C2", "D2",
                 "E", "G", "bf1", "Wf2", "bf2", "Wf3", "bf3")


# ----------------------------------------------------------------------------
# Fused Pallas kernel: whole SimpleCNN forward for one batch tile
# ----------------------------------------------------------------------------
def _lenet_kernel(x_ref, a1_ref, b1_ref, bb1_ref, c1_ref, d1_ref,
                  a2_ref, b2_ref, bb2_ref, c2_ref, d2_ref,
                  e_ref, g_ref, fb1_ref, f2_ref, fb2_ref, f3_ref, fb3_ref,
                  out_ref):
    mm = lambda a, b: jnp.dot(a, b, preferred_element_type=jnp.float32)
    x = x_ref[...]                                              # (R0, 96)

    # conv1 (5x5, 3->6) + relu : sum over kh-taps of rowshift @ x @ banded
    acc = mm(mm(a1_ref[0], x), b1_ref[0])
    for i in range(1, 5):
        acc = acc + mm(mm(a1_ref[i], x), b1_ref[i])
    y1 = jnp.maximum(acc + bb1_ref[...], 0.0)                   # (R0, 168)

    # maxpool 2x2 stride 2 (rows then lanes, with compaction)
    ph = jnp.maximum(mm(c1_ref[0], y1), mm(c1_ref[1], y1))      # (R1, 168)
    p1 = jnp.maximum(mm(ph, d1_ref[0]), mm(ph, d1_ref[1]))      # (R1, 84)

    # conv2 (5x5, 6->16) + relu
    acc = mm(mm(a2_ref[0], p1), b2_ref[0])
    for i in range(1, 5):
        acc = acc + mm(mm(a2_ref[i], p1), b2_ref[i])
    y2 = jnp.maximum(acc + bb2_ref[...], 0.0)                   # (R1, 160)

    # maxpool 2x2 stride 2
    qh = jnp.maximum(mm(c2_ref[0], y2), mm(c2_ref[1], y2))      # (R2, 160)
    p2 = jnp.maximum(mm(qh, d2_ref[0]), mm(qh, d2_ref[1]))      # (R2, 80)

    # fc1 (torch (C,H,W) flatten folded into E/G selection+weights) + relu
    acc = mm(mm(e_ref[0], p2), g_ref[0])
    for h in range(1, 5):
        acc = acc + mm(mm(e_ref[h], p2), g_ref[h])
    h1 = jnp.maximum(acc + fb1_ref[...], 0.0)                   # (TN, 120)

    # fc2 + relu, fc3 (output padded to 128 lanes -> lane-dense store)
    h2 = jnp.maximum(mm(h1, f2_ref[...]) + fb2_ref[...], 0.0)   # (TN, 84)
    out_ref[...] = (mm(h2, f3_ref[...]) + fb3_ref[...]).astype(out_ref.dtype)


# ----------------------------------------------------------------------------
# Host-side one-time packing of torch-layout params into kernel operands
# ----------------------------------------------------------------------------
def prepare_params(params):
    f = lambda a: np.asarray(a, dtype=np.float32)
    Wc1, bc1 = f(params["conv1_w"]), f(params["conv1_b"])   # (6,3,5,5), (6,)
    Wc2, bc2 = f(params["conv2_w"]), f(params["conv2_b"])   # (16,6,5,5), (16,)
    Wf1, bf1 = f(params["fc1_w"]), f(params["fc1_b"])       # (120,400), (120,)
    Wf2, bf2 = f(params["fc2_w"]), f(params["fc2_b"])       # (84,120), (84,)
    Wf3, bf3 = f(params["fc3_w"]), f(params["fc3_b"])       # (10,84), (10,)

    # conv1 kh-tap row-shift matrices (block-diagonal per image)
    A1 = np.zeros((5, R0, R0), np.float32)
    for i in range(5):
        for n in range(TN):
            for h in range(32 - i):
                A1[i, n * 32 + h, n * 32 + h + i] = 1.0
    # conv1 banded (kw, cin)->(w, cout) weights: lane 3w+c -> lane 6w+co
    B1 = np.zeros((5, 96, 168), np.float32)
    for i in range(5):
        for j in range(5):
            for w in range(28):
                B1[i, 3 * (w + j):3 * (w + j) + 3, 6 * w:6 * w + 6] = Wc1[:, :, i, j].T
    b1e = np.zeros((1, 168), np.float32)
    for w in range(28):
        b1e[0, 6 * w:6 * w + 6] = bc1

    # pool1 row / lane selection (compacts to 16-row blocks, 84 lanes)
    C1 = np.zeros((2, R1, R0), np.float32)
    for d in range(2):
        for n in range(TN):
            for h1 in range(14):
                C1[d, n * 16 + h1, n * 32 + 2 * h1 + d] = 1.0
    D1 = np.zeros((2, 168, 84), np.float32)
    for d in range(2):
        for w1 in range(14):
            for c in range(6):
                D1[d, 6 * (2 * w1 + d) + c, 6 * w1 + c] = 1.0

    # conv2
    A2 = np.zeros((5, R1, R1), np.float32)
    for i in range(5):
        for n in range(TN):
            for h in range(16 - i):
                A2[i, n * 16 + h, n * 16 + h + i] = 1.0
    B2 = np.zeros((5, 84, 160), np.float32)
    for i in range(5):
        for j in range(5):
            for w2 in range(10):
                B2[i, 6 * (w2 + j):6 * (w2 + j) + 6, 16 * w2:16 * w2 + 16] = Wc2[:, :, i, j].T
    b2e = np.zeros((1, 160), np.float32)
    for w2 in range(10):
        b2e[0, 16 * w2:16 * w2 + 16] = bc2

    # pool2 row / lane selection (compacts to 8-row blocks, 80 lanes)
    C2 = np.zeros((2, R2, R1), np.float32)
    for d in range(2):
        for n in range(TN):
            for h3 in range(5):
                C2[d, n * 8 + h3, n * 16 + 2 * h3 + d] = 1.0
    D2 = np.zeros((2, 160, 80), np.float32)
    for d in range(2):
        for w3 in range(5):
            for co in range(16):
                D2[d, 16 * (2 * w3 + d) + co, 16 * w3 + co] = 1.0

    # fc1: row selection E (picks h3 row per image) + permuted fc1 weight G
    E = np.zeros((5, TN, R2), np.float32)
    for h3 in range(5):
        for n in range(TN):
            E[h3, n, n * 8 + h3] = 1.0
    G = np.zeros((5, 80, 120), np.float32)
    for h3 in range(5):
        for w3 in range(5):
            for co in range(16):
                G[h3, 16 * w3 + co, :] = Wf1[:, co * 25 + h3 * 5 + w3]

    # fc3 padded to 128 output lanes (lane-dense HBM store)
    Wf3p = np.zeros((84, 128), np.float32)
    Wf3p[:, :10] = Wf3.T
    bf3p = np.zeros((1, 128), np.float32)
    bf3p[0, :10] = bf3

    pack = dict(A1=A1, B1=B1, b1=b1e, C1=C1, D1=D1,
                A2=A2, B2=B2, b2=b2e, C2=C2, D2=D2,
                E=E, G=G, bf1=bf1.reshape(1, 120),
                Wf2=np.ascontiguousarray(Wf2.T), bf2=bf2.reshape(1, 84),
                Wf3=Wf3p, bf3=bf3p)
    return {k: jnp.asarray(v) for k, v in pack.items()}


# ----------------------------------------------------------------------------
# Forward wrapper (single fused pallas_call, grid over batch tiles)
# ----------------------------------------------------------------------------
def _full_spec(a):
    zeros = (0,) * a.ndim
    return pl.BlockSpec(a.shape, lambda g: zeros)


def simple_cnn_forward(prep, x_nchw):
    n = x_nchw.shape[0]
    assert x_nchw.shape[1:] == (3, 32, 32), x_nchw.shape
    n_tiles = (n + TN - 1) // TN
    n_pad = n_tiles * TN

    # NCHW -> NHWC -> (N*32, 96): rows = (image, h), lanes = (w, c); pad batch.
    x = jnp.transpose(x_nchw, (0, 2, 3, 1)).reshape(n * 32, 96)
    x = jnp.pad(x, ((0, (n_pad - n) * 32), (0, 0)))

    weights = [prep[k] for k in _WEIGHT_ORDER]

    out = pl.pallas_call(
        _lenet_kernel,
        out_shape=jax.ShapeDtypeStruct((n_pad, 128), jnp.float32),
        grid=(n_tiles,),
        in_specs=[pl.BlockSpec((R0, 96), lambda g: (g, 0))]
                 + [_full_spec(a) for a in weights],
        out_specs=pl.BlockSpec((TN, 128), lambda g: (g, 0)),
        compiler_params=pltpu.CompilerParams(
            dimension_semantics=("parallel",)),
    )(x, *weights)
    return out[:n, :10]


# ----------------------------------------------------------------------------
# Params (torch layouts) and pure-JAX reference
# ----------------------------------------------------------------------------
def init_params(key):
    ks = jax.random.split(key, 10)
    t = lambda k, shape, s: s * jax.random.normal(k, shape, jnp.float32)
    return {
        "conv1_w": t(ks[0], (6, 3, 5, 5), 0.10),   # torch OIHW
        "conv1_b": t(ks[1], (6,), 0.10),
        "conv2_w": t(ks[2], (16, 6, 5, 5), 0.10),
        "conv2_b": t(ks[3], (16,), 0.10),
        "fc1_w": t(ks[4], (120, 400), 0.05),       # torch (out, in)
        "fc1_b": t(ks[5], (120,), 0.05),
        "fc2_w": t(ks[6], (84, 120), 0.05),
        "fc2_b": t(ks[7], (84,), 0.05),
        "fc3_w": t(ks[8], (10, 84), 0.05),
        "fc3_b": t(ks[9], (10,), 0.05),
    }


def reference_forward(params, x_nchw):
    x = jnp.transpose(x_nchw, (0, 2, 3, 1))

    def conv(x, w_oihw, b):
        w = jnp.transpose(w_oihw, (2, 3, 1, 0))   # OIHW -> HWIO
        y = lax.conv_general_dilated(
            x, w, (1, 1), "VALID", dimension_numbers=("NHWC", "HWIO", "NHWC"))
        return jnp.maximum(y + b, 0.0)

    def pool(x):
        return lax.reduce_window(x, -jnp.inf, lax.max,
                                 (1, 2, 2, 1), (1, 2, 2, 1), "VALID")

    x = pool(conv(x, params["conv1_w"], params["conv1_b"]))
    x = pool(conv(x, params["conv2_w"], params["conv2_b"]))
    x = jnp.transpose(x, (0, 3, 1, 2)).reshape(x.shape[0], -1)  # torch flatten
    h = jnp.maximum(x @ params["fc1_w"].T + params["fc1_b"], 0.0)
    h = jnp.maximum(h @ params["fc2_w"].T + params["fc2_b"], 0.0)
    return h @ params["fc3_w"].T + params["fc3_b"]


if __name__ == "__main__":
    key = jax.random.PRNGKey(0)
    k_param, k_x = jax.random.split(key)
    params = init_params(k_param)
    prep = prepare_params(params)              # one-time host-side packing
    # Input implied by the module (fc1 = 16*5*5): NCHW, 3x32x32.
    x = jax.random.normal(k_x, (2, 3, 32, 32), jnp.float32)

    out = jax.jit(simple_cnn_forward)(prep, x)
    out = jax.block_until_ready(out)
    assert out.shape == (2, 10), out.shape

    ref = jax.block_until_ready(reference_forward(params, x))
    err = float(jnp.max(jnp.abs(out - ref)))
    assert jnp.allclose(out, ref, rtol=2e-2, atol=2e-2), f"max abs err {err}"

    print("KERNEL_OK")
</pallas_src>

<mosaic_0001>
module attributes {stable_mosaic.version = 11 : i64} {
  func.func @_lenet_kernel(%arg0: i32, %arg1: memref<256x96xf32, #tpu.memory_space<vmem>>, %arg2: memref<5x256x256xf32, #tpu.memory_space<vmem>>, %arg3: memref<5x96x168xf32, #tpu.memory_space<vmem>>, %arg4: memref<1x168xf32, #tpu.memory_space<vmem>>, %arg5: memref<2x128x256xf32, #tpu.memory_space<vmem>>, %arg6: memref<2x168x84xf32, #tpu.memory_space<vmem>>, %arg7: memref<5x128x128xf32, #tpu.memory_space<vmem>>, %arg8: memref<5x84x160xf32, #tpu.memory_space<vmem>>, %arg9: memref<1x160xf32, #tpu.memory_space<vmem>>, %arg10: memref<2x64x128xf32, #tpu.memory_space<vmem>>, %arg11: memref<2x160x80xf32, #tpu.memory_space<vmem>>, %arg12: memref<5x8x64xf32, #tpu.memory_space<vmem>>, %arg13: memref<5x80x120xf32, #tpu.memory_space<vmem>>, %arg14: memref<1x120xf32, #tpu.memory_space<vmem>>, %arg15: memref<120x84xf32, #tpu.memory_space<vmem>>, %arg16: memref<1x84xf32, #tpu.memory_space<vmem>>, %arg17: memref<84x128xf32, #tpu.memory_space<vmem>>, %arg18: memref<1x128xf32, #tpu.memory_space<vmem>>, %arg19: memref<8x128xf32, #tpu.memory_space<vmem>>) attributes {dimension_semantics = [#tpu.dimension_semantics<parallel>], iteration_bounds = array<i64: 1>, scalar_prefetch = 0 : i64, scratch_operands = 0 : i64, tpu.core_type = #tpu.core_type<tc>, window_params = [{transform_indices = @transform_0, window_bounds = array<i64: 256, 96>}, {pipeline_mode = #tpu.pipeline_mode<synchronous>, transform_indices = @transform_1, window_bounds = array<i64: 5, 256, 256>}, {pipeline_mode = #tpu.pipeline_mode<synchronous>, transform_indices = @transform_2, window_bounds = array<i64: 5, 96, 168>}, {pipeline_mode = #tpu.pipeline_mode<synchronous>, transform_indices = @transform_3, window_bounds = array<i64: 1, 168>}, {pipeline_mode = #tpu.pipeline_mode<synchronous>, transform_indices = @transform_4, window_bounds = array<i64: 2, 128, 256>}, {pipeline_mode = #tpu.pipeline_mode<synchronous>, transform_indices = @transform_5, window_bounds = array<i64: 2, 168, 84>}, {pipeline_mode = #tpu.pipeline_mode<synchronous>, transform_indices = @transform_6, window_bounds = array<i64: 5, 128, 128>}, {pipeline_mode = #tpu.pipeline_mode<synchronous>, transform_indices = @transform_7, window_bounds = array<i64: 5, 84, 160>}, {pipeline_mode = #tpu.pipeline_mode<synchronous>, transform_indices = @transform_8, window_bounds = array<i64: 1, 160>}, {pipeline_mode = #tpu.pipeline_mode<synchronous>, transform_indices = @transform_9, window_bounds = array<i64: 2, 64, 128>}, {pipeline_mode = #tpu.pipeline_mode<synchronous>, transform_indices = @transform_10, window_bounds = array<i64: 2, 160, 80>}, {pipeline_mode = #tpu.pipeline_mode<synchronous>, transform_indices = @transform_11, window_bounds = array<i64: 5, 8, 64>}, {pipeline_mode = #tpu.pipeline_mode<synchronous>, transform_indices = @transform_12, window_bounds = array<i64: 5, 80, 120>}, {pipeline_mode = #tpu.pipeline_mode<synchronous>, transform_indices = @transform_13, window_bounds = array<i64: 1, 120>}, {pipeline_mode = #tpu.pipeline_mode<synchronous>, transform_indices = @transform_14, window_bounds = array<i64: 120, 84>}, {pipeline_mode = #tpu.pipeline_mode<synchronous>, transform_indices = @transform_15, window_bounds = array<i64: 1, 84>}, {pipeline_mode = #tpu.pipeline_mode<synchronous>, transform_indices = @transform_16, window_bounds = array<i64: 84, 128>}, {pipeline_mode = #tpu.pipeline_mode<synchronous>, transform_indices = @transform_17, window_bounds = array<i64: 1, 128>}, {transform_indices = @transform_18, window_bounds = array<i64: 8, 128>}]} {
    %c0 = arith.constant 0 : index
    %c0_0 = arith.constant 0 : index
    %0 = vector.load %arg1[%c0, %c0_0] : memref<256x96xf32, #tpu.memory_space<vmem>>, vector<256x96xf32>
    %c0_1 = arith.constant 0 : index
    %c0_2 = arith.constant 0 : index
    %c0_3 = arith.constant 0 : index
    %1 = vector.load %arg2[%c0_1, %c0_2, %c0_3] : memref<5x256x256xf32, #tpu.memory_space<vmem>>, vector<1x256x256xf32>
    %2 = vector.shape_cast %1 : vector<1x256x256xf32> to vector<256x256xf32>
    %cst = arith.constant dense<0.000000e+00> : vector<256x96xf32>
    %3 = tpu.matmul %2, %0, %cst {dimension_numbers = #tpu.dot_dimension_numbers<[1], [0], [0], [1], [0, 0, 1, 1], [], []>} : vector<256x256xf32>, vector<256x96xf32>, vector<256x96xf32> -> vector<256x96xf32>
    %c0_4 = arith.constant 0 : index
    %c0_5 = arith.constant 0 : index
    %c0_6 = arith.constant 0 : index
    %4 = vector.load %arg3[%c0_4, %c0_5, %c0_6] : memref<5x96x168xf32, #tpu.memory_space<vmem>>, vector<1x96x168xf32>
    %5 = vector.shape_cast %4 : vector<1x96x168xf32> to vector<96x168xf32>
    %cst_7 = arith.constant dense<0.000000e+00> : vector<256x168xf32>
    %6 = tpu.matmul %3, %5, %cst_7 {dimension_numbers = #tpu.dot_dimension_numbers<[1], [0], [0], [1], [0, 0, 1, 1], [], []>} : vector<256x96xf32>, vector<96x168xf32>, vector<256x168xf32> -> vector<256x168xf32>
    %c1 = arith.constant 1 : index
    %c0_8 = arith.constant 0 : index
    %c0_9 = arith.constant 0 : index
    %7 = vector.load %arg2[%c1, %c0_8, %c0_9] : memref<5x256x256xf32, #tpu.memory_space<vmem>>, vector<1x256x256xf32>
    %8 = vector.shape_cast %7 : vector<1x256x256xf32> to vector<256x256xf32>
    %cst_10 = arith.constant dense<0.000000e+00> : vector<256x96xf32>
    %9 = tpu.matmul %8, %0, %cst_10 {dimension_numbers = #tpu.dot_dimension_numbers<[1], [0], [0], [1], [0, 0, 1, 1], [], []>} : vector<256x256xf32>, vector<256x96xf32>, vector<256x96xf32> -> vector<256x96xf32>
    %c1_11 = arith.constant 1 : index
    %c0_12 = arith.constant 0 : index
    %c0_13 = arith.constant 0 : index
    %10 = vector.load %arg3[%c1_11, %c0_12, %c0_13] : memref<5x96x168xf32, #tpu.memory_space<vmem>>, vector<1x96x168xf32>
    %11 = vector.shape_cast %10 : vector<1x96x168xf32> to vector<96x168xf32>
    %cst_14 = arith.constant dense<0.000000e+00> : vector<256x168xf32>
    %12 = tpu.matmul %9, %11, %cst_14 {dimension_numbers = #tpu.dot_dimension_numbers<[1], [0], [0], [1], [0, 0, 1, 1], [], []>} : vector<256x96xf32>, vector<96x168xf32>, vector<256x168xf32> -> vector<256x168xf32>
    %13 = arith.addf %6, %12 : vector<256x168xf32>
    %c2 = arith.constant 2 : index
    %c0_15 = arith.constant 0 : index
    %c0_16 = arith.constant 0 : index
    %14 = vector.load %arg2[%c2, %c0_15, %c0_16] : memref<5x256x256xf32, #tpu.memory_space<vmem>>, vector<1x256x256xf32>
    %15 = vector.shape_cast %14 : vector<1x256x256xf32> to vector<256x256xf32>
    %cst_17 = arith.constant dense<0.000000e+00> : vector<256x96xf32>
    %16 = tpu.matmul %15, %0, %cst_17 {dimension_numbers = #tpu.dot_dimension_numbers<[1], [0], [0], [1], [0, 0, 1, 1], [], []>} : vector<256x256xf32>, vector<256x96xf32>, vector<256x96xf32> -> vector<256x96xf32>
    %c2_18 = arith.constant 2 : index
    %c0_19 = arith.constant 0 : index
    %c0_20 = arith.constant 0 : index
    %17 = vector.load %arg3[%c2_18, %c0_19, %c0_20] : memref<5x96x168xf32, #tpu.memory_space<vmem>>, vector<1x96x168xf32>
    %18 = vector.shape_cast %17 : vector<1x96x168xf32> to vector<96x168xf32>
    %cst_21 = arith.constant dense<0.000000e+00> : vector<256x168xf32>
    %19 = tpu.matmul %16, %18, %cst_21 {dimension_numbers = #tpu.dot_dimension_numbers<[1], [0], [0], [1], [0, 0, 1, 1], [], []>} : vector<256x96xf32>, vector<96x168xf32>, vector<256x168xf32> -> vector<256x168xf32>
    %20 = arith.addf %13, %19 : vector<256x168xf32>
    %c3 = arith.constant 3 : index
    %c0_22 = arith.constant 0 : index
    %c0_23 = arith.constant 0 : index
    %21 = vector.load %arg2[%c3, %c0_22, %c0_23] : memref<5x256x256xf32, #tpu.memory_space<vmem>>, vector<1x256x256xf32>
    %22 = vector.shape_cast %21 : vector<1x256x256xf32> to vector<256x256xf32>
    %cst_24 = arith.constant dense<0.000000e+00> : vector<256x96xf32>
    %23 = tpu.matmul %22, %0, %cst_24 {dimension_numbers = #tpu.dot_dimension_numbers<[1], [0], [0], [1], [0, 0, 1, 1], [], []>} : vector<256x256xf32>, vector<256x96xf32>, vector<256x96xf32> -> vector<256x96xf32>
    %c3_25 = arith.constant 3 : index
    %c0_26 = arith.constant 0 : index
    %c0_27 = arith.constant 0 : index
    %24 = vector.load %arg3[%c3_25, %c0_26, %c0_27] : memref<5x96x168xf32, #tpu.memory_space<vmem>>, vector<1x96x168xf32>
    %25 = vector.shape_cast %24 : vector<1x96x168xf32> to vector<96x168xf32>
    %cst_28 = arith.constant dense<0.000000e+00> : vector<256x168xf32>
    %26 = tpu.matmul %23, %25, %cst_28 {dimension_numbers = #tpu.dot_dimension_numbers<[1], [0], [0], [1], [0, 0, 1, 1], [], []>} : vector<256x96xf32>, vector<96x168xf32>, vector<256x168xf32> -> vector<256x168xf32>
    %27 = arith.addf %20, %26 : vector<256x168xf32>
    %c4 = arith.constant 4 : index
    %c0_29 = arith.constant 0 : index
    %c0_30 = arith.constant 0 : index
    %28 = vector.load %arg2[%c4, %c0_29, %c0_30] : memref<5x256x256xf32, #tpu.memory_space<vmem>>, vector<1x256x256xf32>
    %29 = vector.shape_cast %28 : vector<1x256x256xf32> to vector<256x256xf32>
    %cst_31 = arith.constant dense<0.000000e+00> : vector<256x96xf32>
    %30 = tpu.matmul %29, %0, %cst_31 {dimension_numbers = #tpu.dot_dimension_numbers<[1], [0], [0], [1], [0, 0, 1, 1], [], []>} : vector<256x256xf32>, vector<256x96xf32>, vector<256x96xf32> -> vector<256x96xf32>
    %c4_32 = arith.constant 4 : index
    %c0_33 = arith.constant 0 : index
    %c0_34 = arith.constant 0 : index
    %31 = vector.load %arg3[%c4_32, %c0_33, %c0_34] : memref<5x96x168xf32, #tpu.memory_space<vmem>>, vector<1x96x168xf32>
    %32 = vector.shape_cast %31 : vector<1x96x168xf32> to vector<96x168xf32>
    %cst_35 = arith.constant dense<0.000000e+00> : vector<256x168xf32>
    %33 = tpu.matmul %30, %32, %cst_35 {dimension_numbers = #tpu.dot_dimension_numbers<[1], [0], [0], [1], [0, 0, 1, 1], [], []>} : vector<256x96xf32>, vector<96x168xf32>, vector<256x168xf32> -> vector<256x168xf32>
    %34 = arith.addf %27, %33 : vector<256x168xf32>
    %c0_36 = arith.constant 0 : index
    %c0_37 = arith.constant 0 : index
    %35 = vector.load %arg4[%c0_36, %c0_37] : memref<1x168xf32, #tpu.memory_space<vmem>>, vector<1x168xf32>
    %36 = vector.broadcast %35 : vector<1x168xf32> to vector<256x168xf32>
    %37 = arith.addf %34, %36 : vector<256x168xf32>
    %cst_38 = arith.constant 0.000000e+00 : f32
    %38 = vector.broadcast %cst_38 : f32 to vector<256x168xf32>
    %39 = arith.maximumf %37, %38 : vector<256x168xf32>
    %c0_39 = arith.constant 0 : index
    %c0_40 = arith.constant 0 : index
    %c0_41 = arith.constant 0 : index
    %40 = vector.load %arg5[%c0_39, %c0_40, %c0_41] : memref<2x128x256xf32, #tpu.memory_space<vmem>>, vector<1x128x256xf32>
    %41 = vector.shape_cast %40 : vector<1x128x256xf32> to vector<128x256xf32>
    %cst_42 = arith.constant dense<0.000000e+00> : vector<128x168xf32>
    %42 = tpu.matmul %41, %39, %cst_42 {dimension_numbers = #tpu.dot_dimension_numbers<[1], [0], [0], [1], [0, 0, 1, 1], [], []>} : vector<128x256xf32>, vector<256x168xf32>, vector<128x168xf32> -> vector<128x168xf32>
    %c1_43 = arith.constant 1 : index
    %c0_44 = arith.constant 0 : index
    %c0_45 = arith.constant 0 : index
    %43 = vector.load %arg5[%c1_43, %c0_44, %c0_45] : memref<2x128x256xf32, #tpu.memory_space<vmem>>, vector<1x128x256xf32>
    %44 = vector.shape_cast %43 : vector<1x128x256xf32> to vector<128x256xf32>
    %cst_46 = arith.constant dense<0.000000e+00> : vector<128x168xf32>
    %45 = tpu.matmul %44, %39, %cst_46 {dimension_numbers = #tpu.dot_dimension_numbers<[1], [0], [0], [1], [0, 0, 1, 1], [], []>} : vector<128x256xf32>, vector<256x168xf32>, vector<128x168xf32> -> vector<128x168xf32>
    %46 = arith.maximumf %42, %45 : vector<128x168xf32>
    %c0_47 = arith.constant 0 : index
    %c0_48 = arith.constant 0 : index
    %c0_49 = arith.constant 0 : index
    %47 = vector.load %arg6[%c0_47, %c0_48, %c0_49] : memref<2x168x84xf32, #tpu.memory_space<vmem>>, vector<1x168x84xf32>
    %48 = vector.shape_cast %47 : vector<1x168x84xf32> to vector<168x84xf32>
    %cst_50 = arith.constant dense<0.000000e+00> : vector<128x84xf32>
    %49 = tpu.matmul %46, %48, %cst_50 {dimension_numbers = #tpu.dot_dimension_numbers<[1], [0], [0], [1], [0, 0, 1, 1], [], []>} : vector<128x168xf32>, vector<168x84xf32>, vector<128x84xf32> -> vector<128x84xf32>
    %c1_51 = arith.constant 1 : index
    %c0_52 = arith.constant 0 : index
    %c0_53 = arith.constant 0 : index
    %50 = vector.load %arg6[%c1_51, %c0_52, %c0_53] : memref<2x168x84xf32, #tpu.memory_space<vmem>>, vector<1x168x84xf32>
    %51 = vector.shape_cast %50 : vector<1x168x84xf32> to vector<168x84xf32>
    %cst_54 = arith.constant dense<0.000000e+00> : vector<128x84xf32>
    %52 = tpu.matmul %46, %51, %cst_54 {dimension_numbers = #tpu.dot_dimension_numbers<[1], [0], [0], [1], [0, 0, 1, 1], [], []>} : vector<128x168xf32>, vector<168x84xf32>, vector<128x84xf32> -> vector<128x84xf32>
    %53 = arith.maximumf %49, %52 : vector<128x84xf32>
    %c0_55 = arith.constant 0 : index
    %c0_56 = arith.constant 0 : index
    %c0_57 = arith.constant 0 : index
    %54 = vector.load %arg7[%c0_55, %c0_56, %c0_57] : memref<5x128x128xf32, #tpu.memory_space<vmem>>, vector<1x128x128xf32>
    %55 = vector.shape_cast %54 : vector<1x128x128xf32> to vector<128x128xf32>
    %cst_58 = arith.constant dense<0.000000e+00> : vector<128x84xf32>
    %56 = tpu.matmul %55, %53, %cst_58 {dimension_numbers = #tpu.dot_dimension_numbers<[1], [0], [0], [1], [0, 0, 1, 1], [], []>} : vector<128x128xf32>, vector<128x84xf32>, vector<128x84xf32> -> vector<128x84xf32>
    %c0_59 = arith.constant 0 : index
    %c0_60 = arith.constant 0 : index
    %c0_61 = arith.constant 0 : index
    %57 = vector.load %arg8[%c0_59, %c0_60, %c0_61] : memref<5x84x160xf32, #tpu.memory_space<vmem>>, vector<1x84x160xf32>
    %58 = vector.shape_cast %57 : vector<1x84x160xf32> to vector<84x160xf32>
    %cst_62 = arith.constant dense<0.000000e+00> : vector<128x160xf32>
    %59 = tpu.matmul %56, %58, %cst_62 {dimension_numbers = #tpu.dot_dimension_numbers<[1], [0], [0], [1], [0, 0, 1, 1], [], []>} : vector<128x84xf32>, vector<84x160xf32>, vector<128x160xf32> -> vector<128x160xf32>
    %c1_63 = arith.constant 1 : index
    %c0_64 = arith.constant 0 : index
    %c0_65 = arith.constant 0 : index
    %60 = vector.load %arg7[%c1_63, %c0_64, %c0_65] : memref<5x128x128xf32, #tpu.memory_space<vmem>>, vector<1x128x128xf32>
    %61 = vector.shape_cast %60 : vector<1x128x128xf32> to vector<128x128xf32>
    %cst_66 = arith.constant dense<0.000000e+00> : vector<128x84xf32>
    %62 = tpu.matmul %61, %53, %cst_66 {dimension_numbers = #tpu.dot_dimension_numbers<[1], [0], [0], [1], [0, 0, 1, 1], [], []>} : vector<128x128xf32>, vector<128x84xf32>, vector<128x84xf32> -> vector<128x84xf32>
    %c1_67 = arith.constant 1 : index
    %c0_68 = arith.constant 0 : index
    %c0_69 = arith.constant 0 : index
    %63 = vector.load %arg8[%c1_67, %c0_68, %c0_69] : memref<5x84x160xf32, #tpu.memory_space<vmem>>, vector<1x84x160xf32>
    %64 = vector.shape_cast %63 : vector<1x84x160xf32> to vector<84x160xf32>
    %cst_70 = arith.constant dense<0.000000e+00> : vector<128x160xf32>
    %65 = tpu.matmul %62, %64, %cst_70 {dimension_numbers = #tpu.dot_dimension_numbers<[1], [0], [0], [1], [0, 0, 1, 1], [], []>} : vector<128x84xf32>, vector<84x160xf32>, vector<128x160xf32> -> vector<128x160xf32>
    %66 = arith.addf %59, %65 : vector<128x160xf32>
    %c2_71 = arith.constant 2 : index
    %c0_72 = arith.constant 0 : index
    %c0_73 = arith.constant 0 : index
    %67 = vector.load %arg7[%c2_71, %c0_72, %c0_73] : memref<5x128x128xf32, #tpu.memory_space<vmem>>, vector<1x128x128xf32>
    %68 = vector.shape_cast %67 : vector<1x128x128xf32> to vector<128x128xf32>
    %cst_74 = arith.constant dense<0.000000e+00> : vector<128x84xf32>
    %69 = tpu.matmul %68, %53, %cst_74 {dimension_numbers = #tpu.dot_dimension_numbers<[1], [0], [0], [1], [0, 0, 1, 1], [], []>} : vector<128x128xf32>, vector<128x84xf32>, vector<128x84xf32> -> vector<128x84xf32>
    %c2_75 = arith.constant 2 : index
    %c0_76 = arith.constant 0 : index
    %c0_77 = arith.constant 0 : index
    %70 = vector.load %arg8[%c2_75, %c0_76, %c0_77] : memref<5x84x160xf32, #tpu.memory_space<vmem>>, vector<1x84x160xf32>
    %71 = vector.shape_cast %70 : vector<1x84x160xf32> to vector<84x160xf32>
    %cst_78 = arith.constant dense<0.000000e+00> : vector<128x160xf32>
    %72 = tpu.matmul %69, %71, %cst_78 {dimension_numbers = #tpu.dot_dimension_numbers<[1], [0], [0], [1], [0, 0, 1, 1], [], []>} : vector<128x84xf32>, vector<84x160xf32>, vector<128x160xf32> -> vector<128x160xf32>
    %73 = arith.addf %66, %72 : vector<128x160xf32>
    %c3_79 = arith.constant 3 : index
    %c0_80 = arith.constant 0 : index
    %c0_81 = arith.constant 0 : index
    %74 = vector.load %arg7[%c3_79, %c0_80, %c0_81] : memref<5x128x128xf32, #tpu.memory_space<vmem>>, vector<1x128x128xf32>
    %75 = vector.shape_cast %74 : vector<1x128x128xf32> to vector<128x128xf32>
    %cst_82 = arith.constant dense<0.000000e+00> : vector<128x84xf32>
    %76 = tpu.matmul %75, %53, %cst_82 {dimension_numbers = #tpu.dot_dimension_numbers<[1], [0], [0], [1], [0, 0, 1, 1], [], []>} : vector<128x128xf32>, vector<128x84xf32>, vector<128x84xf32> -> vector<128x84xf32>
    %c3_83 = arith.constant 3 : index
    %c0_84 = arith.constant 0 : index
    %c0_85 = arith.constant 0 : index
    %77 = vector.load %arg8[%c3_83, %c0_84, %c0_85] : memref<5x84x160xf32, #tpu.memory_space<vmem>>, vector<1x84x160xf32>
    %78 = vector.shape_cast %77 : vector<1x84x160xf32> to vector<84x160xf32>
    %cst_86 = arith.constant dense<0.000000e+00> : vector<128x160xf32>
    %79 = tpu.matmul %76, %78, %cst_86 {dimension_numbers = #tpu.dot_dimension_numbers<[1], [0], [0], [1], [0, 0, 1, 1], [], []>} : vector<128x84xf32>, vector<84x160xf32>, vector<128x160xf32> -> vector<128x160xf32>
    %80 = arith.addf %73, %79 : vector<128x160xf32>
    %c4_87 = arith.constant 4 : index
    %c0_88 = arith.constant 0 : index
    %c0_89 = arith.constant 0 : index
    %81 = vector.load %arg7[%c4_87, %c0_88, %c0_89] : memref<5x128x128xf32, #tpu.memory_space<vmem>>, vector<1x128x128xf32>
    %82 = vector.shape_cast %81 : vector<1x128x128xf32> to vector<128x128xf32>
    %cst_90 = arith.constant dense<0.000000e+00> : vector<128x84xf32>
    %83 = tpu.matmul %82, %53, %cst_90 {dimension_numbers = #tpu.dot_dimension_numbers<[1], [0], [0], [1], [0, 0, 1, 1], [], []>} : vector<128x128xf32>, vector<128x84xf32>, vector<128x84xf32> -> vector<128x84xf32>
    %c4_91 = arith.constant 4 : index
    %c0_92 = arith.constant 0 : index
    %c0_93 = arith.constant 0 : index
    %84 = vector.load %arg8[%c4_91, %c0_92, %c0_93] : memref<5x84x160xf32, #tpu.memory_space<vmem>>, vector<1x84x160xf32>
    %85 = vector.shape_cast %84 : vector<1x84x160xf32> to vector<84x160xf32>
    %cst_94 = arith.constant dense<0.000000e+00> : vector<128x160xf32>
    %86 = tpu.matmul %83, %85, %cst_94 {dimension_numbers = #tpu.dot_dimension_numbers<[1], [0], [0], [1], [0, 0, 1, 1], [], []>} : vector<128x84xf32>, vector<84x160xf32>, vector<128x160xf32> -> vector<128x160xf32>
    %87 = arith.addf %80, %86 : vector<128x160xf32>
    %c0_95 = arith.constant 0 : index
    %c0_96 = arith.constant 0 : index
    %88 = vector.load %arg9[%c0_95, %c0_96] : memref<1x160xf32, #tpu.memory_space<vmem>>, vector<1x160xf32>
    %89 = vector.broadcast %88 : vector<1x160xf32> to vector<128x160xf32>
    %90 = arith.addf %87, %89 : vector<128x160xf32>
    %cst_97 = arith.constant 0.000000e+00 : f32
    %91 = vector.broadcast %cst_97 : f32 to vector<128x160xf32>
    %92 = arith.maximumf %90, %91 : vector<128x160xf32>
    %c0_98 = arith.constant 0 : index
    %c0_99 = arith.constant 0 : index
    %c0_100 = arith.constant 0 : index
    %93 = vector.load %arg10[%c0_98, %c0_99, %c0_100] : memref<2x64x128xf32, #tpu.memory_space<vmem>>, vector<1x64x128xf32>
    %94 = vector.shape_cast %93 : vector<1x64x128xf32> to vector<64x128xf32>
    %cst_101 = arith.constant dense<0.000000e+00> : vector<64x160xf32>
    %95 = tpu.matmul %94, %92, %cst_101 {dimension_numbers = #tpu.dot_dimension_numbers<[1], [0], [0], [1], [0, 0, 1, 1], [], []>} : vector<64x128xf32>, vector<128x160xf32>, vector<64x160xf32> -> vector<64x160xf32>
    %c1_102 = arith.constant 1 : index
    %c0_103 = arith.constant 0 : index
    %c0_104 = arith.constant 0 : index
    %96 = vector.load %arg10[%c1_102, %c0_103, %c0_104] : memref<2x64x128xf32, #tpu.memory_space<vmem>>, vector<1x64x128xf32>
    %97 = vector.shape_cast %96 : vector<1x64x128xf32> to vector<64x128xf32>
    %cst_105 = arith.constant dense<0.000000e+00> : vector<64x160xf32>
    %98 = tpu.matmul %97, %92, %cst_105 {dimension_numbers = #tpu.dot_dimension_numbers<[1], [0], [0], [1], [0, 0, 1, 1], [], []>} : vector<64x128xf32>, vector<128x160xf32>, vector<64x160xf32> -> vector<64x160xf32>
    %99 = arith.maximumf %95, %98 : vector<64x160xf32>
    %c0_106 = arith.constant 0 : index
    %c0_107 = arith.constant 0 : index
    %c0_108 = arith.constant 0 : index
    %100 = vector.load %arg11[%c0_106, %c0_107, %c0_108] : memref<2x160x80xf32, #tpu.memory_space<vmem>>, vector<1x160x80xf32>
    %101 = vector.shape_cast %100 : vector<1x160x80xf32> to vector<160x80xf32>
    %cst_109 = arith.constant dense<0.000000e+00> : vector<64x80xf32>
    %102 = tpu.matmul %99, %101, %cst_109 {dimension_numbers = #tpu.dot_dimension_numbers<[1], [0], [0], [1], [0, 0, 1, 1], [], []>} : vector<64x160xf32>, vector<160x80xf32>, vector<64x80xf32> -> vector<64x80xf32>
    %c1_110 = arith.constant 1 : index
    %c0_111 = arith.constant 0 : index
    %c0_112 = arith.constant 0 : index
    %103 = vector.load %arg11[%c1_110, %c0_111, %c0_112] : memref<2x160x80xf32, #tpu.memory_space<vmem>>, vector<1x160x80xf32>
    %104 = vector.shape_cast %103 : vector<1x160x80xf32> to vector<160x80xf32>
    %cst_113 = arith.constant dense<0.000000e+00> : vector<64x80xf32>
    %105 = tpu.matmul %99, %104, %cst_113 {dimension_numbers = #tpu.dot_dimension_numbers<[1], [0], [0], [1], [0, 0, 1, 1], [], []>} : vector<64x160xf32>, vector<160x80xf32>, vector<64x80xf32> -> vector<64x80xf32>
    %106 = arith.maximumf %102, %105 : vector<64x80xf32>
    %c0_114 = arith.constant 0 : index
    %c0_115 = arith.constant 0 : index
    %c0_116 = arith.constant 0 : index
    %107 = vector.load %arg12[%c0_114, %c0_115, %c0_116] : memref<5x8x64xf32, #tpu.memory_space<vmem>>, vector<1x8x64xf32>
    %108 = vector.shape_cast %107 : vector<1x8x64xf32> to vector<8x64xf32>
    %cst_117 = arith.constant dense<0.000000e+00> : vector<8x80xf32>
    %109 = tpu.matmul %108, %106, %cst_117 {dimension_numbers = #tpu.dot_dimension_numbers<[1], [0], [0], [1], [0, 0, 1, 1], [], []>} : vector<8x64xf32>, vector<64x80xf32>, vector<8x80xf32> -> vector<8x80xf32>
    %c0_118 = arith.constant 0 : index
    %c0_119 = arith.constant 0 : index
    %c0_120 = arith.constant 0 : index
    %110 = vector.load %arg13[%c0_118, %c0_119, %c0_120] : memref<5x80x120xf32, #tpu.memory_space<vmem>>, vector<1x80x120xf32>
    %111 = vector.shape_cast %110 : vector<1x80x120xf32> to vector<80x120xf32>
    %cst_121 = arith.constant dense<0.000000e+00> : vector<8x120xf32>
    %112 = tpu.matmul %109, %111, %cst_121 {dimension_numbers = #tpu.dot_dimension_numbers<[1], [0], [0], [1], [0, 0, 1, 1], [], []>} : vector<8x80xf32>, vector<80x120xf32>, vector<8x120xf32> -> vector<8x120xf32>
    %c1_122 = arith.constant 1 : index
    %c0_123 = arith.constant 0 : index
    %c0_124 = arith.constant 0 : index
    %113 = vector.load %arg12[%c1_122, %c0_123, %c0_124] : memref<5x8x64xf32, #tpu.memory_space<vmem>>, vector<1x8x64xf32>
    %114 = vector.shape_cast %113 : vector<1x8x64xf32> to vector<8x64xf32>
    %cst_125 = arith.constant dense<0.000000e+00> : vector<8x80xf32>
    %115 = tpu.matmul %114, %106, %cst_125 {dimension_numbers = #tpu.dot_dimension_numbers<[1], [0], [0], [1], [0, 0, 1, 1], [], []>} : vector<8x64xf32>, vector<64x80xf32>, vector<8x80xf32> -> vector<8x80xf32>
    %c1_126 = arith.constant 1 : index
    %c0_127 = arith.constant 0 : index
    %c0_128 = arith.constant 0 : index
    %116 = vector.load %arg13[%c1_126, %c0_127, %c0_128] : memref<5x80x120xf32, #tpu.memory_space<vmem>>, vector<1x80x120xf32>
    %117 = vector.shape_cast %116 : vector<1x80x120xf32> to vector<80x120xf32>
    %cst_129 = arith.constant dense<0.000000e+00> : vector<8x120xf32>
    %118 = tpu.matmul %115, %117, %cst_129 {dimension_numbers = #tpu.dot_dimension_numbers<[1], [0], [0], [1], [0, 0, 1, 1], [], []>} : vector<8x80xf32>, vector<80x120xf32>, vector<8x120xf32> -> vector<8x120xf32>
    %119 = arith.addf %112, %118 : vector<8x120xf32>
    %c2_130 = arith.constant 2 : index
    %c0_131 = arith.constant 0 : index
    %c0_132 = arith.constant 0 : index
    %120 = vector.load %arg12[%c2_130, %c0_131, %c0_132] : memref<5x8x64xf32, #tpu.memory_space<vmem>>, vector<1x8x64xf32>
    %121 = vector.shape_cast %120 : vector<1x8x64xf32> to vector<8x64xf32>
    %cst_133 = arith.constant dense<0.000000e+00> : vector<8x80xf32>
    %122 = tpu.matmul %121, %106, %cst_133 {dimension_numbers = #tpu.dot_dimension_numbers<[1], [0], [0], [1], [0, 0, 1, 1], [], []>} : vector<8x64xf32>, vector<64x80xf32>, vector<8x80xf32> -> vector<8x80xf32>
    %c2_134 = arith.constant 2 : index
    %c0_135 = arith.constant 0 : index
    %c0_136 = arith.constant 0 : index
    %123 = vector.load %arg13[%c2_134, %c0_135, %c0_136] : memref<5x80x120xf32, #tpu.memory_space<vmem>>, vector<1x80x120xf32>
    %124 = vector.shape_cast %123 : vector<1x80x120xf32> to vector<80x120xf32>
    %cst_137 = arith.constant dense<0.000000e+00> : vector<8x120xf32>
    %125 = tpu.matmul %122, %124, %cst_137 {dimension_numbers = #tpu.dot_dimension_numbers<[1], [0], [0], [1], [0, 0, 1, 1], [], []>} : vector<8x80xf32>, vector<80x120xf32>, vector<8x120xf32> -> vector<8x120xf32>
    %126 = arith.addf %119, %125 : vector<8x120xf32>
    %c3_138 = arith.constant 3 : index
    %c0_139 = arith.constant 0 : index
    %c0_140 = arith.constant 0 : index
    %127 = vector.load %arg12[%c3_138, %c0_139, %c0_140] : memref<5x8x64xf32, #tpu.memory_space<vmem>>, vector<1x8x64xf32>
    %128 = vector.shape_cast %127 : vector<1x8x64xf32> to vector<8x64xf32>
    %cst_141 = arith.constant dense<0.000000e+00> : vector<8x80xf32>
    %129 = tpu.matmul %128, %106, %cst_141 {dimension_numbers = #tpu.dot_dimension_numbers<[1], [0], [0], [1], [0, 0, 1, 1], [], []>} : vector<8x64xf32>, vector<64x80xf32>, vector<8x80xf32> -> vector<8x80xf32>
    %c3_142 = arith.constant 3 : index
    %c0_143 = arith.constant 0 : index
    %c0_144 = arith.constant 0 : index
    %130 = vector.load %arg13[%c3_142, %c0_143, %c0_144] : memref<5x80x120xf32, #tpu.memory_space<vmem>>, vector<1x80x120xf32>
    %131 = vector.shape_cast %130 : vector<1x80x120xf32> to vector<80x120xf32>
    %cst_145 = arith.constant dense<0.000000e+00> : vector<8x120xf32>
    %132 = tpu.matmul %129, %131, %cst_145 {dimension_numbers = #tpu.dot_dimension_numbers<[1], [0], [0], [1], [0, 0, 1, 1], [], []>} : vector<8x80xf32>, vector<80x120xf32>, vector<8x120xf32> -> vector<8x120xf32>
    %133 = arith.addf %126, %132 : vector<8x120xf32>
    %c4_146 = arith.constant 4 : index
    %c0_147 = arith.constant 0 : index
    %c0_148 = arith.constant 0 : index
    %134 = vector.load %arg12[%c4_146, %c0_147, %c0_148] : memref<5x8x64xf32, #tpu.memory_space<vmem>>, vector<1x8x64xf32>
    %135 = vector.shape_cast %134 : vector<1x8x64xf32> to vector<8x64xf32>
    %cst_149 = arith.constant dense<0.000000e+00> : vector<8x80xf32>
    %136 = tpu.matmul %135, %106, %cst_149 {dimension_numbers = #tpu.dot_dimension_numbers<[1], [0], [0], [1], [0, 0, 1, 1], [], []>} : vector<8x64xf32>, vector<64x80xf32>, vector<8x80xf32> -> vector<8x80xf32>
    %c4_150 = arith.constant 4 : index
    %c0_151 = arith.constant 0 : index
    %c0_152 = arith.constant 0 : index
    %137 = vector.load %arg13[%c4_150, %c0_151, %c0_152] : memref<5x80x120xf32, #tpu.memory_space<vmem>>, vector<1x80x120xf32>
    %138 = vector.shape_cast %137 : vector<1x80x120xf32> to vector<80x120xf32>
    %cst_153 = arith.constant dense<0.000000e+00> : vector<8x120xf32>
    %139 = tpu.matmul %136, %138, %cst_153 {dimension_numbers = #tpu.dot_dimension_numbers<[1], [0], [0], [1], [0, 0, 1, 1], [], []>} : vector<8x80xf32>, vector<80x120xf32>, vector<8x120xf32> -> vector<8x120xf32>
    %140 = arith.addf %133, %139 : vector<8x120xf32>
    %c0_154 = arith.constant 0 : index
    %c0_155 = arith.constant 0 : index
    %141 = vector.load %arg14[%c0_154, %c0_155] : memref<1x120xf32, #tpu.memory_space<vmem>>, vector<1x120xf32>
    %142 = vector.broadcast %141 : vector<1x120xf32> to vector<8x120xf32>
    %143 = arith.addf %140, %142 : vector<8x120xf32>
    %cst_156 = arith.constant 0.000000e+00 : f32
    %144 = vector.broadcast %cst_156 : f32 to vector<8x120xf32>
    %145 = arith.maximumf %143, %144 : vector<8x120xf32>
    %c0_157 = arith.constant 0 : index
    %c0_158 = arith.constant 0 : index
    %146 = vector.load %arg15[%c0_157, %c0_158] : memref<120x84xf32, #tpu.memory_space<vmem>>, vector<120x84xf32>
    %cst_159 = arith.constant dense<0.000000e+00> : vector<8x84xf32>
    %147 = tpu.matmul %145, %146, %cst_159 {dimension_numbers = #tpu.dot_dimension_numbers<[1], [0], [0], [1], [0, 0, 1, 1], [], []>} : vector<8x120xf32>, vector<120x84xf32>, vector<8x84xf32> -> vector<8x84xf32>
    %c0_160 = arith.constant 0 : index
    %c0_161 = arith.constant 0 : index
    %148 = vector.load %arg16[%c0_160, %c0_161] : memref<1x84xf32, #tpu.memory_space<vmem>>, vector<1x84xf32>
    %149 = vector.broadcast %148 : vector<1x84xf32> to vector<8x84xf32>
    %150 = arith.addf %147, %149 : vector<8x84xf32>
    %cst_162 = arith.constant 0.000000e+00 : f32
    %151 = vector.broadcast %cst_162 : f32 to vector<8x84xf32>
    %152 = arith.maximumf %150, %151 : vector<8x84xf32>
    %c0_163 = arith.constant 0 : index
    %c0_164 = arith.constant 0 : index
    %153 = vector.load %arg17[%c0_163, %c0_164] : memref<84x128xf32, #tpu.memory_space<vmem>>, vector<84x128xf32>
    %cst_165 = arith.constant dense<0.000000e+00> : vector<8x128xf32>
    %154 = tpu.matmul %152, %153, %cst_165 {dimension_numbers = #tpu.dot_dimension_numbers<[1], [0], [0], [1], [0, 0, 1, 1], [], []>} : vector<8x84xf32>, vector<84x128xf32>, vector<8x128xf32> -> vector<8x128xf32>
    %c0_166 = arith.constant 0 : index
    %c0_167 = arith.constant 0 : index
    %155 = vector.load %arg18[%c0_166, %c0_167] : memref<1x128xf32, #tpu.memory_space<vmem>>, vector<1x128xf32>
    %156 = vector.broadcast %155 : vector<1x128xf32> to vector<8x128xf32>
    %157 = arith.addf %154, %156 : vector<8x128xf32>
    %c0_168 = arith.constant 0 : index
    %c0_169 = arith.constant 0 : index
    %158 = vector.load %arg19[%c0_168, %c0_169] : memref<8x128xf32, #tpu.memory_space<vmem>>, vector<8x128xf32>
    tpu.vector_store %arg19[%c0_168, %c0_169], %157 {strides = array<i32>} : memref<8x128xf32, #tpu.memory_space<vmem>>, vector<8x128xf32>,
    return
  }
  func.func @transform_0(%arg0: i32) -> (i32, i32) {
    %c0_i32 = arith.constant 0 : i32
    %c0_i32_0 = arith.constant 0 : i32
    return %arg0, %c0_i32 : i32, i32
  }
  func.func @transform_1(%arg0: i32) -> (i32, i32, i32) {
    %c0_i32 = arith.constant 0 : i32
    %c0_i32_0 = arith.constant 0 : i32
    %c0_i32_1 = arith.constant 0 : i32
    %c0_i32_2 = arith.constant 0 : i32
    return %c0_i32, %c0_i32_0, %c0_i32_1 : i32, i32, i32
  }
  func.func @transform_2(%arg0: i32) -> (i32, i32, i32) {
    %c0_i32 = arith.constant 0 : i32
    %c0_i32_0 = arith.constant 0 : i32
    %c0_i32_1 = arith.constant 0 : i32
    %c0_i32_2 = arith.constant 0 : i32
    return %c0_i32, %c0_i32_0, %c0_i32_1 : i32, i32, i32
  }
  func.func @transform_3(%arg0: i32) -> (i32, i32) {
    %c0_i32 = arith.constant 0 : i32
    %c0_i32_0 = arith.constant 0 : i32
    %c0_i32_1 = arith.constant 0 : i32
    return %c0_i32, %c0_i32_0 : i32, i32
  }
  func.func @transform_4(%arg0: i32) -> (i32, i32, i32) {
    %c0_i32 = arith.constant 0 : i32
    %c0_i32_0 = arith.constant 0 : i32
    %c0_i32_1 = arith.constant 0 : i32
    %c0_i32_2 = arith.constant 0 : i32
    return %c0_i32, %c0_i32_0, %c0_i32_1 : i32, i32, i32
  }
  func.func @transform_5(%arg0: i32) -> (i32, i32, i32) {
    %c0_i32 = arith.constant 0 : i32
    %c0_i32_0 = arith.constant 0 : i32
    %c0_i32_1 = arith.constant 0 : i32
    %c0_i32_2 = arith.constant 0 : i32
    return %c0_i32, %c0_i32_0, %c0_i32_1 : i32, i32, i32
  }
  func.func @transform_6(%arg0: i32) -> (i32, i32, i32) {
    %c0_i32 = arith.constant 0 : i32
    %c0_i32_0 = arith.constant 0 : i32
    %c0_i32_1 = arith.constant 0 : i32
    %c0_i32_2 = arith.constant 0 : i32
    return %c0_i32, %c0_i32_0, %c0_i32_1 : i32, i32, i32
  }
  func.func @transform_7(%arg0: i32) -> (i32, i32, i32) {
    %c0_i32 = arith.constant 0 : i32
    %c0_i32_0 = arith.constant 0 : i32
    %c0_i32_1 = arith.constant 0 : i32
    %c0_i32_2 = arith.constant 0 : i32
    return %c0_i32, %c0_i32_0, %c0_i32_1 : i32, i32, i32
  }
  func.func @transform_8(%arg0: i32) -> (i32, i32) {
    %c0_i32 = arith.constant 0 : i32
    %c0_i32_0 = arith.constant 0 : i32
    %c0_i32_1 = arith.constant 0 : i32
    return %c0_i32, %c0_i32_0 : i32, i32
  }
  func.func @transform_9(%arg0: i32) -> (i32, i32, i32) {
    %c0_i32 = arith.constant 0 : i32
    %c0_i32_0 = arith.constant 0 : i32
    %c0_i32_1 = arith.constant 0 : i32
    %c0_i32_2 = arith.constant 0 : i32
    return %c0_i32, %c0_i32_0, %c0_i32_1 : i32, i32, i32
  }
  func.func @transform_10(%arg0: i32) -> (i32, i32, i32) {
    %c0_i32 = arith.constant 0 : i32
    %c0_i32_0 = arith.constant 0 : i32
    %c0_i32_1 = arith.constant 0 : i32
    %c0_i32_2 = arith.constant 0 : i32
    return %c0_i32, %c0_i32_0, %c0_i32_1 : i32, i32, i32
  }
  func.func @transform_11(%arg0: i32) -> (i32, i32, i32) {
    %c0_i32 = arith.constant 0 : i32
    %c0_i32_0 = arith.constant 0 : i32
    %c0_i32_1 = arith.constant 0 : i32
    %c0_i32_2 = arith.constant 0 : i32
    return %c0_i32, %c0_i32_0, %c0_i32_1 : i32, i32, i32
  }
  func.func @transform_12(%arg0: i32) -> (i32, i32, i32) {
    %c0_i32 = arith.constant 0 : i32
    %c0_i32_0 = arith.constant 0 : i32
    %c0_i32_1 = arith.constant 0 : i32
    %c0_i32_2 = arith.constant 0 : i32
    return %c0_i32, %c0_i32_0, %c0_i32_1 : i32, i32, i32
  }
  func.func @transform_13(%arg0: i32) -> (i32, i32) {
    %c0_i32 = arith.constant 0 : i32
    %c0_i32_0 = arith.constant 0 : i32
    %c0_i32_1 = arith.constant 0 : i32
    return %c0_i32, %c0_i32_0 : i32, i32
  }
  func.func @transform_14(%arg0: i32) -> (i32, i32) {
    %c0_i32 = arith.constant 0 : i32
    %c0_i32_0 = arith.constant 0 : i32
    %c0_i32_1 = arith.constant 0 : i32
    return %c0_i32, %c0_i32_0 : i32, i32
  }
  func.func @transform_15(%arg0: i32) -> (i32, i32) {
    %c0_i32 = arith.constant 0 : i32
    %c0_i32_0 = arith.constant 0 : i32
    %c0_i32_1 = arith.constant 0 : i32
    return %c0_i32, %c0_i32_0 : i32, i32
  }
  func.func @transform_16(%arg0: i32) -> (i32, i32) {
    %c0_i32 = arith.constant 0 : i32
    %c0_i32_0 = arith.constant 0 : i32
    %c0_i32_1 = arith.constant 0 : i32
    return %c0_i32, %c0_i32_0 : i32, i32
  }
  func.func @transform_17(%arg0: i32) -> (i32, i32) {
    %c0_i32 = arith.constant 0 : i32
    %c0_i32_0 = arith.constant 0 : i32
    %c0_i32_1 = arith.constant 0 : i32
    return %c0_i32, %c0_i32_0 : i32, i32
  }
  func.func @transform_18(%arg0: i32) -> (i32, i32) {
    %c0_i32 = arith.constant 0 : i32
    %c0_i32_0 = arith.constant 0 : i32
    return %arg0, %c0_i32 : i32, i32
  }
}

</mosaic_0001>

<bundles_post_ra>
// kernel: simple_cnn_forward.1
= control target key start
LH: loop header
LB: loop body
LE: loop exit
PB: predicated region body
PF: predicated region fallthrough
CT: control target
= control target key end

     0   :  { %s15616_s0 = inlined_call_operand.vmem [shape: f32[256,96], index: 0, kind: input, shape index: {}]   ;;  %s15617_s1 = inlined_call_operand.vmem [shape: f32[5,256,256], index: 1, kind: input, shape index: {}]   ;;  %s15618_s2 = inlined_call_operand.vmem [shape: f32[5,96,168], index: 2, kind: input, shape index: {}]   ;;  %s15619_s3 = inlined_call_operand.vmem [shape: f32[1,168], index: 3, kind: input, shape index: {}]   ;;  %s15620_s4 = inlined_call_operand.vmem [shape: f32[2,128,256], index: 4, kind: input, shape index: {}]   ;;  %s15621_s5 = inlined_call_operand.hbm [shape: f32[2,168,84], index: 5, kind: input, shape index: {}]   ;;  %s15622_s6 = inlined_call_operand.vmem [shape: f32[5,128,128], index: 6, kind: input, shape index: {}]   ;;  %s15623_s7 = inlined_call_operand.vmem [shape: f32[5,84,160], index: 7, kind: input, shape index: {}]   ;;  %s15624_s8 = inlined_call_operand.vmem [shape: f32[1,160], index: 8, kind: input, shape index: {}]   ;;  %s15625_s9 = inlined_call_operand.vmem [shape: f32[2,64,128], index: 9, kind: input, shape index: {}]   ;;  %s15626_s10 = inlined_call_operand.hbm [shape: f32[2,160,80], index: 10, kind: input, shape index: {}]   ;;  %s15627_s11 = inlined_call_operand.vmem [shape: f32[5,8,64], index: 11, kind: input, shape index: {}]   ;;  %s15628_s12 = inlined_call_operand.hbm [shape: f32[5,80,120], index: 12, kind: input, shape index: {}]   ;;  %s15629_s13 = inlined_call_operand.vmem [shape: f32[1,120], index: 13, kind: input, shape index: {}]   ;;  %s15630_s14 = inlined_call_operand.vmem [shape: f32[120,84], index: 14, kind: input, shape index: {}]   ;;  %s15631_s15 = inlined_call_operand.vmem [shape: f32[1,84], index: 15, kind: input, shape index: {}]   ;;  %s15632_s16 = inlined_call_operand.vmem [shape: f32[84,128], index: 16, kind: input, shape index: {}]   ;;  %s15633_s17 = inlined_call_operand.vmem [shape: f32[1,128], index: 17, kind: input, shape index: {}]   ;;  %s15634_s18 = inlined_call_operand.vmem [shape: f32[8,128], index: 18, kind: output, shape index: {}]  }
   0x1   :  { %15645 = sst [smem:[#allocation72_spill]] %s15616_s0 }
   0x2   :  { %15646 = sst [smem:[#allocation73_spill]] %s15617_s1 }
   0x3   :  { %15647 = sst [smem:[#allocation74_spill]] %s15618_s2 }
   0x4   :  { %23 = vsyncpa [#allocation3], 0 }
   0x5   :  { %24 = vsyncpa [#allocation5], 0  ;;  %s10173_s27 = smov [#allocation4]   ;;  %s10174_s29 = smov [#allocation2]  }
   0x6   :  { %s60_s28 = sshll.u32 %s10173_s27, 4  ;;  %s40_s30 = sshll.u32 %s10174_s29, 4  ;;  %s61_s28 = int_to_ptr.vmem [resolvable:$true] %s60_s28  ;;  %s41_s30 = int_to_ptr.vmem [resolvable:$true] %s40_s30 }
   0x7   :  { %s10117_s0 = scalar_lea.vmem %s61_s28, 5120  ;;  %p10122_p1 = scmp.lt.s32.totalorder %s61_s28, %s61_s28 }
   0x8   :  { %p10118_p0 = scmp.ne.s32.totalorder %s61_s28, %s10117_s0  ;;  %p10123_p2 = scmp.lt.s32.totalorder %s10117_s0, %s10117_s0 }
   0xa   :  { %p10124_p3 = por %p10123_p2, %p10122_p1 }
   0xc   :  { %p10125_p4 = pnand %p10124_p3, %p10118_p0 }
   0xe   :  { %10128 = shalt.err (!%p10125_p4)
}
   0xf   :  { %s10175_s19 = smov 128   ;;  %s10176_s1 = smov 8  }
  0x10   :  { %66 = dma.hbm_to_vmem [thread:$0]  %s15626_s10, 5120, %s61_s28, [#allocation5], %s10175_s19, %s10175_s19, %s10176_s1  }
  0x11   :  { %s10137_s22 = scalar_lea.vmem %s41_s30, 5376  ;;  %p10142_p6 = scmp.lt.s32.totalorder %s41_s30, %s41_s30 }
  0x12   :  { %p10138_p5 = scmp.ne.s32.totalorder %s41_s30, %s10137_s22  ;;  %p10143_p7 = scmp.lt.s32.totalorder %s10137_s22, %s10137_s22 }
  0x14   :  { %p10144_p8 = por %p10143_p7, %p10142_p6 }
  0x16   :  { %p10145_p9 = pnand %p10144_p8, %p10138_p5 }
  0x18   :  { %10148 = shalt.err (!%p10145_p9)
}
  0x19   :  { %46 = dma.hbm_to_vmem [thread:$0]  %s15621_s5, 5376, %s41_s30, [#allocation3], %s10175_s19, %s10175_s19, %s10176_s1  }
  0x1a   :  { %s10177_s24 = smov [#allocation6]  }
  0x1b   :  { %s74_s25 = sshll.u32 %s10177_s24, 4  ;;  %s75_s25 = int_to_ptr.vmem [resolvable:$true] %s74_s25 }
  0x1c   :  { %s10157_s26 = scalar_lea.vmem %s75_s25, 6400  ;;  %p10162_p11 = scmp.lt.s32.totalorder %s75_s25, %s75_s25 }
  0x1d   :  { %p10158_p10 = scmp.ne.s32.totalorder %s75_s25, %s10157_s26  ;;  %p10163_p12 = scmp.lt.s32.totalorder %s10157_s26, %s10157_s26 }
  0x1f   :  { %p10164_p13 = por %p10163_p12, %p10162_p11 }
  0x21   :  { %p10165_p0 = pnand %p10164_p13, %p10158_p10 }
  0x23   :  { %10168 = shalt.err (!%p10165_p0)
}
  0x24   :  { %80 = dma.hbm_to_vmem [thread:$0]  %s15628_s12, 6400, %s75_s25, [#allocation5], %s10175_s19, %s10175_s19, %s10176_s1  }
  0x25   :  { %10169 = dma.done.wait [#allocation3], 5376  }
  0x26   :  { %10170 = vsyncadd [#allocation3], 4294961920 }
  0x27   :  { %10171 = dma.done.wait [#allocation5], 11520  }
  0x28   :  { %10172 = vsyncadd [#allocation5], 4294955776  ;;  %v15638_v0 = vmov 0.0   ;;  %s15648_s29 = sld [smem:[#allocation72_spill]]  ;;  %vm760_vm0 = vcmask 785408   ;;  %vm4243_vm1 = vcmask 326656  }
  0x29   :  { %196 = vmatprep.subr.mxu0 %v15638_v0  ;;  %510 = vmatprep.subr.mxu1 %v15638_v0  ;;  %s15649_s10 = sld [smem:[#allocation73_spill]]  ;;  %vm5037_vm2 = vcmask 1043456   ;;  %vm4988_vm3 = vcmask 687104   ;;  %vm7071_vm4 = vcmask 261120   ;;  %vm10179_vm5 = vmmov 0  }
  0x2a   :  { %s15650_s23 = sld [smem:[#allocation74_spill]]  ;;  %vm7336_vm6 = vcmask 523264   ;;  %vm7506_vm7 = vcmask 654336   ;;  %vm8164_vm8 = vcmask 982016  }
  0x2e   :  { %v115_v1 = vld [vmem:[%s15648_s29 + $0x78] sm:$0xff]  ;;  %v114_v2 = vld [vmem:[%s15648_s29 + $0x70] sm:$0xff]  ;;  %v113_v3 = vld [vmem:[%s15648_s29 + $0x68] sm:$0xff] }
  0x2f   :  { %197 = vmatpush1.msra.mxu0 %v115_v1  ;;  %511 = vmatpush1.msra.mxu1 %v115_v1  ;;  %v112_v4 = vld [vmem:[%s15648_s29 + $0x60] sm:$0xff]  ;;  %v111_v5 = vld [vmem:[%s15648_s29 + $0x58] sm:$0xff]  ;;  %v110_v6 = vld [vmem:[%s15648_s29 + $0x50] sm:$0xff] }
  0x30   :  { %198 = vmatprep.subr.mxu0 %v15638_v0  ;;  %512 = vmatprep.subr.mxu1 %v15638_v0  ;;  %v109_v7 = vld [vmem:[%s15648_s29 + $0x48] sm:$0xff]  ;;  %v108_v8 = vld [vmem:[%s15648_s29 + $0x40] sm:$0xff]  ;;  %v107_v9 = vld [vmem:[%s15648_s29 + $0x38] sm:$0xff] }
  0x31   :  { %199 = vmatpush1.msra.mxu0 %v114_v2  ;;  %513 = vmatpush1.msra.mxu1 %v114_v2  ;;  %v106_v10 = vld [vmem:[%s15648_s29 + $0x30] sm:$0xff]  ;;  %v105_v11 = vld [vmem:[%s15648_s29 + $0x28] sm:$0xff]  ;;  %v104_v12 = vld [vmem:[%s15648_s29 + $0x20] sm:$0xff] }
  0x32   :  { %200 = vmatprep.subr.mxu0 %v15638_v0  ;;  %514 = vmatprep.subr.mxu1 %v15638_v0  ;;  %v103_v13 = vld [vmem:[%s15648_s29 + $0x18] sm:$0xff]  ;;  %v102_v14 = vld [vmem:[%s15648_s29 + $0x10] sm:$0xff]  ;;  %v101_v15 = vld [vmem:[%s15648_s29 + $0x8] sm:$0xff] }
  0x33   :  { %201 = vmatpush1.msra.mxu0 %v113_v3  ;;  %515 = vmatpush1.msra.mxu1 %v113_v3  ;;  %v100_v16 = vld [vmem:[%s15648_s29] sm:$0xff]  ;;  %v131_v17 = vld [vmem:[%s15648_s29 + $0xf8] sm:$0xff]  ;;  %v130_v18 = vld [vmem:[%s15648_s29 + $0xf0] sm:$0xff] }
  0x34   :  { %202 = vmatprep.subr.mxu0 %v15638_v0  ;;  %516 = vmatprep.subr.mxu1 %v15638_v0  ;;  %v129_v19 = vld [vmem:[%s15648_s29 + $0xe8] sm:$0xff]  ;;  %v128_v20 = vld [vmem:[%s15648_s29 + $0xe0] sm:$0xff]  ;;  %v127_v21 = vld [vmem:[%s15648_s29 + $0xd8] sm:$0xff] }
  0x35   :  { %203 = vmatpush1.msra.mxu0 %v112_v4  ;;  %517 = vmatpush1.msra.mxu1 %v112_v4  ;;  %v126_v22 = vld [vmem:[%s15648_s29 + $0xd0] sm:$0xff]  ;;  %v125_v23 = vld [vmem:[%s15648_s29 + $0xc8] sm:$0xff]  ;;  %v124_v24 = vld [vmem:[%s15648_s29 + $0xc0] sm:$0xff] }
  0x36   :  { %204 = vmatprep.subr.mxu0 %v15638_v0  ;;  %518 = vmatprep.subr.mxu1 %v15638_v0  ;;  %v123_v25 = vld [vmem:[%s15648_s29 + $0xb8] sm:$0xff]  ;;  %v122_v26 = vld [vmem:[%s15648_s29 + $0xb0] sm:$0xff]  ;;  %v121_v27 = vld [vmem:[%s15648_s29 + $0xa8] sm:$0xff] }
  0x37   :  { %205 = vmatpush1.msra.mxu0 %v111_v5  ;;  %519 = vmatpush1.msra.mxu1 %v111_v5  ;;  %v120_v28 = vld [vmem:[%s15648_s29 + $0xa0] sm:$0xff]  ;;  %v119_v29 = vld [vmem:[%s15648_s29 + $0x98] sm:$0xff]  ;;  %v118_v30 = vld [vmem:[%s15648_s29 + $0x90] sm:$0xff] }
  0x38   :  { %206 = vmatprep.subr.mxu0 %v15638_v0  ;;  %520 = vmatprep.subr.mxu1 %v15638_v0  ;;  %v117_v31 = vld [vmem:[%s15648_s29 + $0x88] sm:$0xff]  ;;  %v116_v32 = vld [vmem:[%s15648_s29 + $0x80] sm:$0xff]  ;;  %v135_v37 = vld [vmem:[%s15649_s10 + $0x18] sm:$0xff] }
  0x39   :  { %207 = vmatpush1.msra.mxu0 %v110_v6  ;;  %521 = vmatpush1.msra.mxu1 %v110_v6  ;;  %v133_v33 = vld [vmem:[%s15649_s10 + $0x8] sm:$0xff]  ;;  %v132_v35 = vld [vmem:[%s15649_s10] sm:$0xff]  ;;  %v8343_v38 = vld [vmem:[%s15649_s10 + $0x218] sm:$0xff] }
  0x3a   :  { %208 = vmatprep.subr.mxu0 %v15638_v0  ;;  %522 = vmatprep.subr.mxu1 %v15638_v0  ;;  %v8341_v34 = vld [vmem:[%s15649_s10 + $0x208] sm:$0xff]  ;;  %v8340_v36 = vld [vmem:[%s15649_s10 + $0x200] sm:$0xff]  ;;  %v8427_v39 = vld [vmem:[%s15650_s23 + $0x178] sm:$0xff] }
  0x3b   :  { %209 = vmatpush1.msra.mxu0 %v109_v7  ;;  %523 = vmatpush1.msra.mxu1 %v109_v7  ;;  %v444_v40 = vld [vmem:[%s15650_s23 + $0xb8] sm:$0xff]  ;;  %v8426_v41 = vld [vmem:[%s15650_s23 + $0x170] sm:$0xff]  ;;  %v137_v45 = vld [vmem:[%s15649_s10 + $0x28] sm:$0xff] }
  0x3c   :  { %210 = vmatprep.subr.mxu0 %v15638_v0  ;;  %524 = vmatprep.subr.mxu1 %v15638_v0  ;;  %v443_v42 = vld [vmem:[%s15650_s23 + $0xb0] sm:$0xff]  ;;  %v8345_v46 = vld [vmem:[%s15649_s10 + $0x228] sm:$0xff]  ;;  %v8424_v49 = vld [vmem:[%s15650_s23 + $0x160] sm:$0xff] }
  0x3d   :  { %211 = vmatpush1.msra.mxu0 %v108_v8  ;;  %525 = vmatpush1.msra.mxu1 %v108_v8  ;;  %v134_v43 = vld [vmem:[%s15649_s10 + $0x10] sm:$0xff]  ;;  %v8425_v47 = vld [vmem:[%s15650_s23 + $0x168] sm:$0xff]  ;;  %v441_v50 = vld [vmem:[%s15650_s23 + $0xa0] sm:$0xff] }
  0x3e   :  { %212 = vmatprep.subr.mxu0 %v15638_v0  ;;  %526 = vmatprep.subr.mxu1 %v15638_v0  ;;  %v8342_v44 = vld [vmem:[%s15649_s10 + $0x210] sm:$0xff]  ;;  %v442_v48 = vld [vmem:[%s15650_s23 + $0xa8] sm:$0xff]  ;;  %v136_v51 = vld [vmem:[%s15649_s10 + $0x20] sm:$0xff] }
  0x3f   :  { %213 = vmatpush1.msra.mxu0 %v107_v9  ;;  %527 = vmatpush1.msra.mxu1 %v107_v9  ;;  %v8344_v52 = vld [vmem:[%s15649_s10 + $0x220] sm:$0xff]  ;;  %v139_v53 = vld [vmem:[%s15649_s10 + $0x38] sm:$0xff]  ;;  %v8422_v57 = vld [vmem:[%s15650_s23 + $0x150] sm:$0xff] }
  0x40   :  { %214 = vmatprep.subr.mxu0 %v15638_v0  ;;  %528 = vmatprep.subr.mxu1 %v15638_v0  ;;  %v8347_v54 = vld [vmem:[%s15649_s10 + $0x238] sm:$0xff]  ;;  %v439_v58 = vld [vmem:[%s15650_s23 + $0x90] sm:$0xff]  ;;  %v141_v61 = vld [vmem:[%s15649_s10 + $0x48] sm:$0xff] }
  0x41   :  { %215 = vmatpush1.msra.mxu0 %v106_v10  ;;  %529 = vmatpush1.msra.mxu1 %v106_v10  ;;  %v8423_v55 = vld [vmem:[%s15650_s23 + $0x158] sm:$0xff]  ;;  %v138_v59 = vld [vmem:[%s15649_s10 + $0x30] sm:$0xff]  ;;  %v8349_v62 = vld [vmem:[%s15649_s10 + $0x248] sm:$0xff] }
  0x42   :  { %216 = vmatprep.subr.mxu0 %v15638_v0  ;;  %530 = vmatprep.subr.mxu1 %v15638_v0  ;;  %v440_v56 = vld [vmem:[%s15650_s23 + $0x98] sm:$0xff]  ;;  %v8346_v60 = vld [vmem:[%s15649_s10 + $0x230] sm:$0xff]  ;;  %v8421_v63 = vld [vmem:[%s15650_s23 + $0x148] sm:$0xff] }
  0x43   :  { %217 = vmatpush1.msra.mxu0 %v105_v11  ;;  %531 = vmatpush1.msra.mxu1 %v105_v11  ;;  %v438_v1 = vld [vmem:[%s15650_s23 + $0x88] sm:$0xff]  ;;  %v8420_v2 = vld [vmem:[%s15650_s23 + $0x140] sm:$0xff]  ;;  %v143_v6 = vld [vmem:[%s15649_s10 + $0x58] sm:$0xff] }
  0x44   :  { %218 = vmatprep.subr.mxu0 %v15638_v0  ;;  %532 = vmatprep.subr.mxu1 %v15638_v0  ;;  %v437_v3 = vld [vmem:[%s15650_s23 + $0x80] sm:$0xff]  ;;  %v8351_v7 = vld [vmem:[%s15649_s10 + $0x258] sm:$0xff]  ;;  %v8418_v10 = vld [vmem:[%s15650_s23 + $0x130] sm:$0xff] }
  0x45   :  { %219 = vmatpush1.msra.mxu0 %v104_v12  ;;  %533 = vmatpush1.msra.mxu1 %v104_v12  ;;  %v140_v4 = vld [vmem:[%s15649_s10 + $0x40] sm:$0xff]  ;;  %v8419_v8 = vld [vmem:[%s15650_s23 + $0x138] sm:$0xff]  ;;  %v435_v11 = vld [vmem:[%s15650_s23 + $0x70] sm:$0xff] }
  0x46   :  { %220 = vmatprep.subr.mxu0 %v15638_v0  ;;  %534 = vmatprep.subr.mxu1 %v15638_v0  ;;  %v8348_v5 = vld [vmem:[%s15649_s10 + $0x240] sm:$0xff]  ;;  %v436_v9 = vld [vmem:[%s15650_s23 + $0x78] sm:$0xff]  ;;  %v142_v12 = vld [vmem:[%s15649_s10 + $0x50] sm:$0xff] }
  0x47   :  { %221 = vmatpush1.msra.mxu0 %v103_v13  ;;  %535 = vmatpush1.msra.mxu1 %v103_v13  ;;  %v8350_v13 = vld [vmem:[%s15649_s10 + $0x250] sm:$0xff] }
  0x48   :  { %222 = vmatprep.subr.mxu0 %v15638_v0  ;;  %536 = vmatprep.subr.mxu1 %v15638_v0 }
  0x49   :  { %223 = vmatpush1.msra.mxu0 %v102_v14  ;;  %537 = vmatpush1.msra.mxu1 %v102_v14  ;;  %v145_v14 = vld [vmem:[%s15649_s10 + $0x68] sm:$0xff] }
  0x4a   :  { %224 = vmatprep.subr.mxu0 %v15638_v0  ;;  %538 = vmatprep.subr.mxu1 %v15638_v0 }
  0x4b   :  { %225 = vmatpush1.msra.mxu0 %v101_v15  ;;  %539 = vmatpush1.msra.mxu1 %v101_v15  ;;  %v8353_v15 = vld [vmem:[%s15649_s10 + $0x268] sm:$0xff] }
  0x4c   :  { %226 = vmatprep.subr.mxu0 %v15638_v0  ;;  %540 = vmatprep.subr.mxu1 %v15638_v0 }
  0x4d   :  { %227 = vmatpush1.msra.mxu0 %v100_v16  ;;  %541 = vmatpush1.msra.mxu1 %v100_v16  ;;  %v8417_v16 = vld [vmem:[%s15650_s23 + $0x128] sm:$0xff] }
  0x4e   :  { %228 = vmatprep.subr.mxu0 %v15638_v0  ;;  %542 = vmatprep.subr.mxu1 %v15638_v0 }
  0x4f   :  { %229 = vmatpush2.msra.mxu0 %v131_v17  ;;  %543 = vmatpush2.msra.mxu1 %v131_v17  ;;  %v434_v17 = vld [vmem:[%s15650_s23 + $0x68] sm:$0xff] }
  0x50   :  { %230 = vmatprep.subr.mxu0 %v15638_v0  ;;  %544 = vmatprep.subr.mxu1 %v15638_v0 }
  0x51   :  { %231 = vmatpush2.msra.mxu0 %v130_v18  ;;  %545 = vmatpush2.msra.mxu1 %v130_v18  ;;  %v8416_v18 = vld [vmem:[%s15650_s23 + $0x120] sm:$0xff] }
  0x52   :  { %232 = vmatprep.subr.mxu0 %v15638_v0  ;;  %546 = vmatprep.subr.mxu1 %v15638_v0 }
  0x53   :  { %233 = vmatpush2.msra.mxu0 %v129_v19  ;;  %547 = vmatpush2.msra.mxu1 %v129_v19  ;;  %v433_v19 = vld [vmem:[%s15650_s23 + $0x60] sm:$0xff] }
  0x54   :  { %234 = vmatprep.subr.mxu0 %v15638_v0  ;;  %548 = vmatprep.subr.mxu1 %v15638_v0 }
  0x55   :  { %235 = vmatpush2.msra.mxu0 %v128_v20  ;;  %549 = vmatpush2.msra.mxu1 %v128_v20  ;;  %v144_v20 = vld [vmem:[%s15649_s10 + $0x60] sm:$0xff] }
  0x56   :  { %236 = vmatprep.subr.mxu0 %v15638_v0  ;;  %550 = vmatprep.subr.mxu1 %v15638_v0 }
  0x57   :  { %237 = vmatpush2.msra.mxu0 %v127_v21  ;;  %551 = vmatpush2.msra.mxu1 %v127_v21  ;;  %v8352_v21 = vld [vmem:[%s15649_s10 + $0x260] sm:$0xff] }
  0x58   :  { %238 = vmatprep.subr.mxu0 %v15638_v0  ;;  %552 = vmatprep.subr.mxu1 %v15638_v0 }
  0x59   :  { %239 = vmatpush2.msra.mxu0 %v126_v22  ;;  %553 = vmatpush2.msra.mxu1 %v126_v22  ;;  %v147_v22 = vld [vmem:[%s15649_s10 + $0x78] sm:$0xff] }
  0x5a   :  { %240 = vmatprep.subr.mxu0 %v15638_v0  ;;  %554 = vmatprep.subr.mxu1 %v15638_v0 }
  0x5b   :  { %241 = vmatpush2.msra.mxu0 %v125_v23  ;;  %555 = vmatpush2.msra.mxu1 %v125_v23  ;;  %v8355_v23 = vld [vmem:[%s15649_s10 + $0x278] sm:$0xff] }
  0x5c   :  { %242 = vmatprep.subr.mxu0 %v15638_v0  ;;  %556 = vmatprep.subr.mxu1 %v15638_v0 }
  0x5d   :  { %243 = vmatpush2.msra.mxu0 %v124_v24  ;;  %557 = vmatpush2.msra.mxu1 %v124_v24  ;;  %v8415_v24 = vld [vmem:[%s15650_s23 + $0x118] sm:$0xff] }
  0x5e   :  { %244 = vmatprep.subr.mxu0 %v15638_v0  ;;  %558 = vmatprep.subr.mxu1 %v15638_v0 }
  0x5f   :  { %245 = vmatpush2.msra.mxu0 %v123_v25  ;;  %559 = vmatpush2.msra.mxu1 %v123_v25  ;;  %v432_v25 = vld [vmem:[%s15650_s23 + $0x58] sm:$0xff] }
  0x60   :  { %246 = vmatprep.subr.mxu0 %v15638_v0  ;;  %560 = vmatprep.subr.mxu1 %v15638_v0 }
  0x61   :  { %247 = vmatpush2.msra.mxu0 %v122_v26  ;;  %561 = vmatpush2.msra.mxu1 %v122_v26  ;;  %v8414_v26 = vld [vmem:[%s15650_s23 + $0x110] sm:$0xff] }
  0x62   :  { %248 = vmatprep.subr.mxu0 %v15638_v0  ;;  %562 = vmatprep.subr.mxu1 %v15638_v0 }
  0x63   :  { %249 = vmatpush2.msra.mxu0 %v121_v27  ;;  %563 = vmatpush2.msra.mxu1 %v121_v27  ;;  %v431_v27 = vld [vmem:[%s15650_s23 + $0x50] sm:$0xff] }
  0x64   :  { %250 = vmatprep.subr.mxu0 %v15638_v0  ;;  %564 = vmatprep.subr.mxu1 %v15638_v0 }
  0x65   :  { %251 = vmatpush2.msra.mxu0 %v120_v28  ;;  %565 = vmatpush2.msra.mxu1 %v120_v28  ;;  %v146_v28 = vld [vmem:[%s15649_s10 + $0x70] sm:$0xff] }
  0x66   :  { %252 = vmatprep.subr.mxu0 %v15638_v0  ;;  %566 = vmatprep.subr.mxu1 %v15638_v0 }
  0x67   :  { %253 = vmatpush2.msra.mxu0 %v119_v29  ;;  %567 = vmatpush2.msra.mxu1 %v119_v29  ;;  %v8354_v29 = vld [vmem:[%s15649_s10 + $0x270] sm:$0xff] }
  0x68   :  { %254 = vmatprep.subr.mxu0 %v15638_v0  ;;  %568 = vmatprep.subr.mxu1 %v15638_v0 }
  0x69   :  { %255 = vmatpush2.msra.mxu0 %v118_v30  ;;  %569 = vmatpush2.msra.mxu1 %v118_v30  ;;  %v149_v30 = vld [vmem:[%s15649_s10 + $0x88] sm:$0xff] }
  0x6a   :  { %256 = vmatprep.subr.mxu0 %v15638_v0  ;;  %570 = vmatprep.subr.mxu1 %v15638_v0 }
  0x6b   :  { %257 = vmatpush2.msra.mxu0 %v117_v31  ;;  %571 = vmatpush2.msra.mxu1 %v117_v31  ;;  %v8357_v31 = vld [vmem:[%s15649_s10 + $0x288] sm:$0xff] }
  0x6c   :  { %258 = vmatprep.subr.mxu0 %v15638_v0  ;;  %572 = vmatprep.subr.mxu1 %v15638_v0 }
  0x6d   :  { %259 = vmatpush2.msra.mxu0 %v116_v32  ;;  %260 = vmatprep.mubr.f32.mxu0 %v133_v33  ;;  %v430_v33 = vld [vmem:[%s15650_s23 + $0x48] sm:$0xff] }
  0x6e   :  { %573 = vmatpush2.msra.mxu1 %v116_v32  ;;  %574 = vmatprep.mubr.f32.mxu1 %v8341_v34  ;;  %v8413_v32 = vld [vmem:[%s15650_s23 + $0x108] sm:$0xff]  ;;  %v8412_v34 = vld [vmem:[%s15650_s23 + $0x100] sm:$0xff] }
  0x6f   :  { %261 = vmatmul.mubr.f32.vlgmr.msra.gmra.mxu0 %v132_v35  ;;  %575 = vmatmul.mubr.f32.vlgmr.msra.gmra.mxu1 %v8340_v36  ;;  %v429_v35 = vld [vmem:[%s15650_s23 + $0x40] sm:$0xff] }
  0x70   :  { %265 = vmatprep.mubr.f32.mxu0 %v135_v37  ;;  %579 = vmatprep.mubr.f32.mxu1 %v8343_v38  ;;  %v148_v36 = vld [vmem:[%s15649_s10 + $0x80] sm:$0xff]  ;;  %v151_v38 = vld [vmem:[%s15649_s10 + $0x98] sm:$0xff] }
  0x71   :  { %865 = vmatprep.subr.mxu0 %v8427_v39  ;;  %1218 = vmatprep.subr.mxu1 %v444_v40  ;;  %v8356_v37 = vld [vmem:[%s15649_s10 + $0x280] sm:$0xff]  ;;  %v8359_v39 = vld [vmem:[%s15649_s10 + $0x298] sm:$0xff] }
  0x72   :  { %866 = vmatpush1.msra.mxu0 %v8426_v41  ;;  %1219 = vmatpush1.msra.mxu1 %v443_v42  ;;  %v8411_v40 = vld [vmem:[%s15650_s23 + $0xf8] sm:$0xff]  ;;  %v8410_v42 = vld [vmem:[%s15650_s23 + $0xf0] sm:$0xff] }
  0x73   :  { %266 = vmatmul.mubr.f32.gmra.mxu0 %v134_v43  ;;  %580 = vmatmul.mubr.f32.gmra.mxu1 %v8342_v44  ;;  %v428_v41 = vld [vmem:[%s15650_s23 + $0x38] sm:$0xff]  ;;  %v427_v43 = vld [vmem:[%s15650_s23 + $0x30] sm:$0xff] }
  0x74   :  { %270 = vmatprep.mubr.f32.mxu0 %v137_v45  ;;  %584 = vmatprep.mubr.f32.mxu1 %v8345_v46  ;;  %v150_v44 = vld [vmem:[%s15649_s10 + $0x90] sm:$0xff]  ;;  %v153_v46 = vld [vmem:[%s15649_s10 + $0xa8] sm:$0xff] }
  0x75   :  { %867 = vmatprep.subr.mxu0 %v8425_v47  ;;  %1220 = vmatprep.subr.mxu1 %v442_v48  ;;  %v8358_v45 = vld [vmem:[%s15649_s10 + $0x290] sm:$0xff]  ;;  %v8361_v47 = vld [vmem:[%s15649_s10 + $0x2a8] sm:$0xff] }
  0x76   :  { %868 = vmatpush1.msra.mxu0 %v8424_v49  ;;  %1221 = vmatpush1.msra.mxu1 %v441_v50  ;;  %v8409_v48 = vld [vmem:[%s15650_s23 + $0xe8] sm:$0xff]  ;;  %v8408_v50 = vld [vmem:[%s15650_s23 + $0xe0] sm:$0xff] }
  0x77   :  { %271 = vmatmul.mubr.f32.gmra.mxu0 %v136_v51  ;;  %585 = vmatmul.mubr.f32.gmra.mxu1 %v8344_v52  ;;  %v426_v49 = vld [vmem:[%s15650_s23 + $0x28] sm:$0xff]  ;;  %v425_v51 = vld [vmem:[%s15650_s23 + $0x20] sm:$0xff] }
  0x78   :  { %275 = vmatprep.mubr.f32.mxu0 %v139_v53  ;;  %589 = vmatprep.mubr.f32.mxu1 %v8347_v54  ;;  %v152_v52 = vld [vmem:[%s15649_s10 + $0xa0] sm:$0xff]  ;;  %v155_v54 = vld [vmem:[%s15649_s10 + $0xb8] sm:$0xff] }
  0x79   :  { %869 = vmatprep.subr.mxu0 %v8423_v55  ;;  %1222 = vmatprep.subr.mxu1 %v440_v56  ;;  %v8360_v53 = vld [vmem:[%s15649_s10 + $0x2a0] sm:$0xff]  ;;  %v8363_v55 = vld [vmem:[%s15649_s10 + $0x2b8] sm:$0xff] }
  0x7a   :  { %870 = vmatpush1.msra.mxu0 %v8422_v57  ;;  %1223 = vmatpush1.msra.mxu1 %v439_v58  ;;  %v8407_v56 = vld [vmem:[%s15650_s23 + $0xd8] sm:$0xff]  ;;  %v8406_v58 = vld [vmem:[%s15650_s23 + $0xd0] sm:$0xff] }
  0x7b   :  { %276 = vmatmul.mubr.f32.gmra.mxu0 %v138_v59  ;;  %590 = vmatmul.mubr.f32.gmra.mxu1 %v8346_v60  ;;  %v424_v57 = vld [vmem:[%s15650_s23 + $0x18] sm:$0xff]  ;;  %v423_v59 = vld [vmem:[%s15650_s23 + $0x10] sm:$0xff] }
  0x7c   :  { %280 = vmatprep.mubr.f32.mxu0 %v141_v61  ;;  %594 = vmatprep.mubr.f32.mxu1 %v8349_v62  ;;  %v154_v60 = vld [vmem:[%s15649_s10 + $0xb0] sm:$0xff]  ;;  %v157_v62 = vld [vmem:[%s15649_s10 + $0xc8] sm:$0xff] }
  0x7d   :  { %871 = vmatprep.subr.mxu0 %v8421_v63  ;;  %1224 = vmatprep.subr.mxu1 %v438_v1  ;;  %v8362_v61 = vld [vmem:[%s15649_s10 + $0x2b0] sm:$0xff]  ;;  %v8365_v63 = vld [vmem:[%s15649_s10 + $0x2c8] sm:$0xff] }
  0x7e   :  { %872 = vmatpush1.msra.mxu0 %v8420_v2  ;;  %1225 = vmatpush1.msra.mxu1 %v437_v3  ;;  %v8405_v1 = vld [vmem:[%s15650_s23 + $0xc8] sm:$0xff]  ;;  %v156_v3 = vld [vmem:[%s15649_s10 + $0xc0] sm:$0xff] }
  0x7f   :  { %281 = vmatmul.mubr.f32.gmra.mxu0 %v140_v4  ;;  %595 = vmatmul.mubr.f32.gmra.mxu1 %v8348_v5  ;;  %v422_v2 = vld [vmem:[%s15650_s23 + $0x8] sm:$0xff]  ;;  %v8364_v4 = vld [vmem:[%s15649_s10 + $0x2c0] sm:$0xff]  ;;  %v159_v5 = vld [vmem:[%s15649_s10 + $0xd8] sm:$0xff] }
  0x80   :  { %285 = vmatprep.mubr.f32.mxu0 %v143_v6  ;;  %599 = vmatprep.mubr.f32.mxu1 %v8351_v7  ;;  %v8367_v6 = vld [vmem:[%s15649_s10 + $0x2d8] sm:$0xff]  ;;  %v158_v7 = vld [vmem:[%s15649_s10 + $0xd0] sm:$0xff] }
  0x81   :  { %873 = vmatprep.subr.mxu0 %v8419_v8  ;;  %1226 = vmatprep.subr.mxu1 %v436_v9  ;;  %v8366_v8 = vld [vmem:[%s15649_s10 + $0x2d0] sm:$0xff]  ;;  %v161_v9 = vld [vmem:[%s15649_s10 + $0xe8] sm:$0xff] }
  0x82   :  { %874 = vmatpush1.msra.mxu0 %v8418_v10  ;;  %1227 = vmatpush1.msra.mxu1 %v435_v11  ;;  %v8369_v10 = vld [vmem:[%s15649_s10 + $0x2e8] sm:$0xff]  ;;  %v160_v11 = vld [vmem:[%s15649_s10 + $0xe0] sm:$0xff] }
  0x83   :  { %286 = vmatmul.mubr.f32.gmra.mxu0 %v142_v12  ;;  %600 = vmatmul.mubr.f32.gmra.mxu1 %v8350_v13  ;;  %v8368_v12 = vld [vmem:[%s15649_s10 + $0x2e0] sm:$0xff]  ;;  %v163_v13 = vld [vmem:[%s15649_s10 + $0xf8] sm:$0xff] }
  0x84   :  { %290 = vmatprep.mubr.f32.mxu0 %v145_v14  ;;  %604 = vmatprep.mubr.f32.mxu1 %v8353_v15  ;;  %v8371_v14 = vld [vmem:[%s15649_s10 + $0x2f8] sm:$0xff]  ;;  %v162_v15 = vld [vmem:[%s15649_s10 + $0xf0] sm:$0xff] }
  0x85   :  { %875 = vmatprep.subr.mxu0 %v8417_v16  ;;  %1228 = vmatprep.subr.mxu1 %v434_v17  ;;  %v8370_v16 = vld [vmem:[%s15649_s10 + $0x2f0] sm:$0xff]  ;;  %v165_v17 = vld [vmem:[%s15649_s10 + $0x108] sm:$0xff] }
  0x86   :  { %876 = vmatpush1.msra.mxu0 %v8416_v18  ;;  %1229 = vmatpush1.msra.mxu1 %v433_v19  ;;  %v8373_v18 = vld [vmem:[%s15649_s10 + $0x308] sm:$0xff]  ;;  %v164_v19 = vld [vmem:[%s15649_s10 + $0x100] sm:$0xff] }
  0x87   :  { %291 = vmatmul.mubr.f32.gmra.mxu0 %v144_v20  ;;  %605 = vmatmul.mubr.f32.gmra.mxu1 %v8352_v21  ;;  %v8372_v20 = vld [vmem:[%s15649_s10 + $0x300] sm:$0xff]  ;;  %v167_v21 = vld [vmem:[%s15649_s10 + $0x118] sm:$0xff] }
  0x88   :  { %295 = vmatprep.mubr.f32.mxu0 %v147_v22  ;;  %609 = vmatprep.mubr.f32.mxu1 %v8355_v23  ;;  %v8375_v22 = vld [vmem:[%s15649_s10 + $0x318] sm:$0xff]  ;;  %v8404_v23 = vld [vmem:[%s15650_s23 + $0xc0] sm:$0xff] }
  0x89   :  { %877 = vmatprep.subr.mxu0 %v8415_v24  ;;  %1230 = vmatprep.subr.mxu1 %v432_v25  ;;  %v421_v24 = vld [vmem:[%s15650_s23] sm:$0xff]  ;;  %v166_v25 = vld [vmem:[%s15649_s10 + $0x110] sm:$0xff] }
  0x8a   :  { %878 = vmatpush1.msra.mxu0 %v8414_v26  ;;  %1231 = vmatpush1.msra.mxu1 %v431_v27  ;;  %v8374_v26 = vld [vmem:[%s15649_s10 + $0x310] sm:$0xff]  ;;  %v169_v27 = vld [vmem:[%s15649_s10 + $0x128] sm:$0xff] }
  0x8b   :  { %296 = vmatmul.mubr.f32.gmra.mxu0 %v146_v28  ;;  %610 = vmatmul.mubr.f32.gmra.mxu1 %v8354_v29  ;;  %v8377_v28 = vld [vmem:[%s15649_s10 + $0x328] sm:$0xff]  ;;  %v168_v29 = vld [vmem:[%s15649_s10 + $0x120] sm:$0xff] }
  0x8c   :  { %300 = vmatprep.mubr.f32.mxu0 %v149_v30  ;;  %614 = vmatprep.mubr.f32.mxu1 %v8357_v31  ;;  %v8376_v30 = vld [vmem:[%s15649_s10 + $0x320] sm:$0xff]  ;;  %v171_v31 = vld [vmem:[%s15649_s10 + $0x138] sm:$0xff] }
  0x8d   :  { %879 = vmatprep.subr.mxu0 %v8413_v32  ;;  %1232 = vmatprep.subr.mxu1 %v430_v33  ;;  %v8379_v32 = vld [vmem:[%s15649_s10 + $0x338] sm:$0xff]  ;;  %v170_v33 = vld [vmem:[%s15649_s10 + $0x130] sm:$0xff] }
  0x8e   :  { %880 = vmatpush1.msra.mxu0 %v8412_v34  ;;  %1233 = vmatpush1.msra.mxu1 %v429_v35  ;;  %v8378_v34 = vld [vmem:[%s15649_s10 + $0x330] sm:$0xff]  ;;  %v173_v35 = vld [vmem:[%s15649_s10 + $0x148] sm:$0xff] }
  0x8f   :  { %301 = vmatmul.mubr.f32.gmra.mxu0 %v148_v36  ;;  %615 = vmatmul.mubr.f32.gmra.mxu1 %v8356_v37  ;;  %v8381_v36 = vld [vmem:[%s15649_s10 + $0x348] sm:$0xff]  ;;  %v172_v37 = vld [vmem:[%s15649_s10 + $0x140] sm:$0xff] }
  0x90   :  { %305 = vmatprep.mubr.f32.mxu0 %v151_v38  ;;  %619 = vmatprep.mubr.f32.mxu1 %v8359_v39  ;;  %v8380_v38 = vld [vmem:[%s15649_s10 + $0x340] sm:$0xff]  ;;  %v175_v39 = vld [vmem:[%s15649_s10 + $0x158] sm:$0xff] }
  0x91   :  { %881 = vmatprep.subr.mxu0 %v8411_v40  ;;  %1234 = vmatprep.subr.mxu1 %v428_v41  ;;  %v8383_v40 = vld [vmem:[%s15649_s10 + $0x358] sm:$0xff]  ;;  %v174_v41 = vld [vmem:[%s15649_s10 + $0x150] sm:$0xff] }
  0x92   :  { %882 = vmatpush1.msra.mxu0 %v8410_v42  ;;  %1235 = vmatpush1.msra.mxu1 %v427_v43  ;;  %v8382_v42 = vld [vmem:[%s15649_s10 + $0x350] sm:$0xff]  ;;  %v177_v43 = vld [vmem:[%s15649_s10 + $0x168] sm:$0xff] }
  0x93   :  { %306 = vmatmul.mubr.f32.gmra.mxu0 %v150_v44  ;;  %620 = vmatmul.mubr.f32.gmra.mxu1 %v8358_v45  ;;  %v8385_v44 = vld [vmem:[%s15649_s10 + $0x368] sm:$0xff]  ;;  %v176_v45 = vld [vmem:[%s15649_s10 + $0x160] sm:$0xff] }
  0x94   :  { %310 = vmatprep.mubr.f32.mxu0 %v153_v46  ;;  %624 = vmatprep.mubr.f32.mxu1 %v8361_v47  ;;  %v8384_v46 = vld [vmem:[%s15649_s10 + $0x360] sm:$0xff]  ;;  %v179_v47 = vld [vmem:[%s15649_s10 + $0x178] sm:$0xff] }
  0x95   :  { %883 = vmatprep.subr.mxu0 %v8409_v48  ;;  %1236 = vmatprep.subr.mxu1 %v426_v49  ;;  %v8387_v48 = vld [vmem:[%s15649_s10 + $0x378] sm:$0xff]  ;;  %v178_v49 = vld [vmem:[%s15649_s10 + $0x170] sm:$0xff] }
  0x96   :  { %884 = vmatpush1.msra.mxu0 %v8408_v50  ;;  %1237 = vmatpush1.msra.mxu1 %v425_v51  ;;  %v8386_v50 = vld [vmem:[%s15649_s10 + $0x370] sm:$0xff]  ;;  %v181_v51 = vld [vmem:[%s15649_s10 + $0x188] sm:$0xff] }
  0x97   :  { %311 = vmatmul.mubr.f32.gmra.mxu0 %v152_v52  ;;  %625 = vmatmul.mubr.f32.gmra.mxu1 %v8360_v53  ;;  %v8389_v52 = vld [vmem:[%s15649_s10 + $0x388] sm:$0xff]  ;;  %v180_v53 = vld [vmem:[%s15649_s10 + $0x180] sm:$0xff] }
  0x98   :  { %315 = vmatprep.mubr.f32.mxu0 %v155_v54  ;;  %629 = vmatprep.mubr.f32.mxu1 %v8363_v55  ;;  %v8388_v54 = vld [vmem:[%s15649_s10 + $0x380] sm:$0xff]  ;;  %v183_v55 = vld [vmem:[%s15649_s10 + $0x198] sm:$0xff] }
  0x99   :  { %885 = vmatprep.subr.mxu0 %v8407_v56  ;;  %1238 = vmatprep.subr.mxu1 %v424_v57  ;;  %v8391_v56 = vld [vmem:[%s15649_s10 + $0x398] sm:$0xff]  ;;  %v182_v57 = vld [vmem:[%s15649_s10 + $0x190] sm:$0xff] }
  0x9a   :  { %886 = vmatpush1.msra.mxu0 %v8406_v58  ;;  %1239 = vmatpush1.msra.mxu1 %v423_v59  ;;  %v8390_v58 = vld [vmem:[%s15649_s10 + $0x390] sm:$0xff]  ;;  %v185_v59 = vld [vmem:[%s15649_s10 + $0x1a8] sm:$0xff] }
  0x9b   :  { %316 = vmatmul.mubr.f32.gmra.mxu0 %v154_v60  ;;  %630 = vmatmul.mubr.f32.gmra.mxu1 %v8362_v61  ;;  %v8393_v60 = vld [vmem:[%s15649_s10 + $0x3a8] sm:$0xff]  ;;  %v184_v61 = vld [vmem:[%s15649_s10 + $0x1a0] sm:$0xff] }
  0x9c   :  { %320 = vmatprep.mubr.f32.mxu0 %v157_v62  ;;  %634 = vmatprep.mubr.f32.mxu1 %v8365_v63  ;;  %v8392_v62 = vld [vmem:[%s15649_s10 + $0x3a0] sm:$0xff]  ;;  %v187_v63 = vld [vmem:[%s15649_s10 + $0x1b8] sm:$0xff] }
  0x9d   :  { %887 = vmatprep.subr.mxu0 %v8405_v1  ;;  %1240 = vmatprep.subr.mxu1 %v422_v2  ;;  %v8395_v1 = vld [vmem:[%s15649_s10 + $0x3b8] sm:$0xff]  ;;  %v186_v2 = vld [vmem:[%s15649_s10 + $0x1b0] sm:$0xff] }
  0x9e   :  { %888 = vmatpush1.msra.mxu0 %v8404_v23  ;;  %1241 = vmatpush1.msra.mxu1 %v421_v24  ;;  %v10982_v24 = vld [vmem:[%s15648_s29 + $0x78] sm:$0xff] }
  0x9f   :  { %321 = vmatmul.mubr.f32.gmra.mxu0 %v156_v3  ;;  %635 = vmatmul.mubr.f32.gmra.mxu1 %v8364_v4  ;;  %v8394_v3 = vld [vmem:[%s15649_s10 + $0x3b0] sm:$0xff]  ;;  %v189_v4 = vld [vmem:[%s15649_s10 + $0x1c8] sm:$0xff] }
  0xa0   :  { %325 = vmatprep.mubr.f32.mxu0 %v159_v5  ;;  %639 = vmatprep.mubr.f32.mxu1 %v8367_v6  ;;  %v8397_v5 = vld [vmem:[%s15649_s10 + $0x3c8] sm:$0xff]  ;;  %v188_v6 = vld [vmem:[%s15649_s10 + $0x1c0] sm:$0xff] }
  0xa1   :  { %1532 = vmatprep.subr.mxu0 %v15638_v0 }
  0xa3   :  { %326 = vmatmul.mubr.f32.gmra.mxu0 %v158_v7  ;;  %640 = vmatmul.mubr.f32.gmra.mxu1 %v8366_v8  ;;  %v8396_v7 = vld [vmem:[%s15649_s10 + $0x3c0] sm:$0xff]  ;;  %v191_v8 = vld [vmem:[%s15649_s10 + $0x1d8] sm:$0xff] }
  0xa4   :  { %330 = vmatprep.mubr.f32.mxu0 %v161_v9  ;;  %644 = vmatprep.mubr.f32.mxu1 %v8369_v10  ;;  %v8399_v9 = vld [vmem:[%s15649_s10 + $0x3d8] sm:$0xff]  ;;  %v190_v10 = vld [vmem:[%s15649_s10 + $0x1d0] sm:$0xff] }
  0xa7   :  { %331 = vmatmul.mubr.f32.gmra.mxu0 %v160_v11  ;;  %645 = vmatmul.mubr.f32.gmra.mxu1 %v8368_v12  ;;  %v8398_v11 = vld [vmem:[%s15649_s10 + $0x3d0] sm:$0xff]  ;;  %v193_v12 = vld [vmem:[%s15649_s10 + $0x1e8] sm:$0xff] }
  0xa8   :  { %335 = vmatprep.mubr.f32.mxu0 %v163_v13  ;;  %649 = vmatprep.mubr.f32.mxu1 %v8371_v14  ;;  %v8401_v13 = vld [vmem:[%s15649_s10 + $0x3e8] sm:$0xff]  ;;  %v192_v14 = vld [vmem:[%s15649_s10 + $0x1e0] sm:$0xff] }
  0xab   :  { %336 = vmatmul.mubr.f32.gmra.mxu0 %v162_v15  ;;  %650 = vmatmul.mubr.f32.gmra.mxu1 %v8370_v16  ;;  %v8400_v15 = vld [vmem:[%s15649_s10 + $0x3e0] sm:$0xff]  ;;  %v195_v16 = vld [vmem:[%s15649_s10 + $0x1f8] sm:$0xff] }
  0xac   :  { %340 = vmatprep.mubr.f32.mxu0 %v165_v17  ;;  %654 = vmatprep.mubr.f32.mxu1 %v8373_v18  ;;  %v8403_v17 = vld [vmem:[%s15649_s10 + $0x3f8] sm:$0xff]  ;;  %v194_v18 = vld [vmem:[%s15649_s10 + $0x1f0] sm:$0xff] }
  0xaf   :  { %341 = vmatmul.mubr.f32.gmra.mxu0 %v164_v19  ;;  %655 = vmatmul.mubr.f32.gmra.mxu1 %v8372_v20  ;;  %v8402_v19 = vld [vmem:[%s15649_s10 + $0x3f0] sm:$0xff] }
  0xb0   :  { %345 = vmatprep.mubr.f32.mxu0 %v167_v21  ;;  %659 = vmatprep.mubr.f32.mxu1 %v8375_v22 }
  0xb3   :  { %346 = vmatmul.mubr.f32.gmra.mxu0 %v166_v25  ;;  %660 = vmatmul.mubr.f32.gmra.mxu1 %v8374_v26 }
  0xb4   :  { %350 = vmatprep.mubr.f32.mxu0 %v169_v27  ;;  %664 = vmatprep.mubr.f32.mxu1 %v8377_v28 }
  0xb7   :  { %351 = vmatmul.mubr.f32.gmra.mxu0 %v168_v29  ;;  %665 = vmatmul.mubr.f32.gmra.mxu1 %v8376_v30  ;;  %v10993_v29 = vld [vmem:[%s15648_s29 + $0x70] sm:$0xff] }
  0xb8   :  { %355 = vmatprep.mubr.f32.mxu0 %v171_v31  ;;  %669 = vmatprep.mubr.f32.mxu1 %v8379_v32 }
  0xbb   :  { %356 = vmatmul.mubr.f32.gmra.mxu0 %v170_v33  ;;  %670 = vmatmul.mubr.f32.gmra.mxu1 %v8378_v34  ;;  %v11004_v34 = vld [vmem:[%s15648_s29 + $0x68] sm:$0xff] }
  0xbc   :  { %360 = vmatprep.mubr.f32.mxu0 %v173_v35  ;;  %674 = vmatprep.mubr.f32.mxu1 %v8381_v36 }
  0xbf   :  { %361 = vmatmul.mubr.f32.gmra.mxu0 %v172_v37  ;;  %675 = vmatmul.mubr.f32.gmra.mxu1 %v8380_v38 }
  0xc0   :  { %365 = vmatprep.mubr.f32.mxu0 %v175_v39  ;;  %679 = vmatprep.mubr.f32.mxu1 %v8383_v40  ;;  %v11015_v39 = vld [vmem:[%s15648_s29 + $0x60] sm:$0xff] }
  0xc3   :  { %366 = vmatmul.mubr.f32.gmra.mxu0 %v174_v41  ;;  %680 = vmatmul.mubr.f32.gmra.mxu1 %v8382_v42 }
  0xc4   :  { %370 = vmatprep.mubr.f32.mxu0 %v177_v43  ;;  %684 = vmatprep.mubr.f32.mxu1 %v8385_v44  ;;  %v11026_v44 = vld [vmem:[%s15648_s29 + $0x58] sm:$0xff] }
  0xc7   :  { %371 = vmatmul.mubr.f32.gmra.mxu0 %v176_v45  ;;  %685 = vmatmul.mubr.f32.gmra.mxu1 %v8384_v46 }
  0xc8   :  { %375 = vmatprep.mubr.f32.mxu0 %v179_v47  ;;  %689 = vmatprep.mubr.f32.mxu1 %v8387_v48 }
  0xcb   :  { %376 = vmatmul.mubr.f32.gmra.mxu0 %v178_v49  ;;  %690 = vmatmul.mubr.f32.gmra.mxu1 %v8386_v50  ;;  %v11037_v49 = vld [vmem:[%s15648_s29 + $0x50] sm:$0xff] }
  0xcc   :  { %380 = vmatprep.mubr.f32.mxu0 %v181_v51  ;;  %694 = vmatprep.mubr.f32.mxu1 %v8389_v52 }
  0xcf   :  { %381 = vmatmul.mubr.f32.gmra.mxu0 %v180_v53  ;;  %695 = vmatmul.mubr.f32.gmra.mxu1 %v8388_v54  ;;  %v11048_v54 = vld [vmem:[%s15648_s29 + $0x48] sm:$0xff] }
  0xd0   :  { %385 = vmatprep.mubr.f32.mxu0 %v183_v55  ;;  %699 = vmatprep.mubr.f32.mxu1 %v8391_v56 }
  0xd3   :  { %386 = vmatmul.mubr.f32.gmra.mxu0 %v182_v57  ;;  %700 = vmatmul.mubr.f32.gmra.mxu1 %v8390_v58 }
  0xd4   :  { %390 = vmatprep.mubr.f32.mxu0 %v185_v59  ;;  %704 = vmatprep.mubr.f32.mxu1 %v8393_v60  ;;  %v11059_v59 = vld [vmem:[%s15648_s29 + $0x40] sm:$0xff] }
  0xd7   :  { %391 = vmatmul.mubr.f32.gmra.mxu0 %v184_v61  ;;  %705 = vmatmul.mubr.f32.gmra.mxu1 %v8392_v62 }
  0xd8   :  { %395 = vmatprep.mubr.f32.mxu0 %v187_v63  ;;  %709 = vmatprep.mubr.f32.mxu1 %v8395_v1  ;;  %v11070_v1 = vld [vmem:[%s15648_s29 + $0x38] sm:$0xff] }
  0xdb   :  { %396 = vmatmul.mubr.f32.gmra.mxu0 %v186_v2  ;;  %710 = vmatmul.mubr.f32.gmra.mxu1 %v8394_v3 }
  0xdc   :  { %400 = vmatprep.mubr.f32.mxu0 %v189_v4  ;;  %714 = vmatprep.mubr.f32.mxu1 %v8397_v5 }
  0xdf   :  { %401 = vmatmul.mubr.f32.gmra.mxu0 %v188_v6  ;;  %715 = vmatmul.mubr.f32.gmra.mxu1 %v8396_v7  ;;  %v11081_v6 = vld [vmem:[%s15648_s29 + $0x30] sm:$0xff] }
  0xe0   :  { %405 = vmatprep.mubr.f32.mxu0 %v191_v8  ;;  %719 = vmatprep.mubr.f32.mxu1 %v8399_v9 }
  0xe3   :  { %406 = vmatmul.mubr.f32.gmra.mxu0 %v190_v10  ;;  %720 = vmatmul.mubr.f32.gmra.mxu1 %v8398_v11  ;;  %v11092_v11 = vld [vmem:[%s15648_s29 + $0x28] sm:$0xff] }
  0xe4   :  { %410 = vmatprep.mubr.f32.mxu0 %v193_v12  ;;  %724 = vmatprep.mubr.f32.mxu1 %v8401_v13 }
  0xe7   :  { %411 = vmatmul.mubr.f32.gmra.mxu0 %v192_v14  ;;  %725 = vmatmul.mubr.f32.gmra.mxu1 %v8400_v15 }
  0xe8   :  { %415 = vmatprep.mubr.f32.mxu0 %v195_v16  ;;  %729 = vmatprep.mubr.f32.mxu1 %v8403_v17  ;;  %v11103_v16 = vld [vmem:[%s15648_s29 + $0x20] sm:$0xff] }
  0xeb   :  { %416 = vmatmul.mubr.f32.gmra.mxu0 %v194_v18  ;;  %730 = vmatmul.mubr.f32.gmra.mxu1 %v8402_v19 }
  0xec   :  { %921 = vmatprep.mubr.f32.mxu0 %v15638_v0  ;;  %1274 = vmatprep.mubr.f32.mxu1 %v15638_v0 }
 0x12f   :  { %v262_v20 = vpop.f32.mrf.mxu0  ;;  %v576_v21 = vpop.f32.mrf.mxu1 }
 0x130   :  { %8428 = vmatmul.mubr.msk.f32.vlgmr.msra.gmra.mxu0 %vm760_vm0, %v576_v21  ;;  %8460 = vmatmul.mubr.msk.f32.vlgmr.msra.gmra.mxu1 %vm760_vm0, %v262_v20  ;;  %v11114_v21 = vld [vmem:[%s15648_s29 + $0x18] sm:$0xff] }
 0x131   :  { %v264_v22 = vpop.f32.mrf.mxu0  ;;  %v578_v23 = vpop.f32.mrf.mxu1  ;;  %927 = vmatprep.mubr.f32.mxu0 %v15638_v0  ;;  %1280 = vmatprep.mubr.f32.mxu1 %v15638_v0 }
 0x132   :  { %1533 = vmatpush1.msra.mxu0 %v10982_v24 }
 0x133   :  { %v267_v25 = vpop.f32.mrf.mxu0  ;;  %v581_v26 = vpop.f32.mrf.mxu1  ;;  %1534 = vmatprep.subr.mxu0 %v15638_v0 }
 0x134   :  { %8429 = vmatmul.mubr.msk.f32.gmra.mxu0 %vm760_vm0, %v581_v26  ;;  %8461 = vmatmul.mubr.msk.f32.gmra.mxu1 %vm760_vm0, %v267_v25 }
 0x135   :  { %v269_v27 = vpop.f32.mrf.mxu0  ;;  %v583_v28 = vpop.f32.mrf.mxu1  ;;  %933 = vmatprep.mubr.f32.mxu0 %v15638_v0  ;;  %1286 = vmatprep.mubr.f32.mxu1 %v15638_v0 }
 0x136   :  { %1535 = vmatpush1.msra.mxu0 %v10993_v29  ;;  %v11125_v27 = vld [vmem:[%s15648_s29 + $0x10] sm:$0xff] }
 0x137   :  { %v272_v30 = vpop.f32.mrf.mxu0  ;;  %v586_v31 = vpop.f32.mrf.mxu1  ;;  %1536 = vmatprep.subr.mxu0 %v15638_v0 }
 0x138   :  { %8430 = vmatmul.mubr.msk.f32.gmra.mxu0 %vm760_vm0, %v586_v31  ;;  %8462 = vmatmul.mubr.msk.f32.gmra.mxu1 %vm760_vm0, %v272_v30 }
 0x139   :  { %v274_v32 = vpop.f32.mrf.mxu0  ;;  %v588_v33 = vpop.f32.mrf.mxu1  ;;  %939 = vmatprep.mubr.f32.mxu0 %v15638_v0  ;;  %1292 = vmatprep.mubr.f32.mxu1 %v15638_v0 }
 0x13a   :  { %1537 = vmatpush1.msra.mxu0 %v11004_v34  ;;  %v11136_v33 = vld [vmem:[%s15648_s29 + $0x8] sm:$0xff] }
 0x13b   :  { %v277_v35 = vpop.f32.mrf.mxu0  ;;  %v591_v36 = vpop.f32.mrf.mxu1  ;;  %1538 = vmatprep.subr.mxu0 %v15638_v0 }
 0x13c   :  { %8431 = vmatmul.mubr.msk.f32.gmra.mxu0 %vm760_vm0, %v591_v36  ;;  %8463 = vmatmul.mubr.msk.f32.gmra.mxu1 %vm760_vm0, %v277_v35 }
 0x13d   :  { %v279_v37 = vpop.f32.mrf.mxu0  ;;  %v593_v38 = vpop.f32.mrf.mxu1  ;;  %945 = vmatprep.mubr.f32.mxu0 %v15638_v0  ;;  %1298 = vmatprep.mubr.f32.mxu1 %v15638_v0 }
 0x13e   :  { %1539 = vmatpush1.msra.mxu0 %v11015_v39 }
 0x13f   :  { %v282_v40 = vpop.f32.mrf.mxu0  ;;  %v596_v41 = vpop.f32.mrf.mxu1  ;;  %1540 = vmatprep.subr.mxu0 %v15638_v0 }
 0x140   :  { %8432 = vmatmul.mubr.msk.f32.gmra.mxu0 %vm760_vm0, %v596_v41  ;;  %8464 = vmatmul.mubr.msk.f32.gmra.mxu1 %vm760_vm0, %v282_v40  ;;  %v11147_v40 = vld [vmem:[%s15648_s29] sm:$0xff] }
 0x141   :  { %v284_v42 = vpop.f32.mrf.mxu0  ;;  %v598_v43 = vpop.f32.mrf.mxu1  ;;  %951 = vmatprep.mubr.f32.mxu0 %v15638_v0  ;;  %1304 = vmatprep.mubr.f32.mxu1 %v15638_v0 }
 0x142   :  { %1541 = vmatpush1.msra.mxu0 %v11026_v44 }
 0x143   :  { %v287_v45 = vpop.f32.mrf.mxu0  ;;  %v601_v46 = vpop.f32.mrf.mxu1  ;;  %1542 = vmatprep.subr.mxu0 %v15638_v0 }
 0x144   :  { %8433 = vmatmul.mubr.msk.f32.gmra.mxu0 %vm760_vm0, %v601_v46  ;;  %8465 = vmatmul.mubr.msk.f32.gmra.mxu1 %vm760_vm0, %v287_v45  ;;  %v11158_v46 = vld [vmem:[%s15648_s29 + $0xf8] sm:$0xff] }
 0x145   :  { %v289_v47 = vpop.f32.mrf.mxu0  ;;  %v603_v48 = vpop.f32.mrf.mxu1  ;;  %957 = vmatprep.mubr.f32.mxu0 %v15638_v0  ;;  %1310 = vmatprep.mubr.f32.mxu1 %v15638_v0 }
 0x146   :  { %1543 = vmatpush1.msra.mxu0 %v11037_v49 }
 0x147   :  { %v292_v50 = vpop.f32.mrf.mxu0  ;;  %v606_v51 = vpop.f32.mrf.mxu1  ;;  %1544 = vmatprep.subr.mxu0 %v15638_v0 }
 0x148   :  { %8434 = vmatmul.mubr.msk.f32.gmra.mxu0 %vm760_vm0, %v606_v51  ;;  %8466 = vmatmul.mubr.msk.f32.gmra.mxu1 %vm760_vm0, %v292_v50 }
 0x149   :  { %v294_v52 = vpop.f32.mrf.mxu0  ;;  %v608_v53 = vpop.f32.mrf.mxu1  ;;  %963 = vmatprep.mubr.f32.mxu0 %v15638_v0  ;;  %1316 = vmatprep.mubr.f32.mxu1 %v15638_v0 }
 0x14a   :  { %1545 = vmatpush1.msra.mxu0 %v11048_v54  ;;  %v11169_v52 = vld [vmem:[%s15648_s29 + $0xf0] sm:$0xff] }
 0x14b   :  { %v297_v55 = vpop.f32.mrf.mxu0  ;;  %v611_v56 = vpop.f32.mrf.mxu1  ;;  %1546 = vmatprep.subr.mxu0 %v15638_v0 }
 0x14c   :  { %8435 = vmatmul.mubr.msk.f32.gmra.mxu0 %vm760_vm0, %v611_v56  ;;  %8467 = vmatmul.mubr.msk.f32.gmra.mxu1 %vm760_vm0, %v297_v55 }
 0x14d   :  { %v299_v57 = vpop.f32.mrf.mxu0  ;;  %v613_v58 = vpop.f32.mrf.mxu1  ;;  %969 = vmatprep.mubr.f32.mxu0 %v15638_v0  ;;  %1322 = vmatprep.mubr.f32.mxu1 %v15638_v0 }
 0x14e   :  { %1547 = vmatpush1.msra.mxu0 %v11059_v59  ;;  %v11180_v58 = vld [vmem:[%s15648_s29 + $0xe8] sm:$0xff] }
 0x14f   :  { %v302_v60 = vpop.f32.mrf.mxu0  ;;  %v616_v61 = vpop.f32.mrf.mxu1  ;;  %1548 = vmatprep.subr.mxu0 %v15638_v0 }
 0x150   :  { %8436 = vmatmul.mubr.msk.f32.gmra.mxu0 %vm760_vm0, %v616_v61  ;;  %8468 = vmatmul.mubr.msk.f32.gmra.mxu1 %vm760_vm0, %v302_v60 }
 0x151   :  { %v304_v62 = vpop.f32.mrf.mxu0  ;;  %v618_v63 = vpop.f32.mrf.mxu1  ;;  %975 = vmatprep.mubr.f32.mxu0 %v15638_v0  ;;  %1328 = vmatprep.mubr.f32.mxu1 %v15638_v0 }
 0x152   :  { %1549 = vmatpush1.msra.mxu0 %v11070_v1 }
 0x153   :  { %v307_v2 = vpop.f32.mrf.mxu0  ;;  %v621_v3 = vpop.f32.mrf.mxu1  ;;  %1550 = vmatprep.subr.mxu0 %v15638_v0 }
 0x154   :  { %8437 = vmatmul.mubr.msk.f32.gmra.mxu0 %vm760_vm0, %v621_v3  ;;  %8469 = vmatmul.mubr.msk.f32.gmra.mxu1 %vm760_vm0, %v307_v2  ;;  %v11191_v2 = vld [vmem:[%s15648_s29 + $0xe0] sm:$0xff] }
 0x155   :  { %v309_v4 = vpop.f32.mrf.mxu0  ;;  %v623_v5 = vpop.f32.mrf.mxu1  ;;  %981 = vmatprep.mubr.f32.mxu0 %v15638_v0  ;;  %1334 = vmatprep.mubr.f32.mxu1 %v15638_v0 }
 0x156   :  { %1551 = vmatpush1.msra.mxu0 %v11081_v6 }
 0x157   :  { %v312_v7 = vpop.f32.mrf.mxu0  ;;  %v626_v8 = vpop.f32.mrf.mxu1  ;;  %1552 = vmatprep.subr.mxu0 %v15638_v0 }
 0x158   :  { %8438 = vmatmul.mubr.msk.f32.gmra.mxu0 %vm760_vm0, %v626_v8  ;;  %8470 = vmatmul.mubr.msk.f32.gmra.mxu1 %vm760_vm0, %v312_v7  ;;  %v11202_v8 = vld [vmem:[%s15648_s29 + $0xd8] sm:$0xff] }
 0x159   :  { %v314_v9 = vpop.f32.mrf.mxu0  ;;  %v628_v10 = vpop.f32.mrf.mxu1  ;;  %987 = vmatprep.mubr.f32.mxu0 %v15638_v0  ;;  %1340 = vmatprep.mubr.f32.mxu1 %v15638_v0 }
 0x15a   :  { %1553 = vmatpush1.msra.mxu0 %v11092_v11 }
 0x15b   :  { %v317_v12 = vpop.f32.mrf.mxu0  ;;  %v631_v13 = vpop.f32.mrf.mxu1  ;;  %1554 = vmatprep.subr.mxu0 %v15638_v0 }
 0x15c   :  { %8439 = vmatmul.mubr.msk.f32.gmra.mxu0 %vm760_vm0, %v631_v13  ;;  %8471 = vmatmul.mubr.msk.f32.gmra.mxu1 %vm760_vm0, %v317_v12 }
 0x15d   :  { %v319_v14 = vpop.f32.mrf.mxu0  ;;  %v633_v15 = vpop.f32.mrf.mxu1  ;;  %993 = vmatprep.mubr.f32.mxu0 %v15638_v0  ;;  %1346 = vmatprep.mubr.f32.mxu1 %v15638_v0 }
 0x15e   :  { %1555 = vmatpush1.msra.mxu0 %v11103_v16  ;;  %v11213_v14 = vld [vmem:[%s15648_s29 + $0xd0] sm:$0xff] }
 0x15f   :  { %v322_v17 = vpop.f32.mrf.mxu0  ;;  %v636_v18 = vpop.f32.mrf.mxu1  ;;  %1556 = vmatprep.subr.mxu0 %v15638_v0 }
 0x160   :  { %8440 = vmatmul.mubr.msk.f32.gmra.mxu0 %vm760_vm0, %v636_v18  ;;  %8472 = vmatmul.mubr.msk.f32.gmra.mxu1 %vm760_vm0, %v322_v17 }
 0x161   :  { %v324_v19 = vpop.f32.mrf.mxu0  ;;  %v638_v20 = vpop.f32.mrf.mxu1  ;;  %999 = vmatprep.mubr.f32.mxu0 %v15638_v0  ;;  %1352 = vmatprep.mubr.f32.mxu1 %v15638_v0 }
 0x162   :  { %1557 = vmatpush1.msra.mxu0 %v11114_v21  ;;  %v11224_v20 = vld [vmem:[%s15648_s29 + $0xc8] sm:$0xff] }
 0x163   :  { %v327_v22 = vpop.f32.mrf.mxu0  ;;  %v641_v23 = vpop.f32.mrf.mxu1  ;;  %1558 = vmatprep.subr.mxu0 %v15638_v0 }
 0x164   :  { %8441 = vmatmul.mubr.msk.f32.gmra.mxu0 %vm760_vm0, %v641_v23  ;;  %8473 = vmatmul.mubr.msk.f32.gmra.mxu1 %vm760_vm0, %v327_v22 }
 0x165   :  { %v329_v25 = vpop.f32.mrf.mxu0  ;;  %v643_v26 = vpop.f32.mrf.mxu1  ;;  %1005 = vmatprep.mubr.f32.mxu0 %v15638_v0  ;;  %1358 = vmatprep.mubr.f32.mxu1 %v15638_v0 }
 0x166   :  { %1559 = vmatpush1.msra.mxu0 %v11125_v27 }
 0x167   :  { %v332_v28 = vpop.f32.mrf.mxu0  ;;  %v646_v30 = vpop.f32.mrf.mxu1  ;;  %1560 = vmatprep.subr.mxu0 %v15638_v0 }
 0x168   :  { %8442 = vmatmul.mubr.msk.f32.gmra.mxu0 %vm760_vm0, %v646_v30  ;;  %8474 = vmatmul.mubr.msk.f32.gmra.mxu1 %vm760_vm0, %v332_v28  ;;  %v11235_v28 = vld [vmem:[%s15648_s29 + $0xc0] sm:$0xff] }
 0x169   :  { %v334_v31 = vpop.f32.mrf.mxu0  ;;  %v648_v32 = vpop.f32.mrf.mxu1  ;;  %1011 = vmatprep.mubr.f32.mxu0 %v15638_v0  ;;  %1364 = vmatprep.mubr.f32.mxu1 %v15638_v0 }
 0x16a   :  { %1561 = vmatpush1.msra.mxu0 %v11136_v33 }
 0x16b   :  { %v337_v35 = vpop.f32.mrf.mxu0  ;;  %v651_v36 = vpop.f32.mrf.mxu1  ;;  %1562 = vmatprep.subr.mxu0 %v15638_v0 }
 0x16c   :  { %8443 = vmatmul.mubr.msk.f32.gmra.mxu0 %vm760_vm0, %v651_v36  ;;  %8475 = vmatmul.mubr.msk.f32.gmra.mxu1 %vm760_vm0, %v337_v35  ;;  %v8579_v36 = vld [vmem:[%s15650_s23 + $0x238] sm:$0xff] }
 0x16d   :  { %v339_v37 = vpop.f32.mrf.mxu0  ;;  %v653_v38 = vpop.f32.mrf.mxu1  ;;  %1017 = vmatprep.mubr.f32.mxu0 %v15638_v0  ;;  %1370 = vmatprep.mubr.f32.mxu1 %v15638_v0 }
 0x16e   :  { %1563 = vmatpush1.msra.mxu0 %v11147_v40  ;;  %v11249_v37 = vld [vmem:[%s15648_s29 + $0xb8] sm:$0xff]  ;;  %1886 = vmatprep.subr.mxu1 %v8579_v36 }
 0x16f   :  { %v342_v41 = vpop.f32.mrf.mxu0  ;;  %v656_v42 = vpop.f32.mrf.mxu1  ;;  %1564 = vmatprep.subr.mxu0 %v15638_v0 }
 0x170   :  { %8444 = vmatmul.mubr.msk.f32.gmra.mxu0 %vm760_vm0, %v656_v42  ;;  %8476 = vmatmul.mubr.msk.f32.gmra.mxu1 %vm760_vm0, %v342_v41  ;;  %v8578_v42 = vld [vmem:[%s15650_s23 + $0x230] sm:$0xff] }
 0x171   :  { %v344_v43 = vpop.f32.mrf.mxu0  ;;  %v658_v45 = vpop.f32.mrf.mxu1  ;;  %1023 = vmatprep.mubr.f32.mxu0 %v15638_v0  ;;  %1376 = vmatprep.mubr.f32.mxu1 %v15638_v0 }
 0x172   :  { %1565 = vmatpush2.msra.mxu0 %v11158_v46  ;;  %1887 = vmatpush1.msra.mxu1 %v8578_v42  ;;  %v8492_v42 = vld [vmem:[%s15649_s10 + $0x400] sm:$0xff] }
 0x173   :  { %v347_v47 = vpop.f32.mrf.mxu0  ;;  %v661_v48 = vpop.f32.mrf.mxu1  ;;  %1566 = vmatprep.subr.mxu0 %v15638_v0 }
 0x174   :  { %8445 = vmatmul.mubr.msk.f32.gmra.mxu0 %vm760_vm0, %v661_v48  ;;  %8477 = vmatmul.mubr.msk.f32.gmra.mxu1 %vm760_vm0, %v347_v47  ;;  %v11263_v47 = vld [vmem:[%s15648_s29 + $0xb0] sm:$0xff] }
 0x175   :  { %v349_v50 = vpop.f32.mrf.mxu0  ;;  %v663_v51 = vpop.f32.mrf.mxu1  ;;  %1029 = vmatprep.mubr.f32.mxu0 %v15638_v0  ;;  %1382 = vmatprep.mubr.f32.mxu1 %v15638_v0 }
 0x176   :  { %1567 = vmatpush2.msra.mxu0 %v11169_v52 }
 0x177   :  { %v352_v53 = vpop.f32.mrf.mxu0  ;;  %v666_v55 = vpop.f32.mrf.mxu1  ;;  %1568 = vmatprep.subr.mxu0 %v15638_v0 }
 0x178   :  { %8446 = vmatmul.mubr.msk.f32.gmra.mxu0 %vm760_vm0, %v666_v55  ;;  %8478 = vmatmul.mubr.msk.f32.gmra.mxu1 %vm760_vm0, %v352_v53  ;;  %v11274_v55 = vld [vmem:[%s15648_s29 + $0xa8] sm:$0xff] }
 0x179   :  { %v354_v56 = vpop.f32.mrf.mxu0  ;;  %v668_v57 = vpop.f32.mrf.mxu1  ;;  %1035 = vmatprep.mubr.f32.mxu0 %v15638_v0  ;;  %1388 = vmatprep.mubr.f32.mxu1 %v15638_v0 }
 0x17a   :  { %1569 = vmatpush2.msra.mxu0 %v11180_v58 }
 0x17b   :  { %v357_v60 = vpop.f32.mrf.mxu0  ;;  %v671_v61 = vpop.f32.mrf.mxu1  ;;  %1570 = vmatprep.subr.mxu0 %v15638_v0 }
 0x17c   :  { %8447 = vmatmul.mubr.msk.f32.gmra.mxu0 %vm760_vm0, %v671_v61  ;;  %8479 = vmatmul.mubr.msk.f32.gmra.mxu1 %vm760_vm0, %v357_v60 }
 0x17d   :  { %v359_v62 = vpop.f32.mrf.mxu0  ;;  %v673_v63 = vpop.f32.mrf.mxu1  ;;  %1041 = vmatprep.mubr.f32.mxu0 %v15638_v0  ;;  %1394 = vmatprep.mubr.f32.mxu1 %v15638_v0 }
 0x17e   :  { %1571 = vmatpush2.msra.mxu0 %v11191_v2  ;;  %v8577_v62 = vld [vmem:[%s15650_s23 + $0x228] sm:$0xff]  ;;  %v8576_v63 = vld [vmem:[%s15650_s23 + $0x220] sm:$0xff] }
 0x17f   :  { %v362_v3 = vpop.f32.mrf.mxu0  ;;  %v676_v4 = vpop.f32.mrf.mxu1  ;;  %1572 = vmatprep.subr.mxu0 %v15638_v0  ;;  %1888 = vmatprep.subr.mxu1 %v8577_v62  ;;  %v8511_v62 = vld [vmem:[%s15649_s10 + $0x498] sm:$0xff] }
 0x180   :  { %8448 = vmatmul.mubr.msk.f32.gmra.mxu0 %vm760_vm0, %v676_v4  ;;  %8480 = vmatmul.mubr.msk.f32.gmra.mxu1 %vm760_vm0, %v362_v3  ;;  %v11291_v3 = vld [vmem:[%s15648_s29 + $0xa0] sm:$0xff] }
 0x181   :  { %v364_v5 = vpop.f32.mrf.mxu0  ;;  %v678_v7 = vpop.f32.mrf.mxu1  ;;  %1047 = vmatprep.mubr.f32.mxu0 %v15638_v0  ;;  %1400 = vmatprep.mubr.f32.mxu1 %v15638_v0 }
 0x182   :  { %1573 = vmatpush2.msra.mxu0 %v11202_v8  ;;  %1889 = vmatpush1.msra.mxu1 %v8576_v63  ;;  %v8513_v63 = vld [vmem:[%s15649_s10 + $0x4a8] sm:$0xff] }
 0x183   :  { %v367_v9 = vpop.f32.mrf.mxu0  ;;  %v681_v10 = vpop.f32.mrf.mxu1  ;;  %1574 = vmatprep.subr.mxu0 %v15638_v0 }
 0x184   :  { %8449 = vmatmul.mubr.msk.f32.gmra.mxu0 %vm760_vm0, %v681_v10  ;;  %8481 = vmatmul.mubr.msk.f32.gmra.mxu1 %vm760_vm0, %v367_v9  ;;  %v11302_v10 = vld [vmem:[%s15648_s29 + $0x98] sm:$0xff] }
 0x185   :  { %v369_v12 = vpop.f32.mrf.mxu0  ;;  %v683_v13 = vpop.f32.mrf.mxu1  ;;  %1053 = vmatprep.mubr.f32.mxu0 %v15638_v0  ;;  %1406 = vmatprep.mubr.f32.mxu1 %v15638_v0 }
 0x186   :  { %1575 = vmatpush2.msra.mxu0 %v11213_v14 }
 0x187   :  { %v372_v15 = vpop.f32.mrf.mxu0  ;;  %v686_v17 = vpop.f32.mrf.mxu1  ;;  %1576 = vmatprep.subr.mxu0 %v15638_v0 }
 0x188   :  { %8450 = vmatmul.mubr.msk.f32.gmra.mxu0 %vm760_vm0, %v686_v17  ;;  %8482 = vmatmul.mubr.msk.f32.gmra.mxu1 %vm760_vm0, %v372_v15 }
 0x189   :  { %v374_v18 = vpop.f32.mrf.mxu0  ;;  %v688_v19 = vpop.f32.mrf.mxu1  ;;  %1059 = vmatprep.mubr.f32.mxu0 %v15638_v0  ;;  %1412 = vmatprep.mubr.f32.mxu1 %v15638_v0 }
 0x18a   :  { %1577 = vmatpush2.msra.mxu0 %v11224_v20  ;;  %v11313_v18 = vld [vmem:[%s15648_s29 + $0x90] sm:$0xff] }
 0x18b   :  { %v377_v22 = vpop.f32.mrf.mxu0  ;;  %v691_v23 = vpop.f32.mrf.mxu1  ;;  %1578 = vmatprep.subr.mxu0 %v15638_v0 }
 0x18c   :  { %8451 = vmatmul.mubr.msk.f32.gmra.mxu0 %vm760_vm0, %v691_v23  ;;  %8483 = vmatmul.mubr.msk.f32.gmra.mxu1 %vm760_vm0, %v377_v22  ;;  %v8575_v23 = vld [vmem:[%s15650_s23 + $0x218] sm:$0xff] }
 0x18d   :  { %v379_v25 = vpop.f32.mrf.mxu0  ;;  %v693_v26 = vpop.f32.mrf.mxu1  ;;  %1065 = vmatprep.mubr.f32.mxu0 %v15638_v0  ;;  %1418 = vmatprep.mubr.f32.mxu1 %v15638_v0 }
 0x18e   :  { %1579 = vmatpush2.msra.mxu0 %v11235_v28  ;;  %1890 = vmatprep.subr.mxu1 %v8575_v23  ;;  %v8557_v23 = vld [vmem:[%s15650_s23 + $0x188] sm:$0xff] }
 0x18f   :  { %v382_v30 = vpop.f32.mrf.mxu0  ;;  %v696_v31 = vpop.f32.mrf.mxu1  ;;  %1580 = vmatprep.subr.mxu0 %v15638_v0 }
 0x190   :  { %8452 = vmatmul.mubr.msk.f32.gmra.mxu0 %vm760_vm0, %v696_v31  ;;  %8484 = vmatmul.mubr.msk.f32.gmra.mxu1 %vm760_vm0, %v382_v30  ;;  %v8574_v30 = vld [vmem:[%s15650_s23 + $0x210] sm:$0xff]  ;;  %v11330_v31 = vld [vmem:[%s15648_s29 + $0x88] sm:$0xff] }
 0x191   :  { %v384_v32 = vpop.f32.mrf.mxu0  ;;  %v698_v35 = vpop.f32.mrf.mxu1  ;;  %1071 = vmatprep.mubr.f32.mxu0 %v15638_v0  ;;  %1424 = vmatprep.mubr.f32.mxu1 %v15638_v0 }
 0x192   :  { %1581 = vmatpush2.msra.mxu0 %v11249_v37  ;;  %v8493_v32 = vld [vmem:[%s15649_s10 + $0x408] sm:$0xff]  ;;  %1891 = vmatpush1.msra.mxu1 %v8574_v30  ;;  %v8556_v30 = vld [vmem:[%s15650_s23 + $0x180] sm:$0xff] }
 0x193   :  { %v387_v38 = vpop.f32.mrf.mxu0  ;;  %v701_v41 = vpop.f32.mrf.mxu1  ;;  %1582 = vmatprep.subr.mxu0 %v15638_v0 }
 0x194   :  { %8453 = vmatmul.mubr.msk.f32.gmra.mxu0 %vm760_vm0, %v701_v41  ;;  %8485 = vmatmul.mubr.msk.f32.gmra.mxu1 %vm760_vm0, %v387_v38  ;;  %v11342_v41 = vld [vmem:[%s15648_s29 + $0x80] sm:$0xff] }
 0x195   :  { %v389_v43 = vpop.f32.mrf.mxu0  ;;  %v703_v45 = vpop.f32.mrf.mxu1  ;;  %1077 = vmatprep.mubr.f32.mxu0 %v15638_v0  ;;  %1430 = vmatprep.mubr.f32.mxu1 %v15638_v0 }
 0x196   :  { %1583 = vmatpush2.msra.mxu0 %v11263_v47  ;;  %v8495_v45 = vld [vmem:[%s15649_s10 + $0x418] sm:$0xff] }
 0x197   :  { %v392_v48 = vpop.f32.mrf.mxu0  ;;  %v706_v50 = vpop.f32.mrf.mxu1  ;;  %1584 = vmatprep.subr.mxu0 %v15638_v0 }
 0x198   :  { %8454 = vmatmul.mubr.msk.f32.gmra.mxu0 %vm760_vm0, %v706_v50  ;;  %8486 = vmatmul.mubr.msk.f32.gmra.mxu1 %vm760_vm0, %v392_v48  ;;  %v8494_v48 = vld [vmem:[%s15649_s10 + $0x410] sm:$0xff]  ;;  %v8573_v50 = vld [vmem:[%s15650_s23 + $0x208] sm:$0xff] }
 0x199   :  { %v394_v51 = vpop.f32.mrf.mxu0  ;;  %v708_v53 = vpop.f32.mrf.mxu1  ;;  %1083 = vmatprep.mubr.f32.mxu0 %v15638_v0  ;;  %1436 = vmatprep.mubr.f32.mxu1 %v15638_v0 }
 0x19a   :  { %1585 = vmatpush2.msra.mxu0 %v11274_v55  ;;  %v8497_v51 = vld [vmem:[%s15649_s10 + $0x428] sm:$0xff]  ;;  %1892 = vmatprep.subr.mxu1 %v8573_v50  ;;  %v8572_v53 = vld [vmem:[%s15650_s23 + $0x200] sm:$0xff] }
 0x19b   :  { %v397_v56 = vpop.f32.mrf.mxu0  ;;  %v711_v57 = vpop.f32.mrf.mxu1  ;;  %1586 = vmatprep.subr.mxu0 %v15638_v0  ;;  %1893 = vmatpush1.msra.mxu1 %v8572_v53 }
 0x19c   :  { %8455 = vmatmul.mubr.msk.f32.gmra.mxu0 %vm760_vm0, %v711_v57  ;;  %8487 = vmatmul.mubr.msk.f32.gmra.mxu1 %vm760_vm0, %v397_v56  ;;  %v8499_v56 = vld [vmem:[%s15649_s10 + $0x438] sm:$0xff]  ;;  %v8570_v57 = vld [vmem:[%s15650_s23 + $0x1f0] sm:$0xff] }
 0x19d   :  { %v399_v60 = vpop.f32.mrf.mxu0  ;;  %v713_v61 = vpop.f32.mrf.mxu1  ;;  %1089 = vmatprep.mubr.f32.mxu0 %v15638_v0  ;;  %1442 = vmatprep.mubr.f32.mxu1 %v15638_v0 }
 0x19e   :  { %1587 = vmatpush2.msra.mxu0 %v11291_v3  ;;  %v8505_v60 = vld [vmem:[%s15649_s10 + $0x468] sm:$0xff]  ;;  %v8568_v61 = vld [vmem:[%s15650_s23 + $0x1e0] sm:$0xff] }
 0x19f   :  { %v402_v4 = vpop.f32.mrf.mxu0  ;;  %v716_v5 = vpop.f32.mrf.mxu1  ;;  %1588 = vmatprep.subr.mxu0 %v15638_v0 }
 0x1a0   :  { %8456 = vmatmul.mubr.msk.f32.gmra.mxu0 %vm760_vm0, %v716_v5  ;;  %8488 = vmatmul.mubr.msk.f32.gmra.mxu1 %vm760_vm0, %v402_v4  ;;  %v8515_v4 = vld [vmem:[%s15649_s10 + $0x4b8] sm:$0xff]  ;;  %v8564_v5 = vld [vmem:[%s15650_s23 + $0x1c0] sm:$0xff] }
 0x1a1   :  { %v404_v7 = vpop.f32.mrf.mxu0  ;;  %v718_v9 = vpop.f32.mrf.mxu1  ;;  %1095 = vmatprep.mubr.f32.mxu0 %v15638_v0  ;;  %1448 = vmatprep.mubr.f32.mxu1 %v15638_v0 }
 0x1a2   :  { %1589 = vmatpush2.msra.mxu0 %v11302_v10  ;;  %v8521_v7 = vld [vmem:[%s15649_s10 + $0x4e8] sm:$0xff]  ;;  %v8562_v9 = vld [vmem:[%s15650_s23 + $0x1b0] sm:$0xff] }
 0x1a3   :  { %v407_v12 = vpop.f32.mrf.mxu0  ;;  %v721_v13 = vpop.f32.mrf.mxu1  ;;  %1590 = vmatprep.subr.mxu0 %v15638_v0 }
 0x1a4   :  { %8457 = vmatmul.mubr.msk.f32.gmra.mxu0 %vm760_vm0, %v721_v13  ;;  %8489 = vmatmul.mubr.msk.f32.gmra.mxu1 %vm760_vm0, %v407_v12  ;;  %v8561_v12 = vld [vmem:[%s15650_s23 + $0x1a8] sm:$0xff]  ;;  %v8524_v13 = vld [vmem:[%s15649_s10 + $0x500] sm:$0xff] }
 0x1a5   :  { %v409_v15 = vpop.f32.mrf.mxu0  ;;  %v723_v17 = vpop.f32.mrf.mxu1  ;;  %1101 = vmatprep.mubr.f32.mxu0 %v15638_v0  ;;  %1454 = vmatprep.mubr.f32.mxu1 %v15638_v0 }
 0x1a6   :  { %1591 = vmatpush2.msra.mxu0 %v11313_v18  ;;  %v8527_v15 = vld [vmem:[%s15649_s10 + $0x518] sm:$0xff] }
 0x1a7   :  { %v412_v19 = vpop.f32.mrf.mxu0  ;;  %v726_v22 = vpop.f32.mrf.mxu1  ;;  %1592 = vmatprep.subr.mxu0 %v15638_v0  ;;  %v8559_v17 = vld [vmem:[%s15650_s23 + $0x198] sm:$0xff] }
 0x1a8   :  { %8458 = vmatmul.mubr.msk.f32.gmra.mxu0 %vm760_vm0, %v726_v22  ;;  %8490 = vmatmul.mubr.msk.f32.gmra.mxu1 %vm760_vm0, %v412_v19 }
 0x1a9   :  { %v414_v25 = vpop.f32.mrf.mxu0  ;;  %v728_v26 = vpop.f32.mrf.mxu1  ;;  %1107 = vmatprep.mubr.f32.mxu0 %v15638_v0  ;;  %1460 = vmatprep.mubr.f32.mxu1 %v15638_v0 }
 0x1aa   :  { %1593 = vmatpush2.msra.mxu0 %v11330_v31  ;;  %v8526_v26 = vld [vmem:[%s15649_s10 + $0x510] sm:$0xff] }
 0x1ab   :  { %v417_v35 = vpop.f32.mrf.mxu0  ;;  %v731_v36 = vpop.f32.mrf.mxu1  ;;  %1594 = vmatprep.subr.mxu0 %v15638_v0 }
 0x1ac   :  { %8459 = vmatmul.mubr.msk.f32.gmra.mxu0 %vm760_vm0, %v731_v36  ;;  %8491 = vmatmul.mubr.msk.f32.gmra.mxu1 %vm760_vm0, %v417_v35  ;;  %v8529_v35 = vld [vmem:[%s15649_s10 + $0x528] sm:$0xff] }
 0x1ad   :  { %v733_v38 = vpop.f32.mrf.mxu1  ;;  %1595 = vmatpush2.msra.mxu0 %v11342_v41  ;;  %1596 = vmatprep.mubr.f32.mxu0 %v8493_v32  ;;  %v419_v43 = vpop.f32.mrf.mxu0 }
 0x1ae   :  { %2264 = vmatprep.subr.mxu0 %v15638_v0  ;;  %1942 = vmatprep.mubr.f32.mxu1 %v15638_v0 }
 0x1b0   :  { %1597 = vmatmul.mubr.f32.vlgmr.msra.gmra.mxu0 %v8492_v42  ;;  %v8528_v42 = vld [vmem:[%s15649_s10 + $0x520] sm:$0xff] }
 0x1b1   :  { %1601 = vmatprep.mubr.f32.mxu0 %v8495_v45  ;;  %2265 = vmatpush1.msra.mxu0 %v10982_v24  ;;  %v8496_v24 = vld [vmem:[%s15649_s10 + $0x420] sm:$0xff] }
 0x1b2   :  { %2266 = vmatprep.subr.mxu0 %v15638_v0 }
 0x1b3   :  { %2267 = vmatpush1.msra.mxu0 %v10993_v29  ;;  %v8498_v29 = vld [vmem:[%s15649_s10 + $0x430] sm:$0xff] }
 0x1b4   :  { %1602 = vmatmul.mubr.f32.gmra.mxu0 %v8494_v48  ;;  %2268 = vmatprep.subr.mxu0 %v15638_v0  ;;  %v8531_v48 = vld [vmem:[%s15649_s10 + $0x538] sm:$0xff] }
 0x1b5   :  { %1606 = vmatprep.mubr.f32.mxu0 %v8497_v51  ;;  %2269 = vmatpush1.msra.mxu0 %v11004_v34  ;;  %v8501_v34 = vld [vmem:[%s15649_s10 + $0x448] sm:$0xff] }
 0x1b6   :  { %2270 = vmatprep.subr.mxu0 %v15638_v0 }
 0x1b7   :  { %2271 = vmatpush1.msra.mxu0 %v11015_v39  ;;  %v8500_v39 = vld [vmem:[%s15649_s10 + $0x440] sm:$0xff] }
 0x1b8   :  { %1607 = vmatmul.mubr.f32.gmra.mxu0 %v8496_v24  ;;  %2272 = vmatprep.subr.mxu0 %v15638_v0  ;;  %v8530_v24 = vld [vmem:[%s15649_s10 + $0x530] sm:$0xff] }
 0x1b9   :  { %1611 = vmatprep.mubr.f32.mxu0 %v8499_v56  ;;  %2273 = vmatpush1.msra.mxu0 %v11026_v44  ;;  %v8571_v44 = vld [vmem:[%s15650_s23 + $0x1f8] sm:$0xff] }
 0x1ba   :  { %2274 = vmatprep.subr.mxu0 %v15638_v0  ;;  %1894 = vmatprep.subr.mxu1 %v8571_v44 }
 0x1bb   :  { %2275 = vmatpush1.msra.mxu0 %v11037_v49  ;;  %v8503_v49 = vld [vmem:[%s15649_s10 + $0x458] sm:$0xff]  ;;  %1895 = vmatpush1.msra.mxu1 %v8570_v57 }
 0x1bc   :  { %1612 = vmatmul.mubr.f32.gmra.mxu0 %v8498_v29  ;;  %2276 = vmatprep.subr.mxu0 %v15638_v0 }
 0x1bd   :  { %1616 = vmatprep.mubr.f32.mxu0 %v8501_v34  ;;  %2277 = vmatpush1.msra.mxu0 %v11048_v54  ;;  %v8502_v54 = vld [vmem:[%s15649_s10 + $0x450] sm:$0xff]  ;;  %v8533_v34 = vld [vmem:[%s15649_s10 + $0x548] sm:$0xff] }
 0x1be   :  { %2278 = vmatprep.subr.mxu0 %v15638_v0 }
 0x1bf   :  { %2279 = vmatpush1.msra.mxu0 %v11059_v59  ;;  %v8504_v59 = vld [vmem:[%s15649_s10 + $0x460] sm:$0xff] }
 0x1c0   :  { %1617 = vmatmul.mubr.f32.gmra.mxu0 %v8500_v39  ;;  %2280 = vmatprep.subr.mxu0 %v15638_v0 }
 0x1c1   :  { %1621 = vmatprep.mubr.f32.mxu0 %v8503_v49  ;;  %2281 = vmatpush1.msra.mxu0 %v11070_v1  ;;  %v8507_v1 = vld [vmem:[%s15649_s10 + $0x478] sm:$0xff]  ;;  %v8532_v49 = vld [vmem:[%s15649_s10 + $0x540] sm:$0xff] }
 0x1c2   :  { %2282 = vmatprep.subr.mxu0 %v15638_v0 }
 0x1c3   :  { %2283 = vmatpush1.msra.mxu0 %v11081_v6  ;;  %v8569_v6 = vld [vmem:[%s15650_s23 + $0x1e8] sm:$0xff] }
 0x1c4   :  { %1622 = vmatmul.mubr.f32.gmra.mxu0 %v8502_v54  ;;  %2284 = vmatprep.subr.mxu0 %v15638_v0 }
 0x1c5   :  { %1626 = vmatprep.mubr.f32.mxu0 %v8505_v60  ;;  %2285 = vmatpush1.msra.mxu0 %v11092_v11  ;;  %v8506_v11 = vld [vmem:[%s15649_s10 + $0x470] sm:$0xff] }
 0x1c6   :  { %2286 = vmatprep.subr.mxu0 %v15638_v0  ;;  %1896 = vmatprep.subr.mxu1 %v8569_v6 }
 0x1c7   :  { %2287 = vmatpush1.msra.mxu0 %v11103_v16  ;;  %v8509_v16 = vld [vmem:[%s15649_s10 + $0x488] sm:$0xff]  ;;  %1897 = vmatpush1.msra.mxu1 %v8568_v61  ;;  %v8534_v61 = vld [vmem:[%s15649_s10 + $0x550] sm:$0xff] }
 0x1c8   :  { %1627 = vmatmul.mubr.f32.gmra.mxu0 %v8504_v59  ;;  %2288 = vmatprep.subr.mxu0 %v15638_v0  ;;  %v8535_v59 = vld [vmem:[%s15649_s10 + $0x558] sm:$0xff] }
 0x1c9   :  { %1631 = vmatprep.mubr.f32.mxu0 %v8507_v1  ;;  %2289 = vmatpush1.msra.mxu0 %v11114_v21  ;;  %v8508_v21 = vld [vmem:[%s15649_s10 + $0x480] sm:$0xff] }
 0x1ca   :  { %2290 = vmatprep.subr.mxu0 %v15638_v0 }
 0x1cb   :  { %2291 = vmatpush1.msra.mxu0 %v11125_v27  ;;  %v8510_v27 = vld [vmem:[%s15649_s10 + $0x490] sm:$0xff] }
 0x1cc   :  { %1632 = vmatmul.mubr.f32.gmra.mxu0 %v8506_v11  ;;  %2292 = vmatprep.subr.mxu0 %v15638_v0 }
 0x1cd   :  { %1636 = vmatprep.mubr.f32.mxu0 %v8509_v16  ;;  %2293 = vmatpush1.msra.mxu0 %v11136_v33  ;;  %v8567_v33 = vld [vmem:[%s15650_s23 + $0x1d8] sm:$0xff] }
 0x1ce   :  { %2294 = vmatprep.subr.mxu0 %v15638_v0  ;;  %1898 = vmatprep.subr.mxu1 %v8567_v33 }
 0x1cf   :  { %2295 = vmatpush1.msra.mxu0 %v11147_v40  ;;  %v8566_v40 = vld [vmem:[%s15650_s23 + $0x1d0] sm:$0xff] }
 0x1d0   :  { %1637 = vmatmul.mubr.f32.gmra.mxu0 %v8508_v21  ;;  %2296 = vmatprep.subr.mxu0 %v15638_v0 }
 0x1d1   :  { %1641 = vmatprep.mubr.f32.mxu0 %v8511_v62  ;;  %2297 = vmatpush2.msra.mxu0 %v11158_v46  ;;  %v8512_v46 = vld [vmem:[%s15649_s10 + $0x4a0] sm:$0xff]  ;;  %v8537_v62 = vld [vmem:[%s15649_s10 + $0x568] sm:$0xff] }
 0x1d2   :  { %2298 = vmatprep.subr.mxu0 %v15638_v0  ;;  %1899 = vmatpush1.msra.mxu1 %v8566_v40  ;;  %v8536_v40 = vld [vmem:[%s15649_s10 + $0x560] sm:$0xff] }
 0x1d3   :  { %2299 = vmatpush2.msra.mxu0 %v11169_v52  ;;  %v8514_v52 = vld [vmem:[%s15649_s10 + $0x4b0] sm:$0xff] }
 0x1d4   :  { %1642 = vmatmul.mubr.f32.gmra.mxu0 %v8510_v27  ;;  %2300 = vmatprep.subr.mxu0 %v15638_v0 }
 0x1d5   :  { %1646 = vmatprep.mubr.f32.mxu0 %v8513_v63  ;;  %2301 = vmatpush2.msra.mxu0 %v11180_v58  ;;  %v8517_v58 = vld [vmem:[%s15649_s10 + $0x4c8] sm:$0xff] }
 0x1d6   :  { %2302 = vmatprep.subr.mxu0 %v15638_v0 }
 0x1d7   :  { %2303 = vmatpush2.msra.mxu0 %v11191_v2  ;;  %v8516_v2 = vld [vmem:[%s15649_s10 + $0x4c0] sm:$0xff] }
 0x1d8   :  { %1647 = vmatmul.mubr.f32.gmra.mxu0 %v8512_v46  ;;  %2304 = vmatprep.subr.mxu0 %v15638_v0 }
 0x1d9   :  { %1651 = vmatprep.mubr.f32.mxu0 %v8515_v4  ;;  %2305 = vmatpush2.msra.mxu0 %v11202_v8  ;;  %v8565_v8 = vld [vmem:[%s15650_s23 + $0x1c8] sm:$0xff] }
 0x1da   :  { %2306 = vmatprep.subr.mxu0 %v15638_v0  ;;  %1900 = vmatprep.subr.mxu1 %v8565_v8 }
 0x1db   :  { %2307 = vmatpush2.msra.mxu0 %v11213_v14  ;;  %v8519_v14 = vld [vmem:[%s15649_s10 + $0x4d8] sm:$0xff]  ;;  %1901 = vmatpush1.msra.mxu1 %v8564_v5  ;;  %v8538_v5 = vld [vmem:[%s15649_s10 + $0x570] sm:$0xff] }
 0x1dc   :  { %1652 = vmatmul.mubr.f32.gmra.mxu0 %v8514_v52  ;;  %2308 = vmatprep.subr.mxu0 %v15638_v0  ;;  %v8539_v52 = vld [vmem:[%s15649_s10 + $0x578] sm:$0xff] }
 0x1dd   :  { %1656 = vmatprep.mubr.f32.mxu0 %v8517_v58  ;;  %2309 = vmatpush2.msra.mxu0 %v11224_v20  ;;  %v8518_v20 = vld [vmem:[%s15649_s10 + $0x4d0] sm:$0xff] }
 0x1de   :  { %2310 = vmatprep.subr.mxu0 %v15638_v0 }
 0x1df   :  { %2311 = vmatpush2.msra.mxu0 %v11235_v28  ;;  %v8520_v28 = vld [vmem:[%s15649_s10 + $0x4e0] sm:$0xff] }
 0x1e0   :  { %1657 = vmatmul.mubr.f32.gmra.mxu0 %v8516_v2  ;;  %2312 = vmatprep.subr.mxu0 %v15638_v0 }
 0x1e1   :  { %1661 = vmatprep.mubr.f32.mxu0 %v8519_v14  ;;  %2313 = vmatpush2.msra.mxu0 %v11249_v37  ;;  %v8523_v37 = vld [vmem:[%s15649_s10 + $0x4f8] sm:$0xff] }
 0x1e2   :  { %2314 = vmatprep.subr.mxu0 %v15638_v0 }
 0x1e3   :  { %2315 = vmatpush2.msra.mxu0 %v11263_v47  ;;  %v8563_v47 = vld [vmem:[%s15650_s23 + $0x1b8] sm:$0xff] }
 0x1e4   :  { %1662 = vmatmul.mubr.f32.gmra.mxu0 %v8518_v20  ;;  %2316 = vmatprep.subr.mxu0 %v15638_v0 }
 0x1e5   :  { %1666 = vmatprep.mubr.f32.mxu0 %v8521_v7  ;;  %2317 = vmatpush2.msra.mxu0 %v11274_v55  ;;  %v8522_v55 = vld [vmem:[%s15649_s10 + $0x4f0] sm:$0xff]  ;;  %v8541_v7 = vld [vmem:[%s15649_s10 + $0x588] sm:$0xff] }
 0x1e6   :  { %2318 = vmatprep.subr.mxu0 %v15638_v0  ;;  %1902 = vmatprep.subr.mxu1 %v8563_v47 }
 0x1e7   :  { %2319 = vmatpush2.msra.mxu0 %v11291_v3  ;;  %v8525_v3 = vld [vmem:[%s15649_s10 + $0x508] sm:$0xff]  ;;  %1903 = vmatpush1.msra.mxu1 %v8562_v9 }
 0x1e8   :  { %1667 = vmatmul.mubr.f32.gmra.mxu0 %v8520_v28  ;;  %2320 = vmatprep.subr.mxu0 %v15638_v0 }
 0x1e9   :  { %1671 = vmatprep.mubr.f32.mxu0 %v8523_v37  ;;  %2321 = vmatpush2.msra.mxu0 %v11302_v10  ;;  %v8560_v10 = vld [vmem:[%s15650_s23 + $0x1a0] sm:$0xff] }
 0x1ea   :  { %2322 = vmatprep.subr.mxu0 %v15638_v0  ;;  %1904 = vmatprep.subr.mxu1 %v8561_v12  ;;  %v8543_v12 = vld [vmem:[%s15649_s10 + $0x598] sm:$0xff] }
 0x1eb   :  { %2323 = vmatpush2.msra.mxu0 %v11313_v18  ;;  %1905 = vmatpush1.msra.mxu1 %v8560_v10  ;;  %v8558_v18 = vld [vmem:[%s15650_s23 + $0x190] sm:$0xff] }
 0x1ec   :  { %1672 = vmatmul.mubr.f32.gmra.mxu0 %v8522_v55  ;;  %2324 = vmatprep.subr.mxu0 %v15638_v0  ;;  %v8540_v55 = vld [vmem:[%s15649_s10 + $0x580] sm:$0xff] }
 0x1ed   :  { %1676 = vmatprep.mubr.f32.mxu0 %v8525_v3  ;;  %2325 = vmatpush2.msra.mxu0 %v11330_v31 }
 0x1ee   :  { %2326 = vmatprep.subr.mxu0 %v15638_v0  ;;  %1906 = vmatprep.subr.mxu1 %v8559_v17  ;;  %v8542_v17 = vld [vmem:[%s15649_s10 + $0x590] sm:$0xff] }
 0x1ef   :  { %2327 = vmatpush2.msra.mxu0 %v11342_v41  ;;  %1907 = vmatpush1.msra.mxu1 %v8558_v18  ;;  %v8699_v18 = vld [vmem:[%s15650_s23 + $0x2f8] sm:$0xff] }
 0x1f0   :  { %v923_v19 = vpop.f32.mrf.mxu0  ;;  %v1276_v22 = vpop.f32.mrf.mxu1  ;;  %1677 = vmatmul.mubr.f32.gmra.mxu0 %v8524_v13  ;;  %2996 = vmatprep.subr.mxu0 %v15638_v0 }
 0x1f1   :  { %v11564_v25 = vadd.f32 %v1276_v22, %v923_v19  ;;  %1681 = vmatprep.mubr.f32.mxu0 %v8527_v15  ;;  %1908 = vmatprep.subr.mxu1 %v8557_v23  ;;  %v8545_v23 = vld [vmem:[%s15649_s10 + $0x5a8] sm:$0xff] }
 0x1f2   :  { %v11572_v31 = vpop.f32.mrf.mxu0  ;;  %v11574_v32 = vpop.f32.mrf.mxu1  ;;  %1909 = vmatpush1.msra.mxu1 %v8556_v30 }
 0x1f3   :  { %2618 = vmatprep.subr.mxu1 %v8699_v18  ;;  %v8555_v18 = vld [vmem:[%s15649_s10 + $0x5f8] sm:$0xff] }
 0x1f4   :  { %v929_v36 = vpop.f32.mrf.mxu0  ;;  %v1282_v38 = vpop.f32.mrf.mxu1  ;;  %1682 = vmatmul.mubr.f32.gmra.mxu0 %v8526_v26 }
 0x1f5   :  { %v11579_v41 = vadd.f32 %v1282_v38, %v929_v36  ;;  %1686 = vmatprep.mubr.f32.mxu0 %v8529_v35  ;;  %v8544_v36 = vld [vmem:[%s15649_s10 + $0x5a0] sm:$0xff] }
 0x1f6   :  { %v11584_v43 = vpop.f32.mrf.mxu0  ;;  %v11586_v45 = vpop.f32.mrf.mxu1 }
 0x1f8   :  { %v935_v50 = vpop.f32.mrf.mxu0  ;;  %v1288_v51 = vpop.f32.mrf.mxu1  ;;  %1687 = vmatmul.mubr.f32.gmra.mxu0 %v8528_v42 }
 0x1f9   :  { %v11591_v53 = vadd.f32 %v1288_v51, %v935_v50  ;;  %1691 = vmatprep.mubr.f32.mxu0 %v8531_v48  ;;  %v8547_v48 = vld [vmem:[%s15649_s10 + $0x5b8] sm:$0xff] }
 0x1fa   :  { %v11596_v56 = vpop.f32.mrf.mxu0  ;;  %v11598_v29 = vpop.f32.mrf.mxu1 }
 0x1fc   :  { %v941_v39 = vpop.f32.mrf.mxu0  ;;  %v1294_v44 = vpop.f32.mrf.mxu1  ;;  %1692 = vmatmul.mubr.f32.gmra.mxu0 %v8530_v24 }
 0x1fd   :  { %v11603_v57 = vadd.f32 %v1294_v44, %v941_v39  ;;  %1696 = vmatprep.mubr.f32.mxu0 %v8533_v34  ;;  %v8546_v34 = vld [vmem:[%s15649_s10 + $0x5b0] sm:$0xff] }
 0x1fe   :  { %v11608_v54 = vpop.f32.mrf.mxu0  ;;  %v11610_v60 = vpop.f32.mrf.mxu1 }
 0x200   :  { %v947_v1 = vpop.f32.mrf.mxu0  ;;  %v1300_v6 = vpop.f32.mrf.mxu1  ;;  %1697 = vmatmul.mubr.f32.gmra.mxu0 %v8532_v49  ;;  %v8549_v49 = vld [vmem:[%s15649_s10 + $0x5c8] sm:$0xff] }
 0x201   :  { %v11615_v11 = vadd.f32 %v1300_v6, %v947_v1  ;;  %1701 = vmatprep.mubr.f32.mxu0 %v8535_v59 }
 0x202   :  { %v11620_v16 = vpop.f32.mrf.mxu0  ;;  %v11622_v21 = vpop.f32.mrf.mxu1 }
 0x204   :  { %v953_v27 = vpop.f32.mrf.mxu0  ;;  %v1306_v33 = vpop.f32.mrf.mxu1  ;;  %1702 = vmatmul.mubr.f32.gmra.mxu0 %v8534_v61  ;;  %v8548_v61 = vld [vmem:[%s15649_s10 + $0x5c0] sm:$0xff] }
 0x205   :  { %v11627_v63 = vadd.f32 %v1306_v33, %v953_v27  ;;  %1706 = vmatprep.mubr.f32.mxu0 %v8537_v62  ;;  %v8551_v33 = vld [vmem:[%s15649_s10 + $0x5d8] sm:$0xff] }
 0x206   :  { %v11632_v46 = vpop.f32.mrf.mxu0  ;;  %v11634_v4 = vpop.f32.mrf.mxu1 }
 0x208   :  { %v959_v58 = vpop.f32.mrf.mxu0  ;;  %v1312_v2 = vpop.f32.mrf.mxu1  ;;  %1707 = vmatmul.mubr.f32.gmra.mxu0 %v8536_v40 }
 0x209   :  { %v11639_v8 = vadd.f32 %v1312_v2, %v959_v58  ;;  %1711 = vmatprep.mubr.f32.mxu0 %v8539_v52  ;;  %v8550_v2 = vld [vmem:[%s15649_s10 + $0x5d0] sm:$0xff] }
 0x20a   :  { %v11644_v14 = vpop.f32.mrf.mxu0  ;;  %v11646_v20 = vpop.f32.mrf.mxu1 }
 0x20c   :  { %v965_v28 = vpop.f32.mrf.mxu0  ;;  %v1318_v37 = vpop.f32.mrf.mxu1  ;;  %1712 = vmatmul.mubr.f32.gmra.mxu0 %v8538_v5 }
 0x20d   :  { %v11651_v47 = vadd.f32 %v1318_v37, %v965_v28  ;;  %1716 = vmatprep.mubr.f32.mxu0 %v8541_v7  ;;  %v8553_v28 = vld [vmem:[%s15649_s10 + $0x5e8] sm:$0xff] }
 0x20e   :  { %v11656_v9 = vpop.f32.mrf.mxu0  ;;  %v11658_v3 = vpop.f32.mrf.mxu1 }
 0x210   :  { %v971_v10 = vpop.f32.mrf.mxu0  ;;  %v1324_v13 = vpop.f32.mrf.mxu1  ;;  %1717 = vmatmul.mubr.f32.gmra.mxu0 %v8540_v55 }
 0x211   :  { %v11663_v15 = vadd.f32 %v1324_v13, %v971_v10  ;;  %1721 = vmatprep.mubr.f32.mxu0 %v8543_v12  ;;  %v8552_v10 = vld [vmem:[%s15649_s10 + $0x5e0] sm:$0xff] }
 0x212   :  { %v11671_v19 = vpop.f32.mrf.mxu0  ;;  %v11673_v22 = vpop.f32.mrf.mxu1 }
 0x214   :  { %v977_v26 = vpop.f32.mrf.mxu0  ;;  %v1330_v30 = vpop.f32.mrf.mxu1  ;;  %1722 = vmatmul.mubr.f32.gmra.mxu0 %v8542_v17 }
 0x215   :  { %v11678_v35 = vadd.f32 %v1330_v30, %v977_v26  ;;  %1726 = vmatprep.mubr.f32.mxu0 %v8545_v23 }
 0x216   :  { %v11683_v38 = vpop.f32.mrf.mxu0  ;;  %v11685_v42 = vpop.f32.mrf.mxu1 }
 0x218   :  { %v983_v50 = vpop.f32.mrf.mxu0  ;;  %v1336_v51 = vpop.f32.mrf.mxu1  ;;  %1727 = vmatmul.mubr.f32.gmra.mxu0 %v8544_v36  ;;  %v8554_v36 = vld [vmem:[%s15649_s10 + $0x5f0] sm:$0xff] }
 0x219   :  { %v11690_v24 = vadd.f32 %v1336_v51, %v983_v50  ;;  %1731 = vmatprep.mubr.f32.mxu0 %v8547_v48  ;;  %v8613_v51 = vld [vmem:[%s15649_s10 + $0x608] sm:$0xff] }
 0x21a   :  { %v11695_v39 = vpop.f32.mrf.mxu0  ;;  %v11697_v44 = vpop.f32.mrf.mxu1 }
 0x21c   :  { %v989_v59 = vpop.f32.mrf.mxu0  ;;  %v1342_v1 = vpop.f32.mrf.mxu1  ;;  %1732 = vmatmul.mubr.f32.gmra.mxu0 %v8546_v34 }
 0x21d   :  { %v11702_v6 = vadd.f32 %v1342_v1, %v989_v59  ;;  %1736 = vmatprep.mubr.f32.mxu0 %v8549_v49  ;;  %v8612_v1 = vld [vmem:[%s15649_s10 + $0x600] sm:$0xff] }
 0x21e   :  { %v11707_v62 = vpop.f32.mrf.mxu0  ;;  %v11709_v27 = vpop.f32.mrf.mxu1 }
 0x220   :  { %v995_v40 = vpop.f32.mrf.mxu0  ;;  %v1348_v52 = vpop.f32.mrf.mxu1  ;;  %1737 = vmatmul.mubr.f32.gmra.mxu0 %v8548_v61 }
 0x221   :  { %v11714_v58 = vadd.f32 %v1348_v52, %v995_v40  ;;  %1741 = vmatprep.mubr.f32.mxu0 %v8551_v33  ;;  %v8615_v40 = vld [vmem:[%s15649_s10 + $0x618] sm:$0xff] }
 0x222   :  { %v11719_v5 = vpop.f32.mrf.mxu0  ;;  %v11721_v7 = vpop.f32.mrf.mxu1 }
 0x224   :  { %v1001_v37 = vpop.f32.mrf.mxu0  ;;  %v1354_v55 = vpop.f32.mrf.mxu1  ;;  %1742 = vmatmul.mubr.f32.gmra.mxu0 %v8550_v2 }
 0x225   :  { %v11726_v12 = vadd.f32 %v1354_v55, %v1001_v37  ;;  %1746 = vmatprep.mubr.f32.mxu0 %v8553_v28  ;;  %v8614_v37 = vld [vmem:[%s15649_s10 + $0x610] sm:$0xff]  ;;  %v10077_v55 = vld [vmem:[%s15648_s29 + $0x78] sm:$0xff] }
 0x226   :  { %v11731_v13 = vpop.f32.mrf.mxu0  ;;  %v11733_v17 = vpop.f32.mrf.mxu1 }
 0x228   :  { %v1007_v23 = vpop.f32.mrf.mxu0  ;;  %v1360_v26 = vpop.f32.mrf.mxu1  ;;  %1747 = vmatmul.mubr.f32.gmra.mxu0 %v8552_v10 }
 0x229   :  { %v11738_v30 = vadd.f32 %v1360_v26, %v1007_v23  ;;  %1751 = vmatprep.mubr.f32.mxu0 %v8555_v18  ;;  %v8617_v23 = vld [vmem:[%s15649_s10 + $0x628] sm:$0xff]  ;;  %v10078_v26 = vld [vmem:[%s15648_s29 + $0x70] sm:$0xff] }
 0x22a   :  { %v11743_v48 = vpop.f32.mrf.mxu0  ;;  %v11745_v50 = vpop.f32.mrf.mxu1 }
 0x22c   :  { %v1013_v34 = vpop.f32.mrf.mxu0  ;;  %v1366_v49 = vpop.f32.mrf.mxu1  ;;  %1752 = vmatmul.mubr.f32.gmra.mxu0 %v8554_v36 }
 0x22d   :  { %v11750_v59 = vadd.f32 %v1366_v49, %v1013_v34  ;;  %2328 = vmatprep.mubr.f32.mxu0 %v8613_v51  ;;  %v8616_v49 = vld [vmem:[%s15649_s10 + $0x620] sm:$0xff] }
 0x22e   :  { %v11755_v61 = vpop.f32.mrf.mxu0  ;;  %v11757_v33 = vpop.f32.mrf.mxu1 }
 0x230   :  { %v1019_v52 = vpop.f32.mrf.mxu0  ;;  %v1372_v2 = vpop.f32.mrf.mxu1  ;;  %2329 = vmatmul.mubr.f32.vlgmr.msra.gmra.mxu0 %v8612_v1  ;;  %v10079_v1 = vld [vmem:[%s15648_s29 + $0x68] sm:$0xff] }
 0x231   :  { %v11762_v28 = vadd.f32 %v1372_v2, %v1019_v52  ;;  %2333 = vmatprep.mubr.f32.mxu0 %v8615_v40  ;;  %2997 = vmatpush1.msra.mxu0 %v10077_v55  ;;  %v8619_v2 = vld [vmem:[%s15649_s10 + $0x638] sm:$0xff] }
 0x232   :  { %v11770_v10 = vpop.f32.mrf.mxu0  ;;  %v11772_v18 = vpop.f32.mrf.mxu1  ;;  %2998 = vmatprep.subr.mxu0 %v15638_v0 }
 0x233   :  { %2999 = vmatpush1.msra.mxu0 %v10078_v26 }
 0x234   :  { %v1025_v36 = vpop.f32.mrf.mxu0  ;;  %v1378_v51 = vpop.f32.mrf.mxu1  ;;  %2334 = vmatmul.mubr.f32.gmra.mxu0 %v8614_v37  ;;  %3000 = vmatprep.subr.mxu0 %v15638_v0  ;;  %v10080_v37 = vld [vmem:[%s15648_s29 + $0x60] sm:$0xff] }
 0x235   :  { %v11782_v34 = vadd.f32 %v1378_v51, %v1025_v36  ;;  %2338 = vmatprep.mubr.f32.mxu0 %v8617_v23  ;;  %3001 = vmatpush1.msra.mxu0 %v10079_v1  ;;  %v8618_v36 = vld [vmem:[%s15649_s10 + $0x630] sm:$0xff]  ;;  %v10081_v51 = vld [vmem:[%s15648_s29 + $0x58] sm:$0xff] }
 0x236   :  { %v11790_v40 = vpop.f32.mrf.mxu0  ;;  %v11792_v52 = vpop.f32.mrf.mxu1  ;;  %3002 = vmatprep.subr.mxu0 %v15638_v0 }
 0x237   :  { %15651 = vst [vmem:[#allocation9_spill] sm:$0xff] %v11782_v34  ;;  %3003 = vmatpush1.msra.mxu0 %v10080_v37 }
 0x238   :  { %v1031_v55 = vpop.f32.mrf.mxu0  ;;  %v1384_v23 = vpop.f32.mrf.mxu1  ;;  %2339 = vmatmul.mubr.f32.gmra.mxu0 %v8616_v49  ;;  %3004 = vmatprep.subr.mxu0 %v15638_v0  ;;  %v8621_v49 = vld [vmem:[%s15649_s10 + $0x648] sm:$0xff] }
 0x239   :  { %v11802_v26 = vadd.f32 %v1384_v23, %v1031_v55  ;;  %2343 = vmatprep.mubr.f32.mxu0 %v8619_v2  ;;  %3005 = vmatpush1.msra.mxu0 %v10081_v51  ;;  %v10082_v2 = vld [vmem:[%s15648_s29 + $0x50] sm:$0xff] }
 0x23a   :  { %v11810_v1 = vpop.f32.mrf.mxu0  ;;  %v11812_v37 = vpop.f32.mrf.mxu1  ;;  %3006 = vmatprep.subr.mxu0 %v15638_v0 }
 0x23b   :  { %15652 = vst [vmem:[#allocation10_spill] sm:$0xff] %v11802_v26  ;;  %15653 = vst [vmem:[#allocation11_spill] sm:$0xff] %v11810_v1  ;;  %3007 = vmatpush1.msra.mxu0 %v10082_v2  ;;  %v8620_v26 = vld [vmem:[%s15649_s10 + $0x640] sm:$0xff] }
 0x23c   :  { %15654 = vst [vmem:[#allocation12_spill] sm:$0xff] %v11812_v37  ;;  %v1037_v55 = vpop.f32.mrf.mxu0  ;;  %v1390_v23 = vpop.f32.mrf.mxu1  ;;  %2344 = vmatmul.mubr.f32.gmra.mxu0 %v8618_v36  ;;  %3008 = vmatprep.subr.mxu0 %v15638_v0  ;;  %v10083_v37 = vld [vmem:[%s15648_s29 + $0x48] sm:$0xff]  ;;  %v8623_v36 = vld [vmem:[%s15649_s10 + $0x658] sm:$0xff] }
 0x23d   :  { %v11822_v51 = vadd.f32 %v1390_v23, %v1037_v55  ;;  %2348 = vmatprep.mubr.f32.mxu0 %v8621_v49  ;;  %3009 = vmatpush1.msra.mxu0 %v10083_v37  ;;  %v10084_v49 = vld [vmem:[%s15648_s29 + $0x40] sm:$0xff] }
 0x23e   :  { %v11830_v1 = vpop.f32.mrf.mxu0  ;;  %v11832_v2 = vpop.f32.mrf.mxu1  ;;  %3010 = vmatprep.subr.mxu0 %v15638_v0 }
 0x23f   :  { %15655 = vst [vmem:[#allocation13_spill] sm:$0xff] %v11822_v51  ;;  %15656 = vst [vmem:[#allocation14_spill] sm:$0xff] %v11830_v1  ;;  %3011 = vmatpush1.msra.mxu0 %v10084_v49  ;;  %v8622_v51 = vld [vmem:[%s15649_s10 + $0x650] sm:$0xff] }
 0x240   :  { %15657 = vst [vmem:[#allocation15_spill] sm:$0xff] %v11832_v2  ;;  %v1043_v55 = vpop.f32.mrf.mxu0  ;;  %v1396_v23 = vpop.f32.mrf.mxu1  ;;  %2349 = vmatmul.mubr.f32.gmra.mxu0 %v8620_v26  ;;  %3012 = vmatprep.subr.mxu0 %v15638_v0  ;;  %v10085_v2 = vld [vmem:[%s15648_s29 + $0x38] sm:$0xff]  ;;  %v8625_v26 = vld [vmem:[%s15649_s10 + $0x668] sm:$0xff] }
 0x241   :  { %v11842_v37 = vadd.f32 %v1396_v23, %v1043_v55  ;;  %2353 = vmatprep.mubr.f32.mxu0 %v8623_v36  ;;  %3013 = vmatpush1.msra.mxu0 %v10085_v2  ;;  %v10086_v36 = vld [vmem:[%s15648_s29 + $0x30] sm:$0xff] }
 0x242   :  { %v11850_v1 = vpop.f32.mrf.mxu0  ;;  %v11852_v49 = vpop.f32.mrf.mxu1  ;;  %3014 = vmatprep.subr.mxu0 %v15638_v0 }
 0x243   :  { %15658 = vst [vmem:[#allocation16_spill] sm:$0xff] %v11842_v37  ;;  %15659 = vst [vmem:[#allocation17_spill] sm:$0xff] %v11850_v1  ;;  %3015 = vmatpush1.msra.mxu0 %v10086_v36  ;;  %v8624_v37 = vld [vmem:[%s15649_s10 + $0x660] sm:$0xff] }
 0x244   :  { %15660 = vst [vmem:[#allocation18_spill] sm:$0xff] %v11852_v49  ;;  %v1049_v55 = vpop.f32.mrf.mxu0  ;;  %v1402_v23 = vpop.f32.mrf.mxu1  ;;  %2354 = vmatmul.mubr.f32.gmra.mxu0 %v8622_v51  ;;  %3016 = vmatprep.subr.mxu0 %v15638_v0  ;;  %v10087_v49 = vld [vmem:[%s15648_s29 + $0x28] sm:$0xff]  ;;  %v8627_v51 = vld [vmem:[%s15649_s10 + $0x678] sm:$0xff] }
 0x245   :  { %v11862_v2 = vadd.f32 %v1402_v23, %v1049_v55  ;;  %2358 = vmatprep.mubr.f32.mxu0 %v8625_v26  ;;  %3017 = vmatpush1.msra.mxu0 %v10087_v49  ;;  %v10088_v26 = vld [vmem:[%s15648_s29 + $0x20] sm:$0xff] }
 0x246   :  { %v11870_v1 = vpop.f32.mrf.mxu0  ;;  %v11872_v36 = vpop.f32.mrf.mxu1  ;;  %3018 = vmatprep.subr.mxu0 %v15638_v0 }
 0x247   :  { %15661 = vst [vmem:[#allocation19_spill] sm:$0xff] %v11862_v2  ;;  %15662 = vst [vmem:[#allocation20_spill] sm:$0xff] %v11870_v1  ;;  %3019 = vmatpush1.msra.mxu0 %v10088_v26  ;;  %v8626_v2 = vld [vmem:[%s15649_s10 + $0x670] sm:$0xff] }
 0x248   :  { %15663 = vst [vmem:[#allocation21_spill] sm:$0xff] %v11872_v36  ;;  %v1055_v55 = vpop.f32.mrf.mxu0  ;;  %v1408_v23 = vpop.f32.mrf.mxu1  ;;  %2359 = vmatmul.mubr.f32.gmra.mxu0 %v8624_v37  ;;  %3020 = vmatprep.subr.mxu0 %v15638_v0  ;;  %v10089_v36 = vld [vmem:[%s15648_s29 + $0x18] sm:$0xff]  ;;  %v8629_v37 = vld [vmem:[%s15649_s10 + $0x688] sm:$0xff] }
 0x249   :  { %v11882_v49 = vadd.f32 %v1408_v23, %v1055_v55  ;;  %2363 = vmatprep.mubr.f32.mxu0 %v8627_v51  ;;  %3021 = vmatpush1.msra.mxu0 %v10089_v36  ;;  %v10090_v51 = vld [vmem:[%s15648_s29 + $0x10] sm:$0xff] }
 0x24a   :  { %v11890_v1 = vpop.f32.mrf.mxu0  ;;  %v11892_v26 = vpop.f32.mrf.mxu1  ;;  %3022 = vmatprep.subr.mxu0 %v15638_v0 }
 0x24b   :  { %15664 = vst [vmem:[#allocation22_spill] sm:$0xff] %v11882_v49  ;;  %15665 = vst [vmem:[#allocation23_spill] sm:$0xff] %v11890_v1  ;;  %3023 = vmatpush1.msra.mxu0 %v10090_v51  ;;  %v8628_v49 = vld [vmem:[%s15649_s10 + $0x680] sm:$0xff] }
 0x24c   :  { %15666 = vst [vmem:[#allocation24_spill] sm:$0xff] %v11892_v26  ;;  %v1061_v55 = vpop.f32.mrf.mxu0  ;;  %v1414_v23 = vpop.f32.mrf.mxu1  ;;  %2364 = vmatmul.mubr.f32.gmra.mxu0 %v8626_v2  ;;  %3024 = vmatprep.subr.mxu0 %v15638_v0  ;;  %v10091_v26 = vld [vmem:[%s15648_s29 + $0x8] sm:$0xff]  ;;  %v8631_v2 = vld [vmem:[%s15649_s10 + $0x698] sm:$0xff] }
 0x24d   :  { %v11902_v36 = vadd.f32 %v1414_v23, %v1061_v55  ;;  %2368 = vmatprep.mubr.f32.mxu0 %v8629_v37  ;;  %3025 = vmatpush1.msra.mxu0 %v10091_v26  ;;  %v10092_v37 = vld [vmem:[%s15648_s29] sm:$0xff] }
 0x24e   :  { %v11910_v1 = vpop.f32.mrf.mxu0  ;;  %v11912_v51 = vpop.f32.mrf.mxu1  ;;  %3026 = vmatprep.subr.mxu0 %v15638_v0 }
 0x24f   :  { %15667 = vst [vmem:[#allocation25_spill] sm:$0xff] %v11902_v36  ;;  %15668 = vst [vmem:[#allocation26_spill] sm:$0xff] %v11910_v1  ;;  %3027 = vmatpush1.msra.mxu0 %v10092_v37  ;;  %v8630_v36 = vld [vmem:[%s15649_s10 + $0x690] sm:$0xff] }
 0x250   :  { %15669 = vst [vmem:[#allocation27_spill] sm:$0xff] %v11912_v51  ;;  %v1067_v55 = vpop.f32.mrf.mxu0  ;;  %v1420_v23 = vpop.f32.mrf.mxu1  ;;  %2369 = vmatmul.mubr.f32.gmra.mxu0 %v8628_v49  ;;  %3028 = vmatprep.subr.mxu0 %v15638_v0  ;;  %v10093_v51 = vld [vmem:[%s15648_s29 + $0xf8] sm:$0xff]  ;;  %v8633_v49 = vld [vmem:[%s15649_s10 + $0x6a8] sm:$0xff] }
 0x251   :  { %v11922_v26 = vadd.f32 %v1420_v23, %v1067_v55  ;;  %2373 = vmatprep.mubr.f32.mxu0 %v8631_v2  ;;  %3029 = vmatpush2.msra.mxu0 %v10093_v51  ;;  %v10094_v2 = vld [vmem:[%s15648_s29 + $0xf0] sm:$0xff] }
 0x252   :  { %v11930_v1 = vpop.f32.mrf.mxu0  ;;  %v11932_v37 = vpop.f32.mrf.mxu1  ;;  %3030 = vmatprep.subr.mxu0 %v15638_v0 }
 0x253   :  { %15670 = vst [vmem:[#allocation28_spill] sm:$0xff] %v11922_v26  ;;  %15671 = vst [vmem:[#allocation29_spill] sm:$0xff] %v11930_v1  ;;  %3031 = vmatpush2.msra.mxu0 %v10094_v2  ;;  %v8632_v26 = vld [vmem:[%s15649_s10 + $0x6a0] sm:$0xff] }
 0x254   :  { %15672 = vst [vmem:[#allocation30_spill] sm:$0xff] %v11932_v37  ;;  %v1073_v55 = vpop.f32.mrf.mxu0  ;;  %v1426_v23 = vpop.f32.mrf.mxu1  ;;  %2374 = vmatmul.mubr.f32.gmra.mxu0 %v8630_v36  ;;  %3032 = vmatprep.subr.mxu0 %v15638_v0  ;;  %v10095_v37 = vld [vmem:[%s15648_s29 + $0xe8] sm:$0xff]  ;;  %v8635_v36 = vld [vmem:[%s15649_s10 + $0x6b8] sm:$0xff] }
 0x255   :  { %v11942_v51 = vadd.f32 %v1426_v23, %v1073_v55  ;;  %2378 = vmatprep.mubr.f32.mxu0 %v8633_v49  ;;  %3033 = vmatpush2.msra.mxu0 %v10095_v37  ;;  %v10096_v49 = vld [vmem:[%s15648_s29 + $0xe0] sm:$0xff] }
 0x256   :  { %v11950_v1 = vpop.f32.mrf.mxu0  ;;  %v11952_v2 = vpop.f32.mrf.mxu1  ;;  %3034 = vmatprep.subr.mxu0 %v15638_v0 }
 0x257   :  { %15673 = vst [vmem:[#allocation31_spill] sm:$0xff] %v11942_v51  ;;  %15674 = vst [vmem:[#allocation32_spill] sm:$0xff] %v11950_v1  ;;  %3035 = vmatpush2.msra.mxu0 %v10096_v49  ;;  %v8634_v51 = vld [vmem:[%s15649_s10 + $0x6b0] sm:$0xff] }
 0x258   :  { %15675 = vst [vmem:[#allocation33_spill] sm:$0xff] %v11952_v2  ;;  %v1079_v55 = vpop.f32.mrf.mxu0  ;;  %v1432_v23 = vpop.f32.mrf.mxu1  ;;  %2379 = vmatmul.mubr.f32.gmra.mxu0 %v8632_v26  ;;  %3036 = vmatprep.subr.mxu0 %v15638_v0  ;;  %v10097_v2 = vld [vmem:[%s15648_s29 + $0xd8] sm:$0xff]  ;;  %v8637_v26 = vld [vmem:[%s15649_s10 + $0x6c8] sm:$0xff] }
 0x259   :  { %v11962_v37 = vadd.f32 %v1432_v23, %v1079_v55  ;;  %2383 = vmatprep.mubr.f32.mxu0 %v8635_v36  ;;  %3037 = vmatpush2.msra.mxu0 %v10097_v2  ;;  %v10098_v36 = vld [vmem:[%s15648_s29 + $0xd0] sm:$0xff] }
 0x25a   :  { %v11970_v1 = vpop.f32.mrf.mxu0  ;;  %v11972_v49 = vpop.f32.mrf.mxu1  ;;  %3038 = vmatprep.subr.mxu0 %v15638_v0 }
 0x25b   :  { %15676 = vst [vmem:[#allocation34_spill] sm:$0xff] %v11962_v37  ;;  %15677 = vst [vmem:[#allocation35_spill] sm:$0xff] %v11970_v1  ;;  %3039 = vmatpush2.msra.mxu0 %v10098_v36  ;;  %v8636_v37 = vld [vmem:[%s15649_s10 + $0x6c0] sm:$0xff] }
 0x25c   :  { %15678 = vst [vmem:[#allocation36_spill] sm:$0xff] %v11972_v49  ;;  %v1085_v55 = vpop.f32.mrf.mxu0  ;;  %v1438_v23 = vpop.f32.mrf.mxu1  ;;  %2384 = vmatmul.mubr.f32.gmra.mxu0 %v8634_v51  ;;  %3040 = vmatprep.subr.mxu0 %v15638_v0  ;;  %v10099_v49 = vld [vmem:[%s15648_s29 + $0xc8] sm:$0xff]  ;;  %v8639_v51 = vld [vmem:[%s15649_s10 + $0x6d8] sm:$0xff] }
 0x25d   :  { %v11982_v2 = vadd.f32 %v1438_v23, %v1085_v55  ;;  %2388 = vmatprep.mubr.f32.mxu0 %v8637_v26  ;;  %3041 = vmatpush2.msra.mxu0 %v10099_v49  ;;  %v10100_v26 = vld [vmem:[%s15648_s29 + $0xc0] sm:$0xff] }
 0x25e   :  { %v11990_v1 = vpop.f32.mrf.mxu0  ;;  %v11992_v36 = vpop.f32.mrf.mxu1  ;;  %3042 = vmatprep.subr.mxu0 %v15638_v0 }
 0x25f   :  { %15679 = vst [vmem:[#allocation37_spill] sm:$0xff] %v11982_v2  ;;  %15680 = vst [vmem:[#allocation38_spill] sm:$0xff] %v11990_v1  ;;  %3043 = vmatpush2.msra.mxu0 %v10100_v26  ;;  %v8638_v2 = vld [vmem:[%s15649_s10 + $0x6d0] sm:$0xff] }
 0x260   :  { %15681 = vst [vmem:[#allocation39_spill] sm:$0xff] %v11992_v36  ;;  %v1091_v55 = vpop.f32.mrf.mxu0  ;;  %v1444_v23 = vpop.f32.mrf.mxu1  ;;  %2389 = vmatmul.mubr.f32.gmra.mxu0 %v8636_v37  ;;  %3044 = vmatprep.subr.mxu0 %v15638_v0  ;;  %v10101_v36 = vld [vmem:[%s15648_s29 + $0xb8] sm:$0xff]  ;;  %v8641_v37 = vld [vmem:[%s15649_s10 + $0x6e8] sm:$0xff] }
 0x261   :  { %v12002_v49 = vadd.f32 %v1444_v23, %v1091_v55  ;;  %2393 = vmatprep.mubr.f32.mxu0 %v8639_v51  ;;  %3045 = vmatpush2.msra.mxu0 %v10101_v36  ;;  %v10102_v51 = vld [vmem:[%s15648_s29 + $0xb0] sm:$0xff] }
 0x262   :  { %v12010_v1 = vpop.f32.mrf.mxu0  ;;  %v12012_v26 = vpop.f32.mrf.mxu1  ;;  %3046 = vmatprep.subr.mxu0 %v15638_v0 }
 0x263   :  { %15682 = vst [vmem:[#allocation40_spill] sm:$0xff] %v12002_v49  ;;  %15683 = vst [vmem:[#allocation41_spill] sm:$0xff] %v12010_v1  ;;  %3047 = vmatpush2.msra.mxu0 %v10102_v51  ;;  %v8640_v49 = vld [vmem:[%s15649_s10 + $0x6e0] sm:$0xff] }
 0x264   :  { %15684 = vst [vmem:[#allocation42_spill] sm:$0xff] %v12012_v26  ;;  %v1097_v55 = vpop.f32.mrf.mxu0  ;;  %v1450_v23 = vpop.f32.mrf.mxu1  ;;  %2394 = vmatmul.mubr.f32.gmra.mxu0 %v8638_v2  ;;  %3048 = vmatprep.subr.mxu0 %v15638_v0  ;;  %v10103_v26 = vld [vmem:[%s15648_s29 + $0xa8] sm:$0xff]  ;;  %v8643_v2 = vld [vmem:[%s15649_s10 + $0x6f8] sm:$0xff] }
 0x265   :  { %v12022_v36 = vadd.f32 %v1450_v23, %v1097_v55  ;;  %2398 = vmatprep.mubr.f32.mxu0 %v8641_v37  ;;  %3049 = vmatpush2.msra.mxu0 %v10103_v26  ;;  %v10104_v37 = vld [vmem:[%s15648_s29 + $0xa0] sm:$0xff] }
 0x266   :  { %v12030_v1 = vpop.f32.mrf.mxu0  ;;  %v12032_v51 = vpop.f32.mrf.mxu1  ;;  %3050 = vmatprep.subr.mxu0 %v15638_v0 }
 0x267   :  { %15685 = vst [vmem:[#allocation43_spill] sm:$0xff] %v12022_v36  ;;  %15686 = vst [vmem:[#allocation44_spill] sm:$0xff] %v12030_v1  ;;  %3051 = vmatpush2.msra.mxu0 %v10104_v37  ;;  %v8642_v36 = vld [vmem:[%s15649_s10 + $0x6f0] sm:$0xff] }
 0x268   :  { %15687 = vst [vmem:[#allocation45_spill] sm:$0xff] %v12032_v51  ;;  %v1103_v55 = vpop.f32.mrf.mxu0  ;;  %v1456_v23 = vpop.f32.mrf.mxu1  ;;  %2399 = vmatmul.mubr.f32.gmra.mxu0 %v8640_v49  ;;  %3052 = vmatprep.subr.mxu0 %v15638_v0  ;;  %v10105_v51 = vld [vmem:[%s15648_s29 + $0x98] sm:$0xff]  ;;  %v8645_v49 = vld [vmem:[%s15649_s10 + $0x708] sm:$0xff] }
 0x269   :  { %v12042_v26 = vadd.f32 %v1456_v23, %v1103_v55  ;;  %2403 = vmatprep.mubr.f32.mxu0 %v8643_v2  ;;  %3053 = vmatpush2.msra.mxu0 %v10105_v51  ;;  %v10106_v2 = vld [vmem:[%s15648_s29 + $0x90] sm:$0xff] }
 0x26a   :  { %v12050_v1 = vpop.f32.mrf.mxu0  ;;  %v12052_v37 = vpop.f32.mrf.mxu1  ;;  %3054 = vmatprep.subr.mxu0 %v15638_v0 }
 0x26b   :  { %15688 = vst [vmem:[#allocation46_spill] sm:$0xff] %v12042_v26  ;;  %15689 = vst [vmem:[#allocation47_spill] sm:$0xff] %v12050_v1  ;;  %3055 = vmatpush2.msra.mxu0 %v10106_v2  ;;  %v8644_v26 = vld [vmem:[%s15649_s10 + $0x700] sm:$0xff] }
 0x26c   :  { %15690 = vst [vmem:[#allocation48_spill] sm:$0xff] %v12052_v37  ;;  %v1109_v55 = vpop.f32.mrf.mxu0  ;;  %v1462_v23 = vpop.f32.mrf.mxu1  ;;  %2404 = vmatmul.mubr.f32.gmra.mxu0 %v8642_v36  ;;  %3056 = vmatprep.subr.mxu0 %v15638_v0  ;;  %v10107_v37 = vld [vmem:[%s15648_s29 + $0x88] sm:$0xff]  ;;  %v8647_v36 = vld [vmem:[%s15649_s10 + $0x718] sm:$0xff]  ;;  %v10108_v2 = vld [vmem:[%s15648_s29 + $0x80] sm:$0xff] }
 0x26d   :  { %v12062_v51 = vadd.f32 %v1462_v23, %v1109_v55  ;;  %2408 = vmatprep.mubr.f32.mxu0 %v8645_v49  ;;  %3057 = vmatpush2.msra.mxu0 %v10107_v37  ;;  %v8698_v49 = vld [vmem:[%s15650_s23 + $0x2f0] sm:$0xff]  ;;  %v8697_v37 = vld [vmem:[%s15650_s23 + $0x2e8] sm:$0xff] }
 0x26e   :  { %v12070_v1 = vpop.f32.mrf.mxu0  ;;  %3058 = vmatprep.subr.mxu0 %v15638_v0  ;;  %v8646_v23 = vld [vmem:[%s15649_s10 + $0x710] sm:$0xff]  ;;  %v8696_v0 = vld [vmem:[%s15650_s23 + $0x2e0] sm:$0xff] }
 0x26f   :  { %15691 = vst [vmem:[#allocation49_spill] sm:$0xff] %v12062_v51  ;;  %15692 = vst [vmem:[#allocation50_spill] sm:$0xff] %v12070_v1  ;;  %3059 = vmatpush2.msra.mxu0 %v10108_v2  ;;  %v15693_v1 = vmov 0.0  }
 0x270   :  { %v1598_v55 = vpop.f32.mrf.mxu0  ;;  %2409 = vmatmul.mubr.f32.gmra.mxu0 %v8644_v26  ;;  %v8649_v26 = vld [vmem:[%s15649_s10 + $0x728] sm:$0xff] }
 0x271   :  { %8580 = vmatmul.mubr.msk.f32.vlgmr.msra.gmra.mxu1 %vm760_vm0, %v1598_v55  ;;  %2413 = vmatprep.mubr.f32.mxu0 %v8647_v36  ;;  %v8695_v36 = vld [vmem:[%s15650_s23 + $0x2d8] sm:$0xff]  ;;  %v8694_v55 = vld [vmem:[%s15650_s23 + $0x2d0] sm:$0xff] }
 0x272   :  { %v1600_v51 = vpop.f32.mrf.mxu0  ;;  %1948 = vmatprep.mubr.f32.mxu1 %v15693_v1  ;;  %2619 = vmatpush1.msra.mxu1 %v8698_v49  ;;  %v8693_v49 = vld [vmem:[%s15650_s23 + $0x2c8] sm:$0xff] }
 0x273   :  { %2620 = vmatprep.subr.mxu1 %v8697_v37  ;;  %v8648_v51 = vld [vmem:[%s15649_s10 + $0x720] sm:$0xff] }
 0x274   :  { %v1603_v2 = vpop.f32.mrf.mxu0  ;;  %2414 = vmatmul.mubr.f32.gmra.mxu0 %v8646_v23  ;;  %2621 = vmatpush1.msra.mxu1 %v8696_v0  ;;  %v8651_v0 = vld [vmem:[%s15649_s10 + $0x738] sm:$0xff]  ;;  %v8692_v23 = vld [vmem:[%s15650_s23 + $0x2c0] sm:$0xff] }
 0x275   :  { %8581 = vmatmul.mubr.msk.f32.gmra.mxu1 %vm760_vm0, %v1603_v2  ;;  %2418 = vmatprep.mubr.f32.mxu0 %v8649_v26  ;;  %v8691_v2 = vld [vmem:[%s15650_s23 + $0x2b8] sm:$0xff] }
 0x276   :  { %v1605_v37 = vpop.f32.mrf.mxu0  ;;  %1954 = vmatprep.mubr.f32.mxu1 %v15693_v1  ;;  %2622 = vmatprep.subr.mxu1 %v8695_v36  ;;  %v8690_v36 = vld [vmem:[%s15650_s23 + $0x2b0] sm:$0xff] }
 0x277   :  { %2623 = vmatpush1.msra.mxu1 %v8694_v55  ;;  %v8650_v37 = vld [vmem:[%s15649_s10 + $0x730] sm:$0xff] }
 0x278   :  { %v1608_v26 = vpop.f32.mrf.mxu0  ;;  %2419 = vmatmul.mubr.f32.gmra.mxu0 %v8648_v51  ;;  %2624 = vmatprep.subr.mxu1 %v8693_v49  ;;  %v8653_v51 = vld [vmem:[%s15649_s10 + $0x748] sm:$0xff] }
 0x279   :  { %8582 = vmatmul.mubr.msk.f32.gmra.mxu1 %vm760_vm0, %v1608_v26  ;;  %2423 = vmatprep.mubr.f32.mxu0 %v8651_v0  ;;  %v8689_v49 = vld [vmem:[%s15650_s23 + $0x2a8] sm:$0xff]  ;;  %v8688_v26 = vld [vmem:[%s15650_s23 + $0x2a0] sm:$0xff] }
 0x27a   :  { %v1610_v55 = vpop.f32.mrf.mxu0  ;;  %1960 = vmatprep.mubr.f32.mxu1 %v15693_v1  ;;  %2625 = vmatpush1.msra.mxu1 %v8692_v23  ;;  %v8687_v23 = vld [vmem:[%s15650_s23 + $0x298] sm:$0xff] }
 0x27b   :  { %2626 = vmatprep.subr.mxu1 %v8691_v2  ;;  %v8652_v55 = vld [vmem:[%s15649_s10 + $0x740] sm:$0xff] }
 0x27c   :  { %v1613_v0 = vpop.f32.mrf.mxu0  ;;  %2424 = vmatmul.mubr.f32.gmra.mxu0 %v8650_v37  ;;  %2627 = vmatpush1.msra.mxu1 %v8690_v36  ;;  %v8655_v37 = vld [vmem:[%s15649_s10 + $0x758] sm:$0xff]  ;;  %v8686_v36 = vld [vmem:[%s15650_s23 + $0x290] sm:$0xff] }
 0x27d   :  { %8583 = vmatmul.mubr.msk.f32.gmra.mxu1 %vm760_vm0, %v1613_v0  ;;  %2428 = vmatprep.mubr.f32.mxu0 %v8653_v51  ;;  %v8685_v0 = vld [vmem:[%s15650_s23 + $0x288] sm:$0xff] }
 0x27e   :  { %v1615_v2 = vpop.f32.mrf.mxu0  ;;  %1966 = vmatprep.mubr.f32.mxu1 %v15693_v1  ;;  %2628 = vmatprep.subr.mxu1 %v8689_v49  ;;  %v8684_v49 = vld [vmem:[%s15650_s23 + $0x280] sm:$0xff] }
 0x27f   :  { %2629 = vmatpush1.msra.mxu1 %v8688_v26  ;;  %v8654_v2 = vld [vmem:[%s15649_s10 + $0x750] sm:$0xff] }
 0x280   :  { %v1618_v51 = vpop.f32.mrf.mxu0  ;;  %2429 = vmatmul.mubr.f32.gmra.mxu0 %v8652_v55  ;;  %2630 = vmatprep.subr.mxu1 %v8687_v23  ;;  %v8657_v55 = vld [vmem:[%s15649_s10 + $0x768] sm:$0xff]  ;;  %v8683_v23 = vld [vmem:[%s15650_s23 + $0x278] sm:$0xff] }
 0x281   :  { %8584 = vmatmul.mubr.msk.f32.gmra.mxu1 %vm760_vm0, %v1618_v51  ;;  %2433 = vmatprep.mubr.f32.mxu0 %v8655_v37  ;;  %v8682_v51 = vld [vmem:[%s15650_s23 + $0x270] sm:$0xff] }
 0x282   :  { %v1620_v26 = vpop.f32.mrf.mxu0  ;;  %1972 = vmatprep.mubr.f32.mxu1 %v15693_v1  ;;  %2631 = vmatpush1.msra.mxu1 %v8686_v36  ;;  %v8681_v36 = vld [vmem:[%s15650_s23 + $0x268] sm:$0xff] }
 0x283   :  { %2632 = vmatprep.subr.mxu1 %v8685_v0  ;;  %v8656_v26 = vld [vmem:[%s15649_s10 + $0x760] sm:$0xff] }
 0x284   :  { %v1623_v37 = vpop.f32.mrf.mxu0  ;;  %2434 = vmatmul.mubr.f32.gmra.mxu0 %v8654_v2  ;;  %2633 = vmatpush1.msra.mxu1 %v8684_v49  ;;  %v8659_v2 = vld [vmem:[%s15649_s10 + $0x778] sm:$0xff]  ;;  %v8680_v49 = vld [vmem:[%s15650_s23 + $0x260] sm:$0xff] }
 0x285   :  { %8585 = vmatmul.mubr.msk.f32.gmra.mxu1 %vm760_vm0, %v1623_v37  ;;  %2438 = vmatprep.mubr.f32.mxu0 %v8657_v55  ;;  %v8679_v37 = vld [vmem:[%s15650_s23 + $0x258] sm:$0xff] }
 0x286   :  { %v1625_v0 = vpop.f32.mrf.mxu0  ;;  %1978 = vmatprep.mubr.f32.mxu1 %v15693_v1  ;;  %2634 = vmatprep.subr.mxu1 %v8683_v23  ;;  %v8678_v23 = vld [vmem:[%s15650_s23 + $0x250] sm:$0xff] }
 0x287   :  { %2635 = vmatpush1.msra.mxu1 %v8682_v51  ;;  %v8658_v0 = vld [vmem:[%s15649_s10 + $0x770] sm:$0xff] }
 0x288   :  { %v1628_v55 = vpop.f32.mrf.mxu0  ;;  %2439 = vmatmul.mubr.f32.gmra.mxu0 %v8656_v26  ;;  %2636 = vmatprep.subr.mxu1 %v8681_v36  ;;  %v8661_v26 = vld [vmem:[%s15649_s10 + $0x788] sm:$0xff] }
 0x289   :  { %8586 = vmatmul.mubr.msk.f32.gmra.mxu1 %vm760_vm0, %v1628_v55  ;;  %2443 = vmatprep.mubr.f32.mxu0 %v8659_v2  ;;  %v8677_v36 = vld [vmem:[%s15650_s23 + $0x248] sm:$0xff]  ;;  %v8676_v55 = vld [vmem:[%s15650_s23 + $0x240] sm:$0xff] }
 0x28a   :  { %v1630_v51 = vpop.f32.mrf.mxu0  ;;  %1984 = vmatprep.mubr.f32.mxu1 %v15693_v1  ;;  %2637 = vmatpush1.msra.mxu1 %v8680_v49 }
 0x28b   :  { %2638 = vmatprep.subr.mxu1 %v8679_v37  ;;  %v8660_v51 = vld [vmem:[%s15649_s10 + $0x780] sm:$0xff]  ;;  %v8663_v37 = vld [vmem:[%s15649_s10 + $0x798] sm:$0xff] }
 0x28c   :  { %v1633_v2 = vpop.f32.mrf.mxu0  ;;  %2444 = vmatmul.mubr.f32.gmra.mxu0 %v8658_v0  ;;  %2639 = vmatpush1.msra.mxu1 %v8678_v23  ;;  %v8662_v23 = vld [vmem:[%s15649_s10 + $0x790] sm:$0xff] }
 0x28d   :  { %8587 = vmatmul.mubr.msk.f32.gmra.mxu1 %vm760_vm0, %v1633_v2  ;;  %2448 = vmatprep.mubr.f32.mxu0 %v8661_v26  ;;  %v8819_v26 = vld [vmem:[%s15650_s23 + $0x3b8] sm:$0xff] }
 0x28e   :  { %v1635_v49 = vpop.f32.mrf.mxu0  ;;  %1990 = vmatprep.mubr.f32.mxu1 %v15693_v1  ;;  %2640 = vmatprep.subr.mxu1 %v8677_v36  ;;  %v8665_v36 = vld [vmem:[%s15649_s10 + $0x7a8] sm:$0xff] }
 0x28f   :  { %2641 = vmatpush1.msra.mxu1 %v8676_v55 }
 0x290   :  { %v1638_v0 = vpop.f32.mrf.mxu0  ;;  %2449 = vmatmul.mubr.f32.gmra.mxu0 %v8660_v51  ;;  %3350 = vmatprep.subr.mxu1 %v8819_v26  ;;  %v8664_v51 = vld [vmem:[%s15649_s10 + $0x7a0] sm:$0xff] }
 0x291   :  { %8588 = vmatmul.mubr.msk.f32.gmra.mxu1 %vm760_vm0, %v1638_v0  ;;  %2453 = vmatprep.mubr.f32.mxu0 %v8663_v37  ;;  %v8667_v37 = vld [vmem:[%s15649_s10 + $0x7b8] sm:$0xff] }
 0x292   :  { %v1640_v2 = vpop.f32.mrf.mxu0  ;;  %1996 = vmatprep.mubr.f32.mxu1 %v15693_v1 }
 0x293   :  { %v8669_v2 = vld [vmem:[%s15649_s10 + $0x7c8] sm:$0xff] }
 0x294   :  { %v1643_v55 = vpop.f32.mrf.mxu0  ;;  %2454 = vmatmul.mubr.f32.gmra.mxu0 %v8662_v23  ;;  %v8666_v23 = vld [vmem:[%s15649_s10 + $0x7b0] sm:$0xff] }
 0x295   :  { %8589 = vmatmul.mubr.msk.f32.gmra.mxu1 %vm760_vm0, %v1643_v55  ;;  %2458 = vmatprep.mubr.f32.mxu0 %v8665_v36  ;;  %v8668_v55 = vld [vmem:[%s15649_s10 + $0x7c0] sm:$0xff] }
 0x296   :  { %v1645_v49 = vpop.f32.mrf.mxu0  ;;  %2002 = vmatprep.mubr.f32.mxu1 %v15693_v1 }
 0x297   :  { %v8671_v49 = vld [vmem:[%s15649_s10 + $0x7d8] sm:$0xff] }
 0x298   :  { %v1648_v0 = vpop.f32.mrf.mxu0  ;;  %2459 = vmatmul.mubr.f32.gmra.mxu0 %v8664_v51 }
 0x299   :  { %8590 = vmatmul.mubr.msk.f32.gmra.mxu1 %vm760_vm0, %v1648_v0  ;;  %2463 = vmatprep.mubr.f32.mxu0 %v8667_v37  ;;  %v8670_v0 = vld [vmem:[%s15649_s10 + $0x7d0] sm:$0xff] }
 0x29a   :  { %v1650_v26 = vpop.f32.mrf.mxu0  ;;  %2008 = vmatprep.mubr.f32.mxu1 %v15693_v1 }
 0x29b   :  { %v8673_v26 = vld [vmem:[%s15649_s10 + $0x7e8] sm:$0xff] }
 0x29c   :  { %v1653_v36 = vpop.f32.mrf.mxu0  ;;  %2464 = vmatmul.mubr.f32.gmra.mxu0 %v8666_v23 }
 0x29d   :  { %8591 = vmatmul.mubr.msk.f32.gmra.mxu1 %vm760_vm0, %v1653_v36  ;;  %2468 = vmatprep.mubr.f32.mxu0 %v8669_v2  ;;  %v8672_v36 = vld [vmem:[%s15649_s10 + $0x7e0] sm:$0xff] }
 0x29e   :  { %v1655_v51 = vpop.f32.mrf.mxu0  ;;  %2014 = vmatprep.mubr.f32.mxu1 %v15693_v1 }
 0x29f   :  { %v8675_v51 = vld [vmem:[%s15649_s10 + $0x7f8] sm:$0xff] }
 0x2a0   :  { %v1658_v37 = vpop.f32.mrf.mxu0  ;;  %2469 = vmatmul.mubr.f32.gmra.mxu0 %v8668_v55 }
 0x2a1   :  { %8592 = vmatmul.mubr.msk.f32.gmra.mxu1 %vm760_vm0, %v1658_v37  ;;  %2473 = vmatprep.mubr.f32.mxu0 %v8671_v49  ;;  %v8674_v37 = vld [vmem:[%s15649_s10 + $0x7f0] sm:$0xff] }
 0x2a2   :  { %v1660_v23 = vpop.f32.mrf.mxu0  ;;  %2020 = vmatprep.mubr.f32.mxu1 %v15693_v1 }
 0x2a3   :  { %v8733_v23 = vld [vmem:[%s15649_s10 + $0x808] sm:$0xff] }
 0x2a4   :  { %v1663_v2 = vpop.f32.mrf.mxu0  ;;  %2474 = vmatmul.mubr.f32.gmra.mxu0 %v8670_v0 }
 0x2a5   :  { %8593 = vmatmul.mubr.msk.f32.gmra.mxu1 %vm760_vm0, %v1663_v2  ;;  %2478 = vmatprep.mubr.f32.mxu0 %v8673_v26  ;;  %v8732_v2 = vld [vmem:[%s15649_s10 + $0x800] sm:$0xff] }
 0x2a6   :  { %v1665_v55 = vpop.f32.mrf.mxu0  ;;  %2026 = vmatprep.mubr.f32.mxu1 %v15693_v1 }
 0x2a7   :  { %v8735_v55 = vld [vmem:[%s15649_s10 + $0x818] sm:$0xff] }
 0x2a8   :  { %v1668_v49 = vpop.f32.mrf.mxu0  ;;  %2479 = vmatmul.mubr.f32.gmra.mxu0 %v8672_v36 }
 0x2a9   :  { %8594 = vmatmul.mubr.msk.f32.gmra.mxu1 %vm760_vm0, %v1668_v49  ;;  %2483 = vmatprep.mubr.f32.mxu0 %v8675_v51  ;;  %v8734_v49 = vld [vmem:[%s15649_s10 + $0x810] sm:$0xff] }
 0x2aa   :  { %v1670_v0 = vpop.f32.mrf.mxu0  ;;  %2032 = vmatprep.mubr.f32.mxu1 %v15693_v1 }
 0x2ab   :  { %v8737_v0 = vld [vmem:[%s15649_s10 + $0x828] sm:$0xff] }
 0x2ac   :  { %v1673_v26 = vpop.f32.mrf.mxu0  ;;  %2484 = vmatmul.mubr.f32.gmra.mxu0 %v8674_v37 }
 0x2ad   :  { %8595 = vmatmul.mubr.msk.f32.gmra.mxu1 %vm760_vm0, %v1673_v26  ;;  %3060 = vmatprep.mubr.f32.mxu0 %v8733_v23  ;;  %v8736_v26 = vld [vmem:[%s15649_s10 + $0x820] sm:$0xff] }
 0x2ae   :  { %v1675_v36 = vpop.f32.mrf.mxu0  ;;  %2038 = vmatprep.mubr.f32.mxu1 %v15693_v1 }
 0x2af   :  { %v8739_v36 = vld [vmem:[%s15649_s10 + $0x838] sm:$0xff] }
 0x2b0   :  { %v1678_v51 = vpop.f32.mrf.mxu0  ;;  %3061 = vmatmul.mubr.f32.vlgmr.msra.gmra.mxu0 %v8732_v2 }
 0x2b1   :  { %8596 = vmatmul.mubr.msk.f32.gmra.mxu1 %vm760_vm0, %v1678_v51  ;;  %3065 = vmatprep.mubr.f32.mxu0 %v8735_v55  ;;  %v8738_v51 = vld [vmem:[%s15649_s10 + $0x830] sm:$0xff] }
 0x2b2   :  { %v1680_v37 = vpop.f32.mrf.mxu0  ;;  %2044 = vmatprep.mubr.f32.mxu1 %v15693_v1 }
 0x2b3   :  { %v8741_v37 = vld [vmem:[%s15649_s10 + $0x848] sm:$0xff] }
 0x2b4   :  { %v1683_v23 = vpop.f32.mrf.mxu0  ;;  %3066 = vmatmul.mubr.f32.gmra.mxu0 %v8734_v49 }
 0x2b5   :  { %8597 = vmatmul.mubr.msk.f32.gmra.mxu1 %vm760_vm0, %v1683_v23  ;;  %3070 = vmatprep.mubr.f32.mxu0 %v8737_v0  ;;  %v8740_v23 = vld [vmem:[%s15649_s10 + $0x840] sm:$0xff] }
 0x2b6   :  { %v1685_v2 = vpop.f32.mrf.mxu0  ;;  %2050 = vmatprep.mubr.f32.mxu1 %v15693_v1 }
 0x2b7   :  { %v8743_v2 = vld [vmem:[%s15649_s10 + $0x858] sm:$0xff] }
 0x2b8   :  { %v1688_v55 = vpop.f32.mrf.mxu0  ;;  %3071 = vmatmul.mubr.f32.gmra.mxu0 %v8736_v26 }
 0x2b9   :  { %8598 = vmatmul.mubr.msk.f32.gmra.mxu1 %vm760_vm0, %v1688_v55  ;;  %3075 = vmatprep.mubr.f32.mxu0 %v8739_v36  ;;  %v8742_v55 = vld [vmem:[%s15649_s10 + $0x850] sm:$0xff] }
 0x2ba   :  { %v1690_v49 = vpop.f32.mrf.mxu0  ;;  %2056 = vmatprep.mubr.f32.mxu1 %v15693_v1 }
 0x2bb   :  { %v8745_v49 = vld [vmem:[%s15649_s10 + $0x868] sm:$0xff] }
 0x2bc   :  { %v1693_v0 = vpop.f32.mrf.mxu0  ;;  %3076 = vmatmul.mubr.f32.gmra.mxu0 %v8738_v51 }
 0x2bd   :  { %8599 = vmatmul.mubr.msk.f32.gmra.mxu1 %vm760_vm0, %v1693_v0  ;;  %3080 = vmatprep.mubr.f32.mxu0 %v8741_v37  ;;  %v8744_v0 = vld [vmem:[%s15649_s10 + $0x860] sm:$0xff] }
 0x2be   :  { %v1695_v26 = vpop.f32.mrf.mxu0  ;;  %2062 = vmatprep.mubr.f32.mxu1 %v15693_v1 }
 0x2bf   :  { %v8747_v26 = vld [vmem:[%s15649_s10 + $0x878] sm:$0xff] }
 0x2c0   :  { %v1698_v36 = vpop.f32.mrf.mxu0  ;;  %3081 = vmatmul.mubr.f32.gmra.mxu0 %v8740_v23 }
 0x2c1   :  { %8600 = vmatmul.mubr.msk.f32.gmra.mxu1 %vm760_vm0, %v1698_v36  ;;  %3085 = vmatprep.mubr.f32.mxu0 %v8743_v2  ;;  %v8746_v36 = vld [vmem:[%s15649_s10 + $0x870] sm:$0xff] }
 0x2c2   :  { %v1700_v51 = vpop.f32.mrf.mxu0  ;;  %2068 = vmatprep.mubr.f32.mxu1 %v15693_v1 }
 0x2c3   :  { %v8749_v51 = vld [vmem:[%s15649_s10 + $0x888] sm:$0xff] }
 0x2c4   :  { %v1703_v37 = vpop.f32.mrf.mxu0  ;;  %3086 = vmatmul.mubr.f32.gmra.mxu0 %v8742_v55 }
 0x2c5   :  { %8601 = vmatmul.mubr.msk.f32.gmra.mxu1 %vm760_vm0, %v1703_v37  ;;  %3090 = vmatprep.mubr.f32.mxu0 %v8745_v49  ;;  %v8748_v37 = vld [vmem:[%s15649_s10 + $0x880] sm:$0xff] }
 0x2c6   :  { %v1705_v23 = vpop.f32.mrf.mxu0  ;;  %2074 = vmatprep.mubr.f32.mxu1 %v15693_v1 }
 0x2c7   :  { %v8751_v23 = vld [vmem:[%s15649_s10 + $0x898] sm:$0xff] }
 0x2c8   :  { %v1708_v2 = vpop.f32.mrf.mxu0  ;;  %3091 = vmatmul.mubr.f32.gmra.mxu0 %v8744_v0 }
 0x2c9   :  { %8602 = vmatmul.mubr.msk.f32.gmra.mxu1 %vm760_vm0, %v1708_v2  ;;  %3095 = vmatprep.mubr.f32.mxu0 %v8747_v26  ;;  %v8750_v2 = vld [vmem:[%s15649_s10 + $0x890] sm:$0xff] }
 0x2ca   :  { %v1710_v55 = vpop.f32.mrf.mxu0  ;;  %2080 = vmatprep.mubr.f32.mxu1 %v15693_v1 }
 0x2cb   :  { %v8753_v55 = vld [vmem:[%s15649_s10 + $0x8a8] sm:$0xff] }
 0x2cc   :  { %v1713_v49 = vpop.f32.mrf.mxu0  ;;  %3096 = vmatmul.mubr.f32.gmra.mxu0 %v8746_v36 }
 0x2cd   :  { %8603 = vmatmul.mubr.msk.f32.gmra.mxu1 %vm760_vm0, %v1713_v49  ;;  %3100 = vmatprep.mubr.f32.mxu0 %v8749_v51  ;;  %v8752_v49 = vld [vmem:[%s15649_s10 + $0x8a0] sm:$0xff] }
 0x2ce   :  { %v1715_v0 = vpop.f32.mrf.mxu0  ;;  %2086 = vmatprep.mubr.f32.mxu1 %v15693_v1 }
 0x2cf   :  { %v8755_v0 = vld [vmem:[%s15649_s10 + $0x8b8] sm:$0xff] }
 0x2d0   :  { %v1718_v26 = vpop.f32.mrf.mxu0  ;;  %3101 = vmatmul.mubr.f32.gmra.mxu0 %v8748_v37 }
 0x2d1   :  { %8604 = vmatmul.mubr.msk.f32.gmra.mxu1 %vm760_vm0, %v1718_v26  ;;  %3105 = vmatprep.mubr.f32.mxu0 %v8751_v23  ;;  %v8754_v26 = vld [vmem:[%s15649_s10 + $0x8b0] sm:$0xff] }
 0x2d2   :  { %v1720_v36 = vpop.f32.mrf.mxu0  ;;  %2092 = vmatprep.mubr.f32.mxu1 %v15693_v1 }
 0x2d3   :  { %v8757_v36 = vld [vmem:[%s15649_s10 + $0x8c8] sm:$0xff] }
 0x2d4   :  { %v1723_v51 = vpop.f32.mrf.mxu0  ;;  %3106 = vmatmul.mubr.f32.gmra.mxu0 %v8750_v2 }
 0x2d5   :  { %8605 = vmatmul.mubr.msk.f32.gmra.mxu1 %vm760_vm0, %v1723_v51  ;;  %3110 = vmatprep.mubr.f32.mxu0 %v8753_v55  ;;  %v8756_v51 = vld [vmem:[%s15649_s10 + $0x8c0] sm:$0xff] }
 0x2d6   :  { %v1725_v37 = vpop.f32.mrf.mxu0  ;;  %2098 = vmatprep.mubr.f32.mxu1 %v15693_v1 }
 0x2d7   :  { %v8759_v37 = vld [vmem:[%s15649_s10 + $0x8d8] sm:$0xff] }
 0x2d8   :  { %v1728_v23 = vpop.f32.mrf.mxu0  ;;  %3111 = vmatmul.mubr.f32.gmra.mxu0 %v8752_v49 }
 0x2d9   :  { %8606 = vmatmul.mubr.msk.f32.gmra.mxu1 %vm760_vm0, %v1728_v23  ;;  %3115 = vmatprep.mubr.f32.mxu0 %v8755_v0  ;;  %v8758_v23 = vld [vmem:[%s15649_s10 + $0x8d0] sm:$0xff] }
 0x2da   :  { %v1730_v2 = vpop.f32.mrf.mxu0  ;;  %2104 = vmatprep.mubr.f32.mxu1 %v15693_v1 }
 0x2db   :  { %v8761_v2 = vld [vmem:[%s15649_s10 + $0x8e8] sm:$0xff] }
 0x2dc   :  { %v1733_v55 = vpop.f32.mrf.mxu0  ;;  %3116 = vmatmul.mubr.f32.gmra.mxu0 %v8754_v26 }
 0x2dd   :  { %8607 = vmatmul.mubr.msk.f32.gmra.mxu1 %vm760_vm0, %v1733_v55  ;;  %3120 = vmatprep.mubr.f32.mxu0 %v8757_v36  ;;  %v8760_v55 = vld [vmem:[%s15649_s10 + $0x8e0] sm:$0xff] }
 0x2de   :  { %v1735_v49 = vpop.f32.mrf.mxu0  ;;  %2110 = vmatprep.mubr.f32.mxu1 %v15693_v1 }
 0x2df   :  { %v8763_v49 = vld [vmem:[%s15649_s10 + $0x8f8] sm:$0xff] }
 0x2e0   :  { %v1738_v0 = vpop.f32.mrf.mxu0  ;;  %3121 = vmatmul.mubr.f32.gmra.mxu0 %v8756_v51 }
 0x2e1   :  { %8608 = vmatmul.mubr.msk.f32.gmra.mxu1 %vm760_vm0, %v1738_v0  ;;  %3125 = vmatprep.mubr.f32.mxu0 %v8759_v37  ;;  %v8762_v0 = vld [vmem:[%s15649_s10 + $0x8f0] sm:$0xff] }
 0x2e2   :  { %v1740_v26 = vpop.f32.mrf.mxu0  ;;  %2116 = vmatprep.mubr.f32.mxu1 %v15693_v1 }
 0x2e3   :  { %v8765_v26 = vld [vmem:[%s15649_s10 + $0x908] sm:$0xff] }
 0x2e4   :  { %v1743_v36 = vpop.f32.mrf.mxu0  ;;  %3126 = vmatmul.mubr.f32.gmra.mxu0 %v8758_v23 }
 0x2e5   :  { %8609 = vmatmul.mubr.msk.f32.gmra.mxu1 %vm760_vm0, %v1743_v36  ;;  %3130 = vmatprep.mubr.f32.mxu0 %v8761_v2  ;;  %v8764_v36 = vld [vmem:[%s15649_s10 + $0x900] sm:$0xff] }
 0x2e6   :  { %v1745_v51 = vpop.f32.mrf.mxu0  ;;  %2122 = vmatprep.mubr.f32.mxu1 %v15693_v1 }
 0x2e7   :  { %v8767_v51 = vld [vmem:[%s15649_s10 + $0x918] sm:$0xff] }
 0x2e8   :  { %v1748_v37 = vpop.f32.mrf.mxu0  ;;  %3131 = vmatmul.mubr.f32.gmra.mxu0 %v8760_v55 }
 0x2e9   :  { %8610 = vmatmul.mubr.msk.f32.gmra.mxu1 %vm760_vm0, %v1748_v37  ;;  %3135 = vmatprep.mubr.f32.mxu0 %v8763_v49  ;;  %v8818_v49 = vld [vmem:[%s15650_s23 + $0x3b0] sm:$0xff] }
 0x2ea   :  { %v1750_v23 = vpop.f32.mrf.mxu0  ;;  %2128 = vmatprep.mubr.f32.mxu1 %v15693_v1 }
 0x2eb   :  { %v8766_v23 = vld [vmem:[%s15649_s10 + $0x910] sm:$0xff] }
 0x2ec   :  { %v1753_v2 = vpop.f32.mrf.mxu0  ;;  %3136 = vmatmul.mubr.f32.gmra.mxu0 %v8762_v0  ;;  %v8817_v0 = vld [vmem:[%s15650_s23 + $0x3a8] sm:$0xff] }
 0x2ed   :  { %8611 = vmatmul.mubr.msk.f32.gmra.mxu1 %vm760_vm0, %v1753_v2  ;;  %3140 = vmatprep.mubr.f32.mxu0 %v8765_v26  ;;  %v8816_v26 = vld [vmem:[%s15650_s23 + $0x3a0] sm:$0xff] }
 0x2ee   :  { %v1755_v55 = vpop.f32.mrf.mxu0  ;;  %2674 = vmatprep.mubr.f32.mxu1 %v15693_v1 }
 0x2ef   :  { %v8815_v55 = vld [vmem:[%s15650_s23 + $0x398] sm:$0xff] }
 0x2f0   :  { %v2330_v37 = vpop.f32.mrf.mxu0  ;;  %3141 = vmatmul.mubr.f32.gmra.mxu0 %v8764_v36  ;;  %v8769_v36 = vld [vmem:[%s15649_s10 + $0x928] sm:$0xff] }
 0x2f1   :  { %8700 = vmatmul.mubr.msk.f32.vlgmr.msra.gmra.mxu1 %vm760_vm0, %v2330_v37  ;;  %3145 = vmatprep.mubr.f32.mxu0 %v8767_v51  ;;  %v8814_v37 = vld [vmem:[%s15650_s23 + $0x390] sm:$0xff] }
 0x2f2   :  { %v2332_v2 = vpop.f32.mrf.mxu0  ;;  %2680 = vmatprep.mubr.f32.mxu1 %v15693_v1  ;;  %3351 = vmatpush1.msra.mxu1 %v8818_v49  ;;  %v8813_v49 = vld [vmem:[%s15650_s23 + $0x388] sm:$0xff] }
 0x2f3   :  { %3352 = vmatprep.subr.mxu1 %v8817_v0  ;;  %v8768_v2 = vld [vmem:[%s15649_s10 + $0x920] sm:$0xff] }
 0x2f4   :  { %v2335_v51 = vpop.f32.mrf.mxu0  ;;  %3146 = vmatmul.mubr.f32.gmra.mxu0 %v8766_v23  ;;  %3353 = vmatpush1.msra.mxu1 %v8816_v26  ;;  %v8771_v23 = vld [vmem:[%s15649_s10 + $0x938] sm:$0xff]  ;;  %v8812_v26 = vld [vmem:[%s15650_s23 + $0x380] sm:$0xff] }
 0x2f5   :  { %8701 = vmatmul.mubr.msk.f32.gmra.mxu1 %vm760_vm0, %v2335_v51  ;;  %3150 = vmatprep.mubr.f32.mxu0 %v8769_v36  ;;  %v8811_v51 = vld [vmem:[%s15650_s23 + $0x378] sm:$0xff] }
 0x2f6   :  { %v2337_v0 = vpop.f32.mrf.mxu0  ;;  %2686 = vmatprep.mubr.f32.mxu1 %v15693_v1  ;;  %3354 = vmatprep.subr.mxu1 %v8815_v55  ;;  %v8810_v55 = vld [vmem:[%s15650_s23 + $0x370] sm:$0xff] }
 0x2f7   :  { %3355 = vmatpush1.msra.mxu1 %v8814_v37  ;;  %v8770_v0 = vld [vmem:[%s15649_s10 + $0x930] sm:$0xff] }
 0x2f8   :  { %v2340_v36 = vpop.f32.mrf.mxu0  ;;  %3151 = vmatmul.mubr.f32.gmra.mxu0 %v8768_v2  ;;  %3356 = vmatprep.subr.mxu1 %v8813_v49  ;;  %v8773_v2 = vld [vmem:[%s15649_s10 + $0x948] sm:$0xff] }
 0x2f9   :  { %8702 = vmatmul.mubr.msk.f32.gmra.mxu1 %vm760_vm0, %v2340_v36  ;;  %3155 = vmatprep.mubr.f32.mxu0 %v8771_v23  ;;  %v8809_v49 = vld [vmem:[%s15650_s23 + $0x368] sm:$0xff]  ;;  %v8808_v36 = vld [vmem:[%s15650_s23 + $0x360] sm:$0xff] }
 0x2fa   :  { %v2342_v37 = vpop.f32.mrf.mxu0  ;;  %2692 = vmatprep.mubr.f32.mxu1 %v15693_v1  ;;  %3357 = vmatpush1.msra.mxu1 %v8812_v26  ;;  %v8807_v26 = vld [vmem:[%s15650_s23 + $0x358] sm:$0xff] }
 0x2fb   :  { %3358 = vmatprep.subr.mxu1 %v8811_v51  ;;  %v8772_v37 = vld [vmem:[%s15649_s10 + $0x940] sm:$0xff] }
 0x2fc   :  { %v2345_v23 = vpop.f32.mrf.mxu0  ;;  %3156 = vmatmul.mubr.f32.gmra.mxu0 %v8770_v0  ;;  %3359 = vmatpush1.msra.mxu1 %v8810_v55  ;;  %v8775_v0 = vld [vmem:[%s15649_s10 + $0x958] sm:$0xff]  ;;  %v8806_v55 = vld [vmem:[%s15650_s23 + $0x350] sm:$0xff] }
 0x2fd   :  { %8703 = vmatmul.mubr.msk.f32.gmra.mxu1 %vm760_vm0, %v2345_v23  ;;  %3160 = vmatprep.mubr.f32.mxu0 %v8773_v2  ;;  %v8805_v23 = vld [vmem:[%s15650_s23 + $0x348] sm:$0xff] }
 0x2fe   :  { %v2347_v51 = vpop.f32.mrf.mxu0  ;;  %2698 = vmatprep.mubr.f32.mxu1 %v15693_v1  ;;  %3360 = vmatprep.subr.mxu1 %v8809_v49  ;;  %v8804_v49 = vld [vmem:[%s15650_s23 + $0x340] sm:$0xff] }
 0x2ff   :  { %3361 = vmatpush1.msra.mxu1 %v8808_v36  ;;  %v8774_v51 = vld [vmem:[%s15649_s10 + $0x950] sm:$0xff] }
 0x300   :  { %v2350_v2 = vpop.f32.mrf.mxu0  ;;  %3161 = vmatmul.mubr.f32.gmra.mxu0 %v8772_v37  ;;  %3362 = vmatprep.subr.mxu1 %v8807_v26  ;;  %v8777_v37 = vld [vmem:[%s15649_s10 + $0x968] sm:$0xff]  ;;  %v8803_v26 = vld [vmem:[%s15650_s23 + $0x338] sm:$0xff] }
 0x301   :  { %8704 = vmatmul.mubr.msk.f32.gmra.mxu1 %vm760_vm0, %v2350_v2  ;;  %3165 = vmatprep.mubr.f32.mxu0 %v8775_v0  ;;  %v8802_v2 = vld [vmem:[%s15650_s23 + $0x330] sm:$0xff] }
 0x302   :  { %v2352_v36 = vpop.f32.mrf.mxu0  ;;  %2704 = vmatprep.mubr.f32.mxu1 %v15693_v1  ;;  %3363 = vmatpush1.msra.mxu1 %v8806_v55  ;;  %v8801_v55 = vld [vmem:[%s15650_s23 + $0x328] sm:$0xff] }
 0x303   :  { %3364 = vmatprep.subr.mxu1 %v8805_v23  ;;  %v8776_v36 = vld [vmem:[%s15649_s10 + $0x960] sm:$0xff] }
 0x304   :  { %v2355_v0 = vpop.f32.mrf.mxu0  ;;  %3166 = vmatmul.mubr.f32.gmra.mxu0 %v8774_v51  ;;  %3365 = vmatpush1.msra.mxu1 %v8804_v49  ;;  %v8779_v51 = vld [vmem:[%s15649_s10 + $0x978] sm:$0xff]  ;;  %v8800_v49 = vld [vmem:[%s15650_s23 + $0x320] sm:$0xff] }
 0x305   :  { %8705 = vmatmul.mubr.msk.f32.gmra.mxu1 %vm760_vm0, %v2355_v0  ;;  %3170 = vmatprep.mubr.f32.mxu0 %v8777_v37  ;;  %v8799_v0 = vld [vmem:[%s15650_s23 + $0x318] sm:$0xff] }
 0x306   :  { %v2357_v23 = vpop.f32.mrf.mxu0  ;;  %2710 = vmatprep.mubr.f32.mxu1 %v15693_v1  ;;  %3366 = vmatprep.subr.mxu1 %v8803_v26  ;;  %v8798_v26 = vld [vmem:[%s15650_s23 + $0x310] sm:$0xff] }
 0x307   :  { %3367 = vmatpush1.msra.mxu1 %v8802_v2  ;;  %v8778_v23 = vld [vmem:[%s15649_s10 + $0x970] sm:$0xff] }
 0x308   :  { %v2360_v37 = vpop.f32.mrf.mxu0  ;;  %3171 = vmatmul.mubr.f32.gmra.mxu0 %v8776_v36  ;;  %3368 = vmatprep.subr.mxu1 %v8801_v55  ;;  %v8781_v36 = vld [vmem:[%s15649_s10 + $0x988] sm:$0xff] }
 0x309   :  { %8706 = vmatmul.mubr.msk.f32.gmra.mxu1 %vm760_vm0, %v2360_v37  ;;  %3175 = vmatprep.mubr.f32.mxu0 %v8779_v51  ;;  %v8797_v55 = vld [vmem:[%s15650_s23 + $0x308] sm:$0xff]  ;;  %v8796_v37 = vld [vmem:[%s15650_s23 + $0x300] sm:$0xff] }
 0x30a   :  { %v2362_v2 = vpop.f32.mrf.mxu0  ;;  %2716 = vmatprep.mubr.f32.mxu1 %v15693_v1  ;;  %3369 = vmatpush1.msra.mxu1 %v8800_v49 }
 0x30b   :  { %3370 = vmatprep.subr.mxu1 %v8799_v0  ;;  %v8780_v2 = vld [vmem:[%s15649_s10 + $0x980] sm:$0xff]  ;;  %v8783_v0 = vld [vmem:[%s15649_s10 + $0x998] sm:$0xff] }
 0x30c   :  { %v2365_v51 = vpop.f32.mrf.mxu0  ;;  %3176 = vmatmul.mubr.f32.gmra.mxu0 %v8778_v23  ;;  %3371 = vmatpush1.msra.mxu1 %v8798_v26  ;;  %v8782_v26 = vld [vmem:[%s15649_s10 + $0x990] sm:$0xff] }
 0x30d   :  { %8707 = vmatmul.mubr.msk.f32.gmra.mxu1 %vm760_vm0, %v2365_v51  ;;  %3180 = vmatprep.mubr.f32.mxu0 %v8781_v36  ;;  %v8785_v51 = vld [vmem:[%s15649_s10 + $0x9a8] sm:$0xff] }
 0x30e   :  { %v2367_v49 = vpop.f32.mrf.mxu0  ;;  %2722 = vmatprep.mubr.f32.mxu1 %v15693_v1  ;;  %3372 = vmatprep.subr.mxu1 %v8797_v55  ;;  %v8784_v55 = vld [vmem:[%s15649_s10 + $0x9a0] sm:$0xff] }
 0x30f   :  { %3373 = vmatpush1.msra.mxu1 %v8796_v37 }
 0x310   :  { %v2370_v23 = vpop.f32.mrf.mxu0  ;;  %3181 = vmatmul.mubr.f32.gmra.mxu0 %v8780_v2  ;;  %v8787_v2 = vld [vmem:[%s15649_s10 + $0x9b8] sm:$0xff] }
 0x311   :  { %8708 = vmatmul.mubr.msk.f32.gmra.mxu1 %vm760_vm0, %v2370_v23  ;;  %3185 = vmatprep.mubr.f32.mxu0 %v8783_v0  ;;  %v8786_v23 = vld [vmem:[%s15649_s10 + $0x9b0] sm:$0xff] }
 0x312   :  { %v2372_v36 = vpop.f32.mrf.mxu0  ;;  %2728 = vmatprep.mubr.f32.mxu1 %v15693_v1 }
 0x313   :  { %v8789_v36 = vld [vmem:[%s15649_s10 + $0x9c8] sm:$0xff] }
 0x314   :  { %v2375_v49 = vpop.f32.mrf.mxu0  ;;  %3186 = vmatmul.mubr.f32.gmra.mxu0 %v8782_v26 }
 0x315   :  { %8709 = vmatmul.mubr.msk.f32.gmra.mxu1 %vm760_vm0, %v2375_v49  ;;  %3190 = vmatprep.mubr.f32.mxu0 %v8785_v51  ;;  %v8788_v49 = vld [vmem:[%s15649_s10 + $0x9c0] sm:$0xff] }
 0x316   :  { %v2377_v37 = vpop.f32.mrf.mxu0  ;;  %2734 = vmatprep.mubr.f32.mxu1 %v15693_v1 }
 0x317   :  { %v8791_v37 = vld [vmem:[%s15649_s10 + $0x9d8] sm:$0xff] }
 0x318   :  { %v2380_v0 = vpop.f32.mrf.mxu0  ;;  %3191 = vmatmul.mubr.f32.gmra.mxu0 %v8784_v55 }
 0x319   :  { %8710 = vmatmul.mubr.msk.f32.gmra.mxu1 %vm760_vm0, %v2380_v0  ;;  %3195 = vmatprep.mubr.f32.mxu0 %v8787_v2  ;;  %v8790_v0 = vld [vmem:[%s15649_s10 + $0x9d0] sm:$0xff] }
 0x31a   :  { %v2382_v26 = vpop.f32.mrf.mxu0  ;;  %2740 = vmatprep.mubr.f32.mxu1 %v15693_v1 }
 0x31b   :  { %v8793_v26 = vld [vmem:[%s15649_s10 + $0x9e8] sm:$0xff] }
 0x31c   :  { %v2385_v51 = vpop.f32.mrf.mxu0  ;;  %3196 = vmatmul.mubr.f32.gmra.mxu0 %v8786_v23 }
 0x31d   :  { %8711 = vmatmul.mubr.msk.f32.gmra.mxu1 %vm760_vm0, %v2385_v51  ;;  %3200 = vmatprep.mubr.f32.mxu0 %v8789_v36  ;;  %v8792_v51 = vld [vmem:[%s15649_s10 + $0x9e0] sm:$0xff] }
 0x31e   :  { %v2387_v55 = vpop.f32.mrf.mxu0  ;;  %2746 = vmatprep.mubr.f32.mxu1 %v15693_v1 }
 0x31f   :  { %v8795_v55 = vld [vmem:[%s15649_s10 + $0x9f8] sm:$0xff] }
 0x320   :  { %v2390_v2 = vpop.f32.mrf.mxu0  ;;  %3201 = vmatmul.mubr.f32.gmra.mxu0 %v8788_v49 }
 0x321   :  { %8712 = vmatmul.mubr.msk.f32.gmra.mxu1 %vm760_vm0, %v2390_v2  ;;  %3205 = vmatprep.mubr.f32.mxu0 %v8791_v37  ;;  %v8794_v2 = vld [vmem:[%s15649_s10 + $0x9f0] sm:$0xff] }
 0x322   :  { %v2392_v23 = vpop.f32.mrf.mxu0  ;;  %2752 = vmatprep.mubr.f32.mxu1 %v15693_v1 }
 0x324   :  { %v2395_v36 = vpop.f32.mrf.mxu0  ;;  %3206 = vmatmul.mubr.f32.gmra.mxu0 %v8790_v0 }
 0x325   :  { %8713 = vmatmul.mubr.msk.f32.gmra.mxu1 %vm760_vm0, %v2395_v36  ;;  %3210 = vmatprep.mubr.f32.mxu0 %v8793_v26  ;;  %v12595_v36 = vpop.f32.mrf.mxu1 }
 0x326   :  { %v2397_v49 = vpop.f32.mrf.mxu0  ;;  %2758 = vmatprep.mubr.f32.mxu1 %v15693_v1  ;;  %15694 = vst [vmem:[#allocation51_spill] sm:$0xff] %v12595_v36  ;;  %v1285_v36 = vadd.f32 %v11586_v45, %v11584_v43 }
 0x328   :  { %v2400_v37 = vpop.f32.mrf.mxu0  ;;  %3211 = vmatmul.mubr.f32.gmra.mxu0 %v8792_v51 }
 0x329   :  { %8714 = vmatmul.mubr.msk.f32.gmra.mxu1 %vm760_vm0, %v2400_v37  ;;  %3215 = vmatprep.mubr.f32.mxu0 %v8795_v55  ;;  %v1279_v55 = vadd.f32 %v11574_v32, %v11572_v31 }
 0x32a   :  { %v2402_v0 = vpop.f32.mrf.mxu0  ;;  %2764 = vmatprep.mubr.f32.mxu1 %v15693_v1 }
 0x32c   :  { %v2405_v23 = vpop.f32.mrf.mxu0  ;;  %3216 = vmatmul.mubr.f32.gmra.mxu0 %v8794_v2 }
 0x32d   :  { %8715 = vmatmul.mubr.msk.f32.gmra.mxu1 %vm760_vm0, %v2405_v23 }
 0x32e   :  { %v2407_v26 = vpop.f32.mrf.mxu0  ;;  %2770 = vmatprep.mubr.f32.mxu1 %v15693_v1 }
 0x330   :  { %v2410_v51 = vpop.f32.mrf.mxu0 }
 0x331   :  { %v1944_v49 = vpop.f32.mrf.mxu1  ;;  %8716 = vmatmul.mubr.msk.f32.gmra.mxu1 %vm760_vm0, %v2410_v51 }
 0x332   :  { %v12601_v37 = vadd.f32 %v1944_v49, %v11564_v25  ;;  %v2412_v0 = vpop.f32.mrf.mxu0  ;;  %2776 = vmatprep.mubr.f32.mxu1 %v15693_v1 }
 0x333   :  { %v1946_v2 = vpop.f32.mrf.mxu1 }
 0x334   :  { %v12604_v23 = vadd.f32 %v1946_v2, %v1279_v55  ;;  %v2415_v26 = vpop.f32.mrf.mxu0  ;;  %v1291_v55 = vadd.f32 %v11598_v29, %v11596_v56 }
 0x335   :  { %v1950_v34 = vpop.f32.mrf.mxu1  ;;  %8717 = vmatmul.mubr.msk.f32.gmra.mxu1 %vm760_vm0, %v2415_v26 }
 0x336   :  { %v12610_v51 = vadd.f32 %v1950_v34, %v11579_v41  ;;  %v2417_v31 = vpop.f32.mrf.mxu0  ;;  %2782 = vmatprep.mubr.f32.mxu1 %v15693_v1 }
 0x337   :  { %v1952_v25 = vpop.f32.mrf.mxu1 }
 0x338   :  { %v12613_v32 = vadd.f32 %v1952_v25, %v1285_v36  ;;  %v2420_v49 = vpop.f32.mrf.mxu0  ;;  %v1297_v36 = vadd.f32 %v11610_v60, %v11608_v54 }
 0x339   :  { %v1956_v0 = vpop.f32.mrf.mxu1  ;;  %8718 = vmatmul.mubr.msk.f32.gmra.mxu1 %vm760_vm0, %v2420_v49 }
 0x33a   :  { %v12619_v2 = vadd.f32 %v1956_v0, %v11591_v53  ;;  %v2422_v43 = vpop.f32.mrf.mxu0  ;;  %2788 = vmatprep.mubr.f32.mxu1 %v15693_v1  ;;  %v1303_v0 = vadd.f32 %v11622_v21, %v11620_v16 }
 0x33b   :  { %v1958_v41 = vpop.f32.mrf.mxu1 }
 0x33c   :  { %v12622_v45 = vadd.f32 %v1958_v41, %v1291_v55  ;;  %v2425_v34 = vpop.f32.mrf.mxu0 }
 0x33d   :  { %v1962_v26 = vpop.f32.mrf.mxu1  ;;  %8719 = vmatmul.mubr.msk.f32.gmra.mxu1 %vm760_vm0, %v2425_v34  ;;  %v1309_v34 = vadd.f32 %v11634_v4, %v11632_v46 }
 0x33e   :  { %v12628_v31 = vadd.f32 %v1962_v26, %v11603_v57  ;;  %v2427_v56 = vpop.f32.mrf.mxu0  ;;  %2794 = vmatprep.mubr.f32.mxu1 %v15693_v1 }
 0x33f   :  { %v1964_v53 = vpop.f32.mrf.mxu1 }
 0x340   :  { %v12631_v29 = vadd.f32 %v1964_v53, %v1297_v36  ;;  %v2430_v25 = vpop.f32.mrf.mxu0  ;;  %v1315_v53 = vadd.f32 %v11646_v20, %v11644_v14 }
 0x341   :  { %v1968_v49 = vpop.f32.mrf.mxu1  ;;  %8720 = vmatmul.mubr.msk.f32.gmra.mxu1 %vm760_vm0, %v2430_v25 }
 0x342   :  { %v12637_v55 = vadd.f32 %v1968_v49, %v11615_v11  ;;  %v2432_v54 = vpop.f32.mrf.mxu0  ;;  %2800 = vmatprep.mubr.f32.mxu1 %v15693_v1 }
 0x343   :  { %v1970_v57 = vpop.f32.mrf.mxu1  ;;  %v1321_v54 = vadd.f32 %v11658_v3, %v11656_v9 }
 0x344   :  { %v12640_v60 = vadd.f32 %v1970_v57, %v1303_v0  ;;  %v2435_v43 = vpop.f32.mrf.mxu0 }
 0x345   :  { %v1974_v41 = vpop.f32.mrf.mxu1  ;;  %8721 = vmatmul.mubr.msk.f32.gmra.mxu1 %vm760_vm0, %v2435_v43 }
 0x346   :  { %v12646_v26 = vadd.f32 %v1974_v41, %v11627_v63  ;;  %v2437_v16 = vpop.f32.mrf.mxu0  ;;  %2806 = vmatprep.mubr.f32.mxu1 %v15693_v1 }
 0x347   :  { %v1976_v11 = vpop.f32.mrf.mxu1 }
 0x348   :  { %v12649_v21 = vadd.f32 %v1976_v11, %v1309_v34  ;;  %v2440_v36 = vpop.f32.mrf.mxu0  ;;  %v1327_v34 = vadd.f32 %v11673_v22, %v11671_v19 }
 0x349   :  { %v1980_v56 = vpop.f32.mrf.mxu1  ;;  %8722 = vmatmul.mubr.msk.f32.gmra.mxu1 %vm760_vm0, %v2440_v36 }
 0x34a   :  { %v12655_v25 = vadd.f32 %v1980_v56, %v11639_v8  ;;  %v2442_v46 = vpop.f32.mrf.mxu0  ;;  %2812 = vmatprep.mubr.f32.mxu1 %v15693_v1  ;;  %v1333_v56 = vadd.f32 %v11685_v42, %v11683_v38 }
 0x34b   :  { %v1982_v63 = vpop.f32.mrf.mxu1 }
 0x34c   :  { %v12658_v4 = vadd.f32 %v1982_v63, %v1315_v53  ;;  %v2445_v49 = vpop.f32.mrf.mxu0 }
 0x34d   :  { %v1986_v0 = vpop.f32.mrf.mxu1  ;;  %8723 = vmatmul.mubr.msk.f32.gmra.mxu1 %vm760_vm0, %v2445_v49  ;;  %v1339_v49 = vadd.f32 %v11697_v44, %v11695_v39 }
 0x34e   :  { %v12664_v57 = vadd.f32 %v1986_v0, %v11651_v47  ;;  %v2447_v14 = vpop.f32.mrf.mxu0  ;;  %2818 = vmatprep.mubr.f32.mxu1 %v15693_v1 }
 0x34f   :  { %v1988_v8 = vpop.f32.mrf.mxu1 }
 0x350   :  { %v12667_v20 = vadd.f32 %v1988_v8, %v1321_v54  ;;  %v2450_v43 = vpop.f32.mrf.mxu0  ;;  %v1345_v8 = vadd.f32 %v11709_v27, %v11707_v62 }
 0x351   :  { %v1992_v41 = vpop.f32.mrf.mxu1  ;;  %8724 = vmatmul.mubr.msk.f32.gmra.mxu1 %vm760_vm0, %v2450_v43 }
 0x352   :  { %v12673_v16 = vadd.f32 %v1992_v41, %v11663_v15  ;;  %v2452_v9 = vpop.f32.mrf.mxu0  ;;  %2824 = vmatprep.mubr.f32.mxu1 %v15693_v1 }
 0x353   :  { %v1994_v47 = vpop.f32.mrf.mxu1  ;;  %v1351_v9 = vadd.f32 %v11721_v7, %v11719_v5 }
 0x354   :  { %v12676_v3 = vadd.f32 %v1994_v47, %v1327_v34  ;;  %v2455_v11 = vpop.f32.mrf.mxu0 }
 0x355   :  { %v1998_v36 = vpop.f32.mrf.mxu1  ;;  %8725 = vmatmul.mubr.msk.f32.gmra.mxu1 %vm760_vm0, %v2455_v11 }
 0x356   :  { %v12682_v53 = vadd.f32 %v1998_v36, %v11678_v35  ;;  %v2457_v19 = vpop.f32.mrf.mxu0  ;;  %2830 = vmatprep.mubr.f32.mxu1 %v15693_v1 }
 0x357   :  { %v2000_v15 = vpop.f32.mrf.mxu1 }
 0x358   :  { %v12685_v22 = vadd.f32 %v2000_v15, %v1333_v56  ;;  %v2460_v46 = vpop.f32.mrf.mxu0  ;;  %v1357_v56 = vadd.f32 %v11733_v17, %v11731_v13 }
 0x359   :  { %v2004_v63 = vpop.f32.mrf.mxu1  ;;  %8726 = vmatmul.mubr.msk.f32.gmra.mxu1 %vm760_vm0, %v2460_v46 }
 0x35a   :  { %v12691_v0 = vadd.f32 %v2004_v63, %v11690_v24  ;;  %v2462_v38 = vpop.f32.mrf.mxu0  ;;  %2836 = vmatprep.mubr.f32.mxu1 %v15693_v1  ;;  %v1363_v63 = vadd.f32 %v11745_v50, %v11743_v48 }
 0x35b   :  { %v2006_v35 = vpop.f32.mrf.mxu1 }
 0x35c   :  { %v12694_v42 = vadd.f32 %v2006_v35, %v1339_v49  ;;  %v2465_v54 = vpop.f32.mrf.mxu0 }
 0x35d   :  { %v2010_v14 = vpop.f32.mrf.mxu1  ;;  %8727 = vmatmul.mubr.msk.f32.gmra.mxu1 %vm760_vm0, %v2465_v54  ;;  %v1369_v54 = vadd.f32 %v11757_v33, %v11755_v61 }
 0x35e   :  { %v12700_v43 = vadd.f32 %v2010_v14, %v11702_v6  ;;  %v2467_v39 = vpop.f32.mrf.mxu0  ;;  %2842 = vmatprep.mubr.f32.mxu1 %v15693_v1 }
 0x35f   :  { %v2012_v24 = vpop.f32.mrf.mxu1 }
 0x360   :  { %v12703_v44 = vadd.f32 %v2012_v24, %v1345_v8  ;;  %v2470_v41 = vpop.f32.mrf.mxu0  ;;  %v1375_v24 = vadd.f32 %v11772_v18, %v11770_v10 }
 0x361   :  { %v2016_v34 = vpop.f32.mrf.mxu1  ;;  %8728 = vmatmul.mubr.msk.f32.gmra.mxu1 %vm760_vm0, %v2470_v41 }
 0x362   :  { %v12709_v47 = vadd.f32 %v2016_v34, %v11714_v58  ;;  %v2472_v62 = vpop.f32.mrf.mxu0  ;;  %2848 = vmatprep.mubr.f32.mxu1 %v15693_v1 }
 0x363   :  { %v2018_v6 = vpop.f32.mrf.mxu1  ;;  %v1381_v62 = vadd.f32 %v11792_v52, %v11790_v40 }
 0x364   :  { %v12712_v27 = vadd.f32 %v2018_v6, %v1351_v9  ;;  %v2475_v11 = vpop.f32.mrf.mxu0  ;;  %v15696_v6 = vld [vmem:[#allocation9_spill] sm:$0xff] }
 0x365   :  { %v2022_v36 = vpop.f32.mrf.mxu1  ;;  %8729 = vmatmul.mubr.msk.f32.gmra.mxu1 %vm760_vm0, %v2475_v11 }
 0x366   :  { %v12718_v19 = vadd.f32 %v2022_v36, %v11726_v12  ;;  %v2477_v5 = vpop.f32.mrf.mxu0  ;;  %2854 = vmatprep.mubr.f32.mxu1 %v15693_v1 }
 0x367   :  { %v2024_v58 = vpop.f32.mrf.mxu1  ;;  %v15698_v5 = vld [vmem:[#allocation11_spill] sm:$0xff] }
 0x368   :  { %v12721_v7 = vadd.f32 %v2024_v58, %v1357_v56  ;;  %v2480_v15 = vpop.f32.mrf.mxu0  ;;  %v15699_v58 = vld [vmem:[#allocation12_spill] sm:$0xff] }
 0x369   :  { %v2028_v46 = vpop.f32.mrf.mxu1  ;;  %8730 = vmatmul.mubr.msk.f32.gmra.mxu1 %vm760_vm0, %v2480_v15  ;;  %v1387_v15 = vadd.f32 %v15699_v58, %v15698_v5 }
 0x36a   :  { %v12727_v49 = vadd.f32 %v2028_v46, %v11738_v30  ;;  %v2482_v13 = vpop.f32.mrf.mxu0  ;;  %2860 = vmatprep.mubr.f32.mxu1 %v15693_v1  ;;  %v15700_v46 = vld [vmem:[#allocation10_spill] sm:$0xff] }
 0x36b   :  { %v2030_v12 = vpop.f32.mrf.mxu1 }
 0x36c   :  { %v12730_v17 = vadd.f32 %v2030_v12, %v1363_v63  ;;  %v2485_v38 = vpop.f32.mrf.mxu0 }
 0x36d   :  { %v2034_v35 = vpop.f32.mrf.mxu1  ;;  %8731 = vmatmul.mubr.msk.f32.gmra.mxu1 %vm760_vm0, %v2485_v38 }
 0x36e   :  { %v12736_v14 = vadd.f32 %v2034_v35, %v11750_v59  ;;  %v2487_v48 = vpop.f32.mrf.mxu0  ;;  %3406 = vmatprep.mubr.f32.mxu1 %v15693_v1  ;;  %v15702_v35 = vld [vmem:[#allocation14_spill] sm:$0xff] }
 0x36f   :  { %v2036_v30 = vpop.f32.mrf.mxu1 }
 0x370   :  { %v12739_v50 = vadd.f32 %v2036_v30, %v1369_v54  ;;  %v3062_v8 = vpop.f32.mrf.mxu0  ;;  %v15703_v54 = vld [vmem:[#allocation15_spill] sm:$0xff]  ;;  %v15704_v30 = vld [vmem:[#allocation13_spill] sm:$0xff] }
 0x371   :  { %v2040_v39 = vpop.f32.mrf.mxu1  ;;  %8820 = vmatmul.mubr.msk.f32.vlgmr.msra.gmra.mxu1 %vm760_vm0, %v3062_v8  ;;  %v1393_v48 = vadd.f32 %v15703_v54, %v15702_v35 }
 0x372   :  { %v12745_v41 = vadd.f32 %v2040_v39, %v11762_v28  ;;  %v3064_v61 = vpop.f32.mrf.mxu0  ;;  %3412 = vmatprep.mubr.f32.mxu1 %v15693_v1 }
 0x373   :  { %v2042_v59 = vpop.f32.mrf.mxu1 }
 0x374   :  { %v12748_v33 = vadd.f32 %v2042_v59, %v1375_v24  ;;  %v3067_v34 = vpop.f32.mrf.mxu0 }
 0x375   :  { %v2046_v9 = vpop.f32.mrf.mxu1  ;;  %8821 = vmatmul.mubr.msk.f32.gmra.mxu1 %vm760_vm0, %v3067_v34 }
 0x376   :  { %15695 = vst [vmem:[#allocation52_spill] sm:$0xff] %v12748_v33  ;;  %v12754_v11 = vadd.f32 %v2046_v9, %v15696_v6  ;;  %v3069_v10 = vpop.f32.mrf.mxu0  ;;  %3418 = vmatprep.mubr.f32.mxu1 %v15693_v1  ;;  %v15706_v9 = vld [vmem:[#allocation17_spill] sm:$0xff] }
 0x377   :  { %v2048_v28 = vpop.f32.mrf.mxu1  ;;  %v15708_v10 = vld [vmem:[#allocation16_spill] sm:$0xff] }
 0x378   :  { %v12757_v18 = vadd.f32 %v2048_v28, %v1381_v62  ;;  %v3072_v36 = vpop.f32.mrf.mxu0  ;;  %v15707_v62 = vld [vmem:[#allocation18_spill] sm:$0xff] }
 0x379   :  { %v2052_v56 = vpop.f32.mrf.mxu1  ;;  %8822 = vmatmul.mubr.msk.f32.gmra.mxu1 %vm760_vm0, %v3072_v36  ;;  %v1399_v6 = vadd.f32 %v15707_v62, %v15706_v9  ;;  %v15716_v9 = vld [vmem:[#allocation22_spill] sm:$0xff] }
 0x37a   :  { %15697 = vst [vmem:[#allocation9_spill] sm:$0xff] %v12757_v18  ;;  %v12763_v63 = vadd.f32 %v2052_v56, %v15700_v46  ;;  %v3074_v40 = vpop.f32.mrf.mxu0  ;;  %3424 = vmatprep.mubr.f32.mxu1 %v15693_v1  ;;  %v15710_v46 = vld [vmem:[#allocation20_spill] sm:$0xff] }
 0x37b   :  { %v2054_v52 = vpop.f32.mrf.mxu1  ;;  %v15711_v40 = vld [vmem:[#allocation21_spill] sm:$0xff] }
 0x37c   :  { %v12766_v13 = vadd.f32 %v2054_v52, %v1387_v15  ;;  %v3077_v12 = vpop.f32.mrf.mxu0  ;;  %v1405_v52 = vadd.f32 %v15711_v40, %v15710_v46  ;;  %v15719_v46 = vld [vmem:[#allocation27_spill] sm:$0xff] }
 0x37d   :  { %v2058_v38 = vpop.f32.mrf.mxu1  ;;  %8823 = vmatmul.mubr.msk.f32.gmra.mxu1 %vm760_vm0, %v3077_v12  ;;  %v15712_v12 = vld [vmem:[#allocation19_spill] sm:$0xff] }
 0x37e   :  { %15701 = vst [vmem:[#allocation11_spill] sm:$0xff] %v12766_v13  ;;  %v12772_v8 = vadd.f32 %v2058_v38, %v15704_v30  ;;  %v3079_v39 = vpop.f32.mrf.mxu0  ;;  %3430 = vmatprep.mubr.f32.mxu1 %v15693_v1 }
 0x37f   :  { %v2060_v24 = vpop.f32.mrf.mxu1 }
 0x380   :  { %v12775_v61 = vadd.f32 %v2060_v24, %v1393_v48  ;;  %v3082_v59 = vpop.f32.mrf.mxu0  ;;  %v15714_v24 = vld [vmem:[#allocation23_spill] sm:$0xff] }
 0x381   :  { %v2064_v34 = vpop.f32.mrf.mxu1  ;;  %8824 = vmatmul.mubr.msk.f32.gmra.mxu1 %vm760_vm0, %v3082_v59  ;;  %v15715_v59 = vld [vmem:[#allocation24_spill] sm:$0xff] }
 0x382   :  { %15705 = vst [vmem:[#allocation12_spill] sm:$0xff] %v12775_v61  ;;  %v12781_v28 = vadd.f32 %v2064_v34, %v15708_v10  ;;  %v3084_v36 = vpop.f32.mrf.mxu0  ;;  %3436 = vmatprep.mubr.f32.mxu1 %v15693_v1  ;;  %v1411_v34 = vadd.f32 %v15715_v59, %v15714_v24  ;;  %v15722_v59 = vld [vmem:[#allocation29_spill] sm:$0xff] }
 0x383   :  { %v2066_v56 = vpop.f32.mrf.mxu1 }
 0x384   :  { %v12784_v5 = vadd.f32 %v2066_v56, %v1399_v6  ;;  %v3087_v58 = vpop.f32.mrf.mxu0 }
 0x385   :  { %v2070_v15 = vpop.f32.mrf.mxu1  ;;  %8825 = vmatmul.mubr.msk.f32.gmra.mxu1 %vm760_vm0, %v3087_v58 }
 0x386   :  { %15709 = vst [vmem:[#allocation10_spill] sm:$0xff] %v12784_v5  ;;  %v12790_v38 = vadd.f32 %v2070_v15, %v15712_v12  ;;  %v3089_v35 = vpop.f32.mrf.mxu0  ;;  %3442 = vmatprep.mubr.f32.mxu1 %v15693_v1  ;;  %v15718_v15 = vld [vmem:[#allocation26_spill] sm:$0xff] }
 0x387   :  { %v2072_v54 = vpop.f32.mrf.mxu1  ;;  %v1417_v40 = vadd.f32 %v15719_v46, %v15718_v15 }
 0x388   :  { %v12793_v48 = vadd.f32 %v2072_v54, %v1405_v52  ;;  %v3092_v30 = vpop.f32.mrf.mxu0  ;;  %v15720_v52 = vld [vmem:[#allocation25_spill] sm:$0xff] }
 0x389   :  { %v2076_v39 = vpop.f32.mrf.mxu1  ;;  %8826 = vmatmul.mubr.msk.f32.gmra.mxu1 %vm760_vm0, %v3092_v30 }
 0x38a   :  { %15713 = vst [vmem:[#allocation14_spill] sm:$0xff] %v12793_v48  ;;  %v12799_v62 = vadd.f32 %v2076_v39, %v15716_v9  ;;  %v3094_v6 = vpop.f32.mrf.mxu0  ;;  %3448 = vmatprep.mubr.f32.mxu1 %v15693_v1 }
 0x38b   :  { %v2078_v10 = vpop.f32.mrf.mxu1  ;;  %v15724_v6 = vld [vmem:[#allocation28_spill] sm:$0xff] }
 0x38c   :  { %v12802_v36 = vadd.f32 %v2078_v10, %v1411_v34  ;;  %v3097_v56 = vpop.f32.mrf.mxu0  ;;  %v15723_v34 = vld [vmem:[#allocation30_spill] sm:$0xff] }
 0x38d   :  { %v2082_v58 = vpop.f32.mrf.mxu1  ;;  %8827 = vmatmul.mubr.msk.f32.gmra.mxu1 %vm760_vm0, %v3097_v56  ;;  %v1423_v9 = vadd.f32 %v15723_v34, %v15722_v59 }
 0x38e   :  { %15717 = vst [vmem:[#allocation15_spill] sm:$0xff] %v12802_v36  ;;  %v12808_v12 = vadd.f32 %v2082_v58, %v15720_v52  ;;  %v3099_v35 = vpop.f32.mrf.mxu0  ;;  %3454 = vmatprep.mubr.f32.mxu1 %v15693_v1 }
 0x38f   :  { %v2084_v54 = vpop.f32.mrf.mxu1  ;;  %v15727_v35 = vld [vmem:[#allocation33_spill] sm:$0xff] }
 0x390   :  { %v12811_v30 = vadd.f32 %v2084_v54, %v1417_v40  ;;  %v3102_v39 = vpop.f32.mrf.mxu0  ;;  %v15726_v40 = vld [vmem:[#allocation32_spill] sm:$0xff] }
 0x391   :  { %v2088_v24 = vpop.f32.mrf.mxu1  ;;  %8828 = vmatmul.mubr.msk.f32.gmra.mxu1 %vm760_vm0, %v3102_v39  ;;  %v1429_v54 = vadd.f32 %v15727_v35, %v15726_v40  ;;  %v15728_v39 = vld [vmem:[#allocation31_spill] sm:$0xff] }
 0x392   :  { %15721 = vst [vmem:[#allocation13_spill] sm:$0xff] %v12811_v30  ;;  %v12817_v10 = vadd.f32 %v2088_v24, %v15724_v6  ;;  %v3104_v56 = vpop.f32.mrf.mxu0  ;;  %3460 = vmatprep.mubr.f32.mxu1 %v15693_v1 }
 0x393   :  { %v2090_v58 = vpop.f32.mrf.mxu1 }
 0x394   :  { %v12820_v15 = vadd.f32 %v2090_v58, %v1423_v9  ;;  %v3107_v46 = vpop.f32.mrf.mxu0  ;;  %v15730_v9 = vld [vmem:[#allocation35_spill] sm:$0xff]  ;;  %v15731_v58 = vld [vmem:[#allocation36_spill] sm:$0xff] }
 0x395   :  { %v2094_v52 = vpop.f32.mrf.mxu1  ;;  %8829 = vmatmul.mubr.msk.f32.gmra.mxu1 %vm760_vm0, %v3107_v46  ;;  %v1435_v18 = vadd.f32 %v15731_v58, %v15730_v9  ;;  %v15732_v46 = vld [vmem:[#allocation34_spill] sm:$0xff] }
 0x396   :  { %15725 = vst [vmem:[#allocation17_spill] sm:$0xff] %v12820_v15  ;;  %v12826_v33 = vadd.f32 %v2094_v52, %v15728_v39  ;;  %v3109_v59 = vpop.f32.mrf.mxu0  ;;  %3466 = vmatprep.mubr.f32.mxu1 %v15693_v1 }
 0x397   :  { %v2096_v24 = vpop.f32.mrf.mxu1 }
 0x398   :  { %v12829_v34 = vadd.f32 %v2096_v24, %v1429_v54  ;;  %v3112_v6 = vpop.f32.mrf.mxu0  ;;  %v15734_v54 = vld [vmem:[#allocation38_spill] sm:$0xff]  ;;  %v15735_v24 = vld [vmem:[#allocation39_spill] sm:$0xff] }
 0x399   :  { %v2100_v56 = vpop.f32.mrf.mxu1  ;;  %8830 = vmatmul.mubr.msk.f32.gmra.mxu1 %vm760_vm0, %v3112_v6  ;;  %v1441_v61 = vadd.f32 %v15735_v24, %v15734_v54  ;;  %v15736_v6 = vld [vmem:[#allocation37_spill] sm:$0xff] }
 0x39a   :  { %15729 = vst [vmem:[#allocation18_spill] sm:$0xff] %v12829_v34  ;;  %v12835_v13 = vadd.f32 %v2100_v56, %v15732_v46  ;;  %v3114_v40 = vpop.f32.mrf.mxu0  ;;  %3472 = vmatprep.mubr.f32.mxu1 %v15693_v1 }
 0x39b   :  { %v2102_v52 = vpop.f32.mrf.mxu1 }
 0x39c   :  { %v12838_v35 = vadd.f32 %v2102_v52, %v1435_v18  ;;  %v3117_v39 = vpop.f32.mrf.mxu0  ;;  %v15738_v18 = vld [vmem:[#allocation41_spill] sm:$0xff]  ;;  %v15739_v52 = vld [vmem:[#allocation42_spill] sm:$0xff] }
 0x39d   :  { %v2106_v59 = vpop.f32.mrf.mxu1  ;;  %8831 = vmatmul.mubr.msk.f32.gmra.mxu1 %vm760_vm0, %v3117_v39  ;;  %v1447_v48 = vadd.f32 %v15739_v52, %v15738_v18  ;;  %v15740_v39 = vld [vmem:[#allocation40_spill] sm:$0xff] }
 0x39e   :  { %15733 = vst [vmem:[#allocation16_spill] sm:$0xff] %v12838_v35  ;;  %v12844_v5 = vadd.f32 %v2106_v59, %v15736_v6  ;;  %v3119_v9 = vpop.f32.mrf.mxu0  ;;  %3478 = vmatprep.mubr.f32.mxu1 %v15693_v1 }
 0x39f   :  { %v2108_v56 = vpop.f32.mrf.mxu1 }
 0x3a0   :  { %v12847_v58 = vadd.f32 %v2108_v56, %v1441_v61  ;;  %v3122_v46 = vpop.f32.mrf.mxu0  ;;  %v15742_v61 = vld [vmem:[#allocation44_spill] sm:$0xff]  ;;  %v15743_v56 = vld [vmem:[#allocation45_spill] sm:$0xff] }
 0x3a1   :  { %v2112_v40 = vpop.f32.mrf.mxu1  ;;  %8832 = vmatmul.mubr.msk.f32.gmra.mxu1 %vm760_vm0, %v3122_v46  ;;  %v1453_v30 = vadd.f32 %v15743_v56, %v15742_v61  ;;  %v15744_v46 = vld [vmem:[#allocation43_spill] sm:$0xff] }
 0x3a2   :  { %15737 = vst [vmem:[#allocation20_spill] sm:$0xff] %v12847_v58  ;;  %v12853_v36 = vadd.f32 %v2112_v40, %v15740_v39  ;;  %v3124_v54 = vpop.f32.mrf.mxu0  ;;  %3484 = vmatprep.mubr.f32.mxu1 %v15693_v1 }
 0x3a3   :  { %v2114_v59 = vpop.f32.mrf.mxu1 }
 0x3a4   :  { %v12856_v24 = vadd.f32 %v2114_v59, %v1447_v48  ;;  %v3127_v6 = vpop.f32.mrf.mxu0  ;;  %v15746_v48 = vld [vmem:[#allocation47_spill] sm:$0xff]  ;;  %v15747_v59 = vld [vmem:[#allocation48_spill] sm:$0xff] }
 0x3a5   :  { %v2118_v9 = vpop.f32.mrf.mxu1  ;;  %8833 = vmatmul.mubr.msk.f32.gmra.mxu1 %vm760_vm0, %v3127_v6  ;;  %v1459_v34 = vadd.f32 %v15747_v59, %v15746_v48  ;;  %v15748_v6 = vld [vmem:[#allocation46_spill] sm:$0xff] }
 0x3a6   :  { %15741 = vst [vmem:[#allocation21_spill] sm:$0xff] %v12856_v24  ;;  %v12862_v15 = vadd.f32 %v2118_v9, %v15744_v46  ;;  %v3129_v18 = vpop.f32.mrf.mxu0  ;;  %3490 = vmatprep.mubr.f32.mxu1 %v15693_v1 }
 0x3a7   :  { %v2120_v40 = vpop.f32.mrf.mxu1 }
 0x3a8   :  { %v12865_v52 = vadd.f32 %v2120_v40, %v1453_v30  ;;  %v3132_v39 = vpop.f32.mrf.mxu0  ;;  %v15750_v30 = vld [vmem:[#allocation50_spill] sm:$0xff]  ;;  %v15751_v40 = vld [vmem:[#allocation51_spill] sm:$0xff] }
 0x3a9   :  { %v2124_v54 = vpop.f32.mrf.mxu1  ;;  %8834 = vmatmul.mubr.msk.f32.gmra.mxu1 %vm760_vm0, %v3132_v39  ;;  %v1465_v58 = vadd.f32 %v15751_v40, %v15750_v30  ;;  %v15752_v39 = vld [vmem:[#allocation49_spill] sm:$0xff] }
 0x3aa   :  { %15745 = vst [vmem:[#allocation19_spill] sm:$0xff] %v12865_v52  ;;  %v12871_v35 = vadd.f32 %v2124_v54, %v15748_v6  ;;  %v3134_v61 = vpop.f32.mrf.mxu0  ;;  %3496 = vmatprep.mubr.f32.mxu1 %v15693_v1 }
 0x3ab   :  { %v2126_v9 = vpop.f32.mrf.mxu1 }
 0x3ac   :  { %v12874_v56 = vadd.f32 %v2126_v9, %v1459_v34  ;;  %v3137_v46 = vpop.f32.mrf.mxu0 }
 0x3ad   :  { %v2130_v18 = vpop.f32.mrf.mxu1  ;;  %8835 = vmatmul.mubr.msk.f32.gmra.mxu1 %vm760_vm0, %v3137_v46 }
 0x3ae   :  { %15749 = vst [vmem:[#allocation23_spill] sm:$0xff] %v12874_v56  ;;  %v12880_v24 = vadd.f32 %v2130_v18, %v15752_v39  ;;  %v3139_v48 = vpop.f32.mrf.mxu0  ;;  %3502 = vmatprep.mubr.f32.mxu1 %v15693_v1 }
 0x3af   :  { %v2132_v54 = vpop.f32.mrf.mxu1 }
 0x3b0   :  { %v12883_v59 = vadd.f32 %v2132_v54, %v1465_v58  ;;  %v3142_v6 = vpop.f32.mrf.mxu0 }
 0x3b1   :  { %v2676_v61 = vpop.f32.mrf.mxu1  ;;  %8836 = vmatmul.mubr.msk.f32.gmra.mxu1 %vm760_vm0, %v3142_v6 }
 0x3b2   :  { %15753 = vst [vmem:[#allocation24_spill] sm:$0xff] %v12883_v59  ;;  %v12887_v34 = vadd.f32 %v2676_v61, %v12601_v37  ;;  %v3144_v9 = vpop.f32.mrf.mxu0  ;;  %3508 = vmatprep.mubr.f32.mxu1 %v15693_v1 }
 0x3b3   :  { %v2678_v46 = vpop.f32.mrf.mxu1 }
 0x3b4   :  { %v12891_v18 = vadd.f32 %v2678_v46, %v12604_v23  ;;  %v3147_v30 = vpop.f32.mrf.mxu0 }
 0x3b5   :  { %v2682_v40 = vpop.f32.mrf.mxu1  ;;  %8837 = vmatmul.mubr.msk.f32.gmra.mxu1 %vm760_vm0, %v3147_v30 }
 0x3b6   :  { %15754 = vst [vmem:[#allocation22_spill] sm:$0xff] %v12891_v18  ;;  %v12895_v58 = vadd.f32 %v2682_v40, %v12610_v51  ;;  %v3149_v39 = vpop.f32.mrf.mxu0  ;;  %3514 = vmatprep.mubr.f32.mxu1 %v15693_v1 }
 0x3b7   :  { %v2684_v48 = vpop.f32.mrf.mxu1 }
 0x3b8   :  { %v12899_v37 = vadd.f32 %v2684_v48, %v12613_v32  ;;  %v3152_v54 = vpop.f32.mrf.mxu0 }
 0x3b9   :  { %v2688_v6 = vpop.f32.mrf.mxu1  ;;  %8838 = vmatmul.mubr.msk.f32.gmra.mxu1 %vm760_vm0, %v3152_v54 }
 0x3ba   :  { %15755 = vst [vmem:[#allocation26_spill] sm:$0xff] %v12899_v37  ;;  %v12903_v23 = vadd.f32 %v2688_v6, %v12619_v2  ;;  %v3154_v61 = vpop.f32.mrf.mxu0  ;;  %3520 = vmatprep.mubr.f32.mxu1 %v15693_v1 }
 0x3bb   :  { %v2690_v9 = vpop.f32.mrf.mxu1 }
 0x3bc   :  { %v12907_v51 = vadd.f32 %v2690_v9, %v12622_v45  ;;  %v3157_v46 = vpop.f32.mrf.mxu0 }
 0x3bd   :  { %v2694_v30 = vpop.f32.mrf.mxu1  ;;  %8839 = vmatmul.mubr.msk.f32.gmra.mxu1 %vm760_vm0, %v3157_v46 }
 0x3be   :  { %15756 = vst [vmem:[#allocation27_spill] sm:$0xff] %v12907_v51  ;;  %v12911_v32 = vadd.f32 %v2694_v30, %v12628_v31  ;;  %v3159_v40 = vpop.f32.mrf.mxu0  ;;  %3526 = vmatprep.mubr.f32.mxu1 %v15693_v1 }
 0x3bf   :  { %v2696_v39 = vpop.f32.mrf.mxu1 }
 0x3c0   :  { %v12915_v2 = vadd.f32 %v2696_v39, %v12631_v29  ;;  %v3162_v48 = vpop.f32.mrf.mxu0 }
 0x3c1   :  { %v2700_v54 = vpop.f32.mrf.mxu1  ;;  %8840 = vmatmul.mubr.msk.f32.gmra.mxu1 %vm760_vm0, %v3162_v48 }
 0x3c2   :  { %15757 = vst [vmem:[#allocation25_spill] sm:$0xff] %v12915_v2  ;;  %v12919_v45 = vadd.f32 %v2700_v54, %v12637_v55  ;;  %v3164_v6 = vpop.f32.mrf.mxu0  ;;  %3532 = vmatprep.mubr.f32.mxu1 %v15693_v1 }
 0x3c3   :  { %v2702_v61 = vpop.f32.mrf.mxu1 }
 0x3c4   :  { %v12923_v31 = vadd.f32 %v2702_v61, %v12640_v60  ;;  %v3167_v9 = vpop.f32.mrf.mxu0 }
 0x3c5   :  { %v2706_v46 = vpop.f32.mrf.mxu1  ;;  %8841 = vmatmul.mubr.msk.f32.gmra.mxu1 %vm760_vm0, %v3167_v9 }
 0x3c6   :  { %15758 = vst [vmem:[#allocation29_spill] sm:$0xff] %v12923_v31  ;;  %v12927_v29 = vadd.f32 %v2706_v46, %v12646_v26  ;;  %v3169_v30 = vpop.f32.mrf.mxu0  ;;  %3538 = vmatprep.mubr.f32.mxu1 %v15693_v1 }
 0x3c7   :  { %v2708_v40 = vpop.f32.mrf.mxu1 }
 0x3c8   :  { %15759 = vst [vmem:[#allocation30_spill] sm:$0xff] %v12927_v29  ;;  %v12931_v55 = vadd.f32 %v2708_v40, %v12649_v21  ;;  %v3172_v39 = vpop.f32.mrf.mxu0 }
 0x3c9   :  { %v2712_v48 = vpop.f32.mrf.mxu1  ;;  %8842 = vmatmul.mubr.msk.f32.gmra.mxu1 %vm760_vm0, %v3172_v39 }
 0x3ca   :  { %v12935_v60 = vadd.f32 %v2712_v48, %v12655_v25  ;;  %v3174_v54 = vpop.f32.mrf.mxu0  ;;  %3544 = vmatprep.mubr.f32.mxu1 %v15693_v1 }
 0x3cb   :  { %v2714_v6 = vpop.f32.mrf.mxu1 }
 0x3cc   :  { %v12939_v26 = vadd.f32 %v2714_v6, %v12658_v4  ;;  %v3177_v61 = vpop.f32.mrf.mxu0 }
 0x3cd   :  { %v2718_v9 = vpop.f32.mrf.mxu1  ;;  %8843 = vmatmul.mubr.msk.f32.gmra.mxu1 %vm760_vm0, %v3177_v61 }
 0x3ce   :  { %v12943_v21 = vadd.f32 %v2718_v9, %v12664_v57  ;;  %v3179_v46 = vpop.f32.mrf.mxu0  ;;  %3550 = vmatprep.mubr.f32.mxu1 %v15693_v1 }
 0x3cf   :  { %v2720_v30 = vpop.f32.mrf.mxu1 }
 0x3d0   :  { %v12947_v25 = vadd.f32 %v2720_v30, %v12667_v20  ;;  %v3182_v40 = vpop.f32.mrf.mxu0 }
 0x3d1   :  { %v2724_v39 = vpop.f32.mrf.mxu1  ;;  %8844 = vmatmul.mubr.msk.f32.gmra.mxu1 %vm760_vm0, %v3182_v40 }
 0x3d2   :  { %v12951_v4 = vadd.f32 %v2724_v39, %v12673_v16  ;;  %v3184_v48 = vpop.f32.mrf.mxu0  ;;  %3556 = vmatprep.mubr.f32.mxu1 %v15693_v1 }
 0x3d3   :  { %v12954_v54 = vpop.f32.mrf.mxu1 }
 0x3d4   :  { %v3187_v57 = vpop.f32.mrf.mxu0 }
 0x3d5   :  { %v2730_v6 = vpop.f32.mrf.mxu1  ;;  %8845 = vmatmul.mubr.msk.f32.gmra.mxu1 %vm760_vm0, %v3187_v57 }
 0x3d6   :  { %v12958_v61 = vadd.f32 %v2730_v6, %v12682_v53  ;;  %v3189_v20 = vpop.f32.mrf.mxu0  ;;  %3562 = vmatprep.mubr.f32.mxu1 %v15693_v1 }
 0x3d7   :  { %v12961_v9 = vpop.f32.mrf.mxu1 }
 0x3d8   :  { %v3192_v46 = vpop.f32.mrf.mxu0 }
 0x3d9   :  { %v2736_v16 = vpop.f32.mrf.mxu1  ;;  %8846 = vmatmul.mubr.msk.f32.gmra.mxu1 %vm760_vm0, %v3192_v46 }
 0x3da   :  { %v12965_v30 = vadd.f32 %v2736_v16, %v12691_v0  ;;  %v3194_v40 = vpop.f32.mrf.mxu0  ;;  %3568 = vmatprep.mubr.f32.mxu1 %v15693_v1 }
 0x3db   :  { %v12968_v39 = vpop.f32.mrf.mxu1 }
 0x3dc   :  { %v3197_v48 = vpop.f32.mrf.mxu0 }
 0x3dd   :  { %v2742_v53 = vpop.f32.mrf.mxu1  ;;  %8847 = vmatmul.mubr.msk.f32.gmra.mxu1 %vm760_vm0, %v3197_v48 }
 0x3de   :  { %v12972_v57 = vadd.f32 %v2742_v53, %v12700_v43  ;;  %v3199_v6 = vpop.f32.mrf.mxu0  ;;  %3574 = vmatprep.mubr.f32.mxu1 %v15693_v1 }
 0x3df   :  { %v12975_v20 = vpop.f32.mrf.mxu1 }
 0x3e0   :  { %v3202_v46 = vpop.f32.mrf.mxu0 }
 0x3e1   :  { %v2748_v0 = vpop.f32.mrf.mxu1  ;;  %8848 = vmatmul.mubr.msk.f32.gmra.mxu1 %vm760_vm0, %v3202_v46 }
 0x3e2   :  { %v12979_v16 = vadd.f32 %v2748_v0, %v12709_v47  ;;  %v3204_v40 = vpop.f32.mrf.mxu0  ;;  %3580 = vmatprep.mubr.f32.mxu1 %v15693_v1 }
 0x3e3   :  { %v12982_v59 = vpop.f32.mrf.mxu1 }
 0x3e4   :  { %v3207_v48 = vpop.f32.mrf.mxu0 }
 0x3e5   :  { %v2754_v43 = vpop.f32.mrf.mxu1  ;;  %8849 = vmatmul.mubr.msk.f32.gmra.mxu1 %vm760_vm0, %v3207_v48 }
 0x3e6   :  { %v12986_v53 = vadd.f32 %v2754_v43, %v12718_v19  ;;  %v3209_v6 = vpop.f32.mrf.mxu0  ;;  %3586 = vmatprep.mubr.f32.mxu1 %v15693_v1 }
 0x3e7   :  { %v12989_v52 = vpop.f32.mrf.mxu1 }
 0x3e8   :  { %v3212_v46 = vpop.f32.mrf.mxu0 }
 0x3e9   :  { %v2760_v47 = vpop.f32.mrf.mxu1  ;;  %8850 = vmatmul.mubr.msk.f32.gmra.mxu1 %vm760_vm0, %v3212_v46 }
 0x3ea   :  { %v12993_v0 = vadd.f32 %v2760_v47, %v12727_v49  ;;  %v3214_v40 = vpop.f32.mrf.mxu0  ;;  %3592 = vmatprep.mubr.f32.mxu1 %v15693_v1 }
 0x3eb   :  { %v12996_v56 = vpop.f32.mrf.mxu1 }
 0x3ec   :  { %v3217_v48 = vpop.f32.mrf.mxu0 }
 0x3ed   :  { %v2766_v19 = vpop.f32.mrf.mxu1  ;;  %8851 = vmatmul.mubr.msk.f32.gmra.mxu1 %vm760_vm0, %v3217_v48 }
 0x3ee   :  { %v13000_v43 = vadd.f32 %v2766_v19, %v12736_v14  ;;  %v3219_v6 = vpop.f32.mrf.mxu0 }
 0x3ef   :  { %v13002_v18 = vpop.f32.mrf.mxu1 }
 0x3f1   :  { %v2772_v37 = vpop.f32.mrf.mxu1 }
 0x3f2   :  { %v13005_v46 = vadd.f32 %v2772_v37, %v12745_v41 }
 0x3f3   :  { %v13007_v49 = vpop.f32.mrf.mxu1 }
 0x3f4   :  { %15760 = vst [vmem:[#allocation28_spill] sm:$0xff] %v13007_v49 }
 0x3f5   :  { %v2778_v47 = vpop.f32.mrf.mxu1 }
 0x3f6   :  { %v13010_v40 = vadd.f32 %v2778_v47, %v12754_v11 }
 0x3f7   :  { %v13012_v1 = vpop.f32.mrf.mxu1 }
 0x3f8   :  { %15761 = vst [vmem:[#allocation32_spill] sm:$0xff] %v13012_v1 }
 0x3f9   :  { %v2784_v51 = vpop.f32.mrf.mxu1 }
 0x3fa   :  { %v13015_v48 = vadd.f32 %v2784_v51, %v12763_v63 }
 0x3fb   :  { %v13017_v14 = vpop.f32.mrf.mxu1 }
 0x3fc   :  { %15762 = vst [vmem:[#allocation33_spill] sm:$0xff] %v13017_v14 }
 0x3fd   :  { %v2790_v19 = vpop.f32.mrf.mxu1 }
 0x3fe   :  { %v13020_v6 = vadd.f32 %v2790_v19, %v12772_v8 }
 0x3ff   :  { %v13022_v41 = vpop.f32.mrf.mxu1 }
 0x400   :  { %15763 = vst [vmem:[#allocation31_spill] sm:$0xff] %v13022_v41 }
 0x401   :  { %v2796_v37 = vpop.f32.mrf.mxu1 }
 0x402   :  { %v13025_v49 = vadd.f32 %v2796_v37, %v12781_v28 }
 0x403   :  { %v13027_v11 = vpop.f32.mrf.mxu1 }
 0x404   :  { %15764 = vst [vmem:[#allocation35_spill] sm:$0xff] %v13025_v49  ;;  %15765 = vst [vmem:[#allocation36_spill] sm:$0xff] %v13027_v11  ;;  %v2894_v49 = vadd.f32 %v12989_v52, %v12721_v7 }
 0x405   :  { %v2802_v47 = vpop.f32.mrf.mxu1 }
 0x406   :  { %v13030_v1 = vadd.f32 %v2802_v47, %v12790_v38 }
 0x407   :  { %v13032_v63 = vpop.f32.mrf.mxu1 }
 0x408   :  { %15766 = vst [vmem:[#allocation34_spill] sm:$0xff] %v13030_v1  ;;  %15767 = vst [vmem:[#allocation38_spill] sm:$0xff] %v13032_v63 }
 0x409   :  { %v2808_v51 = vpop.f32.mrf.mxu1 }
 0x40a   :  { %v13035_v14 = vadd.f32 %v2808_v51, %v12799_v62 }
 0x40b   :  { %v13037_v8 = vpop.f32.mrf.mxu1 }
 0x40c   :  { %15768 = vst [vmem:[#allocation39_spill] sm:$0xff] %v13035_v14  ;;  %15769 = vst [vmem:[#allocation37_spill] sm:$0xff] %v13037_v8 }
 0x40d   :  { %v2814_v19 = vpop.f32.mrf.mxu1 }
 0x40e   :  { %v13040_v41 = vadd.f32 %v2814_v19, %v12808_v12 }
 0x40f   :  { %v13042_v28 = vpop.f32.mrf.mxu1 }
 0x410   :  { %15770 = vst [vmem:[#allocation41_spill] sm:$0xff] %v13040_v41  ;;  %15771 = vst [vmem:[#allocation42_spill] sm:$0xff] %v13042_v28 }
 0x411   :  { %v2820_v37 = vpop.f32.mrf.mxu1 }
 0x412   :  { %v13045_v11 = vadd.f32 %v2820_v37, %v12817_v10 }
 0x413   :  { %v13047_v38 = vpop.f32.mrf.mxu1 }
 0x414   :  { %15772 = vst [vmem:[#allocation40_spill] sm:$0xff] %v13045_v11  ;;  %15773 = vst [vmem:[#allocation44_spill] sm:$0xff] %v13047_v38 }
 0x415   :  { %v2826_v47 = vpop.f32.mrf.mxu1 }
 0x416   :  { %v13050_v1 = vadd.f32 %v2826_v47, %v12826_v33 }
 0x417   :  { %v13052_v62 = vpop.f32.mrf.mxu1 }
 0x418   :  { %15774 = vst [vmem:[#allocation45_spill] sm:$0xff] %v13050_v1  ;;  %15775 = vst [vmem:[#allocation43_spill] sm:$0xff] %v13052_v62 }
 0x419   :  { %v2832_v51 = vpop.f32.mrf.mxu1 }
 0x41a   :  { %v13055_v14 = vadd.f32 %v2832_v51, %v12835_v13 }
 0x41b   :  { %v13057_v12 = vpop.f32.mrf.mxu1 }
 0x41c   :  { %15776 = vst [vmem:[#allocation47_spill] sm:$0xff] %v13055_v14  ;;  %15777 = vst [vmem:[#allocation48_spill] sm:$0xff] %v13057_v12 }
 0x41d   :  { %v2838_v19 = vpop.f32.mrf.mxu1 }
 0x41e   :  { %v13060_v63 = vadd.f32 %v2838_v19, %v12844_v5 }
 0x41f   :  { %v13062_v10 = vpop.f32.mrf.mxu1 }
 0x420   :  { %15778 = vst [vmem:[#allocation46_spill] sm:$0xff] %v13060_v63  ;;  %15779 = vst [vmem:[#allocation50_spill] sm:$0xff] %v13062_v10 }
 0x421   :  { %v2844_v37 = vpop.f32.mrf.mxu1 }
 0x422   :  { %v13065_v41 = vadd.f32 %v2844_v37, %v12853_v36 }
 0x423   :  { %v13067_v33 = vpop.f32.mrf.mxu1 }
 0x424   :  { %15780 = vst [vmem:[#allocation51_spill] sm:$0xff] %v13065_v41  ;;  %15781 = vst [vmem:[#allocation49_spill] sm:$0xff] %v13067_v33 }
 0x425   :  { %v2850_v47 = vpop.f32.mrf.mxu1 }
 0x426   :  { %v13070_v8 = vadd.f32 %v2850_v47, %v12862_v15 }
 0x427   :  { %v13072_v13 = vpop.f32.mrf.mxu1 }
 0x428   :  { %15782 = vst [vmem:[#allocation53_spill] sm:$0xff] %v13070_v8  ;;  %15783 = vst [vmem:[#allocation54_spill] sm:$0xff] %v13072_v13 }
 0x429   :  { %v2856_v51 = vpop.f32.mrf.mxu1 }
 0x42a   :  { %v13075_v11 = vadd.f32 %v2856_v51, %v12871_v35 }
 0x42b   :  { %v13077_v5 = vpop.f32.mrf.mxu1 }
 0x42c   :  { %15784 = vst [vmem:[#allocation55_spill] sm:$0xff] %v13075_v11  ;;  %15785 = vst [vmem:[#allocation56_spill] sm:$0xff] %v13077_v5 }
 0x42d   :  { %v2862_v19 = vpop.f32.mrf.mxu1 }
 0x42e   :  { %v13080_v28 = vadd.f32 %v2862_v19, %v12880_v24 }
 0x42f   :  { %v13082_v36 = vpop.f32.mrf.mxu1 }
 0x430   :  { %15786 = vst [vmem:[#allocation57_spill] sm:$0xff] %v13080_v28  ;;  %15787 = vst [vmem:[#allocation58_spill] sm:$0xff] %v13082_v36 }
 0x431   :  { %v3408_v37 = vpop.f32.mrf.mxu1 }
 0x432   :  { %v13085_v1 = vadd.f32 %v3408_v37, %v12887_v34 }
 0x433   :  { %v13087_v15 = vpop.f32.mrf.mxu1 }
 0x434   :  { %15788 = vst [vmem:[#allocation59_spill] sm:$0xff] %v13085_v1  ;;  %15789 = vst [vmem:[#allocation60_spill] sm:$0xff] %v13087_v15  ;;  %v3665_v1 = vlaneseq }
 0x435   :  { %v3414_v47 = vpop.f32.mrf.mxu1 }
 0x436   :  { %v13090_v38 = vadd.f32 %v3414_v47, %v12895_v58  ;;  %v13133_v15 = vshrl.u32 %v3665_v1, 7  ;;  %v2898_v1 = vadd.f32 %v13002_v18, %v12739_v50  ;;  %v2890_v50 = vadd.f32 %v12975_v20, %v12703_v44 }
 0x437   :  { %v13092_v35 = vpop.f32.mrf.mxu1  ;;  %v2888_v44 = vadd.f32 %v12968_v39, %v12694_v42 }
 0x438   :  { %15790 = vst [vmem:[#allocation61_spill] sm:$0xff] %v13090_v38  ;;  %15791 = vst [vmem:[#allocation62_spill] sm:$0xff] %v13092_v35  ;;  %v15801_v31 = vsub.s32 0, %v13133_v15  ;;  %v15802_v29 = vsub.s32 1, %v13133_v15 }
 0x439   :  { %v3420_v51 = vpop.f32.mrf.mxu1  ;;  %15800 = vst [vmem:[#allocation71_spill] sm:$0xff] %v13133_v15 }
 0x43a   :  { %v13095_v14 = vadd.f32 %v3420_v51, %v12903_v23 }
 0x43b   :  { %v13097_v24 = vpop.f32.mrf.mxu1 }
 0x43c   :  { %15792 = vst [vmem:[#allocation63_spill] sm:$0xff] %v13095_v14  ;;  %15793 = vst [vmem:[#allocation64_spill] sm:$0xff] %v13097_v24 }
 0x43d   :  { %v3426_v19 = vpop.f32.mrf.mxu1 }
 0x43e   :  { %v13100_v62 = vadd.f32 %v3426_v19, %v12911_v32 }
 0x43f   :  { %v13102_v34 = vpop.f32.mrf.mxu1 }
 0x440   :  { %15794 = vst [vmem:[#allocation65_spill] sm:$0xff] %v13100_v62  ;;  %15795 = vst [vmem:[#allocation66_spill] sm:$0xff] %v13102_v34  ;;  %v2892_v34 = vadd.f32 %v12982_v59, %v12712_v27 }
 0x441   :  { %v3432_v37 = vpop.f32.mrf.mxu1 }
 0x442   :  { %v13105_v63 = vadd.f32 %v3432_v37, %v12919_v45  ;;  %v3804_v45 = vld [vmem:[%s15620_s4 + $0x8] sm:$0xff] }
 0x443   :  { %v13107_v58 = vpop.f32.mrf.mxu1  ;;  %v8853_v37 = vld [vmem:[%s15620_s4 + $0x108] sm:$0xff]  ;;  %3899 = vmatprep.mubr.f32.mxu0 %v3804_v45  ;;  %v2896_v45 = vadd.f32 %v12996_v56, %v12730_v17 }
 0x444   :  { %15796 = vst [vmem:[#allocation67_spill] sm:$0xff] %v13105_v63  ;;  %15797 = vst [vmem:[#allocation68_spill] sm:$0xff] %v13107_v58  ;;  %4093 = vmatprep.mubr.f32.mxu1 %v8853_v37  ;;  %v3663_v37 = vld [vmem:[%s15619_s3] sm:$0x3] }
 0x445   :  { %v13109_v47 = vpop.f32.mrf.mxu1 }
 0x446   :  { %15798 = vst [vmem:[#allocation69_spill] sm:$0xff] %v13109_v47  ;;  %v13149_v47 = vrot.slane %v3663_v37, %v15801_v31 }
 0x447   :  { %v13111_v12 = vpop.f32.mrf.mxu1 }
 0x448   :  { %15799 = vst [vmem:[#allocation70_spill] sm:$0xff] %v13111_v12  ;;  %v13156_v12 = vrot.slane %v3663_v37, %v15802_v29 }
 0x449   :  { %v13113_v23 = vpop.f32.mrf.mxu1 }
 0x44b   :  { %v13115_v51 = vpop.f32.mrf.mxu1 }
 0x44d   :  { %v13117_v41 = vpop.f32.mrf.mxu1 }
 0x44f   :  { %v13119_v32 = vpop.f32.mrf.mxu1 }
 0x451   :  { %v13121_v19 = vpop.f32.mrf.mxu1 }
 0x453   :  { %v13123_v10 = vpop.f32.mrf.mxu1 }
 0x455   :  { %v13131_v8 = vpop.f32.mrf.mxu1 }
 0x457   :  { %v3464_v33 = vpop.f32.mrf.mxu1 }
 0x459   :  { %v3468_v11 = vpop.f32.mrf.mxu1 }
 0x45a   :  { %v3619_v39 = vadd.f32 %v3468_v11, %v12965_v30 }
 0x45b   :  { %v3470_v28 = vpop.f32.mrf.mxu1 }
 0x45d   :  { %v3474_v36 = vpop.f32.mrf.mxu1 }
 0x45f   :  { %v3476_v13 = vpop.f32.mrf.mxu1 }
 0x460   :  { %v3622_v20 = vadd.f32 %v3476_v13, %v2890_v50  ;;  %v3612_v50 = vadd.f32 %v13115_v51, %v12939_v26  ;;  %v15803_v26 = vld [vmem:[#allocation70_spill] sm:$0xff] }
 0x461   :  { %v3480_v5 = vpop.f32.mrf.mxu1  ;;  %v3610_v51 = vadd.f32 %v15803_v26, %v12931_v55  ;;  %v15808_v55 = vld [vmem:[#allocation35_spill] sm:$0xff] }
 0x462   :  { %v3623_v59 = vadd.f32 %v3480_v5, %v12979_v16  ;;  %v3620_v5 = vadd.f32 %v3470_v28, %v2888_v44  ;;  %v15806_v44 = vld [vmem:[#allocation29_spill] sm:$0xff] }
 0x463   :  { %v3482_v38 = vpop.f32.mrf.mxu1 }
 0x464   :  { %v3699_v13 = vadd.f32 %v13149_v47, %v3623_v59 }
 0x465   :  { %v3486_v14 = vpop.f32.mrf.mxu1 }
 0x466   :  { %v3625_v18 = vadd.f32 %v3486_v14, %v12986_v53 }
 0x467   :  { %v3488_v62 = vpop.f32.mrf.mxu1 }
 0x468   :  { %v3626_v7 = vadd.f32 %v3488_v62, %v2894_v49 }
 0x469   :  { %v3492_v35 = vpop.f32.mrf.mxu1 }
 0x46a   :  { %v3627_v17 = vadd.f32 %v3492_v35, %v12993_v0  ;;  %v3702_v53 = vadd.f32 %v13156_v12, %v3626_v7  ;;  %v3613_v7 = vadd.f32 %v13117_v41, %v12943_v21  ;;  %v3611_v21 = vadd.f32 %v13113_v23, %v12935_v60 }
 0x46b   :  { %v3494_v24 = vpop.f32.mrf.mxu1 }
 0x46c   :  { %v3628_v58 = vadd.f32 %v3494_v24, %v2896_v45  ;;  %v3703_v29 = vadd.f32 %v13149_v47, %v3627_v17  ;;  %v3689_v60 = vadd.f32 %v13149_v47, %v3613_v7 }
 0x46d   :  { %v3498_v2 = vpop.f32.mrf.mxu1 }
 0x46e   :  { %v3629_v63 = vadd.f32 %v3498_v2, %v13000_v43  ;;  %v3624_v43 = vadd.f32 %v3482_v38, %v2892_v34  ;;  %v3704_v0 = vadd.f32 %v13156_v12, %v3628_v58  ;;  %v3621_v38 = vadd.f32 %v3474_v36, %v12972_v57 }
 0x46f   :  { %v3500_v56 = vpop.f32.mrf.mxu1  ;;  %v2884_v57 = vadd.f32 %v12954_v54, %v12676_v3  ;;  %v3698_v36 = vadd.f32 %v13156_v12, %v3622_v20  ;;  %v3617_v58 = vadd.f32 %v13131_v8, %v12958_v61  ;;  %v3695_v61 = vadd.f32 %v13149_v47, %v3619_v39  ;;  %v15807_v20 = vld [vmem:[#allocation68_spill] sm:$0xff] }
 0x470   :  { %v3630_v52 = vadd.f32 %v3500_v56, %v2898_v1  ;;  %v3705_v2 = vadd.f32 %v13149_v47, %v3629_v63  ;;  %v2886_v63 = vadd.f32 %v12961_v9, %v12685_v22  ;;  %v3700_v24 = vadd.f32 %v13156_v12, %v3624_v43 }
 0x471   :  { %v3504_v31 = vpop.f32.mrf.mxu1  ;;  %v3768_v42 = vmax.f32 %v3704_v0, 0.0  ;;  %v3767_v22 = vmax.f32 %v3703_v29, 0.0  ;;  %v3697_v30 = vadd.f32 %v13149_v47, %v3621_v38  ;;  %v3616_v37 = vadd.f32 %v13123_v10, %v2884_v57  ;;  %v15804_v0 = vld [vmem:[#allocation30_spill] sm:$0xff] }
 0x472   :  { %v3706_v35 = vadd.f32 %v13156_v12, %v3630_v52  ;;  %v13165_v27 = vadd.f32 %v3504_v31, %v13005_v46  ;;  %v3701_v46 = vadd.f32 %v13149_v47, %v3625_v18  ;;  %v3769_v62 = vmax.f32 %v3705_v2, 0.0 }
 0x473   :  { %v13169_v49 = vpop.f32.mrf.mxu1  ;;  %v3618_v28 = vadd.f32 %v3464_v33, %v2886_v63  ;;  %v3696_v1 = vadd.f32 %v13156_v12, %v3620_v5  ;;  %v3764_v54 = vmax.f32 %v3700_v24, 0.0  ;;  %v3615_v33 = vadd.f32 %v13121_v19, %v12951_v4  ;;  %v15809_v5 = vld [vmem:[#allocation25_spill] sm:$0xff]  ;;  %v15810_v24 = vld [vmem:[#allocation66_spill] sm:$0xff] }
 0x474   :  { %v3770_v14 = vmax.f32 %v3706_v35, 0.0  ;;  %v3765_v11 = vmax.f32 %v3701_v46, 0.0  ;;  %v3763_v8 = vmax.f32 %v3699_v13, 0.0  ;;  %v3614_v10 = vadd.f32 %v13119_v32, %v12947_v25  ;;  %v15805_v35 = vld [vmem:[#allocation69_spill] sm:$0xff] }
 0x475   :  { %v3510_v16 = vpop.f32.mrf.mxu1  ;;  %v3694_v56 = vadd.f32 %v13156_v12, %v3618_v28  ;;  %v3693_v4 = vadd.f32 %v13149_v47, %v3617_v58  ;;  %v3761_v19 = vmax.f32 %v3697_v30, 0.0  ;;  %v3692_v18 = vadd.f32 %v13156_v12, %v3616_v37 }
 0x476   :  { %v13180_v34 = vadd.f32 %v3510_v16, %v13010_v40  ;;  %3835 = vmatprep.subr.mxu0 %v3770_v14  ;;  %4029 = vmatprep.subr.mxu1 %v3770_v14  ;;  %v3766_v40 = vmax.f32 %v3702_v53, 0.0  ;;  %v3760_v32 = vmax.f32 %v3696_v1, 0.0  ;;  %v3691_v41 = vadd.f32 %v13149_v47, %v3615_v33  ;;  %v15814_v33 = vld [vmem:[#allocation26_spill] sm:$0xff] }
 0x477   :  { %v13184_v9 = vpop.f32.mrf.mxu1  ;;  %3836 = vmatpush1.msra.mxu0 %v3769_v62  ;;  %4030 = vmatpush1.msra.mxu1 %v3769_v62  ;;  %v3759_v2 = vmax.f32 %v3695_v61, 0.0  ;;  %v3690_v43 = vadd.f32 %v13156_v12, %v3614_v10  ;;  %v3609_v59 = vadd.f32 %v15805_v35, %v15804_v0  ;;  %v3757_v23 = vmax.f32 %v3693_v4, 0.0  ;;  %v15815_v61 = vld [vmem:[#allocation62_spill] sm:$0xff]  ;;  %v15820_v0 = vld [vmem:[#allocation61_spill] sm:$0xff] }
 0x478   :  { %3837 = vmatprep.subr.mxu0 %v3768_v42  ;;  %4031 = vmatprep.subr.mxu1 %v3768_v42  ;;  %v3608_v53 = vadd.f32 %v15807_v20, %v15806_v44  ;;  %v3688_v14 = vadd.f32 %v13156_v12, %v3612_v50  ;;  %v3756_v38 = vmax.f32 %v3692_v18, 0.0  ;;  %v3687_v46 = vadd.f32 %v13149_v47, %v3611_v21  ;;  %v15818_v50 = vld [vmem:[#allocation60_spill] sm:$0xff]  ;;  %v15821_v44 = vld [vmem:[#allocation59_spill] sm:$0xff] }
 0x479   :  { %v3516_v45 = vpop.f32.mrf.mxu1  ;;  %3838 = vmatpush1.msra.mxu0 %v3767_v22  ;;  %4032 = vmatpush1.msra.mxu1 %v3767_v22  ;;  %v3755_v62 = vmax.f32 %v3691_v41, 0.0  ;;  %v3606_v42 = vadd.f32 %v15810_v24, %v15809_v5  ;;  %v3686_v39 = vadd.f32 %v13156_v12, %v3610_v51  ;;  %v3754_v13 = vmax.f32 %v3690_v43, 0.0  ;;  %v15819_v41 = vld [vmem:[#allocation63_spill] sm:$0xff] }
 0x47a   :  { %v13195_v3 = vadd.f32 %v3516_v45, %v13015_v48  ;;  %3839 = vmatprep.subr.mxu0 %v3766_v40  ;;  %4033 = vmatprep.subr.mxu1 %v3766_v40  ;;  %v3762_v48 = vmax.f32 %v3698_v36, 0.0  ;;  %v3685_v22 = vadd.f32 %v13149_v47, %v3609_v59  ;;  %v3753_v57 = vmax.f32 %v3689_v60, 0.0  ;;  %v15811_v36 = vld [vmem:[#allocation27_spill] sm:$0xff]  ;;  %v15812_v40 = vld [vmem:[#allocation64_spill] sm:$0xff] }
 0x47b   :  { %v13200_v17 = vpop.f32.mrf.mxu1  ;;  %3840 = vmatpush1.msra.mxu0 %v3765_v11  ;;  %4034 = vmatpush1.msra.mxu1 %v3765_v11  ;;  %v3604_v58 = vadd.f32 %v15812_v40, %v15811_v36  ;;  %v3684_v30 = vadd.f32 %v13156_v12, %v3608_v53  ;;  %v3752_v11 = vmax.f32 %v3688_v14, 0.0  ;;  %v15813_v45 = vld [vmem:[#allocation67_spill] sm:$0xff]  ;;  %v3751_v1 = vmax.f32 %v3687_v46, 0.0 }
 0x47c   :  { %3841 = vmatprep.subr.mxu0 %v3764_v54  ;;  %4035 = vmatprep.subr.mxu1 %v3764_v54  ;;  %v3683_v37 = vadd.f32 %v13149_v47, %v15813_v45  ;;  %v3682_v10 = vadd.f32 %v13156_v12, %v3606_v42  ;;  %v3749_v4 = vmax.f32 %v3685_v22, 0.0  ;;  %v3677_v35 = vadd.f32 %v13149_v47, %v15820_v0 }
 0x47d   :  { %v3522_v52 = vpop.f32.mrf.mxu1  ;;  %3842 = vmatpush1.msra.mxu0 %v3763_v8  ;;  %4036 = vmatpush1.msra.mxu1 %v3763_v8  ;;  %v3602_v8 = vadd.f32 %v15815_v61, %v15814_v33  ;;  %v3748_v21 = vmax.f32 %v3684_v30, 0.0  ;;  %v3675_v20 = vadd.f32 %v13149_v47, %v15821_v44  ;;  %v15823_v33 = vld [vmem:[#allocation56_spill] sm:$0xff] }
 0x47e   :  { %v13212_v25 = vadd.f32 %v3522_v52, %v13020_v6  ;;  %3843 = vmatprep.subr.mxu0 %v3762_v48  ;;  %4037 = vmatprep.subr.mxu1 %v3762_v48  ;;  %v3758_v6 = vmax.f32 %v3694_v56, 0.0  ;;  %v3750_v56 = vmax.f32 %v3686_v39, 0.0  ;;  %v15816_v48 = vld [vmem:[#allocation65_spill] sm:$0xff]  ;;  %v15817_v52 = vld [vmem:[#allocation22_spill] sm:$0xff]  ;;  %v3747_v26 = vmax.f32 %v3683_v37, 0.0  ;;  %v15833_v44 = vld [vmem:[#allocation20_spill] sm:$0xff] }
 0x47f   :  { %v13217_v31 = vpop.f32.mrf.mxu1  ;;  %3844 = vmatpush1.msra.mxu0 %v3761_v19  ;;  %4038 = vmatpush1.msra.mxu1 %v3761_v19  ;;  %v3681_v7 = vadd.f32 %v13149_v47, %v15816_v48  ;;  %v3600_v18 = vadd.f32 %v15818_v50, %v15817_v52  ;;  %v3678_v43 = vadd.f32 %v13156_v12, %v3602_v8  ;;  %v3739_v5 = vmax.f32 %v3675_v20, 0.0  ;;  %v15834_v20 = vld [vmem:[#allocation50_spill] sm:$0xff] }
 0x480   :  { %3845 = vmatprep.subr.mxu0 %v3760_v32  ;;  %4039 = vmatprep.subr.mxu1 %v3760_v32  ;;  %v3680_v32 = vadd.f32 %v13156_v12, %v3604_v58 }
 0x481   :  { %v3528_v29 = vpop.f32.mrf.mxu1  ;;  %3846 = vmatpush1.msra.mxu0 %v3759_v2  ;;  %4040 = vmatpush1.msra.mxu1 %v3759_v2  ;;  %v3679_v2 = vadd.f32 %v13149_v47, %v15819_v41  ;;  %v3745_v59 = vmax.f32 %v3681_v7, 0.0  ;;  %v15826_v7 = vld [vmem:[#allocation24_spill] sm:$0xff] }
 0x482   :  { %v13229_v63 = vadd.f32 %v3528_v29, %v15808_v55  ;;  %3847 = vmatprep.subr.mxu0 %v3758_v6  ;;  %4041 = vmatprep.subr.mxu1 %v3758_v6  ;;  %v3746_v6 = vmax.f32 %v3682_v10, 0.0  ;;  %v3744_v29 = vmax.f32 %v3680_v32, 0.0  ;;  %v3742_v55 = vmax.f32 %v3678_v43, 0.0  ;;  %v15824_v10 = vld [vmem:[#allocation19_spill] sm:$0xff]  ;;  %v15831_v43 = vld [vmem:[#allocation49_spill] sm:$0xff] }
 0x483   :  { %v13232_v16 = vpop.f32.mrf.mxu1  ;;  %3848 = vmatpush1.msra.mxu0 %v3757_v23  ;;  %4042 = vmatpush1.msra.mxu1 %v3757_v23  ;;  %v3676_v23 = vadd.f32 %v13156_v12, %v3600_v18  ;;  %v3743_v53 = vmax.f32 %v3679_v2, 0.0  ;;  %v15828_v18 = vld [vmem:[#allocation57_spill] sm:$0xff] }
 0x484   :  { %3849 = vmatprep.subr.mxu0 %v3756_v38  ;;  %4043 = vmatprep.subr.mxu1 %v3756_v38  ;;  %v3741_v38 = vmax.f32 %v3677_v35, 0.0 }
 0x485   :  { %v13238_v28 = vpop.f32.mrf.mxu1  ;;  %3850 = vmatpush1.msra.mxu0 %v3755_v62  ;;  %4044 = vmatpush1.msra.mxu1 %v3755_v62  ;;  %v3740_v62 = vmax.f32 %v3676_v23, 0.0 }
 0x486   :  { %3851 = vmatprep.subr.mxu0 %v3754_v13  ;;  %4045 = vmatprep.subr.mxu1 %v3754_v13 }
 0x487   :  { %v13245_v54 = vpop.f32.mrf.mxu1  ;;  %3852 = vmatpush1.msra.mxu0 %v3753_v57  ;;  %4046 = vmatpush1.msra.mxu1 %v3753_v57 }
 0x488   :  { %3853 = vmatprep.subr.mxu0 %v3752_v11  ;;  %4047 = vmatprep.subr.mxu1 %v3752_v11 }
 0x489   :  { %v13252_v19 = vpop.f32.mrf.mxu1  ;;  %3854 = vmatpush1.msra.mxu0 %v3751_v1  ;;  %4048 = vmatpush1.msra.mxu1 %v3751_v1  ;;  %v15822_v1 = vld [vmem:[#allocation23_spill] sm:$0xff] }
 0x48a   :  { %3855 = vmatprep.subr.mxu0 %v3750_v56  ;;  %4049 = vmatprep.subr.mxu1 %v3750_v56  ;;  %v2928_v61 = vadd.f32 %v15823_v33, %v15822_v1  ;;  %v15825_v56 = vld [vmem:[#allocation54_spill] sm:$0xff]  ;;  %v15836_v1 = vld [vmem:[#allocation16_spill] sm:$0xff] }
 0x48b   :  { %v13259_v51 = vpop.f32.mrf.mxu1  ;;  %3856 = vmatpush1.msra.mxu0 %v3749_v4  ;;  %4050 = vmatpush1.msra.mxu1 %v3749_v4  ;;  %v2926_v48 = vadd.f32 %v15825_v56, %v15824_v10  ;;  %v15827_v4 = vld [vmem:[#allocation58_spill] sm:$0xff]  ;;  %v15837_v33 = vld [vmem:[#allocation48_spill] sm:$0xff] }
 0x48c   :  { %3857 = vmatprep.subr.mxu0 %v3748_v21  ;;  %4051 = vmatprep.subr.mxu1 %v3748_v21  ;;  %v2930_v52 = vadd.f32 %v15827_v4, %v15826_v7  ;;  %v15829_v21 = vld [vmem:[#allocation55_spill] sm:$0xff]  ;;  %v15838_v10 = vld [vmem:[#allocation46_spill] sm:$0xff] }
 0x48d   :  { %v13264_v60 = vpop.f32.mrf.mxu1  ;;  %3858 = vmatpush1.msra.mxu0 %v3747_v26  ;;  %4052 = vmatpush1.msra.mxu1 %v3747_v26  ;;  %v15830_v26 = vld [vmem:[#allocation21_spill] sm:$0xff]  ;;  %v15839_v7 = vld [vmem:[#allocation18_spill] sm:$0xff]  ;;  %v15840_v4 = vld [vmem:[#allocation43_spill] sm:$0xff] }
 0x48e   :  { %3859 = vmatprep.subr.mxu0 %v3746_v6  ;;  %4053 = vmatprep.subr.mxu1 %v3746_v6  ;;  %v2924_v6 = vadd.f32 %v15831_v43, %v15830_v26 }
 0x48f   :  { %v13269_v14 = vpop.f32.mrf.mxu1  ;;  %3860 = vmatpush1.msra.mxu0 %v3745_v59  ;;  %4054 = vmatpush1.msra.mxu1 %v3745_v59  ;;  %v15832_v59 = vld [vmem:[#allocation53_spill] sm:$0xff] }
 0x490   :  { %3861 = vmatprep.subr.mxu0 %v3744_v29  ;;  %4055 = vmatprep.subr.mxu1 %v3744_v29 }
 0x491   :  { %v13271_v46 = vpop.f32.mrf.mxu1  ;;  %3862 = vmatpush1.msra.mxu0 %v3743_v53  ;;  %4056 = vmatpush1.msra.mxu1 %v3743_v53  ;;  %v2922_v53 = vadd.f32 %v15834_v20, %v15833_v44 }
 0x492   :  { %3863 = vmatprep.subr.mxu0 %v3742_v55  ;;  %4057 = vmatprep.subr.mxu1 %v3742_v55 }
 0x493   :  { %v13273_v24 = vpop.f32.mrf.mxu1  ;;  %3864 = vmatpush1.msra.mxu0 %v3741_v38  ;;  %4058 = vmatpush1.msra.mxu1 %v3741_v38 }
 0x494   :  { %3865 = vmatprep.subr.mxu0 %v3740_v62  ;;  %4059 = vmatprep.subr.mxu1 %v3740_v62 }
 0x495   :  { %v3558_v42 = vpop.f32.mrf.mxu1  ;;  %3866 = vmatpush1.msra.mxu0 %v3739_v5  ;;  %4060 = vmatpush1.msra.mxu1 %v3739_v5  ;;  %v15835_v5 = vld [vmem:[#allocation51_spill] sm:$0xff] }
 0x497   :  { %v3560_v39 = vpop.f32.mrf.mxu1 }
 0x499   :  { %v3564_v13 = vpop.f32.mrf.mxu1 }
 0x49b   :  { %v3566_v22 = vpop.f32.mrf.mxu1 }
 0x49d   :  { %v3570_v57 = vpop.f32.mrf.mxu1 }
 0x49e   :  { %v3653_v56 = vadd.f32 %v3570_v57, %v15838_v10  ;;  %v15842_v57 = vld [vmem:[#allocation17_spill] sm:$0xff]  ;;  %v15852_v10 = vld [vmem:[#allocation38_spill] sm:$0xff] }
 0x49f   :  { %v3572_v36 = vpop.f32.mrf.mxu1 }
 0x4a1   :  { %v3576_v40 = vpop.f32.mrf.mxu1 }
 0x4a3   :  { %v3578_v58 = vpop.f32.mrf.mxu1 }
 0x4a4   :  { %v3656_v55 = vadd.f32 %v3578_v58, %v2924_v6 }
 0x4a5   :  { %v3582_v30 = vpop.f32.mrf.mxu1 }
 0x4a6   :  { %v3657_v23 = vadd.f32 %v3582_v30, %v15832_v59  ;;  %v3729_v59 = vadd.f32 %v13149_v47, %v3653_v56 }
 0x4a7   :  { %v3584_v11 = vpop.f32.mrf.mxu1 }
 0x4a8   :  { %v3658_v0 = vadd.f32 %v3584_v11, %v2926_v48  ;;  %v2920_v11 = vadd.f32 %v15837_v33, %v15836_v1  ;;  %v3733_v48 = vadd.f32 %v13149_v47, %v3657_v23 }
 0x4a9   :  { %v3588_v45 = vpop.f32.mrf.mxu1 }
 0x4aa   :  { %v3659_v41 = vadd.f32 %v3588_v45, %v15829_v21  ;;  %v3655_v45 = vadd.f32 %v3576_v40, %v15835_v5  ;;  %v3734_v30 = vadd.f32 %v13156_v12, %v3658_v0  ;;  %v3732_v40 = vadd.f32 %v13156_v12, %v3656_v55  ;;  %v15844_v0 = vld [vmem:[#allocation45_spill] sm:$0xff]  ;;  %v15847_v55 = vld [vmem:[#allocation40_spill] sm:$0xff]  ;;  %v15848_v5 = vld [vmem:[#allocation15_spill] sm:$0xff] }
 0x4ab   :  { %v3590_v37 = vpop.f32.mrf.mxu1  ;;  %v3797_v23 = vmax.f32 %v3733_v48, 0.0 }
 0x4ac   :  { %v3660_v50 = vadd.f32 %v3590_v37, %v2928_v61  ;;  %v3735_v37 = vadd.f32 %v13149_v47, %v3659_v41  ;;  %v3654_v61 = vadd.f32 %v3572_v36, %v2922_v53  ;;  %v3731_v36 = vadd.f32 %v13149_v47, %v3655_v45  ;;  %v15849_v45 = vld [vmem:[#allocation37_spill] sm:$0xff] }
 0x4ad   :  { %v3594_v8 = vpop.f32.mrf.mxu1 }
 0x4ae   :  { %v3661_v32 = vadd.f32 %v3594_v8, %v15828_v18  ;;  %v3736_v38 = vadd.f32 %v13156_v12, %v3660_v50  ;;  %v3652_v50 = vadd.f32 %v3566_v22, %v2920_v11  ;;  %v3799_v41 = vmax.f32 %v3735_v37, 0.0  ;;  %v15850_v11 = vld [vmem:[#allocation41_spill] sm:$0xff] }
 0x4af   :  { %v3596_v2 = vpop.f32.mrf.mxu1  ;;  %v3730_v6 = vadd.f32 %v13156_v12, %v3654_v61  ;;  %v3798_v22 = vmax.f32 %v3734_v30, 0.0  ;;  %v2912_v37 = vadd.f32 %v15849_v45, %v15848_v5  ;;  %v3645_v61 = vadd.f32 %v13264_v60, %v15850_v11  ;;  %v15863_v45 = vld [vmem:[#allocation52_spill] sm:$0xff] }
 0x4b0   :  { %v3662_v35 = vadd.f32 %v3596_v2, %v2930_v52  ;;  %v3737_v29 = vadd.f32 %v13149_v47, %v3661_v32  ;;  %v2918_v52 = vadd.f32 %v15840_v4, %v15839_v7  ;;  %v3800_v18 = vmax.f32 %v3736_v38, 0.0  ;;  %v15841_v32 = vld [vmem:[#allocation47_spill] sm:$0xff]  ;;  %v15843_v2 = vld [vmem:[#allocation44_spill] sm:$0xff] }
 0x4b1   :  { %v3651_v21 = vadd.f32 %v3564_v13, %v15841_v32  ;;  %v2916_v26 = vadd.f32 %v15843_v2, %v15842_v57  ;;  %v15845_v13 = vld [vmem:[#allocation13_spill] sm:$0xff]  ;;  %v3728_v53 = vadd.f32 %v13156_v12, %v3652_v50  ;;  %v3647_v38 = vadd.f32 %v13271_v46, %v15847_v55  ;;  %v15853_v7 = vld [vmem:[#allocation39_spill] sm:$0xff]  ;;  %v15854_v50 = vld [vmem:[#allocation10_spill] sm:$0xff] }
 0x4b2   :  { %v3738_v62 = vadd.f32 %v13156_v12, %v3662_v35  ;;  %v3801_v58 = vmax.f32 %v3737_v29, 0.0  ;;  %v3650_v43 = vadd.f32 %v3560_v39, %v2918_v52  ;;  %v3649_v35 = vadd.f32 %v3558_v42, %v15844_v0  ;;  %v15846_v29 = vld [vmem:[#allocation42_spill] sm:$0xff]  ;;  %v15857_v2 = vld [vmem:[#allocation12_spill] sm:$0xff] }
 0x4b3   :  { %v2914_v44 = vadd.f32 %v15846_v29, %v15845_v13  ;;  %v3648_v20 = vadd.f32 %v13273_v24, %v2916_v26  ;;  %v3796_v39 = vmax.f32 %v3732_v40, 0.0  ;;  %v3727_v42 = vadd.f32 %v13149_v47, %v3651_v21  ;;  %v15855_v40 = vld [vmem:[#allocation36_spill] sm:$0xff]  ;;  %v15858_v26 = vld [vmem:[#allocation31_spill] sm:$0xff] }
 0x4b4   :  { %v3802_v8 = vmax.f32 %v3738_v62, 0.0  ;;  %v3795_v62 = vmax.f32 %v3731_v36, 0.0  ;;  %v3726_v24 = vadd.f32 %v13156_v12, %v3650_v43  ;;  %v3794_v33 = vmax.f32 %v3730_v6, 0.0  ;;  %v15856_v36 = vld [vmem:[#allocation34_spill] sm:$0xff] }
 0x4b5   :  { %v3646_v1 = vadd.f32 %v13269_v14, %v2914_v44  ;;  %v3725_v46 = vadd.f32 %v13149_v47, %v3649_v35  ;;  %v3793_v30 = vmax.f32 %v3729_v59, 0.0  ;;  %v3644_v48 = vadd.f32 %v13259_v51, %v2912_v37  ;;  %v15860_v59 = vld [vmem:[#allocation33_spill] sm:$0xff]  ;;  %v15864_v37 = vld [vmem:[#allocation28_spill] sm:$0xff] }
 0x4b6   :  { %3867 = vmatprep.subr.mxu0 %v3802_v8  ;;  %4061 = vmatprep.subr.mxu1 %v3802_v8  ;;  %v15851_v8 = vld [vmem:[#allocation14_spill] sm:$0xff]  ;;  %v3724_v14 = vadd.f32 %v13156_v12, %v3648_v20  ;;  %v3643_v4 = vadd.f32 %v13252_v19, %v15853_v7  ;;  %v3723_v60 = vadd.f32 %v13149_v47, %v3647_v38  ;;  %v3791_v52 = vmax.f32 %v3727_v42, 0.0 }
 0x4b7   :  { %3868 = vmatpush2.msra.mxu0 %v3801_v58  ;;  %4062 = vmatpush2.msra.mxu1 %v3801_v58  ;;  %v2910_v56 = vadd.f32 %v15852_v10, %v15851_v8  ;;  %v3792_v58 = vmax.f32 %v3728_v53, 0.0  ;;  %v3722_v51 = vadd.f32 %v13156_v12, %v3646_v1  ;;  %v3790_v21 = vmax.f32 %v3726_v24, 0.0  ;;  %v15861_v53 = vld [vmem:[#allocation9_spill] sm:$0xff] }
 0x4b8   :  { %3869 = vmatprep.subr.mxu0 %v3800_v18  ;;  %4063 = vmatprep.subr.mxu1 %v3800_v18  ;;  %v2908_v18 = vadd.f32 %v15855_v40, %v15854_v50  ;;  %v3721_v19 = vadd.f32 %v13149_v47, %v3645_v61  ;;  %v3789_v57 = vmax.f32 %v3725_v46, 0.0  ;;  %v2906_v43 = vadd.f32 %v15858_v26, %v15857_v2  ;;  %v4237_v50 = vld [vmem:[#allocation2 + $0x78] sm:$0xff]  ;;  %v4453_v40 = vld [vmem:[#allocation2 + $0x120] sm:$0xff] }
 0x4b9   :  { %3870 = vmatpush2.msra.mxu0 %v3799_v41  ;;  %4064 = vmatpush2.msra.mxu1 %v3799_v41  ;;  %v3642_v32 = vadd.f32 %v13245_v54, %v2910_v56  ;;  %v3641_v41 = vadd.f32 %v13238_v28, %v15856_v36  ;;  %v3720_v54 = vadd.f32 %v13156_v12, %v3644_v48  ;;  %v3787_v35 = vmax.f32 %v3723_v60, 0.0  ;;  %v15859_v28 = vld [vmem:[#allocation11_spill] sm:$0xff]  ;;  %v8856_v2 = vld [vmem:[%s15620_s4 + $0x120] sm:$0xff]  ;;  %v3810_v26 = vld [vmem:[%s15620_s4 + $0x38] sm:$0xff] }
 0x4ba   :  { %3871 = vmatprep.subr.mxu0 %v3798_v22  ;;  %4065 = vmatprep.subr.mxu1 %v3798_v22  ;;  %v3640_v6 = vadd.f32 %v13232_v16, %v2908_v18  ;;  %v3788_v22 = vmax.f32 %v3724_v14, 0.0  ;;  %v3719_v0 = vadd.f32 %v13149_v47, %v3643_v4  ;;  %v3638_v13 = vadd.f32 %v13217_v31, %v2906_v43  ;;  %v3805_v18 = vld [vmem:[%s15620_s4 + $0x10] sm:$0xff]  ;;  %v8859_v43 = vld [vmem:[%s15620_s4 + $0x138] sm:$0xff] }
 0x4bb   :  { %3872 = vmatpush2.msra.mxu0 %v3797_v23  ;;  %4066 = vmatpush2.msra.mxu1 %v3797_v23  ;;  %v2904_v23 = vadd.f32 %v15860_v59, %v15859_v28  ;;  %v3718_v29 = vadd.f32 %v13156_v12, %v3642_v32  ;;  %v3786_v16 = vmax.f32 %v3722_v51, 0.0  ;;  %v3717_v44 = vadd.f32 %v13149_v47, %v3641_v41  ;;  %v8854_v32 = vld [vmem:[%s15620_s4 + $0x110] sm:$0xff]  ;;  %v3808_v51 = vld [vmem:[%s15620_s4 + $0x28] sm:$0xff]  ;;  %v4234_v59 = vld [vmem:[#allocation2 + $0x60] sm:$0xff] }
 0x4bc   :  { %3873 = vmatprep.subr.mxu0 %v3796_v39  ;;  %4067 = vmatprep.subr.mxu1 %v3796_v39  ;;  %v3785_v20 = vmax.f32 %v3721_v19, 0.0  ;;  %v15862_v39 = vld [vmem:[#allocation32_spill] sm:$0xff]  ;;  %v3716_v42 = vadd.f32 %v13156_v12, %v3640_v6  ;;  %v3784_v31 = vmax.f32 %v3720_v54, 0.0  ;;  %v3783_v5 = vmax.f32 %v3719_v0, 0.0  ;;  %v4236_v41 = vld [vmem:[#allocation2 + $0x70] sm:$0xff]  ;;  %v4235_v6 = vld [vmem:[#allocation2 + $0x68] sm:$0xff] }
 0x4bd   :  { %3874 = vmatpush2.msra.mxu0 %v3795_v62  ;;  %4068 = vmatpush2.msra.mxu1 %v3795_v62  ;;  %v2902_v55 = vadd.f32 %v15862_v39, %v15861_v53  ;;  %v3636_v38 = vadd.f32 %v13200_v17, %v2904_v23  ;;  %v3715_v62 = vadd.f32 %v13149_v47, %v13229_v63  ;;  %v3782_v17 = vmax.f32 %v3718_v29, 0.0  ;;  %v4452_v19 = vld [vmem:[#allocation2 + $0x118] sm:$0xff]  ;;  %v4451_v54 = vld [vmem:[#allocation2 + $0x110] sm:$0xff]  ;;  %v8861_v28 = vld [vmem:[%s15620_s4 + $0x148] sm:$0xff] }
 0x4be   :  { %3875 = vmatprep.subr.mxu0 %v3794_v33  ;;  %4069 = vmatprep.subr.mxu1 %v3794_v33  ;;  %v2900_v1 = vadd.f32 %v15864_v37, %v15863_v45  ;;  %v3714_v33 = vadd.f32 %v13156_v12, %v3638_v13  ;;  %v3713_v11 = vadd.f32 %v13149_v47, %v13212_v25  ;;  %v3781_v61 = vmax.f32 %v3717_v44, 0.0  ;;  %v8858_v0 = vld [vmem:[%s15620_s4 + $0x130] sm:$0xff]  ;;  %v4450_v23 = vld [vmem:[#allocation2 + $0x108] sm:$0xff]  ;;  %v3811_v13 = vld [vmem:[%s15620_s4 + $0x40] sm:$0xff] }
 0x4bf   :  { %3876 = vmatpush2.msra.mxu0 %v3793_v30  ;;  %4070 = vmatpush2.msra.mxu1 %v3793_v30  ;;  %v3634_v24 = vadd.f32 %v13184_v9, %v2902_v55  ;;  %v3712_v46 = vadd.f32 %v13156_v12, %v3636_v38  ;;  %v3780_v30 = vmax.f32 %v3716_v42, 0.0  ;;  %v3711_v9 = vadd.f32 %v13149_v47, %v13195_v3  ;;  %v8860_v29 = vld [vmem:[%s15620_s4 + $0x140] sm:$0xff]  ;;  %v8863_v44 = vld [vmem:[%s15620_s4 + $0x158] sm:$0xff]  ;;  %v3813_v39 = vld [vmem:[%s15620_s4 + $0x50] sm:$0xff] }
 0x4c0   :  { %3877 = vmatprep.subr.mxu0 %v3792_v58  ;;  %4071 = vmatprep.subr.mxu1 %v3792_v58  ;;  %v3632_v63 = vadd.f32 %v13169_v49, %v2900_v1  ;;  %v3779_v8 = vmax.f32 %v3715_v62, 0.0  ;;  %v3778_v25 = vmax.f32 %v3714_v33, 0.0  ;;  %v3709_v56 = vadd.f32 %v13149_v47, %v13180_v34  ;;  %v4449_v53 = vld [vmem:[#allocation2 + $0x100] sm:$0xff]  ;;  %v8862_v55 = vld [vmem:[%s15620_s4 + $0x150] sm:$0xff]  ;;  %v3816_v38 = vld [vmem:[%s15620_s4 + $0x68] sm:$0xff] }
 0x4c1   :  { %3878 = vmatpush2.msra.mxu0 %v3791_v52  ;;  %4072 = vmatpush2.msra.mxu1 %v3791_v52  ;;  %v3710_v10 = vadd.f32 %v13156_v12, %v3634_v24  ;;  %v3777_v49 = vmax.f32 %v3713_v11, 0.0  ;;  %v3776_v14 = vmax.f32 %v3712_v46, 0.0  ;;  %v3707_v3 = vadd.f32 %v13149_v47, %v13165_v27  ;;  %v8852_v47 = vld [vmem:[%s15620_s4 + $0x100] sm:$0xff]  ;;  %v3806_v27 = vld [vmem:[%s15620_s4 + $0x18] sm:$0xff]  ;;  %v8865_v42 = vld [vmem:[%s15620_s4 + $0x168] sm:$0xff] }
 0x4c2   :  { %3879 = vmatprep.subr.mxu0 %v3790_v21  ;;  %4073 = vmatprep.subr.mxu1 %v3790_v21  ;;  %v3708_v48 = vadd.f32 %v13156_v12, %v3632_v63  ;;  %v3775_v58 = vmax.f32 %v3711_v9, 0.0  ;;  %v3773_v4 = vmax.f32 %v3709_v56, 0.0  ;;  %v3803_v12 = vld [vmem:[%s15620_s4] sm:$0xff]  ;;  %v8855_v52 = vld [vmem:[%s15620_s4 + $0x118] sm:$0xff]  ;;  %v8857_v21 = vld [vmem:[%s15620_s4 + $0x128] sm:$0xff]  ;;  %v15865_v36 = vmov 0.0  }
 0x4c3   :  { %3880 = vmatpush2.msra.mxu0 %v3789_v57  ;;  %4074 = vmatpush2.msra.mxu1 %v3789_v57  ;;  %v3774_v7 = vmax.f32 %v3710_v10, 0.0  ;;  %v3771_v60 = vmax.f32 %v3707_v3, 0.0  ;;  %v3807_v57 = vld [vmem:[%s15620_s4 + $0x20] sm:$0xff]  ;;  %v4448_v62 = vld [vmem:[#allocation2 + $0xf8] sm:$0xff]  ;;  %v4231_v24 = vld [vmem:[#allocation2 + $0x48] sm:$0xff] }
 0x4c4   :  { %3881 = vmatprep.subr.mxu0 %v3788_v22  ;;  %4075 = vmatprep.subr.mxu1 %v3788_v22  ;;  %v3772_v34 = vmax.f32 %v3708_v48, 0.0  ;;  %v3809_v22 = vld [vmem:[%s15620_s4 + $0x30] sm:$0xff]  ;;  %v8864_v45 = vld [vmem:[%s15620_s4 + $0x160] sm:$0xff]  ;;  %v3818_v37 = vld [vmem:[%s15620_s4 + $0x78] sm:$0xff] }
 0x4c5   :  { %3882 = vmatpush2.msra.mxu0 %v3787_v35  ;;  %4076 = vmatpush2.msra.mxu1 %v3787_v35  ;;  %v3812_v35 = vld [vmem:[%s15620_s4 + $0x48] sm:$0xff]  ;;  %v8867_v1 = vld [vmem:[%s15620_s4 + $0x178] sm:$0xff]  ;;  %v4447_v33 = vld [vmem:[#allocation2 + $0xf0] sm:$0xff] }
 0x4c6   :  { %3883 = vmatprep.subr.mxu0 %v3786_v16  ;;  %4077 = vmatprep.subr.mxu1 %v3786_v16  ;;  %v3814_v16 = vld [vmem:[%s15620_s4 + $0x58] sm:$0xff]  ;;  %v8866_v11 = vld [vmem:[%s15620_s4 + $0x170] sm:$0xff]  ;;  %v8869_v63 = vld [vmem:[%s15620_s4 + $0x188] sm:$0xff] }
 0x4c7   :  { %3884 = vmatpush2.msra.mxu0 %v3785_v20  ;;  %4078 = vmatpush2.msra.mxu1 %v3785_v20  ;;  %v4233_v20 = vld [vmem:[#allocation2 + $0x58] sm:$0xff]  ;;  %v4230_v46 = vld [vmem:[#allocation2 + $0x40] sm:$0xff]  ;;  %v3821_v48 = vld [vmem:[%s15620_s4 + $0x90] sm:$0xff] }
 0x4c8   :  { %3885 = vmatprep.subr.mxu0 %v3784_v31  ;;  %4079 = vmatprep.subr.mxu1 %v3784_v31  ;;  %v4232_v31 = vld [vmem:[#allocation2 + $0x50] sm:$0xff]  ;;  %v3819_v9 = vld [vmem:[%s15620_s4 + $0x80] sm:$0xff]  ;;  %v3822_v10 = vld [vmem:[%s15620_s4 + $0x98] sm:$0xff] }
 0x4c9   :  { %3886 = vmatpush2.msra.mxu0 %v3783_v5  ;;  %4080 = vmatpush2.msra.mxu1 %v3783_v5  ;;  %v3815_v5 = vld [vmem:[%s15620_s4 + $0x60] sm:$0xff]  ;;  %v4229_v56 = vld [vmem:[#allocation2 + $0x38] sm:$0xff]  ;;  %v3824_v3 = vld [vmem:[%s15620_s4 + $0xa8] sm:$0xff] }
 0x4ca   :  { %3887 = vmatprep.subr.mxu0 %v3782_v17  ;;  %4081 = vmatprep.subr.mxu1 %v3782_v17  ;;  %v3817_v17 = vld [vmem:[%s15620_s4 + $0x70] sm:$0xff] }
 0x4cb   :  { %3888 = vmatpush2.msra.mxu0 %v3781_v61  ;;  %4082 = vmatpush2.msra.mxu1 %v3781_v61  ;;  %v3820_v61 = vld [vmem:[%s15620_s4 + $0x88] sm:$0xff] }
 0x4cc   :  { %3889 = vmatprep.subr.mxu0 %v3780_v30  ;;  %4083 = vmatprep.subr.mxu1 %v3780_v30  ;;  %v4446_v30 = vld [vmem:[#allocation2 + $0xe8] sm:$0xff] }
 0x4cd   :  { %3890 = vmatpush2.msra.mxu0 %v3779_v8  ;;  %4084 = vmatpush2.msra.mxu1 %v3779_v8  ;;  %v8868_v8 = vld [vmem:[%s15620_s4 + $0x180] sm:$0xff] }
 0x4ce   :  { %3891 = vmatprep.subr.mxu0 %v3778_v25  ;;  %4085 = vmatprep.subr.mxu1 %v3778_v25  ;;  %v8871_v25 = vld [vmem:[%s15620_s4 + $0x198] sm:$0xff] }
 0x4cf   :  { %3892 = vmatpush2.msra.mxu0 %v3777_v49  ;;  %4086 = vmatpush2.msra.mxu1 %v3777_v49  ;;  %v4445_v49 = vld [vmem:[#allocation2 + $0xe0] sm:$0xff] }
 0x4d0   :  { %3893 = vmatprep.subr.mxu0 %v3776_v14  ;;  %4087 = vmatprep.subr.mxu1 %v3776_v14  ;;  %v8870_v14 = vld [vmem:[%s15620_s4 + $0x190] sm:$0xff] }
 0x4d1   :  { %3894 = vmatpush2.msra.mxu0 %v3775_v58  ;;  %4088 = vmatpush2.msra.mxu1 %v3775_v58  ;;  %v8873_v58 = vld [vmem:[%s15620_s4 + $0x1a8] sm:$0xff] }
 0x4d2   :  { %3895 = vmatprep.subr.mxu0 %v3774_v7  ;;  %4089 = vmatprep.subr.mxu1 %v3774_v7  ;;  %v4228_v7 = vld [vmem:[#allocation2 + $0x30] sm:$0xff] }
 0x4d3   :  { %3896 = vmatpush2.msra.mxu0 %v3773_v4  ;;  %4090 = vmatpush2.msra.mxu1 %v3773_v4  ;;  %v4444_v4 = vld [vmem:[#allocation2 + $0xd8] sm:$0xff] }
 0x4d4   :  { %3897 = vmatprep.subr.mxu0 %v3772_v34  ;;  %4091 = vmatprep.subr.mxu1 %v3772_v34  ;;  %v3823_v34 = vld [vmem:[%s15620_s4 + $0xa0] sm:$0xff] }
 0x4d5   :  { %3898 = vmatpush2.msra.mxu0 %v3771_v60  ;;  %4092 = vmatpush2.msra.mxu1 %v3771_v60  ;;  %v8872_v60 = vld [vmem:[%s15620_s4 + $0x1a0] sm:$0xff] }
 0x4d6   :  { %3900 = vmatmul.mubr.f32.vlgmr.msra.gmra.mxu0 %v3803_v12  ;;  %4094 = vmatmul.mubr.f32.vlgmr.msra.gmra.mxu1 %v8852_v47  ;;  %v3826_v12 = vld [vmem:[%s15620_s4 + $0xb8] sm:$0xff] }
 0x4d7   :  { %3905 = vmatprep.mubr.f32.mxu0 %v3806_v27  ;;  %4099 = vmatprep.mubr.f32.mxu1 %v8855_v52  ;;  %v8875_v47 = vld [vmem:[%s15620_s4 + $0x1b8] sm:$0xff]  ;;  %v4227_v27 = vld [vmem:[#allocation2 + $0x28] sm:$0xff]  ;;  %v4443_v52 = vld [vmem:[#allocation2 + $0xd0] sm:$0xff] }
 0x4d8   :  { %4292 = vmatprep.subr.mxu0 %v15865_v36  ;;  %4459 = vmatprep.subr.mxu1 %v15865_v36 }
 0x4d9   :  { %4293 = vmatpush1.msra.mxu0 %v4237_v50  ;;  %4460 = vmatpush1.msra.mxu1 %v4453_v40  ;;  %v3825_v50 = vld [vmem:[%s15620_s4 + $0xb0] sm:$0xff] }
 0x4da   :  { %3906 = vmatmul.mubr.f32.gmra.mxu0 %v3805_v18  ;;  %4100 = vmatmul.mubr.f32.gmra.mxu1 %v8854_v32  ;;  %v8874_v40 = vld [vmem:[%s15620_s4 + $0x1b0] sm:$0xff]  ;;  %v3828_v18 = vld [vmem:[%s15620_s4 + $0xc8] sm:$0xff] }
 0x4db   :  { %3911 = vmatprep.mubr.f32.mxu0 %v3808_v51  ;;  %4105 = vmatprep.mubr.f32.mxu1 %v8857_v21  ;;  %v8877_v32 = vld [vmem:[%s15620_s4 + $0x1c8] sm:$0xff]  ;;  %v4226_v51 = vld [vmem:[#allocation2 + $0x20] sm:$0xff] }
 0x4dc   :  { %4294 = vmatprep.subr.mxu0 %v15865_v36  ;;  %4461 = vmatprep.subr.mxu1 %v15865_v36  ;;  %v4442_v21 = vld [vmem:[#allocation2 + $0xc8] sm:$0xff] }
 0x4dd   :  { %4295 = vmatpush1.msra.mxu0 %v4236_v41  ;;  %4462 = vmatpush1.msra.mxu1 %v4452_v19  ;;  %v3827_v41 = vld [vmem:[%s15620_s4 + $0xc0] sm:$0xff] }
 0x4de   :  { %3912 = vmatmul.mubr.f32.gmra.mxu0 %v3807_v57  ;;  %4106 = vmatmul.mubr.f32.gmra.mxu1 %v8856_v2  ;;  %v8876_v19 = vld [vmem:[%s15620_s4 + $0x1c0] sm:$0xff]  ;;  %v3830_v57 = vld [vmem:[%s15620_s4 + $0xd8] sm:$0xff] }
 0x4df   :  { %3917 = vmatprep.mubr.f32.mxu0 %v3810_v26  ;;  %4111 = vmatprep.mubr.f32.mxu1 %v8859_v43  ;;  %v8879_v2 = vld [vmem:[%s15620_s4 + $0x1d8] sm:$0xff]  ;;  %v4441_v43 = vld [vmem:[#allocation2 + $0xc0] sm:$0xff] }
 0x4e0   :  { %4296 = vmatprep.subr.mxu0 %v15865_v36  ;;  %4463 = vmatprep.subr.mxu1 %v15865_v36  ;;  %v4225_v26 = vld [vmem:[#allocation2 + $0x18] sm:$0xff] }
 0x4e1   :  { %4297 = vmatpush1.msra.mxu0 %v4235_v6  ;;  %4464 = vmatpush1.msra.mxu1 %v4451_v54  ;;  %v3829_v6 = vld [vmem:[%s15620_s4 + $0xd0] sm:$0xff] }
 0x4e2   :  { %3918 = vmatmul.mubr.f32.gmra.mxu0 %v3809_v22  ;;  %4112 = vmatmul.mubr.f32.gmra.mxu1 %v8858_v0  ;;  %v8878_v54 = vld [vmem:[%s15620_s4 + $0x1d0] sm:$0xff]  ;;  %v3832_v22 = vld [vmem:[%s15620_s4 + $0xe8] sm:$0xff] }
 0x4e3   :  { %3923 = vmatprep.mubr.f32.mxu0 %v3812_v35  ;;  %4117 = vmatprep.mubr.f32.mxu1 %v8861_v28  ;;  %v8881_v0 = vld [vmem:[%s15620_s4 + $0x1e8] sm:$0xff]  ;;  %v4224_v35 = vld [vmem:[#allocation2 + $0x10] sm:$0xff]  ;;  %v4440_v28 = vld [vmem:[#allocation2 + $0xb8] sm:$0xff] }
 0x4e4   :  { %4298 = vmatprep.subr.mxu0 %v15865_v36  ;;  %4465 = vmatprep.subr.mxu1 %v15865_v36 }
 0x4e5   :  { %4299 = vmatpush1.msra.mxu0 %v4234_v59  ;;  %4466 = vmatpush1.msra.mxu1 %v4450_v23  ;;  %v3831_v59 = vld [vmem:[%s15620_s4 + $0xe0] sm:$0xff] }
 0x4e6   :  { %3924 = vmatmul.mubr.f32.gmra.mxu0 %v3811_v13  ;;  %4118 = vmatmul.mubr.f32.gmra.mxu1 %v8860_v29  ;;  %v8880_v23 = vld [vmem:[%s15620_s4 + $0x1e0] sm:$0xff]  ;;  %v3834_v13 = vld [vmem:[%s15620_s4 + $0xf8] sm:$0xff] }
 0x4e7   :  { %3929 = vmatprep.mubr.f32.mxu0 %v3814_v16  ;;  %4123 = vmatprep.mubr.f32.mxu1 %v8863_v44  ;;  %v8883_v29 = vld [vmem:[%s15620_s4 + $0x1f8] sm:$0xff]  ;;  %v4223_v16 = vld [vmem:[#allocation2 + $0x8] sm:$0xff]  ;;  %v4439_v44 = vld [vmem:[#allocation2 + $0xb0] sm:$0xff] }
 0x4e8   :  { %4300 = vmatprep.subr.mxu0 %v15865_v36  ;;  %4467 = vmatprep.subr.mxu1 %v15865_v36 }
 0x4e9   :  { %4301 = vmatpush1.msra.mxu0 %v4233_v20  ;;  %4468 = vmatpush1.msra.mxu1 %v4449_v53  ;;  %v3833_v20 = vld [vmem:[%s15620_s4 + $0xf0] sm:$0xff] }
 0x4ea   :  { %3930 = vmatmul.mubr.f32.gmra.mxu0 %v3813_v39  ;;  %4124 = vmatmul.mubr.f32.gmra.mxu1 %v8862_v55  ;;  %v8882_v53 = vld [vmem:[%s15620_s4 + $0x1f0] sm:$0xff]  ;;  %v4222_v39 = vld [vmem:[#allocation2] sm:$0xff]  ;;  %v4438_v55 = vld [vmem:[#allocation2 + $0xa8] sm:$0xff] }
 0x4eb   :  { %3935 = vmatprep.mubr.f32.mxu0 %v3816_v38  ;;  %4129 = vmatprep.mubr.f32.mxu1 %v8865_v42  ;;  %v4242_v38 = vld [vmem:[#allocation2 + $0xa0] sm:$0xff]  ;;  %v4458_v42 = vld [vmem:[#allocation2 + $0x148] sm:$0xff] }
 0x4ec   :  { %4302 = vmatprep.subr.mxu0 %v15865_v36  ;;  %4469 = vmatprep.subr.mxu1 %v15865_v36 }
 0x4ed   :  { %4303 = vmatpush1.msra.mxu0 %v4232_v31  ;;  %4470 = vmatpush1.msra.mxu1 %v4448_v62  ;;  %v4241_v31 = vld [vmem:[#allocation2 + $0x98] sm:$0xff]  ;;  %v4457_v62 = vld [vmem:[#allocation2 + $0x140] sm:$0xff] }
 0x4ee   :  { %3936 = vmatmul.mubr.f32.gmra.mxu0 %v3815_v5  ;;  %4130 = vmatmul.mubr.f32.gmra.mxu1 %v8864_v45  ;;  %v4240_v5 = vld [vmem:[#allocation2 + $0x90] sm:$0xff]  ;;  %v4456_v45 = vld [vmem:[#allocation2 + $0x138] sm:$0xff] }
 0x4ef   :  { %3941 = vmatprep.mubr.f32.mxu0 %v3818_v37  ;;  %4135 = vmatprep.mubr.f32.mxu1 %v8867_v1  ;;  %v4239_v37 = vld [vmem:[#allocation2 + $0x88] sm:$0xff]  ;;  %v4455_v1 = vld [vmem:[#allocation2 + $0x130] sm:$0xff] }
 0x4f0   :  { %4304 = vmatprep.subr.mxu0 %v15865_v36  ;;  %4471 = vmatprep.subr.mxu1 %v15865_v36 }
 0x4f1   :  { %4305 = vmatpush1.msra.mxu0 %v4231_v24  ;;  %4472 = vmatpush1.msra.mxu1 %v4447_v33  ;;  %v4238_v24 = vld [vmem:[#allocation2 + $0x80] sm:$0xff]  ;;  %v4454_v33 = vld [vmem:[#allocation2 + $0x128] sm:$0xff] }
 0x4f2   :  { %3942 = vmatmul.mubr.f32.gmra.mxu0 %v3817_v17  ;;  %4136 = vmatmul.mubr.f32.gmra.mxu1 %v8866_v11 }
 0x4f3   :  { %3947 = vmatprep.mubr.f32.mxu0 %v3820_v61  ;;  %4141 = vmatprep.mubr.f32.mxu1 %v8869_v63 }
 0x4f4   :  { %4306 = vmatprep.subr.mxu0 %v15865_v36  ;;  %4473 = vmatprep.subr.mxu1 %v15865_v36 }
 0x4f5   :  { %4307 = vmatpush1.msra.mxu0 %v4230_v46  ;;  %4474 = vmatpush1.msra.mxu1 %v4446_v30 }
 0x4f6   :  { %3948 = vmatmul.mubr.f32.gmra.mxu0 %v3819_v9  ;;  %4142 = vmatmul.mubr.f32.gmra.mxu1 %v8868_v8 }
 0x4f7   :  { %3953 = vmatprep.mubr.f32.mxu0 %v3822_v10  ;;  %4147 = vmatprep.mubr.f32.mxu1 %v8871_v25 }
 0x4f8   :  { %4308 = vmatprep.subr.mxu0 %v15865_v36  ;;  %4475 = vmatprep.subr.mxu1 %v15865_v36 }
 0x4f9   :  { %4309 = vmatpush1.msra.mxu0 %v4229_v56  ;;  %4476 = vmatpush1.msra.mxu1 %v4445_v49 }
 0x4fa   :  { %3954 = vmatmul.mubr.f32.gmra.mxu0 %v3821_v48  ;;  %4148 = vmatmul.mubr.f32.gmra.mxu1 %v8870_v14 }
 0x4fb   :  { %3959 = vmatprep.mubr.f32.mxu0 %v3824_v3  ;;  %4153 = vmatprep.mubr.f32.mxu1 %v8873_v58 }
 0x4fc   :  { %4310 = vmatprep.subr.mxu0 %v15865_v36  ;;  %4477 = vmatprep.subr.mxu1 %v15865_v36 }
 0x4fd   :  { %4311 = vmatpush1.msra.mxu0 %v4228_v7  ;;  %4478 = vmatpush1.msra.mxu1 %v4444_v4 }
 0x4fe   :  { %3960 = vmatmul.mubr.f32.gmra.mxu0 %v3823_v34  ;;  %4154 = vmatmul.mubr.f32.gmra.mxu1 %v8872_v60 }
 0x4ff   :  { %3965 = vmatprep.mubr.f32.mxu0 %v3826_v12  ;;  %4159 = vmatprep.mubr.f32.mxu1 %v8875_v47 }
 0x500   :  { %4312 = vmatprep.subr.mxu0 %v15865_v36  ;;  %4479 = vmatprep.subr.mxu1 %v15865_v36 }
 0x501   :  { %4313 = vmatpush1.msra.mxu0 %v4227_v27  ;;  %4480 = vmatpush1.msra.mxu1 %v4443_v52 }
 0x502   :  { %3966 = vmatmul.mubr.f32.gmra.mxu0 %v3825_v50  ;;  %4160 = vmatmul.mubr.f32.gmra.mxu1 %v8874_v40 }
 0x503   :  { %3971 = vmatprep.mubr.f32.mxu0 %v3828_v18  ;;  %4165 = vmatprep.mubr.f32.mxu1 %v8877_v32 }
 0x504   :  { %4314 = vmatprep.subr.mxu0 %v15865_v36  ;;  %4481 = vmatprep.subr.mxu1 %v15865_v36 }
 0x505   :  { %4315 = vmatpush1.msra.mxu0 %v4226_v51  ;;  %4482 = vmatpush1.msra.mxu1 %v4442_v21 }
 0x506   :  { %3972 = vmatmul.mubr.f32.gmra.mxu0 %v3827_v41  ;;  %4166 = vmatmul.mubr.f32.gmra.mxu1 %v8876_v19 }
 0x507   :  { %3977 = vmatprep.mubr.f32.mxu0 %v3830_v57  ;;  %4171 = vmatprep.mubr.f32.mxu1 %v8879_v2 }
 0x508   :  { %4316 = vmatprep.subr.mxu0 %v15865_v36  ;;  %4483 = vmatprep.subr.mxu1 %v15865_v36 }
 0x509   :  { %4317 = vmatpush1.msra.mxu0 %v4225_v26  ;;  %4484 = vmatpush1.msra.mxu1 %v4441_v43 }
 0x50a   :  { %3978 = vmatmul.mubr.f32.gmra.mxu0 %v3829_v6  ;;  %4172 = vmatmul.mubr.f32.gmra.mxu1 %v8878_v54 }
 0x50b   :  { %3983 = vmatprep.mubr.f32.mxu0 %v3832_v22  ;;  %4177 = vmatprep.mubr.f32.mxu1 %v8881_v0 }
 0x50c   :  { %4318 = vmatprep.subr.mxu0 %v15865_v36  ;;  %4485 = vmatprep.subr.mxu1 %v15865_v36 }
 0x50d   :  { %4319 = vmatpush1.msra.mxu0 %v4224_v35  ;;  %4486 = vmatpush1.msra.mxu1 %v4440_v28 }
 0x50e   :  { %3984 = vmatmul.mubr.f32.gmra.mxu0 %v3831_v59  ;;  %4178 = vmatmul.mubr.f32.gmra.mxu1 %v8880_v23 }
 0x50f   :  { %3989 = vmatprep.mubr.f32.mxu0 %v3834_v13  ;;  %4183 = vmatprep.mubr.f32.mxu1 %v8883_v29 }
 0x510   :  { %4320 = vmatprep.subr.mxu0 %v15865_v36  ;;  %4487 = vmatprep.subr.mxu1 %v15865_v36 }
 0x511   :  { %4321 = vmatpush1.msra.mxu0 %v4223_v16  ;;  %4488 = vmatpush1.msra.mxu1 %v4439_v44 }
 0x512   :  { %3990 = vmatmul.mubr.f32.gmra.mxu0 %v3833_v20  ;;  %4184 = vmatmul.mubr.f32.gmra.mxu1 %v8882_v53 }
 0x513   :  { %4322 = vmatprep.subr.mxu0 %v15865_v36  ;;  %4489 = vmatprep.subr.mxu1 %v15865_v36 }
 0x514   :  { %4323 = vmatpush1.msra.mxu0 %v4222_v39  ;;  %4490 = vmatpush1.msra.mxu1 %v4438_v55 }
 0x515   :  { %4346 = vmatprep.subr.mxu0 %v15865_v36  ;;  %4513 = vmatprep.subr.mxu1 %v15865_v36 }
 0x516   :  { %4347 = vmatpush2.msra.mxu0 %v4242_v38  ;;  %4514 = vmatpush2.msra.mxu1 %v4458_v42 }
 0x517   :  { %4348 = vmatprep.subr.mxu0 %v15865_v36  ;;  %4515 = vmatprep.subr.mxu1 %v15865_v36 }
 0x518   :  { %4349 = vmatpush2.msra.mxu0 %v4241_v31  ;;  %4516 = vmatpush2.msra.mxu1 %v4457_v62 }
 0x519   :  { %4350 = vmatprep.subr.mxu0 %v15865_v36  ;;  %4517 = vmatprep.subr.mxu1 %v15865_v36 }
 0x51a   :  { %4351 = vmatpush2.msra.mxu0 %v4240_v5  ;;  %4518 = vmatpush2.msra.mxu1 %v4456_v45 }
 0x51b   :  { %4352 = vmatprep.subr.mxu0 %v15865_v36  ;;  %4519 = vmatprep.subr.mxu1 %v15865_v36 }
 0x51c   :  { %4353 = vmatpush2.msra.mxu0 %v4239_v37  ;;  %4520 = vmatpush2.msra.mxu1 %v4455_v1 }
 0x51d   :  { %4354 = vmatprep.subr.mxu0 %v15865_v36  ;;  %4521 = vmatprep.subr.mxu1 %v15865_v36 }
 0x51e   :  { %4355 = vmatpush2.msra.mxu0 %v4238_v24  ;;  %4522 = vmatpush2.msra.mxu1 %v4454_v33 }
 0x596   :  { %v3901_v17 = vpop.f32.mrf.mxu0  ;;  %v4095_v11 = vpop.f32.mrf.mxu1 }
 0x597   :  { %v4190_v30 = vmax.f32 %v3901_v17, %v4095_v11 }
 0x598   :  { %v3903_v61 = vpop.f32.mrf.mxu0  ;;  %v4097_v63 = vpop.f32.mrf.mxu1 }
 0x599   :  { %v4191_v46 = vmax.f32 %v3903_v61, %v4097_v63 }
 0x59a   :  { %v3907_v9 = vpop.f32.mrf.mxu0  ;;  %v4101_v8 = vpop.f32.mrf.mxu1 }
 0x59b   :  { %8884 = vmatprep.mubr.msk.f32.mxu0 %vm4243_vm1, %v4191_v46  ;;  %8900 = vmatprep.mubr.msk.f32.mxu1 %vm4243_vm1, %v4191_v46  ;;  %v4192_v49 = vmax.f32 %v3907_v9, %v4101_v8 }
 0x59c   :  { %v3909_v10 = vpop.f32.mrf.mxu0  ;;  %v4103_v25 = vpop.f32.mrf.mxu1  ;;  %4357 = vmatmul.mubr.f32.vlgmr.msra.gmra.mxu0 %v4190_v30  ;;  %4524 = vmatmul.mubr.f32.vlgmr.msra.gmra.mxu1 %v4190_v30 }
 0x59d   :  { %v4193_v56 = vmax.f32 %v3909_v10, %v4103_v25 }
 0x59e   :  { %v3913_v48 = vpop.f32.mrf.mxu0  ;;  %v4107_v14 = vpop.f32.mrf.mxu1 }
 0x59f   :  { %8885 = vmatprep.mubr.msk.f32.mxu0 %vm4243_vm1, %v4193_v56  ;;  %8901 = vmatprep.mubr.msk.f32.mxu1 %vm4243_vm1, %v4193_v56  ;;  %v4194_v4 = vmax.f32 %v3913_v48, %v4107_v14 }
 0x5a0   :  { %v3915_v3 = vpop.f32.mrf.mxu0  ;;  %v4109_v58 = vpop.f32.mrf.mxu1  ;;  %4362 = vmatmul.mubr.f32.gmra.mxu0 %v4192_v49  ;;  %4529 = vmatmul.mubr.f32.gmra.mxu1 %v4192_v49 }
 0x5a1   :  { %v4195_v7 = vmax.f32 %v3915_v3, %v4109_v58 }
 0x5a2   :  { %v3919_v34 = vpop.f32.mrf.mxu0  ;;  %v4113_v60 = vpop.f32.mrf.mxu1 }
 0x5a3   :  { %8886 = vmatprep.mubr.msk.f32.mxu0 %vm4243_vm1, %v4195_v7  ;;  %8902 = vmatprep.mubr.msk.f32.mxu1 %vm4243_vm1, %v4195_v7  ;;  %v4196_v52 = vmax.f32 %v3919_v34, %v4113_v60 }
 0x5a4   :  { %v3921_v12 = vpop.f32.mrf.mxu0  ;;  %v4115_v47 = vpop.f32.mrf.mxu1  ;;  %4367 = vmatmul.mubr.f32.gmra.mxu0 %v4194_v4  ;;  %4534 = vmatmul.mubr.f32.gmra.mxu1 %v4194_v4 }
 0x5a5   :  { %v4197_v27 = vmax.f32 %v3921_v12, %v4115_v47 }
 0x5a6   :  { %v3925_v50 = vpop.f32.mrf.mxu0  ;;  %v4119_v40 = vpop.f32.mrf.mxu1 }
 0x5a7   :  { %8887 = vmatprep.mubr.msk.f32.mxu0 %vm4243_vm1, %v4197_v27  ;;  %8903 = vmatprep.mubr.msk.f32.mxu1 %vm4243_vm1, %v4197_v27  ;;  %v4198_v21 = vmax.f32 %v3925_v50, %v4119_v40 }
 0x5a8   :  { %v3927_v18 = vpop.f32.mrf.mxu0  ;;  %v4121_v32 = vpop.f32.mrf.mxu1  ;;  %4372 = vmatmul.mubr.f32.gmra.mxu0 %v4196_v52  ;;  %4539 = vmatmul.mubr.f32.gmra.mxu1 %v4196_v52 }
 0x5a9   :  { %v4199_v51 = vmax.f32 %v3927_v18, %v4121_v32 }
 0x5aa   :  { %v3931_v41 = vpop.f32.mrf.mxu0  ;;  %v4125_v19 = vpop.f32.mrf.mxu1 }
 0x5ab   :  { %8888 = vmatprep.mubr.msk.f32.mxu0 %vm4243_vm1, %v4199_v51  ;;  %8904 = vmatprep.mubr.msk.f32.mxu1 %vm4243_vm1, %v4199_v51  ;;  %v4200_v43 = vmax.f32 %v3931_v41, %v4125_v19 }
 0x5ac   :  { %v3933_v57 = vpop.f32.mrf.mxu0  ;;  %v4127_v2 = vpop.f32.mrf.mxu1  ;;  %4377 = vmatmul.mubr.f32.gmra.mxu0 %v4198_v21  ;;  %4544 = vmatmul.mubr.f32.gmra.mxu1 %v4198_v21 }
 0x5ad   :  { %v4201_v26 = vmax.f32 %v3933_v57, %v4127_v2 }
 0x5ae   :  { %v3937_v6 = vpop.f32.mrf.mxu0  ;;  %v4131_v54 = vpop.f32.mrf.mxu1 }
 0x5af   :  { %8889 = vmatprep.mubr.msk.f32.mxu0 %vm4243_vm1, %v4201_v26  ;;  %8905 = vmatprep.mubr.msk.f32.mxu1 %vm4243_vm1, %v4201_v26  ;;  %v4202_v28 = vmax.f32 %v3937_v6, %v4131_v54  ;;  %v4620_v26 = vld [vmem:[%s15622_s6] sm:$0xff] }
 0x5b0   :  { %v3939_v22 = vpop.f32.mrf.mxu0  ;;  %v4133_v0 = vpop.f32.mrf.mxu1  ;;  %4382 = vmatmul.mubr.f32.gmra.mxu0 %v4200_v43  ;;  %4549 = vmatmul.mubr.f32.gmra.mxu1 %v4200_v43  ;;  %v8916_v43 = vld [vmem:[%s15622_s6 + $0x80] sm:$0xff] }
 0x5b1   :  { %v4203_v35 = vmax.f32 %v3939_v22, %v4133_v0 }
 0x5b2   :  { %v3943_v59 = vpop.f32.mrf.mxu0  ;;  %v4137_v23 = vpop.f32.mrf.mxu1 }
 0x5b3   :  { %8890 = vmatprep.mubr.msk.f32.mxu0 %vm4243_vm1, %v4203_v35  ;;  %8906 = vmatprep.mubr.msk.f32.mxu1 %vm4243_vm1, %v4203_v35  ;;  %v4204_v44 = vmax.f32 %v3943_v59, %v4137_v23 }
 0x5b4   :  { %v3945_v13 = vpop.f32.mrf.mxu0  ;;  %v4139_v29 = vpop.f32.mrf.mxu1  ;;  %4387 = vmatmul.mubr.f32.gmra.mxu0 %v4202_v28  ;;  %4554 = vmatmul.mubr.f32.gmra.mxu1 %v4202_v28 }
 0x5b5   :  { %v4205_v16 = vmax.f32 %v3945_v13, %v4139_v29 }
 0x5b6   :  { %v3949_v20 = vpop.f32.mrf.mxu0  ;;  %v4143_v53 = vpop.f32.mrf.mxu1 }
 0x5b7   :  { %8891 = vmatprep.mubr.msk.f32.mxu0 %vm4243_vm1, %v4205_v16  ;;  %8907 = vmatprep.mubr.msk.f32.mxu1 %vm4243_vm1, %v4205_v16  ;;  %v4206_v42 = vmax.f32 %v3949_v20, %v4143_v53 }
 0x5b8   :  { %v3951_v39 = vpop.f32.mrf.mxu0  ;;  %v4145_v55 = vpop.f32.mrf.mxu1  ;;  %4392 = vmatmul.mubr.f32.gmra.mxu0 %v4204_v44  ;;  %4559 = vmatmul.mubr.f32.gmra.mxu1 %v4204_v44 }
 0x5b9   :  { %v4207_v38 = vmax.f32 %v3951_v39, %v4145_v55 }
 0x5ba   :  { %v3955_v31 = vpop.f32.mrf.mxu0  ;;  %v4149_v62 = vpop.f32.mrf.mxu1 }
 0x5bb   :  { %8892 = vmatprep.mubr.msk.f32.mxu0 %vm4243_vm1, %v4207_v38  ;;  %8908 = vmatprep.mubr.msk.f32.mxu1 %vm4243_vm1, %v4207_v38  ;;  %v4208_v1 = vmax.f32 %v3955_v31, %v4149_v62 }
 0x5bc   :  { %v3957_v5 = vpop.f32.mrf.mxu0  ;;  %v4151_v45 = vpop.f32.mrf.mxu1  ;;  %4397 = vmatmul.mubr.f32.gmra.mxu0 %v4206_v42  ;;  %4564 = vmatmul.mubr.f32.gmra.mxu1 %v4206_v42 }
 0x5bd   :  { %v4209_v37 = vmax.f32 %v3957_v5, %v4151_v45 }
 0x5be   :  { %v3961_v24 = vpop.f32.mrf.mxu0  ;;  %v4155_v33 = vpop.f32.mrf.mxu1 }
 0x5bf   :  { %8893 = vmatprep.mubr.msk.f32.mxu0 %vm4243_vm1, %v4209_v37  ;;  %8909 = vmatprep.mubr.msk.f32.mxu1 %vm4243_vm1, %v4209_v37  ;;  %v4210_v63 = vmax.f32 %v3961_v24, %v4155_v33 }
 0x5c0   :  { %v3963_v17 = vpop.f32.mrf.mxu0  ;;  %v4157_v11 = vpop.f32.mrf.mxu1  ;;  %4402 = vmatmul.mubr.f32.gmra.mxu0 %v4208_v1  ;;  %4569 = vmatmul.mubr.f32.gmra.mxu1 %v4208_v1 }
 0x5c1   :  { %v4211_v61 = vmax.f32 %v3963_v17, %v4157_v11 }
 0x5c2   :  { %v3967_v46 = vpop.f32.mrf.mxu0  ;;  %v4161_v30 = vpop.f32.mrf.mxu1 }
 0x5c3   :  { %8894 = vmatprep.mubr.msk.f32.mxu0 %vm4243_vm1, %v4211_v61  ;;  %8910 = vmatprep.mubr.msk.f32.mxu1 %vm4243_vm1, %v4211_v61  ;;  %v4212_v25 = vmax.f32 %v3967_v46, %v4161_v30 }
 0x5c4   :  { %v3969_v9 = vpop.f32.mrf.mxu0  ;;  %v4163_v8 = vpop.f32.mrf.mxu1  ;;  %4407 = vmatmul.mubr.f32.gmra.mxu0 %v4210_v63  ;;  %4574 = vmatmul.mubr.f32.gmra.mxu1 %v4210_v63 }
 0x5c5   :  { %v4213_v10 = vmax.f32 %v3969_v9, %v4163_v8 }
 0x5c6   :  { %v3973_v56 = vpop.f32.mrf.mxu0  ;;  %v4167_v49 = vpop.f32.mrf.mxu1 }
 0x5c7   :  { %8895 = vmatprep.mubr.msk.f32.mxu0 %vm4243_vm1, %v4213_v10  ;;  %8911 = vmatprep.mubr.msk.f32.mxu1 %vm4243_vm1, %v4213_v10  ;;  %v4214_v58 = vmax.f32 %v3973_v56, %v4167_v49 }
 0x5c8   :  { %v3975_v48 = vpop.f32.mrf.mxu0  ;;  %v4169_v14 = vpop.f32.mrf.mxu1  ;;  %4412 = vmatmul.mubr.f32.gmra.mxu0 %v4212_v25  ;;  %4579 = vmatmul.mubr.f32.gmra.mxu1 %v4212_v25 }
 0x5c9   :  { %v4215_v3 = vmax.f32 %v3975_v48, %v4169_v14 }
 0x5ca   :  { %v3979_v7 = vpop.f32.mrf.mxu0  ;;  %v4173_v4 = vpop.f32.mrf.mxu1 }
 0x5cb   :  { %8896 = vmatprep.mubr.msk.f32.mxu0 %vm4243_vm1, %v4215_v3  ;;  %8912 = vmatprep.mubr.msk.f32.mxu1 %vm4243_vm1, %v4215_v3  ;;  %v4216_v47 = vmax.f32 %v3979_v7, %v4173_v4 }
 0x5cc   :  { %v3981_v34 = vpop.f32.mrf.mxu0  ;;  %v4175_v60 = vpop.f32.mrf.mxu1  ;;  %4417 = vmatmul.mubr.f32.gmra.mxu0 %v4214_v58  ;;  %4584 = vmatmul.mubr.f32.gmra.mxu1 %v4214_v58 }
 0x5cd   :  { %v4217_v12 = vmax.f32 %v3981_v34, %v4175_v60 }
 0x5ce   :  { %v3985_v27 = vpop.f32.mrf.mxu0  ;;  %v4179_v52 = vpop.f32.mrf.mxu1 }
 0x5cf   :  { %8897 = vmatprep.mubr.msk.f32.mxu0 %vm4243_vm1, %v4217_v12  ;;  %8913 = vmatprep.mubr.msk.f32.mxu1 %vm4243_vm1, %v4217_v12  ;;  %v4218_v32 = vmax.f32 %v3985_v27, %v4179_v52 }
 0x5d0   :  { %v3987_v50 = vpop.f32.mrf.mxu0  ;;  %v4181_v40 = vpop.f32.mrf.mxu1  ;;  %4422 = vmatmul.mubr.f32.gmra.mxu0 %v4216_v47  ;;  %4589 = vmatmul.mubr.f32.gmra.mxu1 %v4216_v47 }
 0x5d1   :  { %v4219_v18 = vmax.f32 %v3987_v50, %v4181_v40 }
 0x5d2   :  { %v3991_v51 = vpop.f32.mrf.mxu0  ;;  %v4185_v21 = vpop.f32.mrf.mxu1 }
 0x5d3   :  { %8898 = vmatprep.mubr.msk.f32.mxu0 %vm4243_vm1, %v4219_v18  ;;  %8914 = vmatprep.mubr.msk.f32.mxu1 %vm4243_vm1, %v4219_v18  ;;  %v4220_v2 = vmax.f32 %v3991_v51, %v4185_v21 }
 0x5d4   :  { %v3993_v41 = vpop.f32.mrf.mxu0  ;;  %v4187_v19 = vpop.f32.mrf.mxu1  ;;  %4427 = vmatmul.mubr.f32.gmra.mxu0 %v4218_v32  ;;  %4594 = vmatmul.mubr.f32.gmra.mxu1 %v4218_v32 }
 0x5d5   :  { %v4221_v57 = vmax.f32 %v3993_v41, %v4187_v19 }
 0x5d7   :  { %8899 = vmatprep.mubr.msk.f32.mxu0 %vm4243_vm1, %v4221_v57  ;;  %8915 = vmatprep.mubr.msk.f32.mxu1 %vm4243_vm1, %v4221_v57 }
 0x5d8   :  { %4432 = vmatmul.mubr.f32.gmra.mxu0 %v4220_v2  ;;  %4599 = vmatmul.mubr.f32.gmra.mxu1 %v4220_v2 }
 0x5d9   :  { %9522 = vmatprep.mubr.f32.mxu0 %v4620_v26  ;;  %9578 = vmatprep.mubr.f32.mxu1 %v8916_v43 }
 0x65c   :  { %v4358_v6 = vpop.f32.mrf.mxu0  ;;  %v4525_v54 = vpop.f32.mrf.mxu1 }
 0x65d   :  { %v13634_v22 = vmax.f32 %v4358_v6, %v4525_v54 }
 0x65e   :  { %v4360_v0 = vpop.f32.mrf.mxu0  ;;  %v4527_v35 = vpop.f32.mrf.mxu1 }
 0x660   :  { %v4363_v28 = vpop.f32.mrf.mxu0  ;;  %v4530_v59 = vpop.f32.mrf.mxu1 }
 0x661   :  { %v13636_v23 = vmax.f32 %v4363_v28, %v4530_v59 }
 0x662   :  { %v4365_v13 = vpop.f32.mrf.mxu0  ;;  %v4532_v29 = vpop.f32.mrf.mxu1 }
 0x664   :  { %v4368_v16 = vpop.f32.mrf.mxu0  ;;  %v4535_v44 = vpop.f32.mrf.mxu1 }
 0x665   :  { %v13638_v20 = vmax.f32 %v4368_v16, %v4535_v44 }
 0x666   :  { %v4370_v53 = vpop.f32.mrf.mxu0  ;;  %v4537_v39 = vpop.f32.mrf.mxu1 }
 0x668   :  { %v4373_v55 = vpop.f32.mrf.mxu0  ;;  %v4540_v38 = vpop.f32.mrf.mxu1 }
 0x669   :  { %v13640_v42 = vmax.f32 %v4373_v55, %v4540_v38 }
 0x66a   :  { %v4375_v31 = vpop.f32.mrf.mxu0  ;;  %v4542_v62 = vpop.f32.mrf.mxu1 }
 0x66c   :  { %v4378_v5 = vpop.f32.mrf.mxu0  ;;  %v4545_v45 = vpop.f32.mrf.mxu1 }
 0x66d   :  { %v13642_v37 = vmax.f32 %v4378_v5, %v4545_v45 }
 0x66e   :  { %v4380_v1 = vpop.f32.mrf.mxu0  ;;  %v4547_v24 = vpop.f32.mrf.mxu1 }
 0x66f   :  { %v4621_v1 = vld [vmem:[%s15622_s6 + $0x8] sm:$0xff] }
 0x670   :  { %v13644_v33 = vpop.f32.mrf.mxu0  ;;  %v13646_v17 = vpop.f32.mrf.mxu1  ;;  %v8917_v24 = vld [vmem:[%s15622_s6 + $0x88] sm:$0xff] }
 0x671   :  { %v13721_v45 = vmax.f32 %v13644_v33, %v13646_v17  ;;  %v8953_v33 = vld [vmem:[%s15623_s7 + $0x158] sm:$0xf]  ;;  %v8918_v17 = vld [vmem:[%s15622_s6 + $0x90] sm:$0xff] }
 0x672   :  { %v4385_v11 = vpop.f32.mrf.mxu0  ;;  %v4552_v61 = vpop.f32.mrf.mxu1 }
 0x673   :  { %v8952_v11 = vld [vmem:[%s15623_s7 + $0x150] sm:$0xf] }
 0x674   :  { %v13648_v63 = vpop.f32.mrf.mxu0  ;;  %v13650_v46 = vpop.f32.mrf.mxu1  ;;  %v4622_v61 = vld [vmem:[%s15622_s6 + $0x10] sm:$0xff] }
 0x675   :  { %v13713_v5 = vmax.f32 %v13648_v63, %v13650_v46  ;;  %v8951_v63 = vld [vmem:[%s15623_s7 + $0x148] sm:$0xff] }
 0x676   :  { %v4390_v30 = vpop.f32.mrf.mxu0  ;;  %v4557_v9 = vpop.f32.mrf.mxu1  ;;  %v4802_v46 = vld [vmem:[%s15623_s7 + $0xa8] sm:$0xf] }
 0x677   :  { %v8950_v30 = vld [vmem:[%s15623_s7 + $0x140] sm:$0xff]  ;;  %v8919_v9 = vld [vmem:[%s15622_s6 + $0x98] sm:$0xff] }
 0x678   :  { %v13652_v8 = vpop.f32.mrf.mxu0  ;;  %v13654_v10 = vpop.f32.mrf.mxu1 }
 0x679   :  { %v13705_v62 = vmax.f32 %v13652_v8, %v13654_v10  ;;  %v8949_v8 = vld [vmem:[%s15623_s7 + $0x138] sm:$0xff] }
 0x67a   :  { %v4395_v25 = vpop.f32.mrf.mxu0  ;;  %v4562_v56 = vpop.f32.mrf.mxu1  ;;  %v4623_v10 = vld [vmem:[%s15622_s6 + $0x18] sm:$0xff] }
 0x67b   :  { %v8948_v25 = vld [vmem:[%s15623_s7 + $0x130] sm:$0xff]  ;;  %v8920_v56 = vld [vmem:[%s15622_s6 + $0xa0] sm:$0xff] }
 0x67c   :  { %v13656_v49 = vpop.f32.mrf.mxu0  ;;  %v4565_v48 = vpop.f32.mrf.mxu1 }
 0x67d   :  { %v13697_v31 = vmax.f32 %v13656_v49, %v4565_v48  ;;  %v8947_v49 = vld [vmem:[%s15623_s7 + $0x128] sm:$0xff]  ;;  %v4624_v48 = vld [vmem:[%s15622_s6 + $0x20] sm:$0xff] }
 0x67e   :  { %v4400_v14 = vpop.f32.mrf.mxu0  ;;  %v4567_v3 = vpop.f32.mrf.mxu1 }
 0x67f   :  { %v8946_v14 = vld [vmem:[%s15623_s7 + $0x120] sm:$0xff]  ;;  %v8921_v3 = vld [vmem:[%s15622_s6 + $0xa8] sm:$0xff] }
 0x680   :  { %v4403_v58 = vpop.f32.mrf.mxu0  ;;  %v4570_v7 = vpop.f32.mrf.mxu1 }
 0x681   :  { %v13690_v38 = vmax.f32 %v4403_v58, %v4570_v7  ;;  %v8945_v58 = vld [vmem:[%s15623_s7 + $0x118] sm:$0xff]  ;;  %v4625_v7 = vld [vmem:[%s15622_s6 + $0x28] sm:$0xff] }
 0x682   :  { %v4405_v4 = vpop.f32.mrf.mxu0  ;;  %v4572_v34 = vpop.f32.mrf.mxu1 }
 0x683   :  { %v8944_v4 = vld [vmem:[%s15623_s7 + $0x110] sm:$0xff] }
 0x684   :  { %v4408_v60 = vpop.f32.mrf.mxu0  ;;  %v4575_v12 = vpop.f32.mrf.mxu1  ;;  %v8922_v34 = vld [vmem:[%s15622_s6 + $0xb0] sm:$0xff] }
 0x685   :  { %v13684_v55 = vmax.f32 %v4408_v60, %v4575_v12  ;;  %v8943_v60 = vld [vmem:[%s15623_s7 + $0x108] sm:$0xff]  ;;  %v4626_v12 = vld [vmem:[%s15622_s6 + $0x30] sm:$0xff] }
 0x686   :  { %v4410_v47 = vpop.f32.mrf.mxu0  ;;  %v4577_v27 = vpop.f32.mrf.mxu1 }
 0x687   :  { %v8942_v47 = vld [vmem:[%s15623_s7 + $0x100] sm:$0xff]  ;;  %v8923_v27 = vld [vmem:[%s15622_s6 + $0xb8] sm:$0xff] }
 0x688   :  { %v4413_v52 = vpop.f32.mrf.mxu0  ;;  %v4580_v50 = vpop.f32.mrf.mxu1 }
 0x689   :  { %v13678_v39 = vmax.f32 %v4413_v52, %v4580_v50  ;;  %v8941_v52 = vld [vmem:[%s15623_s7 + $0xf8] sm:$0xff] }
 0x68a   :  { %v4415_v40 = vpop.f32.mrf.mxu0  ;;  %v4582_v18 = vpop.f32.mrf.mxu1  ;;  %v4627_v50 = vld [vmem:[%s15622_s6 + $0x38] sm:$0xff] }
 0x68b   :  { %v8940_v40 = vld [vmem:[%s15623_s7 + $0xf0] sm:$0xff]  ;;  %v8924_v18 = vld [vmem:[%s15622_s6 + $0xc0] sm:$0xff] }
 0x68c   :  { %v4418_v32 = vpop.f32.mrf.mxu0  ;;  %v4585_v51 = vpop.f32.mrf.mxu1 }
 0x68d   :  { %v13672_v53 = vmax.f32 %v4418_v32, %v4585_v51  ;;  %v8939_v32 = vld [vmem:[%s15623_s7 + $0xe8] sm:$0xff]  ;;  %v4628_v51 = vld [vmem:[%s15622_s6 + $0x40] sm:$0xff] }
 0x68e   :  { %v4420_v21 = vpop.f32.mrf.mxu0  ;;  %v4587_v41 = vpop.f32.mrf.mxu1 }
 0x68f   :  { %v8938_v21 = vld [vmem:[%s15623_s7 + $0xe0] sm:$0xff]  ;;  %v8925_v41 = vld [vmem:[%s15622_s6 + $0xc8] sm:$0xff] }
 0x690   :  { %v4423_v19 = vpop.f32.mrf.mxu0  ;;  %v4590_v57 = vpop.f32.mrf.mxu1 }
 0x691   :  { %v13666_v44 = vmax.f32 %v4423_v19, %v4590_v57  ;;  %v8937_v19 = vld [vmem:[%s15623_s7 + $0xd8] sm:$0xff]  ;;  %v4629_v57 = vld [vmem:[%s15622_s6 + $0x48] sm:$0xff] }
 0x692   :  { %v4425_v2 = vpop.f32.mrf.mxu0  ;;  %v4592_v26 = vpop.f32.mrf.mxu1 }
 0x693   :  { %v8936_v2 = vld [vmem:[%s15623_s7 + $0xd0] sm:$0xff] }
 0x694   :  { %v4428_v43 = vpop.f32.mrf.mxu0  ;;  %v4595_v6 = vpop.f32.mrf.mxu1  ;;  %v8926_v26 = vld [vmem:[%s15622_s6 + $0xd0] sm:$0xff] }
 0x695   :  { %v13660_v16 = vmax.f32 %v4428_v43, %v4595_v6  ;;  %v8935_v43 = vld [vmem:[%s15623_s7 + $0xc8] sm:$0xff]  ;;  %v4630_v6 = vld [vmem:[%s15622_s6 + $0x50] sm:$0xff] }
 0x696   :  { %v4430_v54 = vpop.f32.mrf.mxu0  ;;  %v4597_v0 = vpop.f32.mrf.mxu1 }
 0x697   :  { %v8934_v54 = vld [vmem:[%s15623_s7 + $0xc0] sm:$0xff]  ;;  %v8927_v0 = vld [vmem:[%s15622_s6 + $0xd8] sm:$0xff] }
 0x698   :  { %v4433_v35 = vpop.f32.mrf.mxu0  ;;  %v4600_v28 = vpop.f32.mrf.mxu1 }
 0x699   :  { %v13658_v59 = vmax.f32 %v4433_v35, %v4600_v28  ;;  %v8933_v35 = vld [vmem:[%s15623_s7 + $0xb8] sm:$0xff] }
 0x69a   :  { %v4435_v13 = vpop.f32.mrf.mxu0  ;;  %v4602_v29 = vpop.f32.mrf.mxu1  ;;  %v4631_v28 = vld [vmem:[%s15622_s6 + $0x58] sm:$0xff] }
 0x69b   :  { %9490 = vmatprep.subr.mxu0 %v13658_v59  ;;  %9546 = vmatprep.subr.mxu1 %v13658_v59  ;;  %v8932_v13 = vld [vmem:[%s15623_s7 + $0xb0] sm:$0xff]  ;;  %v8928_v29 = vld [vmem:[%s15622_s6 + $0xe0] sm:$0xff] }
 0x69c   :  { %9491 = vmatpush3.msra.mxu0 %v13658_v59  ;;  %9547 = vmatpush3.msra.mxu1 %v13658_v59 }
 0x69d   :  { %9492 = vmatprep.subr.mxu0 %v13660_v16  ;;  %9548 = vmatprep.subr.mxu1 %v13660_v16 }
 0x69e   :  { %9493 = vmatpush3.msra.mxu0 %v13660_v16  ;;  %9549 = vmatpush3.msra.mxu1 %v13660_v16 }
 0x69f   :  { %9494 = vmatprep.subr.mxu0 %v13666_v44  ;;  %9550 = vmatprep.subr.mxu1 %v13666_v44 }
 0x6a0   :  { %9495 = vmatpush3.msra.mxu0 %v13666_v44  ;;  %9551 = vmatpush3.msra.mxu1 %v13666_v44 }
 0x6a1   :  { %9496 = vmatprep.subr.mxu0 %v13672_v53  ;;  %9552 = vmatprep.subr.mxu1 %v13672_v53 }
 0x6a2   :  { %9497 = vmatpush3.msra.mxu0 %v13672_v53  ;;  %9553 = vmatpush3.msra.mxu1 %v13672_v53 }
 0x6a3   :  { %9498 = vmatprep.subr.mxu0 %v13678_v39  ;;  %9554 = vmatprep.subr.mxu1 %v13678_v39 }
 0x6a4   :  { %9499 = vmatpush3.msra.mxu0 %v13678_v39  ;;  %9555 = vmatpush3.msra.mxu1 %v13678_v39 }
 0x6a5   :  { %9500 = vmatprep.subr.mxu0 %v13684_v55  ;;  %9556 = vmatprep.subr.mxu1 %v13684_v55 }
 0x6a6   :  { %9501 = vmatpush3.msra.mxu0 %v13684_v55  ;;  %9557 = vmatpush3.msra.mxu1 %v13684_v55 }
 0x6a7   :  { %9502 = vmatprep.subr.mxu0 %v13690_v38  ;;  %9558 = vmatprep.subr.mxu1 %v13690_v38 }
 0x6a8   :  { %9503 = vmatpush3.msra.mxu0 %v13690_v38  ;;  %9559 = vmatpush3.msra.mxu1 %v13690_v38 }
 0x6a9   :  { %9504 = vmatprep.subr.mxu0 %v13697_v31  ;;  %9560 = vmatprep.subr.mxu1 %v13697_v31 }
 0x6aa   :  { %9505 = vmatpush3.msra.mxu0 %v13697_v31  ;;  %9561 = vmatpush3.msra.mxu1 %v13697_v31 }
 0x6ab   :  { %9506 = vmatprep.subr.mxu0 %v13705_v62  ;;  %9562 = vmatprep.subr.mxu1 %v13705_v62 }
 0x6ac   :  { %9507 = vmatpush3.msra.mxu0 %v13705_v62  ;;  %9563 = vmatpush3.msra.mxu1 %v13705_v62 }
 0x6ad   :  { %9508 = vmatprep.subr.mxu0 %v13713_v5  ;;  %9564 = vmatprep.subr.mxu1 %v13713_v5 }
 0x6ae   :  { %9509 = vmatpush3.msra.mxu0 %v13713_v5  ;;  %9565 = vmatpush3.msra.mxu1 %v13713_v5 }
 0x6af   :  { %9510 = vmatprep.subr.mxu0 %v13721_v45  ;;  %9566 = vmatprep.subr.mxu1 %v13721_v45 }
 0x6b0   :  { %9511 = vmatpush3.msra.mxu0 %v13721_v45  ;;  %9567 = vmatpush3.msra.mxu1 %v13721_v45 }
 0x6b1   :  { %9512 = vmatprep.subr.mxu0 %v13642_v37  ;;  %9568 = vmatprep.subr.mxu1 %v13642_v37 }
 0x6b2   :  { %9513 = vmatpush3.msra.mxu0 %v13642_v37  ;;  %9569 = vmatpush3.msra.mxu1 %v13642_v37 }
 0x6b3   :  { %9514 = vmatprep.subr.mxu0 %v13640_v42  ;;  %9570 = vmatprep.subr.mxu1 %v13640_v42 }
 0x6b4   :  { %9515 = vmatpush3.msra.mxu0 %v13640_v42  ;;  %9571 = vmatpush3.msra.mxu1 %v13640_v42 }
 0x6b5   :  { %9516 = vmatprep.subr.mxu0 %v13638_v20  ;;  %9572 = vmatprep.subr.mxu1 %v13638_v20 }
 0x6b6   :  { %9517 = vmatpush3.msra.mxu0 %v13638_v20  ;;  %9573 = vmatpush3.msra.mxu1 %v13638_v20 }
 0x6b7   :  { %9518 = vmatprep.subr.mxu0 %v13636_v23  ;;  %9574 = vmatprep.subr.mxu1 %v13636_v23 }
 0x6b8   :  { %9519 = vmatpush3.msra.mxu0 %v13636_v23  ;;  %9575 = vmatpush3.msra.mxu1 %v13636_v23 }
 0x6b9   :  { %9520 = vmatprep.subr.mxu0 %v13634_v22  ;;  %9576 = vmatprep.subr.mxu1 %v13634_v22 }
 0x6ba   :  { %9521 = vmatpush3.msra.mxu0 %v13634_v22  ;;  %9577 = vmatpush3.msra.mxu1 %v13634_v22 }
 0x6bb   :  { %9523 = vmatmul.mubr.f32.vlgmr.msra.gmra.mxu0 %v4621_v1  ;;  %9579 = vmatmul.mubr.f32.vlgmr.msra.gmra.mxu1 %v8917_v24  ;;  %v4632_v1 = vld [vmem:[%s15622_s6 + $0x60] sm:$0xff]  ;;  %v8929_v24 = vld [vmem:[%s15622_s6 + $0xe8] sm:$0xff] }
 0x6bc   :  { %8954 = vmatprep.subr.msk.mxu0 %vm5037_vm2, %v8953_v33  ;;  %9581 = vmatprep.mubr.f32.mxu1 %v8918_v17  ;;  %v4633_v33 = vld [vmem:[%s15622_s6 + $0x68] sm:$0xff]  ;;  %v8930_v17 = vld [vmem:[%s15622_s6 + $0xf0] sm:$0xff] }
 0x6bd   :  { %8955 = vmatpush1.msk.msra.mxu0 %vm5037_vm2, %v8952_v11  ;;  %9525 = vmatprep.mubr.f32.mxu0 %v4622_v61  ;;  %v4634_v11 = vld [vmem:[%s15622_s6 + $0x70] sm:$0xff]  ;;  %v4801_v61 = vld [vmem:[%s15623_s7 + $0xa0] sm:$0xf] }
 0x6be   :  { %5056 = vmatprep.subr.mxu0 %v8951_v63  ;;  %8972 = vmatprep.subr.msk.mxu1 %vm5037_vm2, %v4802_v46  ;;  %v4800_v63 = vld [vmem:[%s15623_s7 + $0x98] sm:$0xff] }
 0x6bf   :  { %5057 = vmatpush1.msra.mxu0 %v8950_v30  ;;  %9582 = vmatmul.mubr.f32.gmra.mxu1 %v8919_v9  ;;  %v8931_v46 = vld [vmem:[%s15622_s6 + $0xf8] sm:$0xff]  ;;  %v4799_v9 = vld [vmem:[%s15623_s7 + $0x90] sm:$0xff] }
 0x6c0   :  { %5058 = vmatprep.subr.mxu0 %v8949_v8  ;;  %9526 = vmatmul.mubr.f32.gmra.mxu0 %v4623_v10  ;;  %v4635_v30 = vld [vmem:[%s15622_s6 + $0x78] sm:$0xff]  ;;  %v4798_v8 = vld [vmem:[%s15623_s7 + $0x88] sm:$0xff]  ;;  %v4797_v10 = vld [vmem:[%s15623_s7 + $0x80] sm:$0xff] }
 0x6c1   :  { %5059 = vmatpush1.msra.mxu0 %v8948_v25  ;;  %9584 = vmatprep.mubr.f32.mxu1 %v8920_v56  ;;  %v4796_v25 = vld [vmem:[%s15623_s7 + $0x78] sm:$0xff]  ;;  %v4795_v56 = vld [vmem:[%s15623_s7 + $0x70] sm:$0xff] }
 0x6c2   :  { %5060 = vmatprep.subr.mxu0 %v8947_v49  ;;  %9528 = vmatprep.mubr.f32.mxu0 %v4624_v48  ;;  %v4794_v49 = vld [vmem:[%s15623_s7 + $0x68] sm:$0xff]  ;;  %v4793_v48 = vld [vmem:[%s15623_s7 + $0x60] sm:$0xff] }
 0x6c3   :  { %5061 = vmatpush1.msra.mxu0 %v8946_v14  ;;  %9585 = vmatmul.mubr.f32.gmra.mxu1 %v8921_v3  ;;  %v4792_v14 = vld [vmem:[%s15623_s7 + $0x58] sm:$0xff]  ;;  %v4791_v3 = vld [vmem:[%s15623_s7 + $0x50] sm:$0xff] }
 0x6c4   :  { %5062 = vmatprep.subr.mxu0 %v8945_v58  ;;  %9529 = vmatmul.mubr.f32.gmra.mxu0 %v4625_v7  ;;  %v4790_v58 = vld [vmem:[%s15623_s7 + $0x48] sm:$0xff]  ;;  %v4789_v7 = vld [vmem:[%s15623_s7 + $0x40] sm:$0xff] }
 0x6c5   :  { %5063 = vmatpush1.msra.mxu0 %v8944_v4  ;;  %9587 = vmatprep.mubr.f32.mxu1 %v8922_v34  ;;  %v4788_v4 = vld [vmem:[%s15623_s7 + $0x38] sm:$0xff]  ;;  %v4787_v34 = vld [vmem:[%s15623_s7 + $0x30] sm:$0xff] }
 0x6c6   :  { %5064 = vmatprep.subr.mxu0 %v8943_v60  ;;  %9531 = vmatprep.mubr.f32.mxu0 %v4626_v12  ;;  %v4786_v60 = vld [vmem:[%s15623_s7 + $0x28] sm:$0xff]  ;;  %v4785_v12 = vld [vmem:[%s15623_s7 + $0x20] sm:$0xff] }
 0x6c7   :  { %5065 = vmatpush1.msra.mxu0 %v8942_v47  ;;  %9588 = vmatmul.mubr.f32.gmra.mxu1 %v8923_v27  ;;  %v4784_v47 = vld [vmem:[%s15623_s7 + $0x18] sm:$0xff]  ;;  %v4783_v27 = vld [vmem:[%s15623_s7 + $0x10] sm:$0xff] }
 0x6c8   :  { %5066 = vmatprep.subr.mxu0 %v8941_v52  ;;  %9532 = vmatmul.mubr.f32.gmra.mxu0 %v4627_v50  ;;  %v4782_v52 = vld [vmem:[%s15623_s7 + $0x8] sm:$0xff]  ;;  %v4781_v50 = vld [vmem:[%s15623_s7] sm:$0xff] }
 0x6c9   :  { %5067 = vmatpush1.msra.mxu0 %v8940_v40  ;;  %9590 = vmatprep.mubr.f32.mxu1 %v8924_v18  ;;  %v9027_v40 = vld [vmem:[%s15623_s7 + $0x208] sm:$0xf] }
 0x6ca   :  { %5068 = vmatprep.subr.mxu0 %v8939_v32  ;;  %9534 = vmatprep.mubr.f32.mxu0 %v4628_v51  ;;  %v9026_v51 = vld [vmem:[%s15623_s7 + $0x200] sm:$0xf] }
 0x6cb   :  { %5069 = vmatpush1.msra.mxu0 %v8938_v21  ;;  %9591 = vmatmul.mubr.f32.gmra.mxu1 %v8925_v41 }
 0x6cc   :  { %5070 = vmatprep.subr.mxu0 %v8937_v19  ;;  %9535 = vmatmul.mubr.f32.gmra.mxu0 %v4629_v57  ;;  %v9025_v19 = vld [vmem:[%s15623_s7 + $0x1f8] sm:$0xff]  ;;  %v9024_v57 = vld [vmem:[%s15623_s7 + $0x1f0] sm:$0xff] }
 0x6cd   :  { %5071 = vmatpush1.msra.mxu0 %v8936_v2  ;;  %9593 = vmatprep.mubr.f32.mxu1 %v8926_v26  ;;  %v9023_v2 = vld [vmem:[%s15623_s7 + $0x1e8] sm:$0xff]  ;;  %v9022_v26 = vld [vmem:[%s15623_s7 + $0x1e0] sm:$0xff] }
 0x6ce   :  { %5072 = vmatprep.subr.mxu0 %v8935_v43  ;;  %9537 = vmatprep.mubr.f32.mxu0 %v4630_v6  ;;  %v9021_v6 = vld [vmem:[%s15623_s7 + $0x1d8] sm:$0xff] }
 0x6cf   :  { %5073 = vmatpush1.msra.mxu0 %v8934_v54  ;;  %9594 = vmatmul.mubr.f32.gmra.mxu1 %v8927_v0  ;;  %v9020_v54 = vld [vmem:[%s15623_s7 + $0x1d0] sm:$0xff] }
 0x6d0   :  { %5074 = vmatprep.subr.mxu0 %v8933_v35  ;;  %9538 = vmatmul.mubr.f32.gmra.mxu0 %v4631_v28  ;;  %v9019_v35 = vld [vmem:[%s15623_s7 + $0x1c8] sm:$0xff] }
 0x6d1   :  { %5075 = vmatpush1.msra.mxu0 %v8932_v13  ;;  %9596 = vmatprep.mubr.f32.mxu1 %v8928_v29  ;;  %v9018_v13 = vld [vmem:[%s15623_s7 + $0x1c0] sm:$0xff] }
 0x6d2   :  { %9602 = vmatprep.subr.mxu0 %v13658_v59  ;;  %9540 = vmatprep.mubr.f32.mxu0 %v4632_v1  ;;  %v9017_v1 = vld [vmem:[%s15623_s7 + $0x1b8] sm:$0xff] }
 0x6d3   :  { %9597 = vmatmul.mubr.f32.gmra.mxu1 %v8929_v24  ;;  %v9016_v24 = vld [vmem:[%s15623_s7 + $0x1b0] sm:$0xff] }
 0x6d4   :  { %9541 = vmatmul.mubr.f32.gmra.mxu0 %v4633_v33  ;;  %9599 = vmatprep.mubr.f32.mxu1 %v8930_v17  ;;  %v9015_v33 = vld [vmem:[%s15623_s7 + $0x1a8] sm:$0xff]  ;;  %v9014_v17 = vld [vmem:[%s15623_s7 + $0x1a0] sm:$0xff] }
 0x6d5   :  { %9543 = vmatprep.mubr.f32.mxu0 %v4634_v11  ;;  %8973 = vmatpush1.msk.msra.mxu1 %vm5037_vm2, %v4801_v61  ;;  %v9013_v61 = vld [vmem:[%s15623_s7 + $0x198] sm:$0xff] }
 0x6d6   :  { %5271 = vmatprep.subr.mxu1 %v4800_v63  ;;  %v9012_v63 = vld [vmem:[%s15623_s7 + $0x190] sm:$0xff] }
 0x6d7   :  { %9600 = vmatmul.mubr.f32.gmra.mxu1 %v8931_v46 }
 0x6d8   :  { %9544 = vmatmul.mubr.f32.gmra.mxu0 %v4635_v30  ;;  %5272 = vmatpush1.msra.mxu1 %v4799_v9  ;;  %v9011_v30 = vld [vmem:[%s15623_s7 + $0x188] sm:$0xff] }
 0x6d9   :  { %5273 = vmatprep.subr.mxu1 %v4798_v8  ;;  %5108 = vmatprep.mubr.f32.mxu0 %v15865_v36  ;;  %v9010_v8 = vld [vmem:[%s15623_s7 + $0x180] sm:$0xff] }
 0x6da   :  { %5274 = vmatpush1.msra.mxu1 %v4797_v10  ;;  %5323 = vmatprep.mubr.f32.mxu1 %v15865_v36 }
 0x6db   :  { %5275 = vmatprep.subr.mxu1 %v4796_v25  ;;  %v9009_v25 = vld [vmem:[%s15623_s7 + $0x178] sm:$0xff] }
 0x6dc   :  { %5276 = vmatpush1.msra.mxu1 %v4795_v56  ;;  %v9008_v56 = vld [vmem:[%s15623_s7 + $0x170] sm:$0xff] }
 0x6dd   :  { %5277 = vmatprep.subr.mxu1 %v4794_v49  ;;  %v9007_v49 = vld [vmem:[%s15623_s7 + $0x168] sm:$0xff] }
 0x6de   :  { %5278 = vmatpush1.msra.mxu1 %v4793_v48  ;;  %v9006_v48 = vld [vmem:[%s15623_s7 + $0x160] sm:$0xff] }
 0x6df   :  { %5279 = vmatprep.subr.mxu1 %v4792_v14 }
 0x6e0   :  { %5280 = vmatpush1.msra.mxu1 %v4791_v3 }
 0x6e1   :  { %5281 = vmatprep.subr.mxu1 %v4790_v58 }
 0x6e2   :  { %5282 = vmatpush1.msra.mxu1 %v4789_v7 }
 0x6e3   :  { %5283 = vmatprep.subr.mxu1 %v4788_v4 }
 0x6e4   :  { %5284 = vmatpush1.msra.mxu1 %v4787_v34 }
 0x6e5   :  { %5285 = vmatprep.subr.mxu1 %v4786_v60 }
 0x6e6   :  { %5286 = vmatpush1.msra.mxu1 %v4785_v12 }
 0x6e7   :  { %5287 = vmatprep.subr.mxu1 %v4784_v47 }
 0x6e8   :  { %5288 = vmatpush1.msra.mxu1 %v4783_v27 }
 0x6e9   :  { %5289 = vmatprep.subr.mxu1 %v4782_v52 }
 0x6ea   :  { %5290 = vmatpush1.msra.mxu1 %v4781_v50 }
 0x6eb   :  { %9028 = vmatprep.subr.msk.mxu1 %vm5037_vm2, %v9027_v40 }
 0x77b   :  { %v9524_v18 = vpop.f32.mrf.mxu0  ;;  %v9580_v32 = vpop.f32.mrf.mxu1 }
 0x77d   :  { %v4702_v21 = vpop.f32.mrf.mxu0  ;;  %v4886_v41 = vpop.f32.mrf.mxu1 }
 0x77e   :  { %8956 = vmatmul.mubr.msk.f32.vlgmr.msra.gmra.mxu0 %vm4988_vm3, %v4886_v41  ;;  %8974 = vmatmul.mubr.msk.f32.vlgmr.msra.gmra.mxu1 %vm4988_vm3, %v4702_v21 }
 0x77f   :  { %9603 = vmatpush3.msra.mxu0 %v13658_v59  ;;  %9029 = vmatpush1.msk.msra.mxu1 %vm5037_vm2, %v9026_v51  ;;  %v9583_v0 = vpop.f32.mrf.mxu1 }
 0x780   :  { %9604 = vmatprep.subr.mxu0 %v13660_v16  ;;  %5671 = vmatprep.subr.mxu1 %v9025_v19  ;;  %v9527_v43 = vpop.f32.mrf.mxu0 }
 0x781   :  { %9605 = vmatpush3.msra.mxu0 %v13660_v16  ;;  %5672 = vmatpush1.msra.mxu1 %v9024_v57  ;;  %v4896_v29 = vpop.f32.mrf.mxu1 }
 0x782   :  { %5114 = vmatprep.mubr.f32.mxu0 %v15865_v36  ;;  %5329 = vmatprep.mubr.f32.mxu1 %v15865_v36  ;;  %v4712_v28 = vpop.f32.mrf.mxu0 }
 0x783   :  { %9606 = vmatprep.subr.mxu0 %v13666_v44  ;;  %5673 = vmatprep.subr.mxu1 %v9023_v2  ;;  %v9586_v46 = vpop.f32.mrf.mxu1  ;;  %v8990_v2 = vld [vmem:[%s15622_s6 + $0x100] sm:$0xff] }
 0x784   :  { %8957 = vmatmul.mubr.msk.f32.gmra.mxu0 %vm4988_vm3, %v9580_v32  ;;  %8975 = vmatmul.mubr.msk.f32.gmra.mxu1 %vm4988_vm3, %v9524_v18  ;;  %v9530_v11 = vpop.f32.mrf.mxu0 }
 0x785   :  { %9607 = vmatpush3.msra.mxu0 %v13666_v44  ;;  %5674 = vmatpush1.msra.mxu1 %v9022_v26  ;;  %v4906_v10 = vpop.f32.mrf.mxu1  ;;  %v8991_v26 = vld [vmem:[%s15622_s6 + $0x108] sm:$0xff] }
 0x786   :  { %9608 = vmatprep.subr.mxu0 %v13672_v53  ;;  %5675 = vmatprep.subr.mxu1 %v9021_v6  ;;  %v4722_v9 = vpop.f32.mrf.mxu0  ;;  %v8993_v6 = vld [vmem:[%s15622_s6 + $0x118] sm:$0xff] }
 0x787   :  { %9609 = vmatpush3.msra.mxu0 %v13672_v53  ;;  %5676 = vmatpush1.msra.mxu1 %v9020_v54  ;;  %v9589_v3 = vpop.f32.mrf.mxu1  ;;  %v8994_v54 = vld [vmem:[%s15622_s6 + $0x120] sm:$0xff] }
 0x788   :  { %5120 = vmatprep.mubr.f32.mxu0 %v15865_v36  ;;  %5335 = vmatprep.mubr.f32.mxu1 %v15865_v36  ;;  %v9533_v14 = vpop.f32.mrf.mxu0 }
 0x789   :  { %9610 = vmatprep.subr.mxu0 %v13678_v39  ;;  %5677 = vmatprep.subr.mxu1 %v9019_v35  ;;  %v4916_v7 = vpop.f32.mrf.mxu1  ;;  %v8996_v35 = vld [vmem:[%s15622_s6 + $0x130] sm:$0xff] }
 0x78a   :  { %8958 = vmatmul.mubr.msk.f32.gmra.mxu0 %vm4988_vm3, %v4896_v29  ;;  %8976 = vmatmul.mubr.msk.f32.gmra.mxu1 %vm4988_vm3, %v4712_v28  ;;  %v4732_v58 = vpop.f32.mrf.mxu0  ;;  %v8997_v28 = vld [vmem:[%s15622_s6 + $0x138] sm:$0xff]  ;;  %v8999_v29 = vld [vmem:[%s15622_s6 + $0x148] sm:$0xff] }
 0x78b   :  { %9611 = vmatpush3.msra.mxu0 %v13678_v39  ;;  %5678 = vmatpush1.msra.mxu1 %v9018_v13  ;;  %v9592_v34 = vpop.f32.mrf.mxu1  ;;  %v8998_v13 = vld [vmem:[%s15622_s6 + $0x140] sm:$0xff] }
 0x78c   :  { %9612 = vmatprep.subr.mxu0 %v13684_v55  ;;  %5679 = vmatprep.subr.mxu1 %v9017_v1  ;;  %v9536_v4 = vpop.f32.mrf.mxu0  ;;  %v9000_v1 = vld [vmem:[%s15622_s6 + $0x150] sm:$0xff] }
 0x78d   :  { %9613 = vmatpush3.msra.mxu0 %v13684_v55  ;;  %5680 = vmatpush1.msra.mxu1 %v9016_v24  ;;  %v4926_v12 = vpop.f32.mrf.mxu1  ;;  %v9001_v24 = vld [vmem:[%s15622_s6 + $0x158] sm:$0xff] }
 0x78e   :  { %5126 = vmatprep.mubr.f32.mxu0 %v15865_v36  ;;  %5341 = vmatprep.mubr.f32.mxu1 %v15865_v36  ;;  %v4742_v60 = vpop.f32.mrf.mxu0 }
 0x78f   :  { %9614 = vmatprep.subr.mxu0 %v13690_v38  ;;  %5681 = vmatprep.subr.mxu1 %v9015_v33  ;;  %v9595_v27 = vpop.f32.mrf.mxu1  ;;  %v9002_v33 = vld [vmem:[%s15622_s6 + $0x160] sm:$0xff] }
 0x790   :  { %8959 = vmatmul.mubr.msk.f32.gmra.mxu0 %vm4988_vm3, %v9583_v0  ;;  %8977 = vmatmul.mubr.msk.f32.gmra.mxu1 %vm4988_vm3, %v9527_v43  ;;  %v9539_v47 = vpop.f32.mrf.mxu0  ;;  %v8992_v43 = vld [vmem:[%s15622_s6 + $0x110] sm:$0xff]  ;;  %v8995_v0 = vld [vmem:[%s15622_s6 + $0x128] sm:$0xff] }
 0x791   :  { %9615 = vmatpush3.msra.mxu0 %v13690_v38  ;;  %5682 = vmatpush1.msra.mxu1 %v9014_v17  ;;  %v4936_v50 = vpop.f32.mrf.mxu1  ;;  %v9003_v17 = vld [vmem:[%s15622_s6 + $0x168] sm:$0xff] }
 0x792   :  { %9616 = vmatprep.subr.mxu0 %v13697_v31  ;;  %5683 = vmatprep.subr.mxu1 %v9013_v61  ;;  %v4752_v52 = vpop.f32.mrf.mxu0  ;;  %v9005_v61 = vld [vmem:[%s15622_s6 + $0x178] sm:$0xff] }
 0x793   :  { %9617 = vmatpush3.msra.mxu0 %v13697_v31  ;;  %5684 = vmatpush1.msra.mxu1 %v9012_v63  ;;  %v9598_v18 = vpop.f32.mrf.mxu1  ;;  %v9046_v63 = vld [vmem:[%s15622_s6 + $0x180] sm:$0xff] }
 0x794   :  { %5132 = vmatprep.mubr.f32.mxu0 %v15865_v36  ;;  %5347 = vmatprep.mubr.f32.mxu1 %v15865_v36  ;;  %v9542_v40 = vpop.f32.mrf.mxu0 }
 0x795   :  { %9618 = vmatprep.subr.mxu0 %v13705_v62  ;;  %5685 = vmatprep.subr.mxu1 %v9011_v30  ;;  %v4946_v51 = vpop.f32.mrf.mxu1  ;;  %v9048_v30 = vld [vmem:[%s15622_s6 + $0x190] sm:$0xff] }
 0x796   :  { %8960 = vmatmul.mubr.msk.f32.gmra.mxu0 %vm4988_vm3, %v4906_v10  ;;  %8978 = vmatmul.mubr.msk.f32.gmra.mxu1 %vm4988_vm3, %v4722_v9  ;;  %v4762_v32 = vpop.f32.mrf.mxu0  ;;  %v9049_v9 = vld [vmem:[%s15622_s6 + $0x198] sm:$0xff]  ;;  %v9051_v10 = vld [vmem:[%s15622_s6 + $0x1a8] sm:$0xff] }
 0x797   :  { %9619 = vmatpush3.msra.mxu0 %v13705_v62  ;;  %5686 = vmatpush1.msra.mxu1 %v9010_v8  ;;  %v9601_v41 = vpop.f32.mrf.mxu1  ;;  %v9050_v8 = vld [vmem:[%s15622_s6 + $0x1a0] sm:$0xff] }
 0x798   :  { %9620 = vmatprep.subr.mxu0 %v13713_v5  ;;  %5687 = vmatprep.subr.mxu1 %v9009_v25  ;;  %v9545_v21 = vpop.f32.mrf.mxu0  ;;  %v9052_v25 = vld [vmem:[%s15622_s6 + $0x1b0] sm:$0xff] }
 0x799   :  { %9621 = vmatpush3.msra.mxu0 %v13713_v5  ;;  %5688 = vmatpush1.msra.mxu1 %v9008_v56  ;;  %v4956_v57 = vpop.f32.mrf.mxu1  ;;  %v9053_v56 = vld [vmem:[%s15622_s6 + $0x1b8] sm:$0xff] }
 0x79a   :  { %5138 = vmatprep.mubr.f32.mxu0 %v15865_v36  ;;  %5353 = vmatprep.mubr.f32.mxu1 %v15865_v36  ;;  %v4772_v19 = vpop.f32.mrf.mxu0 }
 0x79b   :  { %9622 = vmatprep.subr.mxu0 %v13721_v45  ;;  %5689 = vmatprep.subr.mxu1 %v9007_v49  ;;  %v9054_v49 = vld [vmem:[%s15622_s6 + $0x1c0] sm:$0xff] }
 0x79c   :  { %8961 = vmatmul.mubr.msk.f32.gmra.mxu0 %vm4988_vm3, %v9586_v46  ;;  %8979 = vmatmul.mubr.msk.f32.gmra.mxu1 %vm4988_vm3, %v9530_v11  ;;  %v9004_v11 = vld [vmem:[%s15622_s6 + $0x170] sm:$0xff]  ;;  %v9047_v46 = vld [vmem:[%s15622_s6 + $0x188] sm:$0xff] }
 0x79d   :  { %9623 = vmatpush3.msra.mxu0 %v13721_v45  ;;  %5690 = vmatpush1.msra.mxu1 %v9006_v48  ;;  %v9055_v48 = vld [vmem:[%s15622_s6 + $0x1c8] sm:$0xff] }
 0x79e   :  { %9624 = vmatprep.subr.mxu0 %v13642_v37  ;;  %9714 = vmatprep.subr.mxu1 %v13658_v59 }
 0x79f   :  { %9625 = vmatpush3.msra.mxu0 %v13642_v37  ;;  %5144 = vmatprep.mubr.f32.mxu0 %v15865_v36 }
 0x7a0   :  { %5359 = vmatprep.mubr.f32.mxu1 %v15865_v36  ;;  %9626 = vmatprep.subr.mxu0 %v13640_v42 }
 0x7a1   :  { %8962 = vmatmul.mubr.msk.f32.gmra.mxu0 %vm4988_vm3, %v4916_v7  ;;  %8980 = vmatmul.mubr.msk.f32.gmra.mxu1 %vm4988_vm3, %v4732_v58  ;;  %v9058_v58 = vld [vmem:[%s15622_s6 + $0x1e0] sm:$0xff]  ;;  %v9059_v7 = vld [vmem:[%s15622_s6 + $0x1e8] sm:$0xff] }
 0x7a2   :  { %9627 = vmatpush3.msra.mxu0 %v13640_v42  ;;  %5150 = vmatprep.mubr.f32.mxu0 %v15865_v36 }
 0x7a3   :  { %9628 = vmatprep.subr.mxu0 %v13638_v20  ;;  %5365 = vmatprep.mubr.f32.mxu1 %v15865_v36 }
 0x7a4   :  { %9629 = vmatpush3.msra.mxu0 %v13638_v20 }
 0x7a5   :  { %9630 = vmatprep.subr.mxu0 %v13636_v23  ;;  %8963 = vmatmul.mubr.msk.f32.gmra.mxu0 %vm4988_vm3, %v9589_v3  ;;  %v9057_v3 = vld [vmem:[%s15622_s6 + $0x1d8] sm:$0xff] }
 0x7a6   :  { %8981 = vmatmul.mubr.msk.f32.gmra.mxu1 %vm4988_vm3, %v9533_v14  ;;  %9631 = vmatpush3.msra.mxu0 %v13636_v23  ;;  %v9056_v14 = vld [vmem:[%s15622_s6 + $0x1d0] sm:$0xff] }
 0x7a7   :  { %9632 = vmatprep.subr.mxu0 %v13634_v22  ;;  %5156 = vmatprep.mubr.f32.mxu0 %v15865_v36 }
 0x7a8   :  { %9633 = vmatpush3.msra.mxu0 %v13634_v22  ;;  %5371 = vmatprep.mubr.f32.mxu1 %v15865_v36 }
 0x7a9   :  { %9658 = vmatprep.subr.mxu0 %v13658_v59  ;;  %8964 = vmatmul.mubr.msk.f32.gmra.mxu0 %vm4988_vm3, %v4926_v12  ;;  %v9082_v12 = vld [vmem:[%s15623_s7 + $0x2b0] sm:$0xf] }
 0x7aa   :  { %8982 = vmatmul.mubr.msk.f32.gmra.mxu1 %vm4988_vm3, %v4742_v60  ;;  %5162 = vmatprep.mubr.f32.mxu0 %v15865_v36  ;;  %v9083_v60 = vld [vmem:[%s15623_s7 + $0x2b8] sm:$0xf] }
 0x7ab   :  { %5377 = vmatprep.mubr.f32.mxu1 %v15865_v36 }
 0x7ad   :  { %8965 = vmatmul.mubr.msk.f32.gmra.mxu0 %vm4988_vm3, %v9592_v34  ;;  %v9061_v34 = vld [vmem:[%s15622_s6 + $0x1f8] sm:$0xff] }
 0x7ae   :  { %8983 = vmatmul.mubr.msk.f32.gmra.mxu1 %vm4988_vm3, %v9536_v4  ;;  %5168 = vmatprep.mubr.f32.mxu0 %v15865_v36  ;;  %v9060_v4 = vld [vmem:[%s15622_s6 + $0x1f0] sm:$0xff] }
 0x7af   :  { %5383 = vmatprep.mubr.f32.mxu1 %v15865_v36 }
 0x7b1   :  { %8966 = vmatmul.mubr.msk.f32.gmra.mxu0 %vm4988_vm3, %v4936_v50  ;;  %v9078_v50 = vld [vmem:[%s15623_s7 + $0x290] sm:$0xff] }
 0x7b2   :  { %8984 = vmatmul.mubr.msk.f32.gmra.mxu1 %vm4988_vm3, %v4752_v52  ;;  %5174 = vmatprep.mubr.f32.mxu0 %v15865_v36  ;;  %v9079_v52 = vld [vmem:[%s15623_s7 + $0x298] sm:$0xff] }
 0x7b3   :  { %5389 = vmatprep.mubr.f32.mxu1 %v15865_v36 }
 0x7b5   :  { %8967 = vmatmul.mubr.msk.f32.gmra.mxu0 %vm4988_vm3, %v9595_v27  ;;  %v9080_v27 = vld [vmem:[%s15623_s7 + $0x2a0] sm:$0xff] }
 0x7b6   :  { %8985 = vmatmul.mubr.msk.f32.gmra.mxu1 %vm4988_vm3, %v9539_v47  ;;  %5180 = vmatprep.mubr.f32.mxu0 %v15865_v36  ;;  %v9081_v47 = vld [vmem:[%s15623_s7 + $0x2a8] sm:$0xff] }
 0x7b7   :  { %5395 = vmatprep.mubr.f32.mxu1 %v15865_v36 }
 0x7b9   :  { %8968 = vmatmul.mubr.msk.f32.gmra.mxu0 %vm4988_vm3, %v4946_v51  ;;  %v9074_v51 = vld [vmem:[%s15623_s7 + $0x270] sm:$0xff] }
 0x7ba   :  { %8986 = vmatmul.mubr.msk.f32.gmra.mxu1 %vm4988_vm3, %v4762_v32  ;;  %5186 = vmatprep.mubr.f32.mxu0 %v15865_v36  ;;  %v9075_v32 = vld [vmem:[%s15623_s7 + $0x278] sm:$0xff] }
 0x7bb   :  { %5401 = vmatprep.mubr.f32.mxu1 %v15865_v36 }
 0x7bd   :  { %8969 = vmatmul.mubr.msk.f32.gmra.mxu0 %vm4988_vm3, %v9598_v18  ;;  %v9076_v18 = vld [vmem:[%s15623_s7 + $0x280] sm:$0xff] }
 0x7be   :  { %8987 = vmatmul.mubr.msk.f32.gmra.mxu1 %vm4988_vm3, %v9542_v40  ;;  %5192 = vmatprep.mubr.f32.mxu0 %v15865_v36  ;;  %v9077_v40 = vld [vmem:[%s15623_s7 + $0x288] sm:$0xff] }
 0x7bf   :  { %5407 = vmatprep.mubr.f32.mxu1 %v15865_v36 }
 0x7c1   :  { %8970 = vmatmul.mubr.msk.f32.gmra.mxu0 %vm4988_vm3, %v4956_v57  ;;  %v9070_v57 = vld [vmem:[%s15623_s7 + $0x250] sm:$0xff] }
 0x7c2   :  { %8988 = vmatmul.mubr.msk.f32.gmra.mxu1 %vm4988_vm3, %v4772_v19  ;;  %5198 = vmatprep.mubr.f32.mxu0 %v15865_v36  ;;  %v9071_v19 = vld [vmem:[%s15623_s7 + $0x258] sm:$0xff] }
 0x7c3   :  { %5413 = vmatprep.mubr.f32.mxu1 %v15865_v36 }
 0x7c5   :  { %8971 = vmatmul.mubr.msk.f32.gmra.mxu0 %vm4988_vm3, %v9601_v41  ;;  %v9072_v41 = vld [vmem:[%s15623_s7 + $0x260] sm:$0xff] }
 0x7c6   :  { %8989 = vmatmul.mubr.msk.f32.gmra.mxu1 %vm4988_vm3, %v9545_v21  ;;  %9634 = vmatprep.mubr.f32.mxu0 %v8990_v2  ;;  %v9073_v21 = vld [vmem:[%s15623_s7 + $0x268] sm:$0xff] }
 0x7c7   :  { %5723 = vmatprep.mubr.f32.mxu1 %v15865_v36  ;;  %v9069_v2 = vld [vmem:[%s15623_s7 + $0x248] sm:$0xff] }
 0x7c9   :  { %9635 = vmatmul.mubr.f32.vlgmr.msra.gmra.mxu0 %v8991_v26  ;;  %v9068_v26 = vld [vmem:[%s15623_s7 + $0x240] sm:$0xff] }
 0x7ca   :  { %9659 = vmatpush3.msra.mxu0 %v13658_v59  ;;  %9637 = vmatprep.mubr.f32.mxu0 %v8992_v43  ;;  %v9067_v43 = vld [vmem:[%s15623_s7 + $0x238] sm:$0xff] }
 0x7cb   :  { %9660 = vmatprep.subr.mxu0 %v13660_v16 }
 0x7cc   :  { %9661 = vmatpush3.msra.mxu0 %v13660_v16 }
 0x7cd   :  { %9662 = vmatprep.subr.mxu0 %v13666_v44  ;;  %9638 = vmatmul.mubr.f32.gmra.mxu0 %v8993_v6  ;;  %v9066_v6 = vld [vmem:[%s15623_s7 + $0x230] sm:$0xff] }
 0x7ce   :  { %9663 = vmatpush3.msra.mxu0 %v13666_v44  ;;  %9640 = vmatprep.mubr.f32.mxu0 %v8994_v54  ;;  %v9065_v54 = vld [vmem:[%s15623_s7 + $0x228] sm:$0xff] }
 0x7cf   :  { %9664 = vmatprep.subr.mxu0 %v13672_v53 }
 0x7d0   :  { %9665 = vmatpush3.msra.mxu0 %v13672_v53 }
 0x7d1   :  { %9666 = vmatprep.subr.mxu0 %v13678_v39  ;;  %9641 = vmatmul.mubr.f32.gmra.mxu0 %v8995_v0  ;;  %v9064_v0 = vld [vmem:[%s15623_s7 + $0x220] sm:$0xff] }
 0x7d2   :  { %9667 = vmatpush3.msra.mxu0 %v13678_v39  ;;  %9643 = vmatprep.mubr.f32.mxu0 %v8996_v35  ;;  %v9063_v35 = vld [vmem:[%s15623_s7 + $0x218] sm:$0xff] }
 0x7d3   :  { %9668 = vmatprep.subr.mxu0 %v13684_v55 }
 0x7d4   :  { %9669 = vmatpush3.msra.mxu0 %v13684_v55 }
 0x7d5   :  { %9670 = vmatprep.subr.mxu0 %v13690_v38  ;;  %9644 = vmatmul.mubr.f32.gmra.mxu0 %v8997_v28  ;;  %v9062_v28 = vld [vmem:[%s15623_s7 + $0x210] sm:$0xff] }
 0x7d6   :  { %9671 = vmatpush3.msra.mxu0 %v13690_v38  ;;  %9646 = vmatprep.mubr.f32.mxu0 %v8998_v13 }
 0x7d7   :  { %9672 = vmatprep.subr.mxu0 %v13697_v31 }
 0x7d8   :  { %9673 = vmatpush3.msra.mxu0 %v13697_v31 }
 0x7d9   :  { %9674 = vmatprep.subr.mxu0 %v13705_v62  ;;  %9647 = vmatmul.mubr.f32.gmra.mxu0 %v8999_v29 }
 0x7da   :  { %9675 = vmatpush3.msra.mxu0 %v13705_v62  ;;  %9649 = vmatprep.mubr.f32.mxu0 %v9000_v1 }
 0x7db   :  { %9676 = vmatprep.subr.mxu0 %v13713_v5 }
 0x7dc   :  { %9677 = vmatpush3.msra.mxu0 %v13713_v5 }
 0x7dd   :  { %9678 = vmatprep.subr.mxu0 %v13721_v45  ;;  %9650 = vmatmul.mubr.f32.gmra.mxu0 %v9001_v24 }
 0x7de   :  { %9679 = vmatpush3.msra.mxu0 %v13721_v45  ;;  %9652 = vmatprep.mubr.f32.mxu0 %v9002_v33 }
 0x7df   :  { %9680 = vmatprep.subr.mxu0 %v13642_v37 }
 0x7e0   :  { %9681 = vmatpush3.msra.mxu0 %v13642_v37 }
 0x7e1   :  { %9682 = vmatprep.subr.mxu0 %v13640_v42  ;;  %9653 = vmatmul.mubr.f32.gmra.mxu0 %v9003_v17 }
 0x7e2   :  { %9683 = vmatpush3.msra.mxu0 %v13640_v42  ;;  %9655 = vmatprep.mubr.f32.mxu0 %v9004_v11 }
 0x7e3   :  { %9684 = vmatprep.subr.mxu0 %v13638_v20 }
 0x7e4   :  { %9685 = vmatpush3.msra.mxu0 %v13638_v20 }
 0x7e5   :  { %9686 = vmatprep.subr.mxu0 %v13636_v23  ;;  %9656 = vmatmul.mubr.f32.gmra.mxu0 %v9005_v61 }
 0x7e6   :  { %9687 = vmatpush3.msra.mxu0 %v13636_v23  ;;  %9690 = vmatprep.mubr.f32.mxu0 %v9046_v63 }
 0x7e7   :  { %9688 = vmatprep.subr.mxu0 %v13634_v22 }
 0x7e8   :  { %9689 = vmatpush3.msra.mxu0 %v13634_v22 }
 0x7e9   :  { %9691 = vmatmul.mubr.f32.vlgmr.msra.gmra.mxu0 %v9047_v46  ;;  %9084 = vmatprep.subr.msk.mxu0 %vm5037_vm2, %v9083_v60 }
 0x7ea   :  { %9693 = vmatprep.mubr.f32.mxu0 %v9048_v30  ;;  %9085 = vmatpush1.msk.msra.mxu0 %vm5037_vm2, %v9082_v12 }
 0x7eb   :  { %6103 = vmatprep.subr.mxu0 %v9081_v47 }
 0x7ec   :  { %6104 = vmatpush1.msra.mxu0 %v9080_v27 }
 0x7ed   :  { %9694 = vmatmul.mubr.f32.gmra.mxu0 %v9049_v9  ;;  %6105 = vmatprep.subr.mxu0 %v9079_v52 }
 0x7ee   :  { %9696 = vmatprep.mubr.f32.mxu0 %v9050_v8  ;;  %6106 = vmatpush1.msra.mxu0 %v9078_v50 }
 0x7ef   :  { %6107 = vmatprep.subr.mxu0 %v9077_v40 }
 0x7f0   :  { %6108 = vmatpush1.msra.mxu0 %v9076_v18 }
 0x7f1   :  { %9697 = vmatmul.mubr.f32.gmra.mxu0 %v9051_v10  ;;  %6109 = vmatprep.subr.mxu0 %v9075_v32 }
 0x7f2   :  { %9699 = vmatprep.mubr.f32.mxu0 %v9052_v25  ;;  %6110 = vmatpush1.msra.mxu0 %v9074_v51 }
 0x7f3   :  { %6111 = vmatprep.subr.mxu0 %v9073_v21 }
 0x7f4   :  { %6112 = vmatpush1.msra.mxu0 %v9072_v41 }
 0x7f5   :  { %9700 = vmatmul.mubr.f32.gmra.mxu0 %v9053_v56  ;;  %6113 = vmatprep.subr.mxu0 %v9071_v19 }
 0x7f6   :  { %9702 = vmatprep.mubr.f32.mxu0 %v9054_v49  ;;  %6114 = vmatpush1.msra.mxu0 %v9070_v57 }
 0x7f7   :  { %6115 = vmatprep.subr.mxu0 %v9069_v2 }
 0x7f8   :  { %6116 = vmatpush1.msra.mxu0 %v9068_v26 }
 0x7f9   :  { %9703 = vmatmul.mubr.f32.gmra.mxu0 %v9055_v48  ;;  %6117 = vmatprep.subr.mxu0 %v9067_v43 }
 0x7fa   :  { %9705 = vmatprep.mubr.f32.mxu0 %v9056_v14  ;;  %6118 = vmatpush1.msra.mxu0 %v9066_v6 }
 0x7fb   :  { %6119 = vmatprep.subr.mxu0 %v9065_v54 }
 0x7fc   :  { %6120 = vmatpush1.msra.mxu0 %v9064_v0 }
 0x7fd   :  { %9706 = vmatmul.mubr.f32.gmra.mxu0 %v9057_v3  ;;  %6121 = vmatprep.subr.mxu0 %v9063_v35 }
 0x7fe   :  { %9708 = vmatprep.mubr.f32.mxu0 %v9058_v58  ;;  %6122 = vmatpush1.msra.mxu0 %v9062_v28 }
 0x801   :  { %9709 = vmatmul.mubr.f32.gmra.mxu0 %v9059_v7 }
 0x802   :  { %9711 = vmatprep.mubr.f32.mxu0 %v9060_v4 }
 0x805   :  { %9712 = vmatmul.mubr.f32.gmra.mxu0 %v9061_v34 }
 0x806   :  { %6155 = vmatprep.mubr.f32.mxu0 %v15865_v36 }
 0x83e   :  { %v5110_v13 = vpop.f32.mrf.mxu0  ;;  %v5325_v29 = vpop.f32.mrf.mxu1 }
 0x83f   :  { %v14340_v1 = vadd.f32 %v5325_v29, %v5110_v13 }
 0x840   :  { %v14342_v24 = vpop.f32.mrf.mxu0  ;;  %v14344_v33 = vpop.f32.mrf.mxu1 }
 0x844   :  { %v5116_v17 = vpop.f32.mrf.mxu0  ;;  %v5331_v11 = vpop.f32.mrf.mxu1 }
 0x845   :  { %v14346_v61 = vadd.f32 %v5331_v11, %v5116_v17 }
 0x846   :  { %v14348_v63 = vpop.f32.mrf.mxu0  ;;  %v14350_v46 = vpop.f32.mrf.mxu1 }
 0x84a   :  { %v5122_v30 = vpop.f32.mrf.mxu0  ;;  %v5337_v9 = vpop.f32.mrf.mxu1 }
 0x84b   :  { %v14352_v8 = vadd.f32 %v5337_v9, %v5122_v30 }
 0x84c   :  { %v14354_v10 = vpop.f32.mrf.mxu0  ;;  %v14356_v25 = vpop.f32.mrf.mxu1 }
 0x850   :  { %v5128_v56 = vpop.f32.mrf.mxu0  ;;  %v5343_v49 = vpop.f32.mrf.mxu1 }
 0x851   :  { %v14358_v48 = vadd.f32 %v5343_v49, %v5128_v56 }
 0x852   :  { %v14360_v14 = vpop.f32.mrf.mxu0  ;;  %v14362_v3 = vpop.f32.mrf.mxu1 }
 0x856   :  { %v5134_v58 = vpop.f32.mrf.mxu0  ;;  %v5349_v7 = vpop.f32.mrf.mxu1 }
 0x857   :  { %v14364_v4 = vadd.f32 %v5349_v7, %v5134_v58 }
 0x858   :  { %v14366_v34 = vpop.f32.mrf.mxu0  ;;  %v14368_v60 = vpop.f32.mrf.mxu1 }
 0x85c   :  { %v5140_v12 = vpop.f32.mrf.mxu0  ;;  %v5355_v47 = vpop.f32.mrf.mxu1 }
 0x85d   :  { %v14370_v27 = vadd.f32 %v5355_v47, %v5140_v12 }
 0x85e   :  { %v14372_v52 = vpop.f32.mrf.mxu0  ;;  %v14374_v50 = vpop.f32.mrf.mxu1 }
 0x861   :  { %v5146_v40 = vpop.f32.mrf.mxu0  ;;  %v5361_v18 = vpop.f32.mrf.mxu1 }
 0x862   :  { %v14376_v32 = vadd.f32 %v5361_v18, %v5146_v40 }
 0x863   :  { %v14378_v51 = vpop.f32.mrf.mxu0  ;;  %v14380_v21 = vpop.f32.mrf.mxu1 }
 0x865   :  { %v5152_v41 = vpop.f32.mrf.mxu0 }
 0x866   :  { %v5367_v19 = vpop.f32.mrf.mxu1 }
 0x867   :  { %v14382_v57 = vadd.f32 %v5367_v19, %v5152_v41  ;;  %v14384_v2 = vpop.f32.mrf.mxu0 }
 0x868   :  { %v14386_v26 = vpop.f32.mrf.mxu1 }
 0x869   :  { %v5158_v43 = vpop.f32.mrf.mxu0 }
 0x86a   :  { %v5373_v6 = vpop.f32.mrf.mxu1 }
 0x86b   :  { %v14388_v54 = vadd.f32 %v5373_v6, %v5158_v43  ;;  %v14390_v0 = vpop.f32.mrf.mxu0 }
 0x86c   :  { %v14392_v35 = vpop.f32.mrf.mxu1 }
 0x86d   :  { %v5164_v28 = vpop.f32.mrf.mxu0 }
 0x86e   :  { %v5379_v13 = vpop.f32.mrf.mxu1 }
 0x86f   :  { %v14394_v29 = vadd.f32 %v5379_v13, %v5164_v28  ;;  %v14396_v17 = vpop.f32.mrf.mxu0 }
 0x870   :  { %v14398_v11 = vpop.f32.mrf.mxu1 }
 0x871   :  { %v5170_v30 = vpop.f32.mrf.mxu0 }
 0x872   :  { %v5385_v9 = vpop.f32.mrf.mxu1 }
 0x873   :  { %v14400_v56 = vadd.f32 %v5385_v9, %v5170_v30  ;;  %v14402_v49 = vpop.f32.mrf.mxu0 }
 0x874   :  { %15866 = vst [vmem:[#allocation70_spill] sm:$0xff] %v14402_v49  ;;  %v14404_v58 = vpop.f32.mrf.mxu1 }
 0x875   :  { %15867 = vst [vmem:[#allocation30_spill] sm:$0xff] %v14404_v58  ;;  %v5176_v7 = vpop.f32.mrf.mxu0 }
 0x876   :  { %v5391_v12 = vpop.f32.mrf.mxu1 }
 0x877   :  { %v14406_v47 = vadd.f32 %v5391_v12, %v5176_v7  ;;  %v14408_v40 = vpop.f32.mrf.mxu0 }
 0x878   :  { %15868 = vst [vmem:[#allocation69_spill] sm:$0xff] %v14408_v40  ;;  %v14410_v18 = vpop.f32.mrf.mxu1 }
 0x879   :  { %15869 = vst [vmem:[#allocation29_spill] sm:$0xff] %v14410_v18  ;;  %v5182_v41 = vpop.f32.mrf.mxu0 }
 0x87a   :  { %v5397_v19 = vpop.f32.mrf.mxu1 }
 0x87b   :  { %v14412_v43 = vadd.f32 %v5397_v19, %v5182_v41  ;;  %v14414_v6 = vpop.f32.mrf.mxu0 }
 0x87c   :  { %15870 = vst [vmem:[#allocation68_spill] sm:$0xff] %v14414_v6  ;;  %v14416_v28 = vpop.f32.mrf.mxu1 }
 0x87d   :  { %15871 = vst [vmem:[#allocation35_spill] sm:$0xff] %v14416_v28  ;;  %v5188_v13 = vpop.f32.mrf.mxu0 }
 0x87e   :  { %v5403_v30 = vpop.f32.mrf.mxu1 }
 0x87f   :  { %v14418_v9 = vadd.f32 %v5403_v30, %v5188_v13  ;;  %v14420_v15 = vpop.f32.mrf.mxu0 }
 0x880   :  { %v14422_v7 = vpop.f32.mrf.mxu1 }
 0x881   :  { %15872 = vst [vmem:[#allocation25_spill] sm:$0xff] %v14422_v7  ;;  %v5194_v12 = vpop.f32.mrf.mxu0 }
 0x882   :  { %v5409_v40 = vpop.f32.mrf.mxu1 }
 0x883   :  { %v14424_v58 = vadd.f32 %v5409_v40, %v5194_v12  ;;  %v14426_v18 = vpop.f32.mrf.mxu0 }
 0x884   :  { %v14428_v41 = vpop.f32.mrf.mxu1 }
 0x885   :  { %v5200_v19 = vpop.f32.mrf.mxu0 }
 0x886   :  { %v5415_v6 = vpop.f32.mrf.mxu1 }
 0x887   :  { %v14430_v49 = vadd.f32 %v5415_v6, %v5200_v19  ;;  %v14432_v28 = vpop.f32.mrf.mxu0 }
 0x889   :  { %v9636_v13 = vpop.f32.mrf.mxu0 }
 0x88b   :  { %v5503_v30 = vpop.f32.mrf.mxu0 }
 0x88c   :  { %9030 = vmatmul.mubr.msk.f32.vlgmr.msra.gmra.mxu1 %vm4988_vm3, %v5503_v30  ;;  %v9102_v30 = vld [vmem:[%s15622_s6 + $0x200] sm:$0xff] }
 0x88d   :  { %9715 = vmatpush3.msra.mxu1 %v13658_v59  ;;  %v9639_v7 = vpop.f32.mrf.mxu0  ;;  %5729 = vmatprep.mubr.f32.mxu1 %v15865_v36 }
 0x88e   :  { %9716 = vmatprep.subr.mxu1 %v13660_v16 }
 0x88f   :  { %9717 = vmatpush3.msra.mxu1 %v13660_v16  ;;  %v5513_v40 = vpop.f32.mrf.mxu0 }
 0x890   :  { %9718 = vmatprep.subr.mxu1 %v13666_v44  ;;  %9031 = vmatmul.mubr.msk.f32.gmra.mxu1 %vm4988_vm3, %v9636_v13 }
 0x891   :  { %9719 = vmatpush3.msra.mxu1 %v13666_v44  ;;  %v9642_v6 = vpop.f32.mrf.mxu0  ;;  %5735 = vmatprep.mubr.f32.mxu1 %v15865_v36 }
 0x892   :  { %9720 = vmatprep.subr.mxu1 %v13672_v53 }
 0x893   :  { %9721 = vmatpush3.msra.mxu1 %v13672_v53  ;;  %v5523_v59 = vpop.f32.mrf.mxu0 }
 0x894   :  { %9722 = vmatprep.subr.mxu1 %v13678_v39  ;;  %9032 = vmatmul.mubr.msk.f32.gmra.mxu1 %vm4988_vm3, %v5513_v40 }
 0x895   :  { %9723 = vmatpush3.msra.mxu1 %v13678_v39  ;;  %v9645_v16 = vpop.f32.mrf.mxu0  ;;  %5741 = vmatprep.mubr.f32.mxu1 %v15865_v36 }
 0x896   :  { %9724 = vmatprep.subr.mxu1 %v13684_v55 }
 0x897   :  { %9725 = vmatpush3.msra.mxu1 %v13684_v55  ;;  %v5533_v44 = vpop.f32.mrf.mxu0 }
 0x898   :  { %9726 = vmatprep.subr.mxu1 %v13690_v38  ;;  %9033 = vmatmul.mubr.msk.f32.gmra.mxu1 %vm4988_vm3, %v9639_v7 }
 0x899   :  { %9727 = vmatpush3.msra.mxu1 %v13690_v38  ;;  %v9648_v53 = vpop.f32.mrf.mxu0  ;;  %5747 = vmatprep.mubr.f32.mxu1 %v15865_v36 }
 0x89a   :  { %9728 = vmatprep.subr.mxu1 %v13697_v31 }
 0x89b   :  { %9729 = vmatpush3.msra.mxu1 %v13697_v31  ;;  %v5543_v39 = vpop.f32.mrf.mxu0 }
 0x89c   :  { %9730 = vmatprep.subr.mxu1 %v13705_v62  ;;  %9034 = vmatmul.mubr.msk.f32.gmra.mxu1 %vm4988_vm3, %v5523_v59  ;;  %v9104_v59 = vld [vmem:[%s15622_s6 + $0x210] sm:$0xff] }
 0x89d   :  { %9731 = vmatpush3.msra.mxu1 %v13705_v62  ;;  %v9651_v55 = vpop.f32.mrf.mxu0  ;;  %5753 = vmatprep.mubr.f32.mxu1 %v15865_v36 }
 0x89e   :  { %9732 = vmatprep.subr.mxu1 %v13713_v5 }
 0x89f   :  { %9733 = vmatpush3.msra.mxu1 %v13713_v5  ;;  %v5553_v38 = vpop.f32.mrf.mxu0 }
 0x8a0   :  { %9734 = vmatprep.subr.mxu1 %v13721_v45  ;;  %9035 = vmatmul.mubr.msk.f32.gmra.mxu1 %vm4988_vm3, %v9642_v6  ;;  %v9103_v6 = vld [vmem:[%s15622_s6 + $0x208] sm:$0xff] }
 0x8a1   :  { %9735 = vmatpush3.msra.mxu1 %v13721_v45  ;;  %v9654_v31 = vpop.f32.mrf.mxu0  ;;  %5759 = vmatprep.mubr.f32.mxu1 %v15865_v36 }
 0x8a2   :  { %9736 = vmatprep.subr.mxu1 %v13642_v37 }
 0x8a3   :  { %9737 = vmatpush3.msra.mxu1 %v13642_v37  ;;  %v5563_v62 = vpop.f32.mrf.mxu0 }
 0x8a4   :  { %9738 = vmatprep.subr.mxu1 %v13640_v42  ;;  %9036 = vmatmul.mubr.msk.f32.gmra.mxu1 %vm4988_vm3, %v5533_v44  ;;  %v9105_v44 = vld [vmem:[%s15622_s6 + $0x218] sm:$0xff] }
 0x8a5   :  { %9739 = vmatpush3.msra.mxu1 %v13640_v42  ;;  %v9657_v5 = vpop.f32.mrf.mxu0  ;;  %5765 = vmatprep.mubr.f32.mxu1 %v15865_v36 }
 0x8a6   :  { %9740 = vmatprep.subr.mxu1 %v13638_v20 }
 0x8a7   :  { %9741 = vmatpush3.msra.mxu1 %v13638_v20  ;;  %v5573_v45 = vpop.f32.mrf.mxu0 }
 0x8a8   :  { %9742 = vmatprep.subr.mxu1 %v13636_v23  ;;  %9037 = vmatmul.mubr.msk.f32.gmra.mxu1 %vm4988_vm3, %v9645_v16 }
 0x8a9   :  { %9743 = vmatpush3.msra.mxu1 %v13636_v23  ;;  %v9692_v37 = vpop.f32.mrf.mxu0  ;;  %5771 = vmatprep.mubr.f32.mxu1 %v15865_v36 }
 0x8aa   :  { %9744 = vmatprep.subr.mxu1 %v13634_v22 }
 0x8ab   :  { %9745 = vmatpush3.msra.mxu1 %v13634_v22  ;;  %v5935_v42 = vpop.f32.mrf.mxu0 }
 0x8ac   :  { %9038 = vmatmul.mubr.msk.f32.gmra.mxu1 %vm4988_vm3, %v5543_v39  ;;  %9086 = vmatmul.mubr.msk.f32.vlgmr.msra.gmra.mxu0 %vm4988_vm3, %v5935_v42  ;;  %v9112_v42 = vld [vmem:[%s15622_s6 + $0x250] sm:$0xff] }
 0x8ad   :  { %5777 = vmatprep.mubr.f32.mxu1 %v15865_v36  ;;  %6161 = vmatprep.mubr.f32.mxu0 %v15865_v36  ;;  %v9695_v20 = vpop.f32.mrf.mxu0 }
 0x8af   :  { %v5945_v23 = vpop.f32.mrf.mxu0 }
 0x8b0   :  { %9039 = vmatmul.mubr.msk.f32.gmra.mxu1 %vm4988_vm3, %v9648_v53  ;;  %9087 = vmatmul.mubr.msk.f32.gmra.mxu0 %vm4988_vm3, %v9692_v37  ;;  %v9106_v53 = vld [vmem:[%s15622_s6 + $0x220] sm:$0xff]  ;;  %v9111_v37 = vld [vmem:[%s15622_s6 + $0x248] sm:$0xff] }
 0x8b1   :  { %5783 = vmatprep.mubr.f32.mxu1 %v15865_v36  ;;  %6167 = vmatprep.mubr.f32.mxu0 %v15865_v36  ;;  %v9698_v22 = vpop.f32.mrf.mxu0 }
 0x8b3   :  { %v5955_v7 = vpop.f32.mrf.mxu0 }
 0x8b4   :  { %9040 = vmatmul.mubr.msk.f32.gmra.mxu1 %vm4988_vm3, %v5553_v38  ;;  %9088 = vmatmul.mubr.msk.f32.gmra.mxu0 %vm4988_vm3, %v5945_v23  ;;  %v9108_v38 = vld [vmem:[%s15622_s6 + $0x230] sm:$0xff]  ;;  %v9113_v23 = vld [vmem:[%s15622_s6 + $0x258] sm:$0xff] }
 0x8b5   :  { %5789 = vmatprep.mubr.f32.mxu1 %v15865_v36  ;;  %6173 = vmatprep.mubr.f32.mxu0 %v15865_v36  ;;  %v9701_v12 = vpop.f32.mrf.mxu0 }
 0x8b7   :  { %v5965_v19 = vpop.f32.mrf.mxu0 }
 0x8b8   :  { %9041 = vmatmul.mubr.msk.f32.gmra.mxu1 %vm4988_vm3, %v9651_v55  ;;  %9089 = vmatmul.mubr.msk.f32.gmra.mxu0 %vm4988_vm3, %v9695_v20  ;;  %v9107_v55 = vld [vmem:[%s15622_s6 + $0x228] sm:$0xff] }
 0x8b9   :  { %5795 = vmatprep.mubr.f32.mxu1 %v15865_v36  ;;  %6179 = vmatprep.mubr.f32.mxu0 %v15865_v36  ;;  %v9704_v13 = vpop.f32.mrf.mxu0 }
 0x8bb   :  { %v5975_v40 = vpop.f32.mrf.mxu0 }
 0x8bc   :  { %9042 = vmatmul.mubr.msk.f32.gmra.mxu1 %vm4988_vm3, %v5563_v62  ;;  %9090 = vmatmul.mubr.msk.f32.gmra.mxu0 %vm4988_vm3, %v5955_v7  ;;  %v9109_v62 = vld [vmem:[%s15622_s6 + $0x238] sm:$0xff] }
 0x8bd   :  { %5801 = vmatprep.mubr.f32.mxu1 %v15865_v36  ;;  %6185 = vmatprep.mubr.f32.mxu0 %v15865_v36  ;;  %v9707_v16 = vpop.f32.mrf.mxu0 }
 0x8bf   :  { %v5985_v39 = vpop.f32.mrf.mxu0 }
 0x8c0   :  { %9043 = vmatmul.mubr.msk.f32.gmra.mxu1 %vm4988_vm3, %v9654_v31  ;;  %9091 = vmatmul.mubr.msk.f32.gmra.mxu0 %vm4988_vm3, %v9698_v22  ;;  %v9114_v22 = vld [vmem:[%s15622_s6 + $0x260] sm:$0xff] }
 0x8c1   :  { %5807 = vmatprep.mubr.f32.mxu1 %v15865_v36  ;;  %6191 = vmatprep.mubr.f32.mxu0 %v15865_v36  ;;  %v9710_v31 = vpop.f32.mrf.mxu0 }
 0x8c4   :  { %9044 = vmatmul.mubr.msk.f32.gmra.mxu1 %vm4988_vm3, %v5573_v45  ;;  %9092 = vmatmul.mubr.msk.f32.gmra.mxu0 %vm4988_vm3, %v5965_v19  ;;  %v5995_v45 = vpop.f32.mrf.mxu0  ;;  %v9116_v19 = vld [vmem:[%s15622_s6 + $0x270] sm:$0xff] }
 0x8c5   :  { %5813 = vmatprep.mubr.f32.mxu1 %v15865_v36  ;;  %6197 = vmatprep.mubr.f32.mxu0 %v15865_v36 }
 0x8c6   :  { %v9713_v20 = vpop.f32.mrf.mxu0 }
 0x8c8   :  { %9045 = vmatmul.mubr.msk.f32.gmra.mxu1 %vm4988_vm3, %v9657_v5  ;;  %9093 = vmatmul.mubr.msk.f32.gmra.mxu0 %vm4988_vm3, %v9701_v12  ;;  %v9110_v5 = vld [vmem:[%s15622_s6 + $0x240] sm:$0xff]  ;;  %v6005_v7 = vpop.f32.mrf.mxu0  ;;  %v9115_v12 = vld [vmem:[%s15622_s6 + $0x268] sm:$0xff] }
 0x8c9   :  { %6203 = vmatprep.mubr.f32.mxu0 %v15865_v36  ;;  %9746 = vmatprep.mubr.f32.mxu1 %v9102_v30  ;;  %v9139_v30 = vld [vmem:[%s15623_s7 + $0x368] sm:$0xf] }
 0x8ca   :  { %9140 = vmatprep.subr.msk.mxu1 %vm5037_vm2, %v9139_v30 }
 0x8cc   :  { %9094 = vmatmul.mubr.msk.f32.gmra.mxu0 %vm4988_vm3, %v5975_v40  ;;  %9747 = vmatmul.mubr.f32.vlgmr.msra.gmra.mxu1 %v9103_v6  ;;  %v9138_v40 = vld [vmem:[%s15623_s7 + $0x360] sm:$0xf]  ;;  %v9137_v6 = vld [vmem:[%s15623_s7 + $0x358] sm:$0xff] }
 0x8cd   :  { %6209 = vmatprep.mubr.f32.mxu0 %v15865_v36  ;;  %9749 = vmatprep.mubr.f32.mxu1 %v9104_v59  ;;  %v9136_v59 = vld [vmem:[%s15623_s7 + $0x350] sm:$0xff] }
 0x8ce   :  { %9141 = vmatpush1.msk.msra.mxu1 %vm5037_vm2, %v9138_v40 }
 0x8cf   :  { %6535 = vmatprep.subr.mxu1 %v9137_v6 }
 0x8d0   :  { %9095 = vmatmul.mubr.msk.f32.gmra.mxu0 %vm4988_vm3, %v9704_v13  ;;  %9750 = vmatmul.mubr.f32.gmra.mxu1 %v9105_v44  ;;  %v9117_v13 = vld [vmem:[%s15622_s6 + $0x278] sm:$0xff]  ;;  %v9134_v44 = vld [vmem:[%s15623_s7 + $0x340] sm:$0xff] }
 0x8d1   :  { %6215 = vmatprep.mubr.f32.mxu0 %v15865_v36  ;;  %9752 = vmatprep.mubr.f32.mxu1 %v9106_v53  ;;  %v9133_v53 = vld [vmem:[%s15623_s7 + $0x338] sm:$0xff] }
 0x8d2   :  { %6536 = vmatpush1.msra.mxu1 %v9136_v59 }
 0x8d4   :  { %9096 = vmatmul.mubr.msk.f32.gmra.mxu0 %vm4988_vm3, %v5985_v39  ;;  %9753 = vmatmul.mubr.f32.gmra.mxu1 %v9107_v55  ;;  %v9132_v39 = vld [vmem:[%s15623_s7 + $0x330] sm:$0xff]  ;;  %v9131_v55 = vld [vmem:[%s15623_s7 + $0x328] sm:$0xff] }
 0x8d5   :  { %6221 = vmatprep.mubr.f32.mxu0 %v15865_v36  ;;  %9755 = vmatprep.mubr.f32.mxu1 %v9108_v38  ;;  %v9130_v38 = vld [vmem:[%s15623_s7 + $0x320] sm:$0xff] }
 0x8d8   :  { %9097 = vmatmul.mubr.msk.f32.gmra.mxu0 %vm4988_vm3, %v9707_v16  ;;  %9756 = vmatmul.mubr.f32.gmra.mxu1 %v9109_v62  ;;  %v9135_v16 = vld [vmem:[%s15623_s7 + $0x348] sm:$0xff]  ;;  %v9128_v62 = vld [vmem:[%s15623_s7 + $0x310] sm:$0xff] }
 0x8d9   :  { %6227 = vmatprep.mubr.f32.mxu0 %v15865_v36  ;;  %9758 = vmatprep.mubr.f32.mxu1 %v9110_v5  ;;  %v9127_v5 = vld [vmem:[%s15623_s7 + $0x308] sm:$0xff] }
 0x8da   :  { %6537 = vmatprep.subr.mxu1 %v9135_v16 }
 0x8db   :  { %6538 = vmatpush1.msra.mxu1 %v9134_v44 }
 0x8dc   :  { %9098 = vmatmul.mubr.msk.f32.gmra.mxu0 %vm4988_vm3, %v5995_v45  ;;  %9759 = vmatmul.mubr.f32.gmra.mxu1 %v9111_v37  ;;  %v9126_v45 = vld [vmem:[%s15623_s7 + $0x300] sm:$0xff]  ;;  %v9125_v37 = vld [vmem:[%s15623_s7 + $0x2f8] sm:$0xff] }
 0x8dd   :  { %6233 = vmatprep.mubr.f32.mxu0 %v15865_v36  ;;  %9761 = vmatprep.mubr.f32.mxu1 %v9112_v42  ;;  %v9124_v42 = vld [vmem:[%s15623_s7 + $0x2f0] sm:$0xff] }
 0x8de   :  { %6539 = vmatprep.subr.mxu1 %v9133_v53 }
 0x8df   :  { %6540 = vmatpush1.msra.mxu1 %v9132_v39 }
 0x8e0   :  { %9099 = vmatmul.mubr.msk.f32.gmra.mxu0 %vm4988_vm3, %v9710_v31  ;;  %9762 = vmatmul.mubr.f32.gmra.mxu1 %v9113_v23  ;;  %v9129_v31 = vld [vmem:[%s15623_s7 + $0x318] sm:$0xff]  ;;  %v9122_v23 = vld [vmem:[%s15623_s7 + $0x2e0] sm:$0xff] }
 0x8e1   :  { %6239 = vmatprep.mubr.f32.mxu0 %v15865_v36  ;;  %9764 = vmatprep.mubr.f32.mxu1 %v9114_v22  ;;  %v9121_v22 = vld [vmem:[%s15623_s7 + $0x2d8] sm:$0xff] }
 0x8e2   :  { %6541 = vmatprep.subr.mxu1 %v9131_v55 }
 0x8e3   :  { %6542 = vmatpush1.msra.mxu1 %v9130_v38 }
 0x8e4   :  { %9100 = vmatmul.mubr.msk.f32.gmra.mxu0 %vm4988_vm3, %v6005_v7  ;;  %9765 = vmatmul.mubr.f32.gmra.mxu1 %v9115_v12  ;;  %v9120_v7 = vld [vmem:[%s15623_s7 + $0x2d0] sm:$0xff]  ;;  %v9119_v12 = vld [vmem:[%s15623_s7 + $0x2c8] sm:$0xff] }
 0x8e5   :  { %6245 = vmatprep.mubr.f32.mxu0 %v15865_v36  ;;  %9767 = vmatprep.mubr.f32.mxu1 %v9116_v19  ;;  %v9118_v19 = vld [vmem:[%s15623_s7 + $0x2c0] sm:$0xff] }
 0x8e6   :  { %6543 = vmatprep.subr.mxu1 %v9129_v31 }
 0x8e7   :  { %6544 = vmatpush1.msra.mxu1 %v9128_v62 }
 0x8e8   :  { %9101 = vmatmul.mubr.msk.f32.gmra.mxu0 %vm4988_vm3, %v9713_v20  ;;  %9768 = vmatmul.mubr.f32.gmra.mxu1 %v9117_v13  ;;  %v9123_v20 = vld [vmem:[%s15623_s7 + $0x2e8] sm:$0xff]  ;;  %v14646_v13 = vpop.f32.mrf.mxu1 }
 0x8e9   :  { %6587 = vmatprep.mubr.f32.mxu1 %v15865_v36  ;;  %6864 = vmatprep.mubr.f32.mxu0 %v15865_v36 }
 0x8ea   :  { %6545 = vmatprep.subr.mxu1 %v9127_v5 }
 0x8eb   :  { %6546 = vmatpush1.msra.mxu1 %v9126_v45 }
 0x8ec   :  { %6547 = vmatprep.subr.mxu1 %v9125_v37 }
 0x8ed   :  { %6548 = vmatpush1.msra.mxu1 %v9124_v42 }
 0x8ee   :  { %6549 = vmatprep.subr.mxu1 %v9123_v20 }
 0x8ef   :  { %6550 = vmatpush1.msra.mxu1 %v9122_v23 }
 0x8f0   :  { %6551 = vmatprep.subr.mxu1 %v9121_v22 }
 0x8f1   :  { %6552 = vmatpush1.msra.mxu1 %v9120_v7 }
 0x8f2   :  { %6553 = vmatprep.subr.mxu1 %v9119_v12 }
 0x8f3   :  { %6554 = vmatpush1.msra.mxu1 %v9118_v19 }
 0x8f4   :  { %7096 = vmatprep.subr.mxu1 %v15865_v36 }
 0x94c   :  { %v5725_v30 = vpop.f32.mrf.mxu1 }
 0x94d   :  { %v5820_v40 = vadd.f32 %v5725_v30, %v14340_v1 }
 0x94e   :  { %v5727_v6 = vpop.f32.mrf.mxu1 }
 0x950   :  { %v5731_v59 = vpop.f32.mrf.mxu1 }
 0x951   :  { %v5822_v16 = vadd.f32 %v5731_v59, %v14346_v61 }
 0x952   :  { %v5733_v44 = vpop.f32.mrf.mxu1 }
 0x954   :  { %v5737_v53 = vpop.f32.mrf.mxu1 }
 0x955   :  { %v5824_v39 = vadd.f32 %v5737_v53, %v14352_v8 }
 0x956   :  { %v5739_v55 = vpop.f32.mrf.mxu1 }
 0x958   :  { %v5743_v38 = vpop.f32.mrf.mxu1 }
 0x959   :  { %v5826_v31 = vadd.f32 %v5743_v38, %v14358_v48 }
 0x95a   :  { %v5745_v62 = vpop.f32.mrf.mxu1 }
 0x95c   :  { %v5749_v5 = vpop.f32.mrf.mxu1 }
 0x95d   :  { %v5828_v45 = vadd.f32 %v5749_v5, %v14364_v4  ;;  %v5328_v4 = vadd.f32 %v14344_v33, %v14342_v24 }
 0x95e   :  { %v5751_v37 = vpop.f32.mrf.mxu1 }
 0x95f   :  { %v5821_v19 = vadd.f32 %v5727_v6, %v5328_v4  ;;  %v5340_v6 = vadd.f32 %v14356_v25, %v14354_v10 }
 0x960   :  { %v5755_v42 = vpop.f32.mrf.mxu1 }
 0x961   :  { %v14654_v1 = vadd.f32 %v5755_v42, %v14370_v27 }
 0x962   :  { %v14656_v20 = vpop.f32.mrf.mxu1 }
 0x963   :  { %15873 = vst [vmem:[#allocation66_spill] sm:$0xff] %v14654_v1 }
 0x964   :  { %v5761_v61 = vpop.f32.mrf.mxu1 }
 0x965   :  { %v14659_v23 = vadd.f32 %v5761_v61, %v14376_v32 }
 0x966   :  { %v14661_v8 = vpop.f32.mrf.mxu1 }
 0x967   :  { %15874 = vst [vmem:[#allocation27_spill] sm:$0xff] %v14659_v23 }
 0x968   :  { %v5767_v22 = vpop.f32.mrf.mxu1 }
 0x969   :  { %v14664_v48 = vadd.f32 %v5767_v22, %v14382_v57  ;;  %v5334_v57 = vadd.f32 %v14350_v46, %v14348_v63  ;;  %v5825_v46 = vadd.f32 %v5739_v55, %v5340_v6 }
 0x96a   :  { %v14666_v7 = vpop.f32.mrf.mxu1 }
 0x96b   :  { %15875 = vst [vmem:[#allocation64_spill] sm:$0xff] %v14664_v48  ;;  %v5823_v61 = vadd.f32 %v5733_v44, %v5334_v57  ;;  %v5364_v48 = vadd.f32 %v14380_v21, %v14378_v51  ;;  %v15908_v21 = vld [vmem:[#allocation69_spill] sm:$0xff] }
 0x96c   :  { %v5773_v12 = vpop.f32.mrf.mxu1  ;;  %v6157_v27 = vpop.f32.mrf.mxu0 }
 0x96d   :  { %v14671_v30 = vadd.f32 %v5773_v12, %v14388_v54  ;;  %v14673_v59 = vadd.f32 %v6157_v27, %v5820_v40  ;;  %v5346_v27 = vadd.f32 %v14362_v3, %v14360_v14 }
 0x96e   :  { %v14675_v32 = vpop.f32.mrf.mxu1  ;;  %v6159_v53 = vpop.f32.mrf.mxu0 }
 0x96f   :  { %15876 = vst [vmem:[#allocation67_spill] sm:$0xff] %v14671_v30  ;;  %v14679_v38 = vadd.f32 %v6159_v53, %v5821_v19  ;;  %v5827_v25 = vadd.f32 %v5745_v62, %v5346_v27  ;;  %v15905_v30 = vld [vmem:[#allocation70_spill] sm:$0xff] }
 0x970   :  { %v5779_v5 = vpop.f32.mrf.mxu1  ;;  %v6163_v42 = vpop.f32.mrf.mxu0 }
 0x971   :  { %v14682_v24 = vadd.f32 %v5779_v5, %v14394_v29  ;;  %v14684_v33 = vadd.f32 %v6163_v42, %v5822_v16  ;;  %v5352_v5 = vadd.f32 %v14368_v60, %v14366_v34 }
 0x972   :  { %v14686_v54 = vpop.f32.mrf.mxu1  ;;  %v6165_v40 = vpop.f32.mrf.mxu0 }
 0x973   :  { %v14690_v22 = vadd.f32 %v6165_v40, %v5823_v61  ;;  %v5829_v3 = vadd.f32 %v5751_v37, %v5352_v5 }
 0x974   :  { %v5785_v4 = vpop.f32.mrf.mxu1  ;;  %v6169_v63 = vpop.f32.mrf.mxu0 }
 0x975   :  { %v14693_v12 = vadd.f32 %v5785_v4, %v14400_v56  ;;  %v14695_v44 = vadd.f32 %v6169_v63, %v5824_v39 }
 0x976   :  { %v14697_v29 = vpop.f32.mrf.mxu1  ;;  %v6171_v16 = vpop.f32.mrf.mxu0 }
 0x977   :  { %v14701_v19 = vadd.f32 %v6171_v16, %v5825_v46 }
 0x978   :  { %v5791_v53 = vpop.f32.mrf.mxu1  ;;  %v6175_v10 = vpop.f32.mrf.mxu0 }
 0x979   :  { %v14704_v57 = vadd.f32 %v5791_v53, %v14406_v47  ;;  %v14706_v55 = vadd.f32 %v6175_v10, %v5826_v31 }
 0x97a   :  { %v14708_v56 = vpop.f32.mrf.mxu1  ;;  %v6177_v39 = vpop.f32.mrf.mxu0 }
 0x97b   :  { %v14712_v42 = vadd.f32 %v6177_v39, %v5827_v25 }
 0x97c   :  { %v5797_v61 = vpop.f32.mrf.mxu1  ;;  %v6181_v14 = vpop.f32.mrf.mxu0 }
 0x97d   :  { %v14715_v40 = vadd.f32 %v5797_v61, %v14412_v43  ;;  %v14717_v62 = vadd.f32 %v6181_v14, %v5828_v45 }
 0x97e   :  { %v14719_v47 = vpop.f32.mrf.mxu1  ;;  %v6183_v31 = vpop.f32.mrf.mxu0 }
 0x97f   :  { %v14721_v6 = vadd.f32 %v6183_v31, %v5829_v3 }
 0x980   :  { %v5803_v4 = vpop.f32.mrf.mxu1 }
 0x981   :  { %v14724_v63 = vadd.f32 %v5803_v4, %v14418_v9 }
 0x982   :  { %v14726_v34 = vpop.f32.mrf.mxu1 }
 0x984   :  { %v5809_v60 = vpop.f32.mrf.mxu1 }
 0x985   :  { %v14729_v46 = vadd.f32 %v5809_v60, %v14424_v58 }
 0x986   :  { %v14731_v37 = vpop.f32.mrf.mxu1 }
 0x988   :  { %v5815_v43 = vpop.f32.mrf.mxu1 }
 0x989   :  { %v14734_v45 = vadd.f32 %v5815_v43, %v14430_v49 }
 0x98a   :  { %v14736_v16 = vpop.f32.mrf.mxu1 }
 0x98c   :  { %v9748_v27 = vpop.f32.mrf.mxu1 }
 0x98e   :  { %v6367_v53 = vpop.f32.mrf.mxu1 }
 0x98f   :  { %9142 = vmatmul.mubr.msk.f32.vlgmr.msra.gmra.mxu1 %vm4988_vm3, %v6367_v53 }
 0x990   :  { %6593 = vmatprep.mubr.f32.mxu1 %v15865_v36  ;;  %v9751_v9 = vpop.f32.mrf.mxu1 }
 0x992   :  { %v6377_v58 = vpop.f32.mrf.mxu1 }
 0x993   :  { %9143 = vmatmul.mubr.msk.f32.gmra.mxu1 %vm4988_vm3, %v9748_v27  ;;  %v14769_v27 = vpop.f32.mrf.mxu0 }
 0x994   :  { %6599 = vmatprep.mubr.f32.mxu1 %v15865_v36  ;;  %v9754_v49 = vpop.f32.mrf.mxu1  ;;  %15877 = vst [vmem:[#allocation26_spill] sm:$0xff] %v14769_v27 }
 0x995   :  { %v14771_v53 = vpop.f32.mrf.mxu0 }
 0x996   :  { %v6387_v10 = vpop.f32.mrf.mxu1  ;;  %15878 = vst [vmem:[#allocation62_spill] sm:$0xff] %v14771_v53 }
 0x997   :  { %9144 = vmatmul.mubr.msk.f32.gmra.mxu1 %vm4988_vm3, %v6377_v58 }
 0x998   :  { %6605 = vmatprep.mubr.f32.mxu1 %v15865_v36  ;;  %v9757_v25 = vpop.f32.mrf.mxu1 }
 0x99a   :  { %v6397_v39 = vpop.f32.mrf.mxu1 }
 0x99b   :  { %9145 = vmatmul.mubr.msk.f32.gmra.mxu1 %vm4988_vm3, %v9751_v9  ;;  %v14773_v9 = vpop.f32.mrf.mxu0 }
 0x99c   :  { %6611 = vmatprep.mubr.f32.mxu1 %v15865_v36  ;;  %v9760_v5 = vpop.f32.mrf.mxu1  ;;  %15879 = vst [vmem:[#allocation65_spill] sm:$0xff] %v14773_v9 }
 0x99d   :  { %v14775_v58 = vpop.f32.mrf.mxu0 }
 0x99e   :  { %v6407_v61 = vpop.f32.mrf.mxu1  ;;  %15880 = vst [vmem:[#allocation22_spill] sm:$0xff] %v14775_v58 }
 0x99f   :  { %9146 = vmatmul.mubr.msk.f32.gmra.mxu1 %vm4988_vm3, %v6387_v10 }
 0x9a0   :  { %6617 = vmatprep.mubr.f32.mxu1 %v15865_v36  ;;  %v9763_v14 = vpop.f32.mrf.mxu1 }
 0x9a2   :  { %v6417_v3 = vpop.f32.mrf.mxu1 }
 0x9a3   :  { %9147 = vmatmul.mubr.msk.f32.gmra.mxu1 %vm4988_vm3, %v9754_v49  ;;  %v14777_v49 = vpop.f32.mrf.mxu0 }
 0x9a4   :  { %6623 = vmatprep.mubr.f32.mxu1 %v15865_v36  ;;  %v9766_v31 = vpop.f32.mrf.mxu1  ;;  %15881 = vst [vmem:[#allocation60_spill] sm:$0xff] %v14777_v49  ;;  %v5412_v49 = vadd.f32 %v14428_v41, %v14426_v18  ;;  %v5418_v18 = vadd.f32 %v14646_v13, %v14432_v28  ;;  %v15910_v41 = vld [vmem:[#allocation68_spill] sm:$0xff] }
 0x9a5   :  { %v14779_v10 = vpop.f32.mrf.mxu0 }
 0x9a6   :  { %v6427_v4 = vpop.f32.mrf.mxu1  ;;  %15882 = vst [vmem:[#allocation63_spill] sm:$0xff] %v14779_v10  ;;  %v5376_v10 = vadd.f32 %v14392_v35, %v14390_v0  ;;  %v5849_v51 = vadd.f32 %v14731_v37, %v5412_v49  ;;  %v15911_v0 = vld [vmem:[#allocation35_spill] sm:$0xff]  ;;  %v5851_v28 = vadd.f32 %v14736_v16, %v5418_v18  ;;  %v6716_v49 = vld [vmem:[%s15624_s8] sm:$0x3] }
 0x9a7   :  { %9148 = vmatmul.mubr.msk.f32.gmra.mxu1 %vm4988_vm3, %v6397_v39  ;;  %v5400_v35 = vadd.f32 %v15911_v0, %v15910_v41 }
 0x9a8   :  { %6629 = vmatprep.mubr.f32.mxu1 %v15865_v36  ;;  %v9769_v60 = vpop.f32.mrf.mxu1 }
 0x9aa   :  { %v6437_v43 = vpop.f32.mrf.mxu1 }
 0x9ab   :  { %9149 = vmatmul.mubr.msk.f32.gmra.mxu1 %vm4988_vm3, %v9757_v25  ;;  %v14781_v25 = vpop.f32.mrf.mxu0 }
 0x9ac   :  { %6635 = vmatprep.mubr.f32.mxu1 %v15865_v36  ;;  %15883 = vst [vmem:[#allocation61_spill] sm:$0xff] %v14781_v25 }
 0x9af   :  { %9150 = vmatmul.mubr.msk.f32.gmra.mxu1 %vm4988_vm3, %v6407_v61  ;;  %v14786_v61 = vpop.f32.mrf.mxu0 }
 0x9b0   :  { %6641 = vmatprep.mubr.f32.mxu1 %v15865_v36  ;;  %15885 = vst [vmem:[#allocation23_spill] sm:$0xff] %v14786_v61 }
 0x9b3   :  { %9151 = vmatmul.mubr.msk.f32.gmra.mxu1 %vm4988_vm3, %v9760_v5 }
 0x9b4   :  { %6647 = vmatprep.mubr.f32.mxu1 %v15865_v36 }
 0x9b7   :  { %9152 = vmatmul.mubr.msk.f32.gmra.mxu1 %vm4988_vm3, %v6417_v3 }
 0x9b8   :  { %6653 = vmatprep.mubr.f32.mxu1 %v15865_v36 }
 0x9bb   :  { %9153 = vmatmul.mubr.msk.f32.gmra.mxu1 %vm4988_vm3, %v9763_v14 }
 0x9bc   :  { %6659 = vmatprep.mubr.f32.mxu1 %v15865_v36 }
 0x9bf   :  { %9154 = vmatmul.mubr.msk.f32.gmra.mxu1 %vm4988_vm3, %v6427_v4 }
 0x9c0   :  { %6665 = vmatprep.mubr.f32.mxu1 %v15865_v36 }
 0x9c3   :  { %9155 = vmatmul.mubr.msk.f32.gmra.mxu1 %vm4988_vm3, %v9766_v31 }
 0x9c4   :  { %6671 = vmatprep.mubr.f32.mxu1 %v15865_v36 }
 0x9c7   :  { %9156 = vmatmul.mubr.msk.f32.gmra.mxu1 %vm4988_vm3, %v6437_v43 }
 0x9c8   :  { %6677 = vmatprep.mubr.f32.mxu1 %v15865_v36 }
 0x9cb   :  { %9157 = vmatmul.mubr.msk.f32.gmra.mxu1 %vm4988_vm3, %v9769_v60  ;;  %v14794_v60 = vpop.f32.mrf.mxu0 }
 0xa4f   :  { %v6589_v39 = vpop.f32.mrf.mxu1 }
 0xa50   :  { %v14784_v5 = vadd.f32 %v6589_v39, %v14673_v59  ;;  %v14802_v39 = vpop.f32.mrf.mxu0 }
 0xa51   :  { %v6591_v14 = vpop.f32.mrf.mxu1 }
 0xa52   :  { %15884 = vst [vmem:[#allocation59_spill] sm:$0xff] %v14784_v5  ;;  %v14789_v3 = vadd.f32 %v6591_v14, %v14679_v38 }
 0xa53   :  { %v6595_v31 = vpop.f32.mrf.mxu1 }
 0xa54   :  { %15886 = vst [vmem:[#allocation56_spill] sm:$0xff] %v14789_v3  ;;  %v14792_v4 = vadd.f32 %v6595_v31, %v14684_v33  ;;  %v14810_v31 = vpop.f32.mrf.mxu0 }
 0xa55   :  { %v6597_v43 = vpop.f32.mrf.mxu1  ;;  %v6272_v41 = vadd.f32 %v14810_v31, %v14693_v12  ;;  %v6270_v12 = vadd.f32 %v14794_v60, %v14682_v24  ;;  %v15917_v24 = vld [vmem:[#allocation67_spill] sm:$0xff]  ;;  %v15918_v60 = vld [vmem:[#allocation61_spill] sm:$0xff] }
 0xa56   :  { %15887 = vst [vmem:[#allocation19_spill] sm:$0xff] %v14792_v4  ;;  %v14797_v27 = vadd.f32 %v6597_v43, %v14690_v22 }
 0xa57   :  { %v6601_v1 = vpop.f32.mrf.mxu1 }
 0xa58   :  { %15888 = vst [vmem:[#allocation54_spill] sm:$0xff] %v14797_v27  ;;  %v14800_v59 = vadd.f32 %v6601_v1, %v14695_v44  ;;  %v14818_v44 = vpop.f32.mrf.mxu0 }
 0xa59   :  { %v6603_v5 = vpop.f32.mrf.mxu1 }
 0xa5a   :  { %15889 = vst [vmem:[#allocation24_spill] sm:$0xff] %v14800_v59  ;;  %v14805_v38 = vadd.f32 %v6603_v5, %v14701_v19 }
 0xa5b   :  { %v6607_v14 = vpop.f32.mrf.mxu1 }
 0xa5c   :  { %15890 = vst [vmem:[#allocation58_spill] sm:$0xff] %v14805_v38  ;;  %v14808_v33 = vadd.f32 %v6607_v14, %v14706_v55  ;;  %v14825_v55 = vpop.f32.mrf.mxu0 }
 0xa5d   :  { %v6609_v3 = vpop.f32.mrf.mxu1 }
 0xa5e   :  { %15891 = vst [vmem:[#allocation57_spill] sm:$0xff] %v14808_v33  ;;  %v14813_v22 = vadd.f32 %v6609_v3, %v14712_v42  ;;  %v14831_v42 = vpop.f32.mrf.mxu0 }
 0xa5f   :  { %v6613_v43 = vpop.f32.mrf.mxu1 }
 0xa60   :  { %15892 = vst [vmem:[#allocation55_spill] sm:$0xff] %v14813_v22  ;;  %v14816_v1 = vadd.f32 %v6613_v43, %v14717_v62  ;;  %v14837_v43 = vpop.f32.mrf.mxu0 }
 0xa61   :  { %v6615_v4 = vpop.f32.mrf.mxu1 }
 0xa62   :  { %15893 = vst [vmem:[#allocation21_spill] sm:$0xff] %v14816_v1  ;;  %v14821_v19 = vadd.f32 %v6615_v4, %v14721_v6  ;;  %v7066_v4 = vld [vmem:[#allocation4 + $0x78] sm:$0xff]  ;;  %v6231_v38 = vpop.f32.mrf.mxu0 }
 0xa63   :  { %v14823_v5 = vpop.f32.mrf.mxu1  ;;  %7097 = vmatpush1.msra.mxu1 %v7066_v4 }
 0xa64   :  { %15894 = vst [vmem:[#allocation49_spill] sm:$0xff] %v14821_v19  ;;  %15895 = vst [vmem:[#allocation53_spill] sm:$0xff] %v14823_v5  ;;  %7098 = vmatprep.subr.mxu1 %v15865_v36  ;;  %v6235_v1 = vpop.f32.mrf.mxu0 }
 0xa65   :  { %v14827_v14 = vpop.f32.mrf.mxu1 }
 0xa66   :  { %15896 = vst [vmem:[#allocation20_spill] sm:$0xff] %v14827_v14  ;;  %v6237_v14 = vpop.f32.mrf.mxu0 }
 0xa67   :  { %v14829_v27 = vpop.f32.mrf.mxu1 }
 0xa68   :  { %15897 = vst [vmem:[#allocation50_spill] sm:$0xff] %v14829_v27  ;;  %v6241_v53 = vpop.f32.mrf.mxu0 }
 0xa69   :  { %v14833_v3 = vpop.f32.mrf.mxu1 }
 0xa6a   :  { %15898 = vst [vmem:[#allocation51_spill] sm:$0xff] %v14833_v3  ;;  %v6243_v23 = vpop.f32.mrf.mxu0 }
 0xa6b   :  { %v14835_v62 = vpop.f32.mrf.mxu1  ;;  %v6281_v13 = vadd.f32 %v6243_v23, %v5849_v51 }
 0xa6c   :  { %15899 = vst [vmem:[#allocation16_spill] sm:$0xff] %v14835_v62  ;;  %v6247_v58 = vpop.f32.mrf.mxu0 }
 0xa6d   :  { %v14839_v59 = vpop.f32.mrf.mxu1  ;;  %v6282_v37 = vadd.f32 %v6247_v58, %v14734_v45  ;;  %v6278_v45 = vadd.f32 %v6235_v1, %v14724_v63  ;;  %v15912_v58 = vld [vmem:[#allocation71_spill] sm:$0xff] }
 0xa6e   :  { %15900 = vst [vmem:[#allocation48_spill] sm:$0xff] %v14839_v59  ;;  %v15913_v18 = vsub.s32 0, %v15912_v58 }
 0xa6f   :  { %v14841_v6 = vpop.f32.mrf.mxu1 }
 0xa70   :  { %15901 = vst [vmem:[#allocation46_spill] sm:$0xff] %v14841_v6  ;;  %v5358_v6 = vadd.f32 %v14374_v50, %v14372_v52  ;;  %v15907_v52 = vld [vmem:[#allocation25_spill] sm:$0xff]  ;;  %v14899_v51 = vrot.slane %v6716_v49, %v15913_v18 }
 0xa71   :  { %v14843_v33 = vpop.f32.mrf.mxu1  ;;  %v5406_v50 = vadd.f32 %v15907_v52, %v14420_v15 }
 0xa72   :  { %15902 = vst [vmem:[#allocation18_spill] sm:$0xff] %v14843_v33  ;;  %v5370_v33 = vadd.f32 %v14386_v26, %v14384_v2  ;;  %v15909_v2 = vld [vmem:[#allocation29_spill] sm:$0xff] }
 0xa73   :  { %v14846_v22 = vpop.f32.mrf.mxu1  ;;  %v5394_v26 = vadd.f32 %v15909_v2, %v15908_v21  ;;  %v5847_v15 = vadd.f32 %v14726_v34, %v5406_v50 }
 0xa74   :  { %15903 = vst [vmem:[#allocation43_spill] sm:$0xff] %v14846_v22  ;;  %v5382_v22 = vadd.f32 %v14398_v11, %v14396_v17  ;;  %v14880_v17 = vadd.f32 %v14656_v20, %v5358_v6  ;;  %v14883_v11 = vadd.f32 %v14661_v8, %v5364_v48  ;;  %v5835_v52 = vadd.f32 %v14666_v7, %v5370_v33 }
 0xa75   :  { %v14848_v19 = vpop.f32.mrf.mxu1  ;;  %v5837_v20 = vadd.f32 %v14675_v32, %v5376_v10  ;;  %v5845_v8 = vadd.f32 %v14719_v47, %v5400_v35  ;;  %v6280_v48 = vadd.f32 %v6241_v53, %v14729_v46  ;;  %v6279_v21 = vadd.f32 %v6237_v14, %v5847_v15 }
 0xa76   :  { %15904 = vst [vmem:[#allocation47_spill] sm:$0xff] %v14848_v19  ;;  %v15906_v19 = vld [vmem:[#allocation30_spill] sm:$0xff]  ;;  %v5843_v23 = vadd.f32 %v14708_v56, %v5394_v26  ;;  %v15914_v47 = vsub.s32 1, %v15912_v58  ;;  %v6276_v56 = vadd.f32 %v14837_v43, %v14715_v40 }
 0xa77   :  { %v14850_v5 = vpop.f32.mrf.mxu1  ;;  %v5388_v61 = vadd.f32 %v15906_v19, %v15905_v30  ;;  %v6249_v30 = vpop.f32.mrf.mxu0  ;;  %v6277_v32 = vadd.f32 %v6231_v38, %v5845_v8 }
 0xa78   :  { %v6283_v34 = vadd.f32 %v6249_v30, %v5851_v28  ;;  %v14903_v10 = vrot.slane %v6716_v49, %v15914_v47  ;;  %v6275_v1 = vadd.f32 %v14831_v42, %v5843_v23  ;;  %v6704_v31 = vadd.f32 %v14850_v5, %v6272_v41 }
 0xa79   :  { %v14852_v27 = vpop.f32.mrf.mxu1  ;;  %v5841_v14 = vadd.f32 %v14697_v29, %v5388_v61  ;;  %v6274_v29 = vadd.f32 %v14825_v55, %v14704_v57  ;;  %v6268_v5 = vadd.f32 %v15918_v60, %v15917_v24 }
 0xa7a   :  { %v14982_v18 = vadd.f32 %v14899_v51, %v6704_v31  ;;  %v15934_v31 = vld [vmem:[#allocation50_spill] sm:$0xff] }
 0xa7b   :  { %v14854_v3 = vpop.f32.mrf.mxu1  ;;  %v6273_v43 = vadd.f32 %v14818_v44, %v5841_v14  ;;  %v15919_v28 = vld [vmem:[#allocation43_spill] sm:$0xff] }
 0xa7c   :  { %v15927_v14 = vld [vmem:[#allocation27_spill] sm:$0xff] }
 0xa7d   :  { %v6657_v62 = vpop.f32.mrf.mxu1  ;;  %v6705_v44 = vadd.f32 %v14852_v27, %v6273_v43  ;;  %v15915_v27 = vld [vmem:[#allocation23_spill] sm:$0xff] }
 0xa7e   :  { %v6269_v0 = vadd.f32 %v15915_v27, %v5837_v20  ;;  %v15916_v35 = vld [vmem:[#allocation47_spill] sm:$0xff] }
 0xa7f   :  { %v6661_v9 = vpop.f32.mrf.mxu1  ;;  %v15920_v20 = vld [vmem:[#allocation63_spill] sm:$0xff] }
 0xa80   :  { %v6708_v61 = vadd.f32 %v6661_v9, %v6276_v56  ;;  %v6267_v8 = vadd.f32 %v15920_v20, %v5835_v52  ;;  %v15928_v56 = vld [vmem:[#allocation65_spill] sm:$0xff]  ;;  %v15931_v43 = vld [vmem:[#allocation51_spill] sm:$0xff] }
 0xa81   :  { %v6663_v59 = vpop.f32.mrf.mxu1 }
 0xa83   :  { %v6667_v4 = vpop.f32.mrf.mxu1 }
 0xa84   :  { %v6710_v2 = vadd.f32 %v6667_v4, %v6278_v45  ;;  %v6707_v4 = vadd.f32 %v6657_v62, %v6275_v1  ;;  %v15924_v45 = vld [vmem:[#allocation46_spill] sm:$0xff]  ;;  %v15929_v1 = vld [vmem:[#allocation16_spill] sm:$0xff] }
 0xa85   :  { %v6669_v36 = vpop.f32.mrf.mxu1  ;;  %v6700_v58 = vadd.f32 %v15924_v45, %v6268_v5  ;;  %v15936_v5 = vld [vmem:[#allocation53_spill] sm:$0xff] }
 0xa86   :  { %v6711_v46 = vadd.f32 %v6669_v36, %v6279_v21  ;;  %v5839_v36 = vadd.f32 %v14686_v54, %v5382_v22  ;;  %v6706_v54 = vadd.f32 %v14854_v3, %v6274_v29  ;;  %v14933_v22 = vadd.f32 %v14899_v51, %v6710_v2  ;;  %v15930_v29 = vld [vmem:[#allocation62_spill] sm:$0xff] }
 0xa87   :  { %v6673_v25 = vpop.f32.mrf.mxu1  ;;  %v14948_v3 = vadd.f32 %v14899_v51, %v6708_v61  ;;  %v14973_v21 = vadd.f32 %v14903_v10, %v6705_v44  ;;  %v6264_v2 = vadd.f32 %v15928_v56, %v15927_v14  ;;  %v6263_v61 = vadd.f32 %v15930_v29, %v14880_v17  ;;  %v15933_v44 = vld [vmem:[#allocation26_spill] sm:$0xff]  ;;  %v15940_v29 = vld [vmem:[#allocation57_spill] sm:$0xff] }
 0xa88   :  { %v6712_v7 = vadd.f32 %v6673_v25, %v6280_v48  ;;  %v6709_v25 = vadd.f32 %v6663_v59, %v6277_v32  ;;  %v14926_v59 = vadd.f32 %v14903_v10, %v6711_v46  ;;  %v6271_v9 = vadd.f32 %v14802_v39, %v5839_v36  ;;  %v15921_v48 = vld [vmem:[#allocation18_spill] sm:$0xff]  ;;  %v15926_v32 = vld [vmem:[#allocation48_spill] sm:$0xff] }
 0xa89   :  { %v6675_v19 = vpop.f32.mrf.mxu1  ;;  %v6786_v49 = vmax.f32 %v14933_v22, 0.0  ;;  %v6784_v52 = vmax.f32 %v14948_v3, 0.0  ;;  %v6699_v47 = vadd.f32 %v15926_v32, %v6267_v8  ;;  %v6696_v27 = vadd.f32 %v15934_v31, %v6264_v2  ;;  %v15939_v2 = vld [vmem:[#allocation55_spill] sm:$0xff]  ;;  %v6799_v22 = vld [vmem:[%s15625_s9 + $0x38] sm:$0xff] }
 0xa8a   :  { %v6713_v50 = vadd.f32 %v6675_v19, %v6281_v13  ;;  %v14922_v40 = vadd.f32 %v14899_v51, %v6712_v7  ;;  %v14939_v55 = vadd.f32 %v14903_v10, %v6709_v25  ;;  %v6703_v30 = vadd.f32 %v15916_v35, %v6271_v9  ;;  %v15925_v7 = vld [vmem:[#allocation22_spill] sm:$0xff]  ;;  %v15935_v35 = vld [vmem:[#allocation20_spill] sm:$0xff]  ;;  %v9160_v3 = vld [vmem:[%s15625_s9 + $0x50] sm:$0xff] }
 0xa8b   :  { %v6679_v6 = vpop.f32.mrf.mxu1  ;;  %v14956_v19 = vadd.f32 %v14903_v10, %v6707_v4  ;;  %v6787_v15 = vmax.f32 %v14926_v59, 0.0  ;;  %v6702_v13 = vadd.f32 %v15919_v28, %v6270_v12  ;;  %v15932_v9 = vld [vmem:[#allocation66_spill] sm:$0xff]  ;;  %v6780_v17 = vmax.f32 %v14982_v18, 0.0  ;;  %v6798_v59 = vld [vmem:[%s15625_s9 + $0x30] sm:$0xff]  ;;  %v7064_v18 = vld [vmem:[#allocation4 + $0x68] sm:$0xff] }
 0xa8c   :  { %v6714_v16 = vadd.f32 %v6679_v6, %v6282_v37  ;;  %v14913_v38 = vadd.f32 %v14903_v10, %v6713_v50  ;;  %v6788_v39 = vmax.f32 %v14922_v40, 0.0  ;;  %v14965_v37 = vadd.f32 %v14899_v51, %v6706_v54  ;;  %v15922_v50 = vld [vmem:[#allocation64_spill] sm:$0xff]  ;;  %v6797_v40 = vld [vmem:[%s15625_s9 + $0x28] sm:$0xff] }
 0xa8d   :  { %v6681_v33 = vpop.f32.mrf.mxu1  ;;  %v6701_v6 = vadd.f32 %v15921_v48, %v6269_v0  ;;  %v14991_v46 = vadd.f32 %v14903_v10, %v6703_v30  ;;  %v15000_v36 = vadd.f32 %v14899_v51, %v6702_v13  ;;  %v6781_v54 = vmax.f32 %v14973_v21, 0.0  ;;  %v7065_v21 = vld [vmem:[#allocation4 + $0x70] sm:$0xff] }
 0xa8e   :  { %v6715_v53 = vadd.f32 %v6681_v33, %v6283_v34  ;;  %v14909_v63 = vadd.f32 %v14899_v51, %v6714_v16  ;;  %v6789_v62 = vmax.f32 %v14913_v38, 0.0  ;;  %v6785_v34 = vmax.f32 %v14939_v55, 0.0  ;;  %v15923_v16 = vld [vmem:[#allocation60_spill] sm:$0xff]  ;;  %v7217_v55 = vld [vmem:[#allocation4 + $0x118] sm:$0xff]  ;;  %7099 = vmatpush1.msra.mxu1 %v7065_v21 }
 0xa8f   :  { %v6266_v23 = vadd.f32 %v15923_v16, %v15922_v50  ;;  %v6265_v33 = vadd.f32 %v15925_v7, %v14883_v11  ;;  %v6782_v11 = vmax.f32 %v14965_v37, 0.0  ;;  %v15009_v41 = vadd.f32 %v14903_v10, %v6701_v6  ;;  %v15937_v7 = vld [vmem:[#allocation49_spill] sm:$0xff]  ;;  %v6795_v38 = vld [vmem:[%s15625_s9 + $0x18] sm:$0xff]  ;;  %v9164_v37 = vld [vmem:[%s15625_s9 + $0x70] sm:$0xff] }
 0xa90   :  { %v14916_v26 = vadd.f32 %v14903_v10, %v6715_v53  ;;  %v6790_v57 = vmax.f32 %v14909_v63, 0.0  ;;  %v6783_v53 = vmax.f32 %v14956_v19, 0.0  ;;  %v6262_v12 = vadd.f32 %v15933_v44, %v15932_v9  ;;  %v6794_v63 = vld [vmem:[%s15625_s9 + $0x10] sm:$0xff]  ;;  %v9162_v19 = vld [vmem:[%s15625_s9 + $0x60] sm:$0xff] }
 0xa91   :  { %v6698_v25 = vadd.f32 %v15929_v1, %v6266_v23  ;;  %v6697_v4 = vadd.f32 %v15931_v43, %v6265_v33  ;;  %v15018_v0 = vadd.f32 %v14899_v51, %v6700_v58  ;;  %v6695_v30 = vadd.f32 %v15935_v35, %v6263_v61  ;;  %v15943_v35 = vld [vmem:[#allocation54_spill] sm:$0xff] }
 0xa92   :  { %v6791_v42 = vmax.f32 %v14916_v26, 0.0  ;;  %v15025_v24 = vadd.f32 %v14903_v10, %v6699_v47  ;;  %v6779_v60 = vmax.f32 %v14991_v46, 0.0  ;;  %v6694_v28 = vadd.f32 %v15936_v5, %v6262_v12  ;;  %v15938_v47 = vld [vmem:[#allocation21_spill] sm:$0xff]  ;;  %v15942_v12 = vld [vmem:[#allocation24_spill] sm:$0xff]  ;;  %v7063_v46 = vld [vmem:[#allocation4 + $0x60] sm:$0xff] }
 0xa93   :  { %v15032_v13 = vadd.f32 %v14899_v51, %v6698_v25  ;;  %v6778_v20 = vmax.f32 %v15000_v36, 0.0  ;;  %v15038_v8 = vadd.f32 %v14903_v10, %v6697_v4  ;;  %v6777_v48 = vmax.f32 %v15009_v41, 0.0  ;;  %v15941_v4 = vld [vmem:[#allocation58_spill] sm:$0xff]  ;;  %v6796_v26 = vld [vmem:[%s15625_s9 + $0x20] sm:$0xff] }
 0xa94   :  { %6800 = vmatprep.subr.mxu0 %v6791_v42  ;;  %v15044_v6 = vadd.f32 %v14899_v51, %v6696_v27  ;;  %v6776_v50 = vmax.f32 %v15018_v0, 0.0  ;;  %v15050_v16 = vadd.f32 %v14903_v10, %v6695_v30  ;;  %v6775_v23 = vmax.f32 %v15025_v24, 0.0  ;;  %v7062_v36 = vld [vmem:[#allocation4 + $0x58] sm:$0xff]  ;;  %v7061_v41 = vld [vmem:[#allocation4 + $0x50] sm:$0xff]  ;;  %v7060_v0 = vld [vmem:[#allocation4 + $0x48] sm:$0xff] }
 0xa95   :  { %6801 = vmatpush1.msra.mxu0 %v6790_v57  ;;  %v15056_v45 = vadd.f32 %v14899_v51, %v6694_v28  ;;  %v6774_v58 = vmax.f32 %v15032_v13, 0.0  ;;  %v15063_v33 = vadd.f32 %v14903_v10, %v15937_v7  ;;  %v6773_v32 = vmax.f32 %v15038_v8, 0.0  ;;  %v15944_v28 = vld [vmem:[#allocation19_spill] sm:$0xff]  ;;  %v7058_v13 = vld [vmem:[#allocation4 + $0x38] sm:$0xff]  ;;  %v7057_v8 = vld [vmem:[#allocation4 + $0x30] sm:$0xff] }
 0xa96   :  { %6802 = vmatprep.subr.mxu0 %v6789_v62  ;;  %v15070_v14 = vadd.f32 %v14899_v51, %v15938_v47  ;;  %v6772_v56 = vmax.f32 %v15044_v6, 0.0  ;;  %v15077_v1 = vadd.f32 %v14903_v10, %v15939_v2  ;;  %v6771_v25 = vmax.f32 %v15050_v16, 0.0  ;;  %v15945_v2 = vld [vmem:[#allocation56_spill] sm:$0xff]  ;;  %v7059_v24 = vld [vmem:[#allocation4 + $0x40] sm:$0xff] }
 0xa97   :  { %6803 = vmatpush1.msra.mxu0 %v6788_v39  ;;  %v15084_v61 = vadd.f32 %v14899_v51, %v15940_v29  ;;  %v6770_v43 = vmax.f32 %v15056_v45, 0.0  ;;  %v15091_v9 = vadd.f32 %v14903_v10, %v15941_v4  ;;  %v6769_v44 = vmax.f32 %v15063_v33, 0.0  ;;  %v7056_v6 = vld [vmem:[#allocation4 + $0x28] sm:$0xff]  ;;  %v7055_v16 = vld [vmem:[#allocation4 + $0x20] sm:$0xff]  ;;  %v7054_v45 = vld [vmem:[#allocation4 + $0x18] sm:$0xff] }
 0xa98   :  { %6804 = vmatprep.subr.mxu0 %v6787_v15  ;;  %v15098_v31 = vadd.f32 %v14899_v51, %v15942_v12  ;;  %v15644_v27 = vmax.f32 %v15070_v14, 0.0  ;;  %v15105_v30 = vadd.f32 %v14903_v10, %v15943_v35  ;;  %v6767_v5 = vmax.f32 %v15077_v1, 0.0  ;;  %v15946_v12 = vld [vmem:[#allocation59_spill] sm:$0xff]  ;;  %v7053_v33 = vld [vmem:[#allocation4 + $0x10] sm:$0xff] }
 0xa99   :  { %6805 = vmatpush1.msra.mxu0 %v6786_v49  ;;  %v15112_v7 = vadd.f32 %v14899_v51, %v15944_v28  ;;  %v6766_v47 = vmax.f32 %v15084_v61, 0.0  ;;  %v15119_v29 = vadd.f32 %v14903_v10, %v15945_v2  ;;  %v6765_v4 = vmax.f32 %v15091_v9, 0.0  ;;  %v7051_v1 = vld [vmem:[#allocation4] sm:$0xff] }
 0xa9a   :  { %6806 = vmatprep.subr.mxu0 %v6785_v34  ;;  %v15126_v35 = vadd.f32 %v14899_v51, %v15946_v12  ;;  %v6764_v28 = vmax.f32 %v15098_v31, 0.0  ;;  %v6763_v61 = vmax.f32 %v15105_v30, 0.0  ;;  %v6792_v51 = vld [vmem:[%s15625_s9] sm:$0xff]  ;;  %v15947_v31 = vmov 0.0   ;;  %v6793_v30 = vld [vmem:[%s15625_s9 + $0x8] sm:$0xff]  ;;  %v7067_v2 = vld [vmem:[#allocation4 + $0x80] sm:$0xff] }
 0xa9b   :  { %6807 = vmatpush1.msra.mxu0 %v6784_v52  ;;  %v6761_v10 = vmax.f32 %v15119_v29, 0.0  ;;  %7100 = vmatprep.subr.mxu1 %v15947_v31  ;;  %v7218_v29 = vld [vmem:[#allocation4 + $0x120] sm:$0xff] }
 0xa9c   :  { %6808 = vmatprep.subr.mxu0 %v6783_v53  ;;  %v6760_v9 = vmax.f32 %v15126_v35, 0.0  ;;  %7101 = vmatpush1.msra.mxu1 %v7064_v18 }
 0xa9d   :  { %6809 = vmatpush1.msra.mxu0 %v6782_v11  ;;  %7102 = vmatprep.subr.mxu1 %v15947_v31 }
 0xa9e   :  { %6810 = vmatprep.subr.mxu0 %v6781_v54  ;;  %7103 = vmatpush1.msra.mxu1 %v7063_v46 }
 0xa9f   :  { %6811 = vmatpush1.msra.mxu0 %v6780_v17  ;;  %7104 = vmatprep.subr.mxu1 %v15947_v31 }
 0xaa0   :  { %6812 = vmatprep.subr.mxu0 %v6779_v60  ;;  %7105 = vmatpush1.msra.mxu1 %v7062_v36 }
 0xaa1   :  { %6813 = vmatpush1.msra.mxu0 %v6778_v20  ;;  %7106 = vmatprep.subr.mxu1 %v15947_v31 }
 0xaa2   :  { %6814 = vmatprep.subr.mxu0 %v6777_v48  ;;  %7107 = vmatpush1.msra.mxu1 %v7061_v41 }
 0xaa3   :  { %6815 = vmatpush1.msra.mxu0 %v6776_v50  ;;  %7108 = vmatprep.subr.mxu1 %v15947_v31 }
 0xaa4   :  { %6816 = vmatprep.subr.mxu0 %v6775_v23  ;;  %7109 = vmatpush1.msra.mxu1 %v7060_v0 }
 0xaa5   :  { %6817 = vmatpush1.msra.mxu0 %v6774_v58  ;;  %7110 = vmatprep.subr.mxu1 %v15947_v31 }
 0xaa6   :  { %6818 = vmatprep.subr.mxu0 %v6773_v32  ;;  %7111 = vmatpush1.msra.mxu1 %v7059_v24 }
 0xaa7   :  { %6819 = vmatpush1.msra.mxu0 %v6772_v56  ;;  %7112 = vmatprep.subr.mxu1 %v15947_v31 }
 0xaa8   :  { %6820 = vmatprep.subr.mxu0 %v6771_v25  ;;  %7113 = vmatpush1.msra.mxu1 %v7058_v13 }
 0xaa9   :  { %6821 = vmatpush1.msra.mxu0 %v6770_v43  ;;  %7114 = vmatprep.subr.mxu1 %v15947_v31 }
 0xaaa   :  { %6822 = vmatprep.subr.mxu0 %v6769_v44  ;;  %7115 = vmatpush1.msra.mxu1 %v7057_v8 }
 0xaab   :  { %6823 = vmatpush1.msra.mxu0 %v15644_v27  ;;  %v6762_v27 = vmax.f32 %v15112_v7, 0.0  ;;  %7116 = vmatprep.subr.mxu1 %v15947_v31  ;;  %v7068_v7 = vld [vmem:[#allocation4 + $0x88] sm:$0xff] }
 0xaac   :  { %6824 = vmatprep.subr.mxu0 %v6767_v5  ;;  %7117 = vmatpush1.msra.mxu1 %v7056_v6 }
 0xaad   :  { %6825 = vmatpush1.msra.mxu0 %v6766_v47  ;;  %7118 = vmatprep.subr.mxu1 %v15947_v31 }
 0xaae   :  { %6826 = vmatprep.subr.mxu0 %v6765_v4  ;;  %7119 = vmatpush1.msra.mxu1 %v7055_v16 }
 0xaaf   :  { %6827 = vmatpush1.msra.mxu0 %v6764_v28  ;;  %7120 = vmatprep.subr.mxu1 %v15947_v31 }
 0xab0   :  { %6828 = vmatprep.subr.mxu0 %v6763_v61  ;;  %7121 = vmatpush1.msra.mxu1 %v7054_v45 }
 0xab1   :  { %6829 = vmatpush1.msra.mxu0 %v6762_v27  ;;  %7122 = vmatprep.subr.mxu1 %v15947_v31 }
 0xab2   :  { %6830 = vmatprep.subr.mxu0 %v6761_v10  ;;  %7123 = vmatpush1.msra.mxu1 %v7053_v33 }
 0xab3   :  { %6831 = vmatpush1.msra.mxu0 %v6760_v9  ;;  %7124 = vmatprep.subr.mxu1 %v15947_v31 }
 0xab4   :  { %6865 = vmatmul.mubr.f32.vlgmr.msra.gmra.mxu0 %v6792_v51  ;;  %6922 = vmatprep.subr.mxu0 %v6791_v42  ;;  %v15948_v42 = vmax.f32 %v15070_v14, 0.0  ;;  %v7052_v14 = vld [vmem:[#allocation4 + $0x8] sm:$0xff] }
 0xab5   :  { %6923 = vmatpush1.msra.mxu0 %v6790_v57  ;;  %6870 = vmatprep.mubr.f32.mxu0 %v15947_v31  ;;  %v9158_v57 = vld [vmem:[%s15625_s9 + $0x40] sm:$0xff] }
 0xab6   :  { %6924 = vmatprep.subr.mxu0 %v6789_v62  ;;  %v9159_v62 = vld [vmem:[%s15625_s9 + $0x48] sm:$0xff]  ;;  %7125 = vmatpush1.msra.mxu1 %v7052_v14 }
 0xab7   :  { %6925 = vmatpush1.msra.mxu0 %v6788_v39  ;;  %v9161_v39 = vld [vmem:[%s15625_s9 + $0x58] sm:$0xff]  ;;  %7126 = vmatprep.subr.mxu1 %v15947_v31 }
 0xab8   :  { %6871 = vmatmul.mubr.f32.gmra.mxu0 %v6793_v30  ;;  %6926 = vmatprep.subr.mxu0 %v6787_v15  ;;  %v9163_v15 = vld [vmem:[%s15625_s9 + $0x68] sm:$0xff] }
 0xab9   :  { %6927 = vmatpush1.msra.mxu0 %v6786_v49  ;;  %6876 = vmatprep.mubr.f32.mxu0 %v15947_v31  ;;  %v9165_v49 = vld [vmem:[%s15625_s9 + $0x78] sm:$0xff] }
 0xaba   :  { %6928 = vmatprep.subr.mxu0 %v6785_v34  ;;  %v7216_v34 = vld [vmem:[#allocation4 + $0x110] sm:$0xff]  ;;  %7127 = vmatpush1.msra.mxu1 %v7051_v1 }
 0xabb   :  { %6929 = vmatpush1.msra.mxu0 %v6784_v52  ;;  %v7215_v52 = vld [vmem:[#allocation4 + $0x108] sm:$0xff]  ;;  %7152 = vmatprep.subr.mxu1 %v15947_v31 }
 0xabc   :  { %6877 = vmatmul.mubr.f32.gmra.mxu0 %v6794_v63  ;;  %6930 = vmatprep.subr.mxu0 %v6783_v53  ;;  %v7214_v53 = vld [vmem:[#allocation4 + $0x100] sm:$0xff] }
 0xabd   :  { %6931 = vmatpush1.msra.mxu0 %v6782_v11  ;;  %6882 = vmatprep.mubr.f32.mxu0 %v15947_v31  ;;  %v7213_v11 = vld [vmem:[#allocation4 + $0xf8] sm:$0xff] }
 0xabe   :  { %6932 = vmatprep.subr.mxu0 %v6781_v54  ;;  %v7212_v54 = vld [vmem:[#allocation4 + $0xf0] sm:$0xff] }
 0xabf   :  { %6933 = vmatpush1.msra.mxu0 %v6780_v17  ;;  %v7211_v17 = vld [vmem:[#allocation4 + $0xe8] sm:$0xff] }
 0xac0   :  { %6883 = vmatmul.mubr.f32.gmra.mxu0 %v6795_v38  ;;  %6934 = vmatprep.subr.mxu0 %v6779_v60  ;;  %v7210_v60 = vld [vmem:[#allocation4 + $0xe0] sm:$0xff] }
 0xac1   :  { %6935 = vmatpush1.msra.mxu0 %v6778_v20  ;;  %6888 = vmatprep.mubr.f32.mxu0 %v15947_v31  ;;  %v7209_v20 = vld [vmem:[#allocation4 + $0xd8] sm:$0xff] }
 0xac2   :  { %6936 = vmatprep.subr.mxu0 %v6777_v48  ;;  %v7208_v48 = vld [vmem:[#allocation4 + $0xd0] sm:$0xff] }
 0xac3   :  { %6937 = vmatpush1.msra.mxu0 %v6776_v50  ;;  %v7207_v50 = vld [vmem:[#allocation4 + $0xc8] sm:$0xff] }
 0xac4   :  { %6889 = vmatmul.mubr.f32.gmra.mxu0 %v6796_v26  ;;  %6938 = vmatprep.subr.mxu0 %v6775_v23  ;;  %v7206_v23 = vld [vmem:[#allocation4 + $0xc0] sm:$0xff] }
 0xac5   :  { %6939 = vmatpush1.msra.mxu0 %v6774_v58  ;;  %6894 = vmatprep.mubr.f32.mxu0 %v15947_v31  ;;  %v7205_v58 = vld [vmem:[#allocation4 + $0xb8] sm:$0xff] }
 0xac6   :  { %6940 = vmatprep.subr.mxu0 %v6773_v32  ;;  %v7204_v32 = vld [vmem:[#allocation4 + $0xb0] sm:$0xff] }
 0xac7   :  { %6941 = vmatpush1.msra.mxu0 %v6772_v56  ;;  %v7203_v56 = vld [vmem:[#allocation4 + $0xa8] sm:$0xff] }
 0xac8   :  { %6895 = vmatmul.mubr.f32.gmra.mxu0 %v6797_v40  ;;  %6942 = vmatprep.subr.mxu0 %v6771_v25  ;;  %v7202_v25 = vld [vmem:[#allocation4 + $0xa0] sm:$0xff] }
 0xac9   :  { %6943 = vmatpush1.msra.mxu0 %v6770_v43  ;;  %6900 = vmatprep.mubr.f32.mxu0 %v15947_v31  ;;  %v7070_v43 = vld [vmem:[#allocation4 + $0x98] sm:$0xff] }
 0xaca   :  { %6944 = vmatprep.subr.mxu0 %v6769_v44  ;;  %v7221_v44 = vld [vmem:[#allocation4 + $0x138] sm:$0xff]  ;;  %7153 = vmatpush2.msra.mxu1 %v7070_v43 }
 0xacb   :  { %6945 = vmatpush1.msra.mxu0 %v15948_v42  ;;  %7154 = vmatprep.subr.mxu1 %v15947_v31 }
 0xacc   :  { %6901 = vmatmul.mubr.f32.gmra.mxu0 %v6798_v59  ;;  %6946 = vmatprep.subr.mxu0 %v6767_v5  ;;  %v7220_v5 = vld [vmem:[#allocation4 + $0x130] sm:$0xff] }
 0xacd   :  { %6947 = vmatpush1.msra.mxu0 %v6766_v47  ;;  %6906 = vmatprep.mubr.f32.mxu0 %v15947_v31  ;;  %v7219_v47 = vld [vmem:[#allocation4 + $0x128] sm:$0xff] }
 0xace   :  { %6948 = vmatprep.subr.mxu0 %v6765_v4 }
 0xacf   :  { %6949 = vmatpush1.msra.mxu0 %v6764_v28 }
 0xad0   :  { %6907 = vmatmul.mubr.f32.gmra.mxu0 %v6799_v22  ;;  %6950 = vmatprep.subr.mxu0 %v6763_v61 }
 0xad1   :  { %6951 = vmatpush1.msra.mxu0 %v6762_v27  ;;  %6986 = vmatprep.mubr.f32.mxu0 %v15947_v31  ;;  %v7069_v27 = vld [vmem:[#allocation4 + $0x90] sm:$0xff] }
 0xad2   :  { %6952 = vmatprep.subr.mxu0 %v6761_v10  ;;  %7155 = vmatpush2.msra.mxu1 %v7069_v27 }
 0xad3   :  { %6953 = vmatpush1.msra.mxu0 %v6760_v9  ;;  %7156 = vmatprep.subr.mxu1 %v15947_v31 }
 0xad4   :  { %6987 = vmatmul.mubr.f32.vlgmr.msra.gmra.mxu0 %v9158_v57  ;;  %7222 = vmatprep.subr.mxu0 %v15947_v31 }
 0xad5   :  { %6992 = vmatprep.mubr.f32.mxu0 %v15947_v31  ;;  %7223 = vmatpush1.msra.mxu0 %v7217_v55 }
 0xad6   :  { %7224 = vmatprep.subr.mxu0 %v15947_v31  ;;  %7157 = vmatpush2.msra.mxu1 %v7068_v7 }
 0xad7   :  { %7225 = vmatpush1.msra.mxu0 %v7216_v34  ;;  %7158 = vmatprep.subr.mxu1 %v15947_v31 }
 0xad8   :  { %6993 = vmatmul.mubr.f32.gmra.mxu0 %v9159_v62  ;;  %7226 = vmatprep.subr.mxu0 %v15947_v31 }
 0xad9   :  { %6998 = vmatprep.mubr.f32.mxu0 %v15947_v31  ;;  %7227 = vmatpush1.msra.mxu0 %v7215_v52 }
 0xada   :  { %7228 = vmatprep.subr.mxu0 %v15947_v31  ;;  %7159 = vmatpush2.msra.mxu1 %v7067_v2 }
 0xadb   :  { %7229 = vmatpush1.msra.mxu0 %v7214_v53  ;;  %9770 = vmatprep.subr.mxu1 %v15947_v31 }
 0xadc   :  { %6999 = vmatmul.mubr.f32.gmra.mxu0 %v9160_v3  ;;  %7230 = vmatprep.subr.mxu0 %v15947_v31 }
 0xadd   :  { %7004 = vmatprep.mubr.f32.mxu0 %v15947_v31  ;;  %7231 = vmatpush1.msra.mxu0 %v7213_v11 }
 0xade   :  { %7232 = vmatprep.subr.mxu0 %v15947_v31 }
 0xadf   :  { %7233 = vmatpush1.msra.mxu0 %v7212_v54 }
 0xae0   :  { %7005 = vmatmul.mubr.f32.gmra.mxu0 %v9161_v39  ;;  %7234 = vmatprep.subr.mxu0 %v15947_v31 }
 0xae1   :  { %7010 = vmatprep.mubr.f32.mxu0 %v15947_v31  ;;  %7235 = vmatpush1.msra.mxu0 %v7211_v17 }
 0xae2   :  { %7236 = vmatprep.subr.mxu0 %v15947_v31 }
 0xae3   :  { %7237 = vmatpush1.msra.mxu0 %v7210_v60 }
 0xae4   :  { %7011 = vmatmul.mubr.f32.gmra.mxu0 %v9162_v19  ;;  %7238 = vmatprep.subr.mxu0 %v15947_v31 }
 0xae5   :  { %7016 = vmatprep.mubr.f32.mxu0 %v15947_v31  ;;  %7239 = vmatpush1.msra.mxu0 %v7209_v20 }
 0xae6   :  { %7240 = vmatprep.subr.mxu0 %v15947_v31 }
 0xae7   :  { %7241 = vmatpush1.msra.mxu0 %v7208_v48 }
 0xae8   :  { %7017 = vmatmul.mubr.f32.gmra.mxu0 %v9163_v15  ;;  %7242 = vmatprep.subr.mxu0 %v15947_v31 }
 0xae9   :  { %7022 = vmatprep.mubr.f32.mxu0 %v15947_v31  ;;  %7243 = vmatpush1.msra.mxu0 %v7207_v50 }
 0xaea   :  { %7244 = vmatprep.subr.mxu0 %v15947_v31 }
 0xaeb   :  { %7245 = vmatpush1.msra.mxu0 %v7206_v23 }
 0xaec   :  { %7023 = vmatmul.mubr.f32.gmra.mxu0 %v9164_v37  ;;  %7246 = vmatprep.subr.mxu0 %v15947_v31 }
 0xaed   :  { %7028 = vmatprep.mubr.f32.mxu0 %v15947_v31  ;;  %7247 = vmatpush1.msra.mxu0 %v7205_v58 }
 0xaee   :  { %7248 = vmatprep.subr.mxu0 %v15947_v31 }
 0xaef   :  { %7249 = vmatpush1.msra.mxu0 %v7204_v32 }
 0xaf0   :  { %7029 = vmatmul.mubr.f32.gmra.mxu0 %v9165_v49  ;;  %7250 = vmatprep.subr.mxu0 %v15947_v31 }
 0xaf1   :  { %7251 = vmatpush1.msra.mxu0 %v7203_v56 }
 0xaf2   :  { %7252 = vmatprep.subr.mxu0 %v15947_v31 }
 0xaf3   :  { %7253 = vmatpush1.msra.mxu0 %v7202_v25 }
 0xaf4   :  { %7278 = vmatprep.subr.mxu0 %v15947_v31 }
 0xaf5   :  { %7279 = vmatpush2.msra.mxu0 %v7221_v44 }
 0xaf6   :  { %7280 = vmatprep.subr.mxu0 %v15947_v31 }
 0xaf7   :  { %7281 = vmatpush2.msra.mxu0 %v7220_v5 }
 0xaf8   :  { %7282 = vmatprep.subr.mxu0 %v15947_v31 }
 0xaf9   :  { %7283 = vmatpush2.msra.mxu0 %v7219_v47 }
 0xafa   :  { %7284 = vmatprep.subr.mxu0 %v15947_v31 }
 0xafb   :  { %7285 = vmatpush2.msra.mxu0 %v7218_v29 }
 0xafc   :  { %9831 = vmatprep.subr.mxu0 %v15947_v31 }
 0xb74   :  { %v6866_v4 = vpop.f32.mrf.mxu0 }
 0xb76   :  { %v6868_v12 = vpop.f32.mrf.mxu0 }
 0xb78   :  { %v6872_v35 = vpop.f32.mrf.mxu0 }
 0xb7a   :  { %v6874_v28 = vpop.f32.mrf.mxu0 }
 0xb7c   :  { %v6878_v61 = vpop.f32.mrf.mxu0 }
 0xb7e   :  { %v6880_v10 = vpop.f32.mrf.mxu0 }
 0xb80   :  { %v6884_v9 = vpop.f32.mrf.mxu0 }
 0xb82   :  { %v6886_v51 = vpop.f32.mrf.mxu0 }
 0xb84   :  { %v6890_v30 = vpop.f32.mrf.mxu0 }
 0xb86   :  { %v6892_v63 = vpop.f32.mrf.mxu0 }
 0xb88   :  { %v6896_v38 = vpop.f32.mrf.mxu0 }
 0xb8a   :  { %v6898_v26 = vpop.f32.mrf.mxu0 }
 0xb8c   :  { %v6902_v40 = vpop.f32.mrf.mxu0 }
 0xb8e   :  { %v6904_v59 = vpop.f32.mrf.mxu0 }
 0xb90   :  { %v6908_v42 = vpop.f32.mrf.mxu0 }
 0xb92   :  { %v6910_v22 = vpop.f32.mrf.mxu0 }
 0xb94   :  { %v6988_v57 = vpop.f32.mrf.mxu0 }
 0xb95   :  { %v7035_v3 = vmax.f32 %v6866_v4, %v6988_v57 }
 0xb96   :  { %v6990_v55 = vpop.f32.mrf.mxu0 }
 0xb97   :  { %v7036_v62 = vmax.f32 %v6868_v12, %v6990_v55 }
 0xb98   :  { %v6994_v39 = vpop.f32.mrf.mxu0 }
 0xb99   :  { %9166 = vmatprep.mubr.msk.f32.mxu1 %vm7071_vm4, %v7036_v62  ;;  %9174 = vmatprep.mubr.msk.f32.mxu0 %vm7071_vm4, %v7036_v62  ;;  %v7037_v37 = vmax.f32 %v6872_v35, %v6994_v39 }
 0xb9a   :  { %v6996_v19 = vpop.f32.mrf.mxu0  ;;  %7161 = vmatmul.mubr.f32.vlgmr.msra.gmra.mxu1 %v7035_v3  ;;  %7287 = vmatmul.mubr.f32.vlgmr.msra.gmra.mxu0 %v7035_v3 }
 0xb9b   :  { %v7038_v15 = vmax.f32 %v6874_v28, %v6996_v19 }
 0xb9c   :  { %v7000_v49 = vpop.f32.mrf.mxu0 }
 0xb9d   :  { %9167 = vmatprep.mubr.msk.f32.mxu1 %vm7071_vm4, %v7038_v15  ;;  %9175 = vmatprep.mubr.msk.f32.mxu0 %vm7071_vm4, %v7038_v15  ;;  %v7039_v18 = vmax.f32 %v6878_v61, %v7000_v49 }
 0xb9e   :  { %v7002_v21 = vpop.f32.mrf.mxu0  ;;  %7166 = vmatmul.mubr.f32.gmra.mxu1 %v7037_v37  ;;  %7292 = vmatmul.mubr.f32.gmra.mxu0 %v7037_v37 }
 0xb9f   :  { %v7040_v34 = vmax.f32 %v6880_v10, %v7002_v21  ;;  %v7335_v21 = vld [vmem:[%s15627_s11] sm:$0xff] }
 0xba0   :  { %v7006_v52 = vpop.f32.mrf.mxu0 }
 0xba1   :  { %9168 = vmatprep.mubr.msk.f32.mxu1 %vm7071_vm4, %v7040_v34  ;;  %9176 = vmatprep.mubr.msk.f32.mxu0 %vm7071_vm4, %v7040_v34  ;;  %v7041_v36 = vmax.f32 %v6884_v9, %v7006_v52  ;;  %v9183_v34 = vld [vmem:[%s15627_s11 + $0x8] sm:$0xff]  ;;  %v7504_v52 = vld [vmem:[#allocation6 + $0x90] sm:$0xff] }
 0xba2   :  { %v7008_v46 = vpop.f32.mrf.mxu0  ;;  %7171 = vmatmul.mubr.f32.gmra.mxu1 %v7039_v18  ;;  %7297 = vmatmul.mubr.f32.gmra.mxu0 %v7039_v18  ;;  %v7505_v18 = vld [vmem:[#allocation6 + $0x98] sm:$0xff] }
 0xba3   :  { %v7042_v53 = vmax.f32 %v6886_v51, %v7008_v46  ;;  %v7503_v46 = vld [vmem:[#allocation6 + $0x88] sm:$0xff] }
 0xba4   :  { %v7012_v11 = vpop.f32.mrf.mxu0 }
 0xba5   :  { %9169 = vmatprep.mubr.msk.f32.mxu1 %vm7071_vm4, %v7042_v53  ;;  %9177 = vmatprep.mubr.msk.f32.mxu0 %vm7071_vm4, %v7042_v53  ;;  %v7043_v0 = vmax.f32 %v6890_v30, %v7012_v11  ;;  %v7502_v53 = vld [vmem:[#allocation6 + $0x80] sm:$0xff]  ;;  %v7500_v11 = vld [vmem:[#allocation6 + $0x70] sm:$0xff] }
 0xba6   :  { %v7014_v41 = vpop.f32.mrf.mxu0  ;;  %7176 = vmatmul.mubr.f32.gmra.mxu1 %v7041_v36  ;;  %7302 = vmatmul.mubr.f32.gmra.mxu0 %v7041_v36  ;;  %v7501_v36 = vld [vmem:[#allocation6 + $0x78] sm:$0xff] }
 0xba7   :  { %v7044_v54 = vmax.f32 %v6892_v63, %v7014_v41  ;;  %v7499_v41 = vld [vmem:[#allocation6 + $0x68] sm:$0xff] }
 0xba8   :  { %v7018_v17 = vpop.f32.mrf.mxu0 }
 0xba9   :  { %9170 = vmatprep.mubr.msk.f32.mxu1 %vm7071_vm4, %v7044_v54  ;;  %9178 = vmatprep.mubr.msk.f32.mxu0 %vm7071_vm4, %v7044_v54  ;;  %v7045_v13 = vmax.f32 %v6896_v38, %v7018_v17  ;;  %v7498_v54 = vld [vmem:[#allocation6 + $0x60] sm:$0xff] }
 0xbaa   :  { %v7020_v24 = vpop.f32.mrf.mxu0  ;;  %7181 = vmatmul.mubr.f32.gmra.mxu1 %v7043_v0  ;;  %7307 = vmatmul.mubr.f32.gmra.mxu0 %v7043_v0  ;;  %v7419_v0 = vld [vmem:[#allocation6 + $0x48] sm:$0xff]  ;;  %v7418_v17 = vld [vmem:[#allocation6 + $0x40] sm:$0xff] }
 0xbab   :  { %v7046_v60 = vmax.f32 %v6898_v26, %v7020_v24  ;;  %9832 = vmatpush3.msra.mxu0 %v7419_v0  ;;  %v7417_v24 = vld [vmem:[#allocation6 + $0x38] sm:$0xff]  ;;  %v8153_v0 = vld [vmem:[%s15630_s14 + $0x58] sm:$0xff] }
 0xbac   :  { %v7024_v20 = vpop.f32.mrf.mxu0  ;;  %9833 = vmatprep.subr.mxu0 %v15947_v31 }
 0xbad   :  { %9171 = vmatprep.mubr.msk.f32.mxu1 %vm7071_vm4, %v7046_v60  ;;  %9179 = vmatprep.mubr.msk.f32.mxu0 %vm7071_vm4, %v7046_v60  ;;  %v7047_v6 = vmax.f32 %v6902_v40, %v7024_v20  ;;  %v7416_v60 = vld [vmem:[#allocation6 + $0x30] sm:$0xff]  ;;  %v7414_v20 = vld [vmem:[#allocation6 + $0x20] sm:$0xff] }
 0xbae   :  { %v7026_v8 = vpop.f32.mrf.mxu0  ;;  %7186 = vmatmul.mubr.f32.gmra.mxu1 %v7045_v13  ;;  %7312 = vmatmul.mubr.f32.gmra.mxu0 %v7045_v13  ;;  %v7415_v13 = vld [vmem:[#allocation6 + $0x28] sm:$0xff] }
 0xbaf   :  { %v7048_v48 = vmax.f32 %v6904_v59, %v7026_v8  ;;  %9834 = vmatpush3.msra.mxu0 %v7418_v17  ;;  %v7413_v8 = vld [vmem:[#allocation6 + $0x18] sm:$0xff]  ;;  %v8152_v17 = vld [vmem:[%s15630_s14 + $0x50] sm:$0xff] }
 0xbb0   :  { %v7030_v50 = vpop.f32.mrf.mxu0  ;;  %9835 = vmatprep.subr.mxu0 %v15947_v31 }
 0xbb1   :  { %9172 = vmatprep.mubr.msk.f32.mxu1 %vm7071_vm4, %v7048_v48  ;;  %9180 = vmatprep.mubr.msk.f32.mxu0 %vm7071_vm4, %v7048_v48  ;;  %v7049_v45 = vmax.f32 %v6908_v42, %v7030_v50  ;;  %v7412_v48 = vld [vmem:[#allocation6 + $0x10] sm:$0xff]  ;;  %v7497_v50 = vld [vmem:[#allocation6 + $0x58] sm:$0xff] }
 0xbb2   :  { %v7032_v16 = vpop.f32.mrf.mxu0  ;;  %7191 = vmatmul.mubr.f32.gmra.mxu1 %v7047_v6  ;;  %7317 = vmatmul.mubr.f32.gmra.mxu0 %v7047_v6  ;;  %v7411_v6 = vld [vmem:[#allocation6 + $0x8] sm:$0xff] }
 0xbb3   :  { %v7050_v23 = vmax.f32 %v6910_v22, %v7032_v16  ;;  %9836 = vmatpush3.msra.mxu0 %v7417_v24  ;;  %v7410_v16 = vld [vmem:[#allocation6] sm:$0xff]  ;;  %v8151_v24 = vld [vmem:[%s15630_s14 + $0x48] sm:$0xff] }
 0xbb4   :  { %9837 = vmatprep.subr.mxu0 %v15947_v31 }
 0xbb5   :  { %9173 = vmatprep.mubr.msk.f32.mxu1 %vm7071_vm4, %v7050_v23  ;;  %9181 = vmatprep.mubr.msk.f32.mxu0 %vm7071_vm4, %v7050_v23  ;;  %v7496_v23 = vld [vmem:[#allocation6 + $0x50] sm:$0xff] }
 0xbb6   :  { %7196 = vmatmul.mubr.f32.gmra.mxu1 %v7049_v45  ;;  %7322 = vmatmul.mubr.f32.gmra.mxu0 %v7049_v45  ;;  %v7738_v45 = vld [vmem:[#allocation6 + $0xe8] sm:$0xff] }
 0xbb7   :  { %9786 = vmatprep.mubr.msk.f32.mxu1 %vm10179_vm5, %v15947_v31  ;;  %9851 = vmatprep.mubr.msk.f32.mxu0 %vm10179_vm5, %v15947_v31 }
 0xbb8   :  { %9838 = vmatpush3.msra.mxu0 %v7416_v60  ;;  %v8150_v60 = vld [vmem:[%s15630_s14 + $0x40] sm:$0xff] }
 0xbb9   :  { %9839 = vmatprep.subr.mxu0 %v15947_v31 }
 0xbba   :  { %9840 = vmatpush3.msra.mxu0 %v7415_v13  ;;  %v8149_v13 = vld [vmem:[%s15630_s14 + $0x38] sm:$0xff] }
 0xbbb   :  { %9841 = vmatprep.subr.mxu0 %v15947_v31 }
 0xbbc   :  { %9842 = vmatpush3.msra.mxu0 %v7414_v20  ;;  %v8148_v20 = vld [vmem:[%s15630_s14 + $0x30] sm:$0xff] }
 0xbbd   :  { %9843 = vmatprep.subr.mxu0 %v15947_v31 }
 0xbbe   :  { %9844 = vmatpush3.msra.mxu0 %v7413_v8  ;;  %v8147_v8 = vld [vmem:[%s15630_s14 + $0x28] sm:$0xff] }
 0xbbf   :  { %9845 = vmatprep.subr.mxu0 %v15947_v31 }
 0xbc0   :  { %9846 = vmatpush3.msra.mxu0 %v7412_v48  ;;  %v8146_v48 = vld [vmem:[%s15630_s14 + $0x20] sm:$0xff] }
 0xbc1   :  { %9847 = vmatprep.subr.mxu0 %v15947_v31 }
 0xbc2   :  { %9848 = vmatpush3.msra.mxu0 %v7411_v6  ;;  %v8145_v6 = vld [vmem:[%s15630_s14 + $0x18] sm:$0xff] }
 0xbc3   :  { %9849 = vmatprep.subr.mxu0 %v15947_v31 }
 0xbc4   :  { %9850 = vmatpush3.msra.mxu0 %v7410_v16  ;;  %v8143_v16 = vld [vmem:[%s15630_s14 + $0x8] sm:$0xff] }
 0xbc5   :  { %9873 = vmatprep.subr.mxu0 %v15947_v31 }
 0xc5a   :  { %v7162_v58 = vpop.f32.mrf.mxu1  ;;  %v7288_v33 = vpop.f32.mrf.mxu0 }
 0xc5b   :  { %v15332_v49 = vmax.f32 %v7162_v58, %v7288_v33  ;;  %v7737_v33 = vld [vmem:[#allocation6 + $0xe0] sm:$0xff] }
 0xc5c   :  { %v7164_v32 = vpop.f32.mrf.mxu1  ;;  %v7290_v14 = vpop.f32.mrf.mxu0 }
 0xc5d   :  { %v7736_v14 = vld [vmem:[#allocation6 + $0xd8] sm:$0xff] }
 0xc5e   :  { %v7167_v56 = vpop.f32.mrf.mxu1  ;;  %v7293_v1 = vpop.f32.mrf.mxu0 }
 0xc5f   :  { %v15328_v37 = vmax.f32 %v7167_v56, %v7293_v1  ;;  %v7735_v56 = vld [vmem:[#allocation6 + $0xd0] sm:$0xff]  ;;  %v7734_v1 = vld [vmem:[#allocation6 + $0xc8] sm:$0xff] }
 0xc60   :  { %v7169_v25 = vpop.f32.mrf.mxu1  ;;  %v7295_v43 = vpop.f32.mrf.mxu0 }
 0xc61   :  { %v7733_v25 = vld [vmem:[#allocation6 + $0xc0] sm:$0xff]  ;;  %v7732_v43 = vld [vmem:[#allocation6 + $0xb8] sm:$0xff] }
 0xc62   :  { %v7172_v44 = vpop.f32.mrf.mxu1  ;;  %v7298_v27 = vpop.f32.mrf.mxu0 }
 0xc63   :  { %v15324_v15 = vmax.f32 %v7172_v44, %v7298_v27  ;;  %v7731_v44 = vld [vmem:[#allocation6 + $0xb0] sm:$0xff] }
 0xc64   :  { %v7174_v5 = vpop.f32.mrf.mxu1  ;;  %v7300_v7 = vpop.f32.mrf.mxu0 }
 0xc65   :  { %v9187_v7 = vld [vmem:[%s15627_s11 + $0x10] sm:$0xff] }
 0xc66   :  { %v7177_v47 = vpop.f32.mrf.mxu1  ;;  %v7303_v2 = vpop.f32.mrf.mxu0 }
 0xc67   :  { %v15320_v19 = vmax.f32 %v7177_v47, %v7303_v2  ;;  %v9190_v47 = vld [vmem:[%s15627_s11 + $0x18] sm:$0xff]  ;;  %v9193_v2 = vld [vmem:[%s15627_s11 + $0x20] sm:$0xff] }
 0xc68   :  { %v7179_v29 = vpop.f32.mrf.mxu1  ;;  %v7305_v4 = vpop.f32.mrf.mxu0 }
 0xc69   :  { %v7730_v29 = vld [vmem:[#allocation6 + $0xa8] sm:$0xff]  ;;  %v7729_v4 = vld [vmem:[#allocation6 + $0xa0] sm:$0xff] }
 0xc6a   :  { %v7182_v12 = vpop.f32.mrf.mxu1  ;;  %v7308_v35 = vpop.f32.mrf.mxu0 }
 0xc6b   :  { %v15316_v39 = vmax.f32 %v7182_v12, %v7308_v35 }
 0xc6c   :  { %v7184_v28 = vpop.f32.mrf.mxu1  ;;  %v7310_v61 = vpop.f32.mrf.mxu0 }
 0xc6e   :  { %v7187_v10 = vpop.f32.mrf.mxu1  ;;  %v7313_v9 = vpop.f32.mrf.mxu0 }
 0xc6f   :  { %v15312_v3 = vmax.f32 %v7187_v10, %v7313_v9  ;;  %v7898_v9 = vld [vmem:[#allocation6 + $0x138] sm:$0xff] }
 0xc70   :  { %v7189_v51 = vpop.f32.mrf.mxu1  ;;  %v7315_v30 = vpop.f32.mrf.mxu0 }
 0xc71   :  { %v7897_v30 = vld [vmem:[#allocation6 + $0x130] sm:$0xff] }
 0xc72   :  { %v7192_v63 = vpop.f32.mrf.mxu1  ;;  %v7318_v38 = vpop.f32.mrf.mxu0 }
 0xc73   :  { %v15308_v62 = vmax.f32 %v7192_v63, %v7318_v38  ;;  %v7896_v38 = vld [vmem:[#allocation6 + $0x128] sm:$0xff] }
 0xc74   :  { %v7194_v26 = vpop.f32.mrf.mxu1  ;;  %v7320_v40 = vpop.f32.mrf.mxu0 }
 0xc75   :  { %v7895_v26 = vld [vmem:[#allocation6 + $0x120] sm:$0xff]  ;;  %v7894_v40 = vld [vmem:[#allocation6 + $0x118] sm:$0xff] }
 0xc76   :  { %v7197_v59 = vpop.f32.mrf.mxu1  ;;  %v7323_v42 = vpop.f32.mrf.mxu0 }
 0xc77   :  { %v15306_v22 = vmax.f32 %v7197_v59, %v7323_v42  ;;  %v7893_v59 = vld [vmem:[#allocation6 + $0x110] sm:$0xff]  ;;  %v7892_v42 = vld [vmem:[#allocation6 + $0x108] sm:$0xff] }
 0xc78   :  { %v7199_v57 = vpop.f32.mrf.mxu1  ;;  %v7325_v55 = vpop.f32.mrf.mxu0 }
 0xc79   :  { %9771 = vmatpush3.msra.mxu1 %v15306_v22  ;;  %v7890_v57 = vld [vmem:[#allocation6 + $0xf8] sm:$0xff] }
 0xc7a   :  { %9772 = vmatprep.subr.mxu1 %v15947_v31 }
 0xc7b   :  { %9773 = vmatpush3.msra.mxu1 %v15308_v62 }
 0xc7c   :  { %9774 = vmatprep.subr.mxu1 %v15947_v31 }
 0xc7d   :  { %9775 = vmatpush3.msra.mxu1 %v15312_v3 }
 0xc7e   :  { %9776 = vmatprep.subr.mxu1 %v15947_v31 }
 0xc7f   :  { %9777 = vmatpush3.msra.mxu1 %v15316_v39 }
 0xc80   :  { %9778 = vmatprep.subr.mxu1 %v15947_v31 }
 0xc81   :  { %9779 = vmatpush3.msra.mxu1 %v15320_v19 }
 0xc82   :  { %9780 = vmatprep.subr.mxu1 %v15947_v31 }
 0xc83   :  { %9781 = vmatpush3.msra.mxu1 %v15324_v15 }
 0xc84   :  { %9782 = vmatprep.subr.mxu1 %v15947_v31 }
 0xc85   :  { %9783 = vmatpush3.msra.mxu1 %v15328_v37 }
 0xc86   :  { %9784 = vmatprep.subr.mxu1 %v15947_v31 }
 0xc87   :  { %9785 = vmatpush3.msra.mxu1 %v15332_v49 }
 0xc88   :  { %9789 = vmatprep.subr.mxu1 %v15947_v31  ;;  %9787 = vmatmul.mubr.msk.f32.vlgmr.msra.gmra.mxu1 %vm7336_vm6, %v7335_v21  ;;  %v8053_v21 = vld [vmem:[#allocation6 + $0x160] sm:$0xff] }
 0xc89   :  { %9790 = vmatpush3.msra.mxu1 %v15306_v22  ;;  %9805 = vmatprep.mubr.msk.f32.mxu1 %vm10179_vm5, %v15947_v31 }
 0xc8a   :  { %9791 = vmatprep.subr.mxu1 %v15947_v31 }
 0xc8b   :  { %9792 = vmatpush3.msra.mxu1 %v15308_v62 }
 0xc8c   :  { %9793 = vmatprep.subr.mxu1 %v15947_v31 }
 0xc8d   :  { %9794 = vmatpush3.msra.mxu1 %v15312_v3 }
 0xc8e   :  { %9795 = vmatprep.subr.mxu1 %v15947_v31 }
 0xc8f   :  { %9796 = vmatpush3.msra.mxu1 %v15316_v39 }
 0xc90   :  { %9797 = vmatprep.subr.mxu1 %v15947_v31 }
 0xc91   :  { %9798 = vmatpush3.msra.mxu1 %v15320_v19 }
 0xc92   :  { %9799 = vmatprep.subr.mxu1 %v15947_v31 }
 0xc93   :  { %9800 = vmatpush3.msra.mxu1 %v15324_v15 }
 0xc94   :  { %9801 = vmatprep.subr.mxu1 %v15947_v31 }
 0xc95   :  { %9802 = vmatpush3.msra.mxu1 %v15328_v37 }
 0xc96   :  { %9803 = vmatprep.subr.mxu1 %v15947_v31 }
 0xc97   :  { %9804 = vmatpush3.msra.mxu1 %v15332_v49 }
 0xc98   :  { %9806 = vmatmul.mubr.msk.f32.vlgmr.msra.gmra.mxu1 %vm7336_vm6, %v9183_v34  ;;  %9808 = vmatprep.subr.mxu1 %v15947_v31  ;;  %v8052_v34 = vld [vmem:[#allocation6 + $0x158] sm:$0xff] }
 0xc99   :  { %9809 = vmatpush3.msra.mxu1 %v7505_v18  ;;  %9828 = vmatprep.mubr.msk.f32.mxu1 %vm10179_vm5, %v15947_v31 }
 0xc9a   :  { %9810 = vmatprep.subr.mxu1 %v15947_v31 }
 0xc9b   :  { %9811 = vmatpush3.msra.mxu1 %v7504_v52  ;;  %v8051_v52 = vld [vmem:[#allocation6 + $0x150] sm:$0xff] }
 0xc9c   :  { %9812 = vmatprep.subr.mxu1 %v15947_v31 }
 0xc9d   :  { %9813 = vmatpush3.msra.mxu1 %v7503_v46 }
 0xc9e   :  { %9814 = vmatprep.subr.mxu1 %v15947_v31 }
 0xc9f   :  { %9815 = vmatpush3.msra.mxu1 %v7502_v53  ;;  %v8050_v53 = vld [vmem:[#allocation6 + $0x148] sm:$0xff] }
 0xca0   :  { %9816 = vmatprep.subr.mxu1 %v15947_v31 }
 0xca1   :  { %9817 = vmatpush3.msra.mxu1 %v7501_v36  ;;  %v8049_v36 = vld [vmem:[#allocation6 + $0x140] sm:$0xff] }
 0xca2   :  { %9818 = vmatprep.subr.mxu1 %v15947_v31 }
 0xca3   :  { %9819 = vmatpush3.msra.mxu1 %v7500_v11  ;;  %v8156_v11 = vld [vmem:[%s15630_s14 + $0x70] sm:$0xff] }
 0xca4   :  { %9820 = vmatprep.subr.mxu1 %v15947_v31 }
 0xca5   :  { %9821 = vmatpush3.msra.mxu1 %v7499_v41  ;;  %v8155_v41 = vld [vmem:[%s15630_s14 + $0x68] sm:$0xff] }
 0xca6   :  { %9822 = vmatprep.subr.mxu1 %v15947_v31 }
 0xca7   :  { %9823 = vmatpush3.msra.mxu1 %v7498_v54  ;;  %v8154_v54 = vld [vmem:[%s15630_s14 + $0x60] sm:$0xff] }
 0xca8   :  { %9824 = vmatprep.subr.mxu1 %v15947_v31 }
 0xca9   :  { %9825 = vmatpush3.msra.mxu1 %v7497_v50  ;;  %v8144_v50 = vld [vmem:[%s15630_s14 + $0x10] sm:$0xff] }
 0xcaa   :  { %9826 = vmatprep.subr.mxu1 %v15947_v31 }
 0xcab   :  { %9827 = vmatpush3.msra.mxu1 %v7496_v23  ;;  %v8142_v23 = vld [vmem:[%s15630_s14] sm:$0xff] }
 0xcac   :  { %9854 = vmatprep.subr.mxu1 %v15947_v31 }
 0xd48   :  { %v7406_v58 = vpop.f32.mrf.mxu1 }
 0xd49   :  { %9852 = vmatmul.mubr.msk.f32.vlgmr.msra.gmra.mxu0 %vm7506_vm7, %v7406_v58  ;;  %v8248_v58 = vld [vmem:[%s15632_s16 + $0x48] sm:$0xff] }
 0xd4a   :  { %v9788_v32 = vpop.f32.mrf.mxu1  ;;  %9874 = vmatpush3.msra.mxu0 %v7738_v45  ;;  %9893 = vmatprep.mubr.msk.f32.mxu0 %vm10179_vm5, %v15947_v31  ;;  %v8249_v45 = vld [vmem:[%s15632_s16 + $0x50] sm:$0xf] }
 0xd4b   :  { %9875 = vmatprep.subr.mxu0 %v15947_v31  ;;  %v8246_v32 = vld [vmem:[%s15632_s16 + $0x38] sm:$0xff] }
 0xd4c   :  { %9876 = vmatpush3.msra.mxu0 %v7737_v33  ;;  %v8247_v33 = vld [vmem:[%s15632_s16 + $0x40] sm:$0xff] }
 0xd4d   :  { %9877 = vmatprep.subr.mxu0 %v15947_v31 }
 0xd4e   :  { %9878 = vmatpush3.msra.mxu0 %v7736_v14  ;;  %v8245_v14 = vld [vmem:[%s15632_s16 + $0x30] sm:$0xff] }
 0xd4f   :  { %9879 = vmatprep.subr.mxu0 %v15947_v31 }
 0xd50   :  { %9880 = vmatpush3.msra.mxu0 %v7735_v56  ;;  %v8244_v56 = vld [vmem:[%s15632_s16 + $0x28] sm:$0xff] }
 0xd51   :  { %9881 = vmatprep.subr.mxu0 %v15947_v31 }
 0xd52   :  { %9882 = vmatpush3.msra.mxu0 %v7734_v1  ;;  %v8243_v1 = vld [vmem:[%s15632_s16 + $0x20] sm:$0xff] }
 0xd53   :  { %9883 = vmatprep.subr.mxu0 %v15947_v31 }
 0xd54   :  { %9884 = vmatpush3.msra.mxu0 %v7733_v25  ;;  %v8242_v25 = vld [vmem:[%s15632_s16 + $0x18] sm:$0xff] }
 0xd55   :  { %9885 = vmatprep.subr.mxu0 %v15947_v31 }
 0xd56   :  { %9886 = vmatpush3.msra.mxu0 %v7732_v43 }
 0xd57   :  { %9887 = vmatprep.subr.mxu0 %v15947_v31 }
 0xd58   :  { %v7491_v27 = vpop.f32.mrf.mxu1  ;;  %9888 = vmatpush3.msra.mxu0 %v7731_v44 }
 0xd59   :  { %9829 = vmatmul.mubr.msk.f32.vlgmr.msra.gmra.mxu1 %vm7506_vm7, %v7491_v27  ;;  %9889 = vmatprep.subr.mxu0 %v15947_v31 }
 0xd5a   :  { %9855 = vmatpush3.msra.mxu1 %v15306_v22  ;;  %9870 = vmatprep.mubr.msk.f32.mxu1 %vm10179_vm5, %v15947_v31  ;;  %v9807_v5 = vpop.f32.mrf.mxu1 }
 0xd5b   :  { %9856 = vmatprep.subr.mxu1 %v15947_v31  ;;  %9890 = vmatpush3.msra.mxu0 %v7730_v29  ;;  %v9196_v29 = vld [vmem:[%s15629_s13] ss:$0 sm:$0xff] }
 0xd5c   :  { %9857 = vmatpush3.msra.mxu1 %v15308_v62  ;;  %9891 = vmatprep.subr.mxu0 %v15947_v31 }
 0xd5d   :  { %9858 = vmatprep.subr.mxu1 %v15947_v31  ;;  %9892 = vmatpush3.msra.mxu0 %v7729_v4 }
 0xd5e   :  { %9859 = vmatpush3.msra.mxu1 %v15312_v3  ;;  %9915 = vmatprep.subr.mxu0 %v15947_v31 }
 0xd5f   :  { %9860 = vmatprep.subr.mxu1 %v15947_v31 }
 0xd60   :  { %9861 = vmatpush3.msra.mxu1 %v15316_v39 }
 0xd61   :  { %9862 = vmatprep.subr.mxu1 %v15947_v31 }
 0xd62   :  { %9863 = vmatpush3.msra.mxu1 %v15320_v19 }
 0xd63   :  { %9864 = vmatprep.subr.mxu1 %v15947_v31 }
 0xd64   :  { %9865 = vmatpush3.msra.mxu1 %v15324_v15 }
 0xd65   :  { %9866 = vmatprep.subr.mxu1 %v15947_v31 }
 0xd66   :  { %9867 = vmatpush3.msra.mxu1 %v15328_v37 }
 0xd67   :  { %9868 = vmatprep.subr.mxu1 %v15947_v31 }
 0xd68   :  { %9869 = vmatpush3.msra.mxu1 %v15332_v49 }
 0xd69   :  { %9871 = vmatmul.mubr.msk.f32.vlgmr.msra.gmra.mxu1 %vm7336_vm6, %v9187_v7  ;;  %9896 = vmatprep.subr.mxu1 %v15947_v31 }
 0xd6a   :  { %9897 = vmatpush3.msra.mxu1 %v15306_v22  ;;  %9912 = vmatprep.mubr.msk.f32.mxu1 %vm10179_vm5, %v15947_v31 }
 0xd6b   :  { %9898 = vmatprep.subr.mxu1 %v15947_v31 }
 0xd6c   :  { %9899 = vmatpush3.msra.mxu1 %v15308_v62 }
 0xd6d   :  { %9900 = vmatprep.subr.mxu1 %v15947_v31 }
 0xd6e   :  { %9901 = vmatpush3.msra.mxu1 %v15312_v3 }
 0xd6f   :  { %9902 = vmatprep.subr.mxu1 %v15947_v31 }
 0xd70   :  { %9903 = vmatpush3.msra.mxu1 %v15316_v39 }
 0xd71   :  { %9904 = vmatprep.subr.mxu1 %v15947_v31 }
 0xd72   :  { %9905 = vmatpush3.msra.mxu1 %v15320_v19 }
 0xd73   :  { %9906 = vmatprep.subr.mxu1 %v15947_v31 }
 0xd74   :  { %9907 = vmatpush3.msra.mxu1 %v15324_v15 }
 0xd75   :  { %9908 = vmatprep.subr.mxu1 %v15947_v31 }
 0xd76   :  { %9909 = vmatpush3.msra.mxu1 %v15328_v37 }
 0xd77   :  { %9910 = vmatprep.subr.mxu1 %v15947_v31 }
 0xd78   :  { %9911 = vmatpush3.msra.mxu1 %v15332_v49 }
 0xd79   :  { %9938 = vmatprep.subr.mxu1 %v15947_v31  ;;  %9913 = vmatmul.mubr.msk.f32.vlgmr.msra.gmra.mxu1 %vm7336_vm6, %v9190_v47 }
 0xd7a   :  { %9939 = vmatpush3.msra.mxu1 %v15306_v22  ;;  %9954 = vmatprep.mubr.msk.f32.mxu1 %vm10179_vm5, %v15947_v31  ;;  %v7891_v22 = vld [vmem:[#allocation6 + $0x100] sm:$0xff] }
 0xd7b   :  { %9940 = vmatprep.subr.mxu1 %v15947_v31 }
 0xd7c   :  { %9941 = vmatpush3.msra.mxu1 %v15308_v62  ;;  %v7889_v62 = vld [vmem:[#allocation6 + $0xf0] sm:$0xff] }
 0xd7d   :  { %9942 = vmatprep.subr.mxu1 %v15947_v31 }
 0xd7e   :  { %9943 = vmatpush3.msra.mxu1 %v15312_v3 }
 0xd7f   :  { %9944 = vmatprep.subr.mxu1 %v15947_v31 }
 0xd80   :  { %9945 = vmatpush3.msra.mxu1 %v15316_v39  ;;  %v8058_v39 = vld [vmem:[#allocation6 + $0x188] sm:$0xff] }
 0xd81   :  { %9946 = vmatprep.subr.mxu1 %v15947_v31 }
 0xd82   :  { %9947 = vmatpush3.msra.mxu1 %v15320_v19  ;;  %v8057_v19 = vld [vmem:[#allocation6 + $0x180] sm:$0xff] }
 0xd83   :  { %9948 = vmatprep.subr.mxu1 %v15947_v31 }
 0xd84   :  { %9949 = vmatpush3.msra.mxu1 %v15324_v15  ;;  %v8056_v15 = vld [vmem:[#allocation6 + $0x178] sm:$0xff] }
 0xd85   :  { %9950 = vmatprep.subr.mxu1 %v15947_v31 }
 0xd86   :  { %9951 = vmatpush3.msra.mxu1 %v15328_v37  ;;  %v8055_v37 = vld [vmem:[#allocation6 + $0x170] sm:$0xff] }
 0xd87   :  { %9952 = vmatprep.subr.mxu1 %v15947_v31 }
 0xd88   :  { %9953 = vmatpush3.msra.mxu1 %v15332_v49  ;;  %v8054_v49 = vld [vmem:[#allocation6 + $0x168] sm:$0xff] }
 0xd89   :  { %9955 = vmatmul.mubr.msk.f32.vlgmr.msra.gmra.mxu1 %vm7336_vm6, %v9193_v2  ;;  %9980 = vmatprep.subr.mxu1 %v15947_v31 }
 0xd8a   :  { %10010 = vmatprep.mubr.msk.f32.mxu1 %vm10179_vm5, %v15947_v31  ;;  %9981 = vmatpush3.msra.mxu1 %v8156_v11 }
 0xd8b   :  { %9982 = vmatprep.subr.mxu1 %v15947_v31 }
 0xd8c   :  { %9983 = vmatpush3.msra.mxu1 %v8155_v41 }
 0xd8d   :  { %9984 = vmatprep.subr.mxu1 %v15947_v31 }
 0xd8e   :  { %9985 = vmatpush3.msra.mxu1 %v8154_v54 }
 0xd8f   :  { %9986 = vmatprep.subr.mxu1 %v15947_v31 }
 0xd90   :  { %9987 = vmatpush3.msra.mxu1 %v8153_v0 }
 0xd91   :  { %9988 = vmatprep.subr.mxu1 %v15947_v31 }
 0xd92   :  { %9989 = vmatpush3.msra.mxu1 %v8152_v17 }
 0xd93   :  { %9990 = vmatprep.subr.mxu1 %v15947_v31 }
 0xd94   :  { %9991 = vmatpush3.msra.mxu1 %v8151_v24 }
 0xd95   :  { %9992 = vmatprep.subr.mxu1 %v15947_v31 }
 0xd96   :  { %9993 = vmatpush3.msra.mxu1 %v8150_v60 }
 0xd97   :  { %9994 = vmatprep.subr.mxu1 %v15947_v31 }
 0xd98   :  { %9995 = vmatpush3.msra.mxu1 %v8149_v13 }
 0xd99   :  { %9996 = vmatprep.subr.mxu1 %v15947_v31 }
 0xd9a   :  { %9997 = vmatpush3.msra.mxu1 %v8148_v20 }
 0xd9b   :  { %9998 = vmatprep.subr.mxu1 %v15947_v31 }
 0xd9c   :  { %9999 = vmatpush3.msra.mxu1 %v8147_v8 }
 0xd9d   :  { %10000 = vmatprep.subr.mxu1 %v15947_v31 }
 0xd9e   :  { %10001 = vmatpush3.msra.mxu1 %v8146_v48 }
 0xd9f   :  { %10002 = vmatprep.subr.mxu1 %v15947_v31 }
 0xda0   :  { %10003 = vmatpush3.msra.mxu1 %v8145_v6 }
 0xda1   :  { %10004 = vmatprep.subr.mxu1 %v15947_v31 }
 0xda2   :  { %10005 = vmatpush3.msra.mxu1 %v8144_v50 }
 0xda3   :  { %10006 = vmatprep.subr.mxu1 %v15947_v31 }
 0xda4   :  { %10007 = vmatpush3.msra.mxu1 %v8143_v16 }
 0xda5   :  { %10008 = vmatprep.subr.mxu1 %v15947_v31 }
 0xda6   :  { %10009 = vmatpush3.msra.mxu1 %v8142_v23 }
 0xe09   :  { %v7649_v12 = vpop.f32.mrf.mxu0 }
 0xe0b   :  { %v9853_v35 = vpop.f32.mrf.mxu0 }
 0xe19   :  { %v7576_v28 = vpop.f32.mrf.mxu1 }
 0xe1a   :  { %v15468_v61 = vadd.f32 %v7649_v12, %v7576_v28 }
 0xe1b   :  { %v9830_v10 = vpop.f32.mrf.mxu1 }
 0xe1c   :  { %v8241_v10 = vld [vmem:[%s15632_s16 + $0x10] sm:$0xff] }
 0xe29   :  { %v7724_v51 = vpop.f32.mrf.mxu1 }
 0xe2a   :  { %9894 = vmatmul.mubr.msk.f32.vlgmr.msra.gmra.mxu0 %vm7506_vm7, %v7724_v51  ;;  %v9197_v51 = vld [vmem:[%s15631_s15] ss:$0 sm:$0xff] }
 0xe2b   :  { %9916 = vmatpush3.msra.mxu0 %v7898_v9  ;;  %v9872_v63 = vpop.f32.mrf.mxu1  ;;  %9935 = vmatprep.mubr.msk.f32.mxu0 %vm10179_vm5, %v15947_v31  ;;  %v8239_v9 = vld [vmem:[%s15632_s16] sm:$0xff] }
 0xe2c   :  { %9917 = vmatprep.subr.mxu0 %v15947_v31 }
 0xe2d   :  { %9918 = vmatpush3.msra.mxu0 %v7897_v30 }
 0xe2e   :  { %9919 = vmatprep.subr.mxu0 %v15947_v31 }
 0xe2f   :  { %9920 = vmatpush3.msra.mxu0 %v7896_v38 }
 0xe30   :  { %9921 = vmatprep.subr.mxu0 %v15947_v31 }
 0xe31   :  { %9922 = vmatpush3.msra.mxu0 %v7895_v26 }
 0xe32   :  { %9923 = vmatprep.subr.mxu0 %v15947_v31 }
 0xe33   :  { %9924 = vmatpush3.msra.mxu0 %v7894_v40  ;;  %v9199_v40 = vld [vmem:[%s15633_s17] ss:$0 sm:$0xff] }
 0xe34   :  { %9925 = vmatprep.subr.mxu0 %v15947_v31 }
 0xe35   :  { %9926 = vmatpush3.msra.mxu0 %v7893_v59 }
 0xe36   :  { %9927 = vmatprep.subr.mxu0 %v15947_v31 }
 0xe37   :  { %9928 = vmatpush3.msra.mxu0 %v7892_v42 }
 0xe38   :  { %9929 = vmatprep.subr.mxu0 %v15947_v31 }
 0xe39   :  { %9930 = vmatpush3.msra.mxu0 %v7891_v22  ;;  %v7884_v55 = vpop.f32.mrf.mxu1 }
 0xe3a   :  { %9931 = vmatprep.subr.mxu0 %v15947_v31 }
 0xe3b   :  { %9932 = vmatpush3.msra.mxu0 %v7890_v57  ;;  %v9914_v3 = vpop.f32.mrf.mxu1 }
 0xe3c   :  { %9933 = vmatprep.subr.mxu0 %v15947_v31 }
 0xe3d   :  { %9934 = vmatpush3.msra.mxu0 %v7889_v62 }
 0xe3e   :  { %9936 = vmatmul.mubr.msk.f32.vlgmr.msra.gmra.mxu0 %vm7506_vm7, %v7884_v55  ;;  %9957 = vmatprep.subr.mxu0 %v15947_v31 }
 0xe3f   :  { %9958 = vmatpush3.msra.mxu0 %v8058_v39  ;;  %9977 = vmatprep.mubr.msk.f32.mxu0 %vm10179_vm5, %v15947_v31 }
 0xe40   :  { %9959 = vmatprep.subr.mxu0 %v15947_v31 }
 0xe41   :  { %9960 = vmatpush3.msra.mxu0 %v8057_v19 }
 0xe42   :  { %9961 = vmatprep.subr.mxu0 %v15947_v31 }
 0xe43   :  { %9962 = vmatpush3.msra.mxu0 %v8056_v15 }
 0xe44   :  { %9963 = vmatprep.subr.mxu0 %v15947_v31 }
 0xe45   :  { %9964 = vmatpush3.msra.mxu0 %v8055_v37 }
 0xe46   :  { %9965 = vmatprep.subr.mxu0 %v15947_v31 }
 0xe47   :  { %9966 = vmatpush3.msra.mxu0 %v8054_v49 }
 0xe48   :  { %9967 = vmatprep.subr.mxu0 %v15947_v31 }
 0xe49   :  { %9968 = vmatpush3.msra.mxu0 %v8053_v21  ;;  %v8044_v18 = vpop.f32.mrf.mxu1 }
 0xe4a   :  { %9969 = vmatprep.subr.mxu0 %v15947_v31 }
 0xe4b   :  { %9970 = vmatpush3.msra.mxu0 %v8052_v34  ;;  %v9956_v46 = vpop.f32.mrf.mxu1 }
 0xe4c   :  { %9971 = vmatprep.subr.mxu0 %v15947_v31 }
 0xe4d   :  { %9972 = vmatpush3.msra.mxu0 %v8051_v52 }
 0xe4e   :  { %9973 = vmatprep.subr.mxu0 %v15947_v31 }
 0xe4f   :  { %9974 = vmatpush3.msra.mxu0 %v8050_v53 }
 0xe50   :  { %9975 = vmatprep.subr.mxu0 %v15947_v31 }
 0xe51   :  { %9976 = vmatpush3.msra.mxu0 %v8049_v36 }
 0xe52   :  { %9978 = vmatmul.mubr.msk.f32.vlgmr.msra.gmra.mxu0 %vm7506_vm7, %v8044_v18  ;;  %10013 = vmatprep.subr.mxu0 %v15947_v31 }
 0xe53   :  { %10035 = vmatprep.mubr.msk.f32.mxu0 %vm10179_vm5, %v15947_v31  ;;  %10014 = vmatpush3.msk.msra.mxu0 %vm5037_vm2, %v8249_v45 }
 0xe54   :  { %10015 = vmatprep.subr.mxu0 %v15947_v31 }
 0xe55   :  { %10016 = vmatpush3.msra.mxu0 %v8248_v58 }
 0xe56   :  { %10017 = vmatprep.subr.mxu0 %v15947_v31 }
 0xe57   :  { %10018 = vmatpush3.msra.mxu0 %v8247_v33 }
 0xe58   :  { %10019 = vmatprep.subr.mxu0 %v15947_v31 }
 0xe59   :  { %10020 = vmatpush3.msra.mxu0 %v8246_v32 }
 0xe5a   :  { %10021 = vmatprep.subr.mxu0 %v15947_v31 }
 0xe5b   :  { %10022 = vmatpush3.msra.mxu0 %v8245_v14 }
 0xe5c   :  { %10023 = vmatprep.subr.mxu0 %v15947_v31 }
 0xe5d   :  { %10024 = vmatpush3.msra.mxu0 %v8244_v56 }
 0xe5e   :  { %10025 = vmatprep.subr.mxu0 %v15947_v31 }
 0xe5f   :  { %10026 = vmatpush3.msra.mxu0 %v8243_v1 }
 0xe60   :  { %10027 = vmatprep.subr.mxu0 %v15947_v31 }
 0xe61   :  { %10028 = vmatpush3.msra.mxu0 %v8242_v25 }
 0xe62   :  { %10029 = vmatprep.subr.mxu0 %v15947_v31 }
 0xe63   :  { %10030 = vmatpush3.msra.mxu0 %v8241_v10 }
 0xe64   :  { %10031 = vmatprep.subr.mxu0 %v15947_v31 }
 0xeea   :  { %v7808_v43 = vpop.f32.mrf.mxu0 }
 0xeeb   :  { %v7812_v7 = vadd.f32 %v7808_v43, %v15468_v61  ;;  %v8240_v61 = vld [vmem:[%s15632_s16 + $0x8] sm:$0xff] }
 0xeec   :  { %v9895_v44 = vpop.f32.mrf.mxu0  ;;  %10032 = vmatpush3.msra.mxu0 %v8240_v61 }
 0xeed   :  { %10033 = vmatprep.subr.mxu0 %v15947_v31 }
 0xeee   :  { %10034 = vmatpush3.msra.mxu0 %v8239_v9 }
 0xefe   :  { %v7968_v27 = vpop.f32.mrf.mxu0 }
 0xeff   :  { %v7972_v47 = vadd.f32 %v7968_v27, %v7812_v7 }
 0xf00   :  { %v9937_v5 = vpop.f32.mrf.mxu0 }
 0xf12   :  { %v8128_v2 = vpop.f32.mrf.mxu0 }
 0xf13   :  { %v8132_v4 = vadd.f32 %v8128_v2, %v7972_v47 }
 0xf14   :  { %v9979_v12 = vpop.f32.mrf.mxu0 }
 0xf15   :  { %v8140_v35 = vadd.f32 %v9196_v29, %v8132_v4 }
 0xf17   :  { %v8141_v28 = vmax.f32 %v8140_v35, 0.0 }
 0xf19   :  { %10011 = vmatmul.mubr.msk.f32.vlgmr.msra.gmra.mxu1 %vm8164_vm8, %v8141_v28 }
 0xfd9   :  { %v8234_v30 = vpop.f32.mrf.mxu1 }
 0xfda   :  { %v8235_v63 = vadd.f32 %v9197_v51, %v8234_v30 }
 0xfdb   :  { %v10012_v38 = vpop.f32.mrf.mxu1 }
 0xfdc   :  { %v8238_v26 = vmax.f32 %v8235_v63, 0.0 }
 0xfde   :  { %10036 = vmatmul.mubr.msk.f32.vlgmr.msra.gmra.mxu0 %vm4988_vm3, %v8238_v26 }
0x109e   :  { %v8329_v31 = vpop.f32.mrf.mxu0 }
0x109f   :  { %v8330_v59 = vadd.f32 %v9199_v40, %v8329_v31 }
0x10a0   :  { %v10037_v42 = vpop.f32.mrf.mxu0 }
0x10a1   :  { %8333 = vst [vmem:[%s15634_s18] sm:$0xff] %v8330_v59 }
0x10a2   :  { %8338 = vsyncpa [#allocation3], 1 }
0x10a3   :  { %8339 = vsyncpa [#allocation5], 1 }

</bundles_post_ra>
